<compile_context>
chip_gen: v7x
topology: tpu7x:2x2x1
jax: 0.10.0
libtpu: 0.0.40
codegen_flags: <defaults>
</compile_context>

<pallas_src>
import functools
import math

import jax
import jax.numpy as jnp
from jax.experimental import pallas as pl
from jax.experimental.pallas import tpu as pltpu


# ----------------------------------------------------------------------------
# Tile targets (auto-shrink for small dims).
# ----------------------------------------------------------------------------
TILE_Q = 512          # flash-attention query tile
TILE_KV = 512         # flash-attention key/value tile
TILE_INTER = 256      # MLP intermediate-dim tile
TILE_K_OPROJ = 512    # o-proj reduction (K) tile -- multiple of the 256-deep MXU
VMEM_LIMIT = 64 * 1024 * 1024   # <= physical VMEM on v5e/v6e/v7x


def _row_tile_target(dtype):
    # 512-row tiles for <=2-byte activations (per-step VMEM ~40 MiB at H=4096,
    # v7x-safe); 256 for f32 so the f32 accumulators still fit comfortably.
    return 512 if jnp.dtype(dtype).itemsize <= 2 else 256


def _pick_tile(dim, target):
    """Largest tile <= target that evenly divides dim (falls back to full dim).
    TODO(synk): assert instead of silently falling back for odd large dims."""
    if dim <= target:
        return dim
    t = target
    while t >= 8 and dim % t != 0:
        t //= 2
    return t if (t >= 8 and dim % t == 0) else dim


# ----------------------------------------------------------------------------
# Kernel A: RMSNorm (cached) + fused head-group QKV projection + RoPE (roll)
# ----------------------------------------------------------------------------
def _rmsnorm_qkv_rope_kernel(x_ref, wn_ref, wqkv_ref, cos_ref, sin_ref,
                             q_ref, k_ref, v_ref, g_ref,
                             *, eps, hd, hg, use_roll):
    gi = pl.program_id(2)

    # RMSNorm computed once per row tile and cached in VMEM scratch (head-group
    # axis is innermost / "arbitrary"); not redone per head.
    @pl.when(gi == 0)
    def _():
        x32 = x_ref[...].astype(jnp.float32)
        var = jnp.mean(x32 * x32, axis=-1, keepdims=True)
        g_ref[...] = (x32 * jax.lax.rsqrt(var + eps)
                      * wn_ref[...].astype(jnp.float32)).astype(g_ref.dtype)

    g = g_ref[...]
    # One MXU matmul per head group: N = 3*hg*hd (= 768 for hd=128, hg=2 ->
    # multiple of the 256-wide MXU output on v6e/v7x).
    qkv = jnp.dot(g, wqkv_ref[...], preferred_element_type=jnp.float32)

    cos = cos_ref[...].astype(jnp.float32)
    sin = sin_ref[...].astype(jnp.float32)   # sign-folded: first half negated

    def rope(t):
        if use_roll:
            rot = pltpu.roll(t, shift=hd // 2, axis=1)   # XLU slot, free under MXU
        else:
            rot = jnp.concatenate([t[:, hd // 2:], t[:, :hd // 2]], axis=-1)
        return t * cos + rot * sin

    for h in range(hg):   # static, tiny unrolled loop over heads in the group
        q_h = qkv[:, h * hd:(h + 1) * hd]
        k_h = qkv[:, (hg + h) * hd:(hg + h + 1) * hd]
        v_h = qkv[:, (2 * hg + h) * hd:(2 * hg + h + 1) * hd]
        q_ref[h, :, :] = rope(q_h).astype(q_ref.dtype)   # 1/sqrt(hd) folded into Wq
        k_ref[h, :, :] = rope(k_h).astype(k_ref.dtype)
        v_ref[h, :, :] = v_h.astype(v_ref.dtype)


def rmsnorm_qkv_rope(x, rn_w, wqkv_groups, cos, sin_folded, *, eps):
    bs, sl, hs = x.shape
    ng, _, w3 = wqkv_groups.shape
    hd = cos.shape[-1]
    hg = w3 // (3 * hd)
    nh = ng * hg
    use_roll = (hd % 128 == 0)   # lane-aligned rotate-half; concat fallback otherwise
    tsl = _pick_tile(sl, _row_tile_target(x.dtype))
    grid = (bs, sl // tsl, ng)   # head-group innermost so the RMSNorm scratch is reused
    out_sd = jax.ShapeDtypeStruct((bs, nh, sl, hd), x.dtype)
    head_out = pl.BlockSpec((None, hg, tsl, hd), lambda b, si, gi: (b, gi, si, 0))
    return pl.pallas_call(
        functools.partial(_rmsnorm_qkv_rope_kernel, eps=eps, hd=hd, hg=hg,
                          use_roll=use_roll),
        out_shape=(out_sd, out_sd, out_sd),
        grid=grid,
        in_specs=[
            pl.BlockSpec((None, tsl, hs), lambda b, si, gi: (b, si, 0)),
            pl.BlockSpec((1, hs), lambda b, si, gi: (0, 0)),
            pl.BlockSpec((None, hs, w3), lambda b, si, gi: (gi, 0, 0)),
            pl.BlockSpec((tsl, hd), lambda b, si, gi: (si, 0)),
            pl.BlockSpec((tsl, hd), lambda b, si, gi: (si, 0)),
        ],
        out_specs=[head_out, head_out, head_out],
        scratch_shapes=[pltpu.VMEM((tsl, hs), x.dtype)],   # cached RMSNorm output
        compiler_params=pltpu.CompilerParams(
            dimension_semantics=("parallel", "parallel", "arbitrary"),
            vmem_limit_bytes=VMEM_LIMIT),
    )(x, rn_w.reshape(1, hs), wqkv_groups, cos, sin_folded)


# ----------------------------------------------------------------------------
# Kernel B: causal flash attention (online softmax, kv-tile reduction axis)
# ----------------------------------------------------------------------------
def _flash_attn_kernel(q_ref, k_ref, v_ref, o_ref, m_ref, l_ref, acc_ref, *, tq, tkv):
    qi = pl.program_id(2)
    ki = pl.program_id(3)

    @pl.when(ki == 0)
    def _():
        m_ref[...] = jnp.full(m_ref.shape, -jnp.inf, dtype=m_ref.dtype)
        l_ref[...] = jnp.zeros(l_ref.shape, dtype=l_ref.dtype)
        acc_ref[...] = jnp.zeros(acc_ref.shape, dtype=acc_ref.dtype)

    # Skip kv tiles strictly above the causal diagonal (their DMA is also
    # suppressed by the clamped kv index_map below).
    @pl.when(ki * tkv <= qi * tq + (tq - 1))
    def _():
        q = q_ref[...]
        k = k_ref[...]
        v = v_ref[...]
        # QK^T without transposing k: contract head_dim of both operands.
        s = jax.lax.dot_general(q, k, (((1,), (1,)), ((), ())),
                                preferred_element_type=jnp.float32)  # (tq, tkv)
        row = qi * tq + jax.lax.broadcasted_iota(jnp.int32, (tq, tkv), 0)
        col = ki * tkv + jax.lax.broadcasted_iota(jnp.int32, (tq, tkv), 1)
        s = jnp.where(row >= col, s, -jnp.inf)

        m_prev = m_ref[...]
        m_new = jnp.maximum(m_prev, jnp.max(s, axis=-1, keepdims=True))
        alpha = jnp.exp(m_prev - m_new)
        p = jnp.exp(s - m_new)
        l_ref[...] = alpha * l_ref[...] + jnp.sum(p, axis=-1, keepdims=True)
        acc_ref[...] = alpha * acc_ref[...] + jnp.dot(
            p.astype(v.dtype), v, preferred_element_type=jnp.float32)
        m_ref[...] = m_new

    @pl.when(ki == pl.num_programs(3) - 1)
    def _():
        # Safe for pure causal attention (diagonal always present -> l >= 1).
        o_ref[...] = (acc_ref[...] *
                      pl.reciprocal(l_ref[...], approx=True)).astype(o_ref.dtype)


def flash_attention(q, k, v):
    # q/k/v: (bs, nh, sl, hd); the 1/sqrt(hd) scale is already folded into q.
    bs, nh, sl, hd = q.shape
    tq = _pick_tile(sl, TILE_Q)
    tkv = _pick_tile(sl, TILE_KV)
    grid = (bs, nh, sl // tq, sl // tkv)

    def kv_index(b, h, qi, ki):
        # Clamp so causally-skipped kv tiles alias an already-fetched block
        # (pl.when skips the compute; this also suppresses the wasted DMA).
        last_needed = (qi * tq + tq - 1) // tkv
        return (b, h, jnp.minimum(ki, last_needed), 0)

    q_spec = pl.BlockSpec((None, None, tq, hd), lambda b, h, qi, ki: (b, h, qi, 0))
    kv_spec = pl.BlockSpec((None, None, tkv, hd), kv_index)

    lane_dense = (hd % 128 == 0) or (nh == 1)
    if lane_dense:
        # Lane-dense (bs, sl, H) output: head h lands at columns [h*hd, (h+1)*hd).
        out_shape = jax.ShapeDtypeStruct((bs, sl, nh * hd), q.dtype)
        out_spec = pl.BlockSpec((None, tq, hd), lambda b, h, qi, ki: (b, qi, h))
    else:
        # Fallback for unaligned head dims: per-head layout + XLA transpose after.
        out_shape = jax.ShapeDtypeStruct((bs, nh, sl, hd), q.dtype)
        out_spec = pl.BlockSpec((None, None, tq, hd), lambda b, h, qi, ki: (b, h, qi, 0))

    out = pl.pallas_call(
        functools.partial(_flash_attn_kernel, tq=tq, tkv=tkv),
        out_shape=out_shape,
        grid=grid,
        in_specs=[q_spec, kv_spec, kv_spec],
        out_specs=out_spec,
        scratch_shapes=[
            pltpu.VMEM((tq, 1), jnp.float32),   # running max
            pltpu.VMEM((tq, 1), jnp.float32),   # running denom
            pltpu.VMEM((tq, hd), jnp.float32),  # output accumulator
        ],
        compiler_params=pltpu.CompilerParams(
            dimension_semantics=("parallel", "parallel", "parallel", "arbitrary"),
            vmem_limit_bytes=VMEM_LIMIT),
    )(q, k, v)
    if not lane_dense:
        out = out.transpose(0, 2, 1, 3).reshape(bs, sl, nh * hd)
    return out


# ----------------------------------------------------------------------------
# Kernel C: output projection (K-tiled matmul over heads) + residual add
# ----------------------------------------------------------------------------
def _oproj_residual_kernel(attn_ref, wo_ref, x_ref, o_ref, acc_ref):
    kk = pl.program_id(1)

    @pl.when(kk == 0)
    def _():
        acc_ref[...] = jnp.zeros(acc_ref.shape, dtype=acc_ref.dtype)

    acc_ref[...] += jnp.dot(attn_ref[...], wo_ref[...],
                            preferred_element_type=jnp.float32)

    @pl.when(kk == pl.num_programs(1) - 1)
    def _():
        o_ref[...] = (x_ref[...].astype(jnp.float32) + acc_ref[...]).astype(o_ref.dtype)


def oproj_residual(attn, wo, x_res):
    # attn: (bs, sl, H) lane-dense flash output; wo: (H, H); x_res: (bs, sl, H)
    bs, sl, hs = x_res.shape
    M = bs * sl
    a2 = attn.reshape(M, hs)     # free, contiguous reshape
    x2 = x_res.reshape(M, hs)
    tm = _pick_tile(M, _row_tile_target(x_res.dtype))
    tk = _pick_tile(hs, TILE_K_OPROJ)   # K per reduction step (>=256 on v6e/v7x)
    grid = (M // tm, hs // tk)
    out = pl.pallas_call(
        _oproj_residual_kernel,
        out_shape=jax.ShapeDtypeStruct((M, hs), x_res.dtype),
        grid=grid,
        in_specs=[
            pl.BlockSpec((tm, tk), lambda m, k: (m, k)),
            pl.BlockSpec((tk, hs), lambda m, k: (k, 0)),
            pl.BlockSpec((tm, hs), lambda m, k: (m, 0)),
        ],
        out_specs=pl.BlockSpec((tm, hs), lambda m, k: (m, 0)),
        scratch_shapes=[pltpu.VMEM((tm, hs), jnp.float32)],
        compiler_params=pltpu.CompilerParams(
            dimension_semantics=("parallel", "arbitrary"),
            vmem_limit_bytes=VMEM_LIMIT),
    )(a2, wo, x2)
    return out.reshape(bs, sl, hs)


# ----------------------------------------------------------------------------
# Kernel D: RMSNorm (cached) + SwiGLU MLP + residual (intermediate-dim reduction)
# ----------------------------------------------------------------------------
def _rmsnorm_mlp_residual_kernel(x_ref, wn_ref, gw_ref, uw_ref, dw_ref, o_ref,
                                 acc_ref, g_ref, *, eps):
    i = pl.program_id(1)

    # RMSNorm hoisted out of the intermediate-dim reduction loop: computed once
    # per row tile, cached in VMEM scratch, reused for every i > 0.
    @pl.when(i == 0)
    def _():
        x32 = x_ref[...].astype(jnp.float32)
        var = jnp.mean(x32 * x32, axis=-1, keepdims=True)
        g_ref[...] = (x32 * jax.lax.rsqrt(var + eps)
                      * wn_ref[...].astype(jnp.float32)).astype(g_ref.dtype)
        acc_ref[...] = jnp.zeros(acc_ref.shape, dtype=acc_ref.dtype)

    g = g_ref[...]
    gate = jnp.dot(g, gw_ref[...], preferred_element_type=jnp.float32)
    up = jnp.dot(g, uw_ref[...], preferred_element_type=jnp.float32)
    hidden = (gate * (1.0 / (1.0 + jnp.exp(-gate))) * up).astype(g.dtype)  # SwiGLU
    acc_ref[...] += jnp.dot(hidden, dw_ref[...], preferred_element_type=jnp.float32)

    @pl.when(i == pl.num_programs(1) - 1)
    def _():
        o_ref[...] = (x_ref[...].astype(jnp.float32) + acc_ref[...]).astype(o_ref.dtype)


def rmsnorm_mlp_residual(x, rn_w, gate_w, up_w, down_w, *, eps):
    bs, sl, hs = x.shape
    inter = gate_w.shape[1]
    M = bs * sl
    x2 = x.reshape(M, hs)                       # free (contiguous) reshape
    tm = _pick_tile(M, _row_tile_target(x.dtype))
    ti = _pick_tile(inter, TILE_INTER)
    grid = (M // tm, inter // ti)
    out = pl.pallas_call(
        functools.partial(_rmsnorm_mlp_residual_kernel, eps=eps),
        out_shape=jax.ShapeDtypeStruct((M, hs), x.dtype),
        grid=grid,
        in_specs=[
            pl.BlockSpec((tm, hs), lambda m, i: (m, 0)),
            pl.BlockSpec((1, hs), lambda m, i: (0, 0)),
            pl.BlockSpec((hs, ti), lambda m, i: (0, i)),
            pl.BlockSpec((hs, ti), lambda m, i: (0, i)),
            pl.BlockSpec((ti, hs), lambda m, i: (i, 0)),
        ],
        out_specs=pl.BlockSpec((tm, hs), lambda m, i: (m, 0)),
        scratch_shapes=[pltpu.VMEM((tm, hs), jnp.float32),   # down-proj accumulator
                        pltpu.VMEM((tm, hs), x.dtype)],      # cached RMSNorm output
        compiler_params=pltpu.CompilerParams(
            dimension_semantics=("parallel", "arbitrary"),
            vmem_limit_bytes=VMEM_LIMIT),
    )(x2, rn_w.reshape(1, hs), gate_w, up_w, down_w)
    return out.reshape(bs, sl, hs)


# ----------------------------------------------------------------------------
# Parameter prep (one-time) and Block forward
# ----------------------------------------------------------------------------
def precompute_cos_sin(max_len, dim):
    inv_freq = 1.0 / (10000.0 ** (jnp.arange(0, dim, 2, dtype=jnp.float32) / dim))
    t = jnp.arange(max_len, dtype=jnp.float32)
    freqs = jnp.outer(t, inv_freq)
    emb = jnp.concatenate([freqs, freqs], axis=-1)
    return jnp.cos(emb), jnp.sin(emb)


def prepare_block_params(raw, cfg):
    """One-time weight re-layout for the fused kernels."""
    hs = cfg["hidden_size"]
    nh = cfg["num_attention_heads"]
    hd = hs // nh
    hg = 2 if nh % 2 == 0 else 1      # 2 heads/step -> N = 3*hg*hd MXU-aligned for hd=128
    scale = 1.0 / math.sqrt(hd)

    def group(w):   # (hs, hs) -> (nh//hg, hs, hg*hd): heads grouped along N
        return w.reshape(hs, nh // hg, hg * hd).transpose(1, 0, 2)

    # Per-group column layout: [Q_h0..Q_h{hg-1} | K_h0.. | V_h0..]; attention
    # scale folded into the Q part.
    wqkv = jnp.concatenate([group(raw["q_w"] * scale), group(raw["k_w"]),
                            group(raw["v_w"])], axis=-1)   # (ng, hs, 3*hg*hd)

    sin = raw["sin"]
    # Sign-folded sin so rotate-half becomes a plain half-roll in the kernel.
    sin_folded = jnp.concatenate([-sin[:, :hd // 2], sin[:, hd // 2:]], axis=-1)
    return {
        "rn1_w": raw["rn1_w"], "rn2_w": raw["rn2_w"],
        "wqkv_g": wqkv, "wo": raw["o_w"],
        "gate_w": raw["gate_w"], "up_w": raw["up_w"], "down_w": raw["down_w"],
        "cos": raw["cos"], "sin_folded": sin_folded,
    }


def block_forward(x, params, cfg):
    eps = cfg["rms_norm_eps"]
    sl = x.shape[1]
    cos = params["cos"][:sl]
    sin_f = params["sin_folded"][:sl]
    # x = x + O_proj(Attn(RoPE(QKV(RMSNorm(x)))))
    q, k, v = rmsnorm_qkv_rope(x, params["rn1_w"], params["wqkv_g"], cos, sin_f, eps=eps)
    attn = flash_attention(q, k, v)                    # (bs, sl, H), lane-dense
    x = oproj_residual(attn, params["wo"], x)
    # x = x + Down(SiLU(Gate(RMSNorm(x))) * Up(RMSNorm(x)))
    x = rmsnorm_mlp_residual(x, params["rn2_w"], params["gate_w"],
                             params["up_w"], params["down_w"], eps=eps)
    return x


# ----------------------------------------------------------------------------
# Pure-JAX reference (for correctness check)
# ----------------------------------------------------------------------------
def ref_block(x, params, cfg):
    bs, sl, hs = x.shape
    nh = cfg["num_attention_heads"]
    hd = hs // nh
    eps = cfg["rms_norm_eps"]

    def rms(t, w):
        var = jnp.mean(t * t, axis=-1, keepdims=True)
        return t * jax.lax.rsqrt(var + eps) * w

    def rope(t, cos, sin):  # t: (bs, nh, sl, hd)
        t1, t2 = t[..., : hd // 2], t[..., hd // 2:]
        rot = jnp.concatenate([-t2, t1], axis=-1)
        return t * cos + rot * sin

    g = rms(x, params["rn1_w"])
    q = (g @ params["q_w"]).reshape(bs, sl, nh, hd).transpose(0, 2, 1, 3)
    k = (g @ params["k_w"]).reshape(bs, sl, nh, hd).transpose(0, 2, 1, 3)
    v = (g @ params["v_w"]).reshape(bs, sl, nh, hd).transpose(0, 2, 1, 3)
    cos, sin = params["cos"][:sl], params["sin"][:sl]
    q, k = rope(q, cos, sin), rope(k, cos, sin)
    s = jnp.einsum("bhqd,bhkd->bhqk", q, k) / math.sqrt(hd)
    mask = jnp.tril(jnp.ones((sl, sl), bool))
    s = jnp.where(mask, s, -jnp.inf)
    p = jax.nn.softmax(s, axis=-1)
    a = jnp.einsum("bhqk,bhkd->bhqd", p, v).transpose(0, 2, 1, 3).reshape(bs, sl, hs)
    x = x + a @ params["o_w"]

    g2 = rms(x, params["rn2_w"])
    gate = g2 @ params["gate_w"]
    up = g2 @ params["up_w"]
    h = (gate * jax.nn.sigmoid(gate)) * up
    x = x + h @ params["down_w"]
    return x


# ----------------------------------------------------------------------------
# Main
# ----------------------------------------------------------------------------
if __name__ == "__main__":
    # Small-ish shapes, but head_dim=128 / seq=1024 so the lane-aligned RoPE-roll,
    # multi-tile flash attention (causal skip + clamped kv DMA) and the reduction
    # loops in kernels A/C/D are all actually exercised.
    cfg = dict(
        hidden_size=512,
        num_attention_heads=4,
        intermediate_size=1024,
        rms_norm_eps=1e-5,
        max_context_length=1024,
        initializer_range=0.02,
        dropout=0.0,   # TODO(synk): dropout is identity (eval-mode semantics)
    )
    bs, sl = 2, 1024
    hs, inter = cfg["hidden_size"], cfg["intermediate_size"]
    hd = hs // cfg["num_attention_heads"]

    key = jax.random.PRNGKey(0)
    ks = jax.random.split(key, 8)
    std = cfg["initializer_range"]
    cos, sin = precompute_cos_sin(cfg["max_context_length"], hd)
    raw = {
        "rn1_w": jnp.ones((hs,), jnp.float32),
        "rn2_w": jnp.ones((hs,), jnp.float32),
        "q_w": jax.random.normal(ks[0], (hs, hs), jnp.float32) * std,
        "k_w": jax.random.normal(ks[1], (hs, hs), jnp.float32) * std,
        "v_w": jax.random.normal(ks[2], (hs, hs), jnp.float32) * std,
        "o_w": jax.random.normal(ks[3], (hs, hs), jnp.float32) * std,
        "gate_w": jax.random.normal(ks[4], (hs, inter), jnp.float32) * std,
        "up_w": jax.random.normal(ks[5], (hs, inter), jnp.float32) * std,
        "down_w": jax.random.normal(ks[6], (inter, hs), jnp.float32) * std,
        "cos": cos,
        "sin": sin,
    }
    params = prepare_block_params(raw, cfg)
    x = jax.random.normal(ks[7], (bs, sl, hs), jnp.float32)

    out = jax.block_until_ready(block_forward(x, params, cfg))
    ref = jax.block_until_ready(ref_block(x, raw, cfg))

    assert out.shape == (bs, sl, hs)
    # Tolerance accounts for f32 flash accumulation order + approx EUP reciprocal.
    assert jnp.allclose(out, ref, atol=2e-3, rtol=2e-3), \
        "Pallas output mismatch vs JAX reference"

    print("KERNEL_OK")
</pallas_src>

<mosaic_0001>
module attributes {stable_mosaic.version = 11 : i64} {
  func.func @_rmsnorm_qkv_rope_kernel(%arg0: i32, %arg1: i32, %arg2: i32, %arg3: memref<1x256x512xf32, #tpu.memory_space<vmem>>, %arg4: memref<1x512xf32, #tpu.memory_space<vmem>>, %arg5: memref<1x512x768xf32, #tpu.memory_space<vmem>>, %arg6: memref<256x128xf32, #tpu.memory_space<vmem>>, %arg7: memref<256x128xf32, #tpu.memory_space<vmem>>, %arg8: memref<1x2x256x128xf32, #tpu.memory_space<vmem>>, %arg9: memref<1x2x256x128xf32, #tpu.memory_space<vmem>>, %arg10: memref<1x2x256x128xf32, #tpu.memory_space<vmem>>, %arg11: memref<256x512xf32, #tpu.memory_space<vmem>>) attributes {dimension_semantics = [#tpu.dimension_semantics<parallel>, #tpu.dimension_semantics<parallel>, #tpu.dimension_semantics<arbitrary>], iteration_bounds = array<i64: 2, 4, 2>, scalar_prefetch = 0 : i64, scratch_operands = 1 : i64, tpu.core_type = #tpu.core_type<tc>, window_params = [{transform_indices = @transform_0, window_bounds = array<i64: 1, 256, 512>}, {pipeline_mode = #tpu.pipeline_mode<synchronous>, transform_indices = @transform_1, window_bounds = array<i64: 1, 512>}, {transform_indices = @transform_2, window_bounds = array<i64: 1, 512, 768>}, {transform_indices = @transform_3, window_bounds = array<i64: 256, 128>}, {transform_indices = @transform_4, window_bounds = array<i64: 256, 128>}, {transform_indices = @transform_5, window_bounds = array<i64: 1, 2, 256, 128>}, {transform_indices = @transform_6, window_bounds = array<i64: 1, 2, 256, 128>}, {transform_indices = @transform_7, window_bounds = array<i64: 1, 2, 256, 128>}]} {
    %c0_i32 = arith.constant 0 : i32
    %0 = arith.cmpi eq, %arg2, %c0_i32 : i32
    %1 = arith.extui %0 : i1 to i32
    %c0_i32_0 = arith.constant 0 : i32
    %2 = arith.cmpi ne, %1, %c0_i32_0 : i32
    scf.if %2 {
      %c0_35 = arith.constant 0 : index
      %c0_36 = arith.constant 0 : index
      %c0_37 = arith.constant 0 : index
      %49 = vector.load %arg3[%c0_35, %c0_36, %c0_37] : memref<1x256x512xf32, #tpu.memory_space<vmem>>, vector<1x256x512xf32>
      %50 = vector.shape_cast %49 : vector<1x256x512xf32> to vector<256x512xf32>
      %51 = arith.mulf %50, %50 : vector<256x512xf32>
      %cst_38 = arith.constant dense<0.000000e+00> : vector<256xf32>
      %52 = vector.multi_reduction <add>, %51, %cst_38 [1] : vector<256x512xf32> to vector<256xf32>
      %53 = vector.shape_cast %52 : vector<256xf32> to vector<256x1xf32>
      %cst_39 = arith.constant 5.120000e+02 : f32
      %54 = vector.broadcast %cst_39 : f32 to vector<256x1xf32>
      %55 = arith.divf %53, %54 : vector<256x1xf32>
      %cst_40 = arith.constant 9.99999974E-6 : f32
      %56 = vector.broadcast %cst_40 : f32 to vector<256x1xf32>
      %57 = arith.addf %55, %56 : vector<256x1xf32>
      %58 = math.rsqrt %57 : vector<256x1xf32>
      %59 = vector.broadcast %58 : vector<256x1xf32> to vector<256x512xf32>
      %60 = arith.mulf %50, %59 : vector<256x512xf32>
      %c0_41 = arith.constant 0 : index
      %c0_42 = arith.constant 0 : index
      %61 = vector.load %arg4[%c0_41, %c0_42] : memref<1x512xf32, #tpu.memory_space<vmem>>, vector<1x512xf32>
      %62 = vector.broadcast %61 : vector<1x512xf32> to vector<256x512xf32>
      %63 = arith.mulf %60, %62 : vector<256x512xf32>
      %c0_43 = arith.constant 0 : index
      %c0_44 = arith.constant 0 : index
      %64 = vector.load %arg11[%c0_43, %c0_44] : memref<256x512xf32, #tpu.memory_space<vmem>>, vector<256x512xf32>
      tpu.vector_store %arg11[%c0_43, %c0_44], %63 {strides = array<i32>} : memref<256x512xf32, #tpu.memory_space<vmem>>, vector<256x512xf32>,
    } else {
    }
    %c0 = arith.constant 0 : index
    %c0_1 = arith.constant 0 : index
    %3 = vector.load %arg11[%c0, %c0_1] : memref<256x512xf32, #tpu.memory_space<vmem>>, vector<256x512xf32>
    %c0_2 = arith.constant 0 : index
    %c0_3 = arith.constant 0 : index
    %c0_4 = arith.constant 0 : index
    %4 = vector.load %arg5[%c0_2, %c0_3, %c0_4] : memref<1x512x768xf32, #tpu.memory_space<vmem>>, vector<1x512x768xf32>
    %5 = vector.shape_cast %4 : vector<1x512x768xf32> to vector<512x768xf32>
    %cst = arith.constant dense<0.000000e+00> : vector<256x768xf32>
    %6 = tpu.matmul %3, %5, %cst {dimension_numbers = #tpu.dot_dimension_numbers<[1], [0], [0], [1], [0, 0, 1, 1], [], []>} : vector<256x512xf32>, vector<512x768xf32>, vector<256x768xf32> -> vector<256x768xf32>
    %c0_5 = arith.constant 0 : index
    %c0_6 = arith.constant 0 : index
    %7 = vector.load %arg6[%c0_5, %c0_6] : memref<256x128xf32, #tpu.memory_space<vmem>>, vector<256x128xf32>
    %c0_7 = arith.constant 0 : index
    %c0_8 = arith.constant 0 : index
    %8 = vector.load %arg7[%c0_7, %c0_8] : memref<256x128xf32, #tpu.memory_space<vmem>>, vector<256x128xf32>
    %9 = vector.extract_strided_slice %6 {offsets = [0, 0], sizes = [256, 128], strides = [1, 1]} : vector<256x768xf32> to vector<256x128xf32>
    %10 = vector.extract_strided_slice %6 {offsets = [0, 256], sizes = [256, 128], strides = [1, 1]} : vector<256x768xf32> to vector<256x128xf32>
    %11 = vector.extract_strided_slice %6 {offsets = [0, 512], sizes = [256, 128], strides = [1, 1]} : vector<256x768xf32> to vector<256x128xf32>
    %c64_i32 = arith.constant 64 : i32
    %12 = tpu.dynamic_rotate %9 by %c64_i32 dim 1 : vector<256x128xf32>, i32 -> vector<256x128xf32>
    %13 = arith.mulf %9, %7 : vector<256x128xf32>
    %14 = arith.mulf %12, %8 : vector<256x128xf32>
    %15 = arith.addf %13, %14 : vector<256x128xf32>
    %c0_9 = arith.constant 0 : index
    %c0_10 = arith.constant 0 : index
    %c0_11 = arith.constant 0 : index
    %c0_12 = arith.constant 0 : index
    %16 = vector.load %arg8[%c0_9, %c0_10, %c0_11, %c0_12] : memref<1x2x256x128xf32, #tpu.memory_space<vmem>>, vector<1x1x256x128xf32>
    %17 = vector.shape_cast %16 : vector<1x1x256x128xf32> to vector<256x128xf32>
    %18 = vector.shape_cast %15 : vector<256x128xf32> to vector<1x1x256x128xf32>
    tpu.vector_store %arg8[%c0_9, %c0_10, %c0_11, %c0_12], %18 {strides = array<i32>} : memref<1x2x256x128xf32, #tpu.memory_space<vmem>>, vector<1x1x256x128xf32>,
    %c64_i32_13 = arith.constant 64 : i32
    %19 = tpu.dynamic_rotate %10 by %c64_i32_13 dim 1 : vector<256x128xf32>, i32 -> vector<256x128xf32>
    %20 = arith.mulf %10, %7 : vector<256x128xf32>
    %21 = arith.mulf %19, %8 : vector<256x128xf32>
    %22 = arith.addf %20, %21 : vector<256x128xf32>
    %c0_14 = arith.constant 0 : index
    %c0_15 = arith.constant 0 : index
    %c0_16 = arith.constant 0 : index
    %c0_17 = arith.constant 0 : index
    %23 = vector.load %arg9[%c0_14, %c0_15, %c0_16, %c0_17] : memref<1x2x256x128xf32, #tpu.memory_space<vmem>>, vector<1x1x256x128xf32>
    %24 = vector.shape_cast %23 : vector<1x1x256x128xf32> to vector<256x128xf32>
    %25 = vector.shape_cast %22 : vector<256x128xf32> to vector<1x1x256x128xf32>
    tpu.vector_store %arg9[%c0_14, %c0_15, %c0_16, %c0_17], %25 {strides = array<i32>} : memref<1x2x256x128xf32, #tpu.memory_space<vmem>>, vector<1x1x256x128xf32>,
    %c0_18 = arith.constant 0 : index
    %c0_19 = arith.constant 0 : index
    %c0_20 = arith.constant 0 : index
    %c0_21 = arith.constant 0 : index
    %26 = vector.load %arg10[%c0_18, %c0_19, %c0_20, %c0_21] : memref<1x2x256x128xf32, #tpu.memory_space<vmem>>, vector<1x1x256x128xf32>
    %27 = vector.shape_cast %26 : vector<1x1x256x128xf32> to vector<256x128xf32>
    %28 = vector.shape_cast %11 : vector<256x128xf32> to vector<1x1x256x128xf32>
    tpu.vector_store %arg10[%c0_18, %c0_19, %c0_20, %c0_21], %28 {strides = array<i32>} : memref<1x2x256x128xf32, #tpu.memory_space<vmem>>, vector<1x1x256x128xf32>,
    %29 = vector.extract_strided_slice %6 {offsets = [0, 128], sizes = [256, 128], strides = [1, 1]} : vector<256x768xf32> to vector<256x128xf32>
    %30 = vector.extract_strided_slice %6 {offsets = [0, 384], sizes = [256, 128], strides = [1, 1]} : vector<256x768xf32> to vector<256x128xf32>
    %31 = vector.extract_strided_slice %6 {offsets = [0, 640], sizes = [256, 128], strides = [1, 1]} : vector<256x768xf32> to vector<256x128xf32>
    %c64_i32_22 = arith.constant 64 : i32
    %32 = tpu.dynamic_rotate %29 by %c64_i32_22 dim 1 : vector<256x128xf32>, i32 -> vector<256x128xf32>
    %33 = arith.mulf %29, %7 : vector<256x128xf32>
    %34 = arith.mulf %32, %8 : vector<256x128xf32>
    %35 = arith.addf %33, %34 : vector<256x128xf32>
    %c0_23 = arith.constant 0 : index
    %c1 = arith.constant 1 : index
    %c0_24 = arith.constant 0 : index
    %c0_25 = arith.constant 0 : index
    %36 = vector.load %arg8[%c0_23, %c1, %c0_24, %c0_25] : memref<1x2x256x128xf32, #tpu.memory_space<vmem>>, vector<1x1x256x128xf32>
    %37 = vector.shape_cast %36 : vector<1x1x256x128xf32> to vector<256x128xf32>
    %38 = vector.shape_cast %35 : vector<256x128xf32> to vector<1x1x256x128xf32>
    tpu.vector_store %arg8[%c0_23, %c1, %c0_24, %c0_25], %38 {strides = array<i32>} : memref<1x2x256x128xf32, #tpu.memory_space<vmem>>, vector<1x1x256x128xf32>,
    %c64_i32_26 = arith.constant 64 : i32
    %39 = tpu.dynamic_rotate %30 by %c64_i32_26 dim 1 : vector<256x128xf32>, i32 -> vector<256x128xf32>
    %40 = arith.mulf %30, %7 : vector<256x128xf32>
    %41 = arith.mulf %39, %8 : vector<256x128xf32>
    %42 = arith.addf %40, %41 : vector<256x128xf32>
    %c0_27 = arith.constant 0 : index
    %c1_28 = arith.constant 1 : index
    %c0_29 = arith.constant 0 : index
    %c0_30 = arith.constant 0 : index
    %43 = vector.load %arg9[%c0_27, %c1_28, %c0_29, %c0_30] : memref<1x2x256x128xf32, #tpu.memory_space<vmem>>, vector<1x1x256x128xf32>
    %44 = vector.shape_cast %43 : vector<1x1x256x128xf32> to vector<256x128xf32>
    %45 = vector.shape_cast %42 : vector<256x128xf32> to vector<1x1x256x128xf32>
    tpu.vector_store %arg9[%c0_27, %c1_28, %c0_29, %c0_30], %45 {strides = array<i32>} : memref<1x2x256x128xf32, #tpu.memory_space<vmem>>, vector<1x1x256x128xf32>,
    %c0_31 = arith.constant 0 : index
    %c1_32 = arith.constant 1 : index
    %c0_33 = arith.constant 0 : index
    %c0_34 = arith.constant 0 : index
    %46 = vector.load %arg10[%c0_31, %c1_32, %c0_33, %c0_34] : memref<1x2x256x128xf32, #tpu.memory_space<vmem>>, vector<1x1x256x128xf32>
    %47 = vector.shape_cast %46 : vector<1x1x256x128xf32> to vector<256x128xf32>
    %48 = vector.shape_cast %31 : vector<256x128xf32> to vector<1x1x256x128xf32>
    tpu.vector_store %arg10[%c0_31, %c1_32, %c0_33, %c0_34], %48 {strides = array<i32>} : memref<1x2x256x128xf32, #tpu.memory_space<vmem>>, vector<1x1x256x128xf32>,
    return
  }
  func.func @transform_0(%arg0: i32, %arg1: i32, %arg2: i32) -> (i32, i32, i32) {
    %c0_i32 = arith.constant 0 : i32
    %c0_i32_0 = arith.constant 0 : i32
    return %arg0, %arg1, %c0_i32 : i32, i32, i32
  }
  func.func @transform_1(%arg0: i32, %arg1: i32, %arg2: i32) -> (i32, i32) {
    %c0_i32 = arith.constant 0 : i32
    %c0_i32_0 = arith.constant 0 : i32
    %c0_i32_1 = arith.constant 0 : i32
    return %c0_i32, %c0_i32_0 : i32, i32
  }
  func.func @transform_2(%arg0: i32, %arg1: i32, %arg2: i32) -> (i32, i32, i32) {
    %c0_i32 = arith.constant 0 : i32
    %c0_i32_0 = arith.constant 0 : i32
    %c0_i32_1 = arith.constant 0 : i32
    return %arg2, %c0_i32, %c0_i32_0 : i32, i32, i32
  }
  func.func @transform_3(%arg0: i32, %arg1: i32, %arg2: i32) -> (i32, i32) {
    %c0_i32 = arith.constant 0 : i32
    %c0_i32_0 = arith.constant 0 : i32
    return %arg1, %c0_i32 : i32, i32
  }
  func.func @transform_4(%arg0: i32, %arg1: i32, %arg2: i32) -> (i32, i32) {
    %c0_i32 = arith.constant 0 : i32
    %c0_i32_0 = arith.constant 0 : i32
    return %arg1, %c0_i32 : i32, i32
  }
  func.func @transform_5(%arg0: i32, %arg1: i32, %arg2: i32) -> (i32, i32, i32, i32) {
    %c0_i32 = arith.constant 0 : i32
    %c0_i32_0 = arith.constant 0 : i32
    return %arg0, %arg2, %arg1, %c0_i32 : i32, i32, i32, i32
  }
  func.func @transform_6(%arg0: i32, %arg1: i32, %arg2: i32) -> (i32, i32, i32, i32) {
    %c0_i32 = arith.constant 0 : i32
    %c0_i32_0 = arith.constant 0 : i32
    return %arg0, %arg2, %arg1, %c0_i32 : i32, i32, i32, i32
  }
  func.func @transform_7(%arg0: i32, %arg1: i32, %arg2: i32) -> (i32, i32, i32, i32) {
    %c0_i32 = arith.constant 0 : i32
    %c0_i32_0 = arith.constant 0 : i32
    return %arg0, %arg2, %arg1, %c0_i32 : i32, i32, i32, i32
  }
}

</mosaic_0001>

<bundles_post_ra>
// kernel: tpu_custom_call.1
= control target key start
LH: loop header
LB: loop body
LE: loop exit
PB: predicated region body
PF: predicated region fallthrough
CT: control target
= control target key end

     0   :  { %s9290_s0 = inlined_call_operand.hbm [shape: f32[2,1024,512], index: 0, kind: input, shape index: {}]   ;;  %s9291_s1 = inlined_call_operand.hbm [shape: f32[1,512], index: 1, kind: input, shape index: {}]   ;;  %s9292_s2 = inlined_call_operand.hbm [shape: f32[2,512,768], index: 2, kind: input, shape index: {}]   ;;  %s9293_s3 = inlined_call_operand.hbm [shape: f32[1024,128], index: 3, kind: input, shape index: {}]   ;;  %s9294_s4 = inlined_call_operand.hbm [shape: f32[1024,128], index: 4, kind: input, shape index: {}]   ;;  %s9295_s5 = inlined_call_operand.hbm [shape: f32[2,4,1024,128], index: 5, kind: output, shape index: {0}]   ;;  %s9296_s6 = inlined_call_operand.hbm [shape: f32[2,4,1024,128], index: 6, kind: output, shape index: {1}]   ;;  %s9297_s7 = inlined_call_operand.hbm [shape: f32[2,4,1024,128], index: 7, kind: output, shape index: {2}]  }
   0x1   :  { %9385 = sst [smem:[#allocation91_spill]] %s9290_s0 }
   0x2   :  { %9386 = sst [smem:[#allocation92_spill]] %s9291_s1 }
   0x3   :  { %9387 = sst [smem:[#allocation93_spill]] %s9292_s2 }
   0x4   :  { %9388 = sst [smem:[#allocation94_spill]] %s9293_s3 }
   0x5   :  { %9389 = sst [smem:[#allocation95_spill]] %s9294_s4 }
   0x6   :  { %9390 = sst [smem:[#allocation96_spill]] %s9295_s5 }
   0x7   :  { %9391 = sst [smem:[#allocation97_spill]] %s9296_s6 }
   0x8   :  { %9392 = sst [smem:[#allocation98_spill]] %s9297_s7 }
   0x9   :  { %13 = vsyncpa [#allocation4], 0 }
   0xa   :  { %15 = vsyncpa [#allocation4 + $0x1], 0 }
   0xb   :  { %16 = vsyncpa [#allocation7], 0 }
   0xc   :  { %17 = vsyncpa [#allocation5], 0 }
   0xd   :  { %19 = vsyncpa [#allocation5 + $0x1], 0 }
   0xe   :  { %20 = vsyncpa [#allocation13], 0 }
   0xf   :  { %22 = vsyncpa [#allocation13 + $0x1], 0  ;;  %s6412_s24 = smov 0   ;;  %s6414_s25 = smov 0  }
  0x10   :  { %s6416_s26 = smov 0   ;;  %s6418_s27 = smov 0  }
  0x11   :  { %s6420_s28 = smov 0   ;;  %s6422_s29 = smov 0  }
  0x12   :  { %s6424_s30 = smov 0   ;;  %s6426_s8 = smov 0  }
  0x13   :  { %s6428_s9 = smov 0   ;;  %s6430_s10 = smov 0  }
  0x14   :  { %s6432_s11 = smov 0   ;;  %s6434_s12 = smov 0  }
  0x15   :  { %s6436_s13 = smov 0   ;;  %s6438_s14 = smov 0  }
  0x16   :  { %s6440_s15 = smov 0   ;;  %s6442_s16 = smov 0  }
  0x17   :  { %s6444_s17 = smov 0   ;;  %s6446_s18 = smov 0  }
  0x18   :  { %s6448_s19 = smov 0  }
  0x19 LB: > { %9393 = sst [smem:[#allocation27_spill]] %s6265_s24  ;;  %s43_s20 = sadd.s32 1, %s6329_s17  ;;  %s6337_s19 = sphi %s6448_s19, %s28_s19   ;;  %s6333_s18 = sphi %s6446_s18, %s9591_s18   ;;  %s6329_s17 = sphi %s6444_s17, %s9589_s17   ;;  %s6325_s16 = sphi %s6442_s16, %s9601_s16   ;;  %s6321_s15 = sphi %s6440_s15, %s9587_s15   ;;  %s6317_s14 = sphi %s6438_s14, %s9586_s14   ;;  %s6313_s13 = sphi %s6436_s13, %s9585_s13   ;;  %s6309_s12 = sphi %s6434_s12, %s9584_s12   ;;  %s6305_s11 = sphi %s6432_s11, %s9600_s11   ;;  %s6301_s10 = sphi %s6430_s10, %s9599_s10   ;;  %s6297_s9 = sphi %s6428_s9, %s9582_s9   ;;  %s6293_s8 = sphi %s6426_s8, %s9598_s8   ;;  %s6289_s30 = sphi %s6424_s30, %s9597_s30   ;;  %s6285_s29 = sphi %s6422_s29, %s9596_s29   ;;  %s6281_s28 = sphi %s6420_s28, %s9595_s28   ;;  %s6277_s27 = sphi %s6418_s27, %s9593_s27   ;;  %s6273_s26 = sphi %s6416_s26, %s9592_s26   ;;  %s6269_s25 = sphi %s6414_s25, %s9590_s25   ;;  %s6265_s24 = sphi %s6412_s24, %s9580_s24  }
  0x1a   : > { %9394 = sst [smem:[#allocation28_spill]] %s6269_s25  ;;  %p63_p0 = scmp.ne.s32.totalorder %s6309_s12, %s6305_s11 }
  0x1b   : > { %9395 = sst [smem:[#allocation29_spill]] %s6297_s9  ;;  %p9307_p1 = scmp.eq.s32.totalorder %s6337_s19, 0 }
  0x1c   : > { %9396 = sst [smem:[#allocation30_spill]] %s6309_s12  ;;  %p9302_p2 = scmp.lt.s32.totalorder %s6337_s19, 16 }
  0x1d   : > { %9397 = sst [smem:[#allocation31_spill]] %s6313_s13  ;;  %s293_s23 = sand.u32 1, %s6337_s19  }
  0x1e   : > { %9398 = sst [smem:[#allocation32_spill]] %s6317_s14  ;;  %p65_p3 = por %p9307_p1, %p63_p0 }
  0x1f   : > { %9399 = sst [smem:[#allocation33_spill]] %s6321_s15  ;;  %s295_s7 = sand.u32 1, %s6309_s12  }
  0x20   : > { %9400 = sst [smem:[#allocation34_spill]] %s6325_s16  ;;  %s4899_s6 = sshll.u32 %s6329_s17, 7 }
  0x21   : > { %9401 = sst [smem:[#allocation35_spill]] %s6329_s17  ;;  %s4762_s5 = sshll.u32 %s295_s7, 10 }
  0x22   : > { %9402 = sst [smem:[#allocation36_spill]] %s6333_s18  ;;  %s4765_s15 = sshll.u32 %s6333_s18, 9 }
  0x23   : > { %s304_s14 = sadd.s32 %s4899_s6, %s4765_s15  ;;  %s297_s1 = scalar_lea.vmem [#allocation3], %s4762_s5 }
  0x24   : > { %s4766_s13 = sshll.u32 %s304_s14, 7  ;;  %s307_s4 = sshll.u32 %s297_s1, 4  ;;  %s6525_s4 = int_to_ptr.vmem [resolvable:$true] %s307_s4 }
  0x25   : > { %s9403_s0 = sld [smem:[#allocation91_spill]]  ;;  %p6529_p4 = pnand %p9302_p2, %p65_p3 }
  0x26   : > { %s6533_s5 = scalar_lea.sflag [#allocation4], %s293_s23 }
  0x27   : > { %p6017_p6 = pneg %p6529_p4 }
  0x2b   : > { %s6523_s21 = scalar_lea.hbm %s9403_s0, %s4766_s13  ;;  %s6020_s24 = scalar_lea.hbm %s9403_s0, 131072 }
  0x2c   : > { %s6015_s1 = scalar_lea.hbm %s6523_s21, 16384  ;;  %p6021_p9 = scmp.lt.u32.totalorder %s6523_s21, %s9403_s0 }
  0x2d   : > { %p6016_p5 = scmp.ne.s32.totalorder %s6523_s21, %s6015_s1  ;;  %p6022_p10 = scmp.lt.u32.totalorder %s6020_s24, %s6015_s1 }
  0x2e   : > { %p6024_p12 = scmp.lt.u32.totalorder %s6015_s1, %s6523_s21 }
  0x2f   : > { %p6018_p7 = pnand %p6017_p6, %p6016_p5  ;;  %p6023_p11 = por %p6022_p10, %p6021_p9 }
  0x31   : > { %p6019_p8 = pneg %p6018_p7  ;;  %p6025_p13 = por %p6024_p12, %p6023_p11 }
  0x33   : > { %p6026_p0 = pnand %p6025_p13, %p6019_p8 }
  0x35   : > { %6029 = shalt.err (!%p6026_p0)
}
  0x36   : > { %s6030_s14 = scalar_lea.vmem %s6525_s4, 16384  ;;  %s6339_s15 = smov [#allocation3]  }
  0x37   : > { %p6031_p3 = scmp.ne.s32.totalorder %s6525_s4, %s6030_s14  ;;  %s6035_s23 = sshll.u32 %s6339_s15, 4  ;;  %s6036_s23 = int_to_ptr.vmem [resolvable:$false] %s6035_s23 }
  0x38   : > { %s6037_s6 = scalar_lea.vmem %s6036_s23, 32768  ;;  %p6038_p2 = scmp.lt.s32.totalorder %s6525_s4, %s6036_s23 }
  0x39   : > { %p6033_p5 = pnand %p6031_p3, %p6017_p6  ;;  %p6039_p9 = scmp.lt.s32.totalorder %s6037_s6, %s6030_s14 }
  0x3b   : > { %p6034_p7 = pneg %p6033_p5  ;;  %p6040_p10 = por %p6039_p9, %p6038_p2 }
  0x3d   : > { %p6041_p11 = pnand %p6040_p10, %p6034_p7 }
  0x3f   : > { %6044 = shalt.err (!%p6041_p11)
}
  0x40   : > { %s6340_s1 = smov 512   ;;  %s6341_s7 = smov 32  }
  0x41   : > { %5527 = dma.hbm_to_vmem [thread:$0]  (!%p6529_p4), %s6523_s21, 16384, %s6525_s4, %s6533_s5, %s6340_s1, %s6340_s1, %s6341_s7  }
  0x42   : > { %s40_s24 = sadd.s32 1, %s6325_s16  ;;  %s103_s25 = sadd.s32 1, %s6297_s9 }
  0x43   : > { %p41_p2 = scmp.ge.s32.totalorder %s40_s24, 2  ;;  %p110_p6 = scmp.ne.s32.totalorder %s6297_s9, %s6293_s8 }
  0x44   : > { %s319_s13 = sand.u32 1, %s6297_s9   ;;  %s5482_s14 = smul.u32 49152, %s6325_s16 }
  0x45   : > { %s9603_s24 = smov (%p41_p2, %s40_s24), 0  ;;  %s9605_s20 = smov (!%p41_p2, %s43_s20), %s6329_s17 }
  0x46   : > { %9405 = sst [smem:[#allocation37_spill]] %s9603_s24  ;;  %s100_s15 = ssub.s32 %s6325_s16, %s9603_s24 }
  0x47   : > { %p6576_p4 = por %p110_p6, %p9307_p1  ;;  %p45_p8 = scmp.ge.s32.totalorder %s9605_s20, 4 }
  0x48   : > { %p101_p12 = scmp.eq.s32.totalorder %s100_s15, 0  ;;  %s5481_s21 = smul.u32 3072, %s319_s13 }
  0x49   : > { %s9407_s2 = sld [smem:[#allocation93_spill]]  ;;  %s9607_s20 = smov (%p45_p8, %s9605_s20), 0 }
  0x4a   : > { %9408 = sst [smem:[#allocation38_spill]] %s9607_s20  ;;  %s9409_s1 = sadd.s32 1, %s6333_s18 }
  0x4b   : > { %s9609_s1 = smov (!%p45_p8, %s9409_s1), %s6333_s18  ;;  %s6592_s7 = ssub.s32 %s6329_s17, %s9607_s20 }
  0x4c   : > { %p49_p13 = scmp.ge.s32.totalorder %s9609_s1, 2  ;;  %p127_p0 = scmp.eq.s32.totalorder %s6592_s7, 0 }
  0x4d   : > { %s6596_s13 = scalar_select %p101_p12, %s6297_s9, %s103_s25  }
  0x4e   : > { %s9611_s1 = smov (%p49_p13, %s9609_s1), 0  ;;  %p9412_p3 = scmp.lt.s32.totalorder %s6337_s19, 16 }
  0x4f   : > { %s6583_s6 = scalar_lea.hbm %s9407_s2, %s5482_s14  ;;  %9410 = sst [smem:[#allocation39_spill]] %s6596_s13 }
  0x50   : > { %9411 = sst [smem:[#allocation40_spill]] %s9611_s1  ;;  %s321_s14 = scalar_lea.vmem [#allocation8], %s5481_s21 }
  0x51   : > { %s328_s22 = sshll.u32 %s321_s14, 4  ;;  %p6604_p5 = pnand %p9412_p3, %p6576_p4  ;;  %s6610_s22 = int_to_ptr.vmem [resolvable:$true] %s328_s22 }
  0x52   : > { %s51_s0 = ssub.s32 %s6333_s18, %s9611_s1  ;;  %s9414_s4 = sadd.s32 1, %s6309_s12 }
  0x53   : > { %s53_s25 = sor.u32 %s6592_s7, %s51_s0  ;;  %s180_s20 = sor.u32 %s100_s15, %s51_s0 }
  0x54   : > { %p54_p7 = scmp.eq.s32.totalorder %s53_s25, 0  ;;  %s6614_s24 = sor.u32 %s180_s20, %s6592_s7 }
  0x55   : > { %s6045_s14 = scalar_lea.hbm %s6583_s6, 49152  ;;  %p6047_p11 = pneg %p6604_p5 }
  0x56   : > { %s6620_s21 = scalar_select %p54_p7, %s6309_s12, %s9414_s4  }
  0x57   : > { %p6046_p10 = scmp.ne.s32.totalorder %s6583_s6, %s6045_s14  ;;  %s6050_s0 = scalar_lea.hbm %s9407_s2, 98304 }
  0x58   : > { %9415 = sst [smem:[#allocation41_spill]] %s6620_s21  ;;  %p6051_p4 = scmp.lt.u32.totalorder %s6583_s6, %s9407_s2 }
  0x59   : > { %p6048_p2 = pnand %p6047_p11, %p6046_p10  ;;  %p6052_p8 = scmp.lt.u32.totalorder %s6050_s0, %s6045_s14 }
  0x5a   : > { %p6054_p13 = scmp.lt.u32.totalorder %s6045_s14, %s6583_s6 }
  0x5b   : > { %p6049_p6 = pneg %p6048_p2  ;;  %p6053_p12 = por %p6052_p8, %p6051_p4 }
  0x5d   : > { %p6055_p3 = por %p6054_p13, %p6053_p12 }
  0x5f   : > { %p6056_p7 = pnand %p6055_p3, %p6049_p6 }
  0x61   : > { %6059 = shalt.err (!%p6056_p7)
}
  0x62   : > { %s6060_s25 = scalar_lea.vmem %s6610_s22, 49152  ;;  %s6342_s18 = smov [#allocation8]  }
  0x63   : > { %p6061_p10 = scmp.ne.s32.totalorder %s6610_s22, %s6060_s25  ;;  %s6065_s1 = sshll.u32 %s6342_s18, 4  ;;  %s6066_s1 = int_to_ptr.vmem [resolvable:$false] %s6065_s1 }
  0x64   : > { %s6067_s4 = scalar_lea.vmem %s6066_s1, 98304  ;;  %p6068_p1 = scmp.lt.s32.totalorder %s6610_s22, %s6066_s1 }
  0x65   : > { %p6063_p2 = pnand %p6061_p10, %p6047_p11  ;;  %p6069_p4 = scmp.lt.s32.totalorder %s6067_s4, %s6060_s25 }
  0x67   : > { %p6064_p9 = pneg %p6063_p2  ;;  %p6070_p8 = por %p6069_p4, %p6068_p1 }
  0x69   : > { %p6071_p12 = pnand %p6070_p8, %p6064_p9 }
  0x6b   : > { %6074 = shalt.err (!%p6071_p12)
}
  0x6c   : > { %s6343_s14 = smov 768   ;;  %s6344_s0 = smov 48  }
  0x6d   : > { %5530 = dma.hbm_to_vmem [thread:$0]  (!%p6604_p5), %s6583_s6, 49152, %s6610_s22, %s6533_s5, %s6343_s14, %s6343_s14, %s6344_s0  }
  0x6e   : > { %s129_s15 = sadd.s32 1, %s6285_s29  ;;  %p136_p1 = scmp.ne.s32.totalorder %s6285_s29, %s6281_s28 }
  0x6f   : > { %s6654_s20 = scalar_select %p127_p0, %s6285_s29, %s129_s15  }
  0x70   : > { %p9416_p9 = scmp.eq.s32.totalorder %s6337_s19, 0  ;;  %s340_s25 = sand.u32 1, %s6285_s29  }
  0x71   : > { %s6659_s18 = sshll.u32 %s340_s25, 8  ;;  %s4900_s1 = sshll.u32 %s6329_s17, 12 }
  0x72   : > { %p138_p11 = por %p136_p1, %p9416_p9  ;;  %s9417_s3 = sld [smem:[#allocation94_spill]] }
  0x73   : > { %s342_s6 = scalar_lea.vmem [#allocation9], %s6659_s18  ;;  %p9418_p0 = scmp.lt.s32.totalorder %s6337_s19, 16 }
  0x74   : > { %s349_s7 = sshll.u32 %s342_s6, 4  ;;  %s6676_s7 = int_to_ptr.vmem [resolvable:$true] %s349_s7 }
  0x75   : > { %p6672_p5 = pnand %p9418_p0, %p138_p11 }
  0x77   : > { %p9309_p13 = pneg %p6672_p5 }
  0x78   : > { %s6667_s16 = scalar_lea.hbm %s9417_s3, %s4900_s1  ;;  %s6080_s0 = scalar_lea.hbm %s9417_s3, 16384 }
  0x79   : > { %s6075_s23 = scalar_lea.hbm %s6667_s16, 4096  ;;  %p6081_p10 = scmp.lt.u32.totalorder %s6667_s16, %s9417_s3 }
  0x7a   : > { %p6076_p6 = scmp.ne.s32.totalorder %s6667_s16, %s6075_s23  ;;  %p6082_p2 = scmp.lt.u32.totalorder %s6080_s0, %s6075_s23 }
  0x7b   : > { %p6084_p8 = scmp.lt.u32.totalorder %s6075_s23, %s6667_s16 }
  0x7c   : > { %p6078_p3 = pnand %p9309_p13, %p6076_p6  ;;  %p6083_p4 = por %p6082_p2, %p6081_p10 }
  0x7e   : > { %p6079_p7 = pneg %p6078_p3  ;;  %p6085_p12 = por %p6084_p8, %p6083_p4 }
  0x80   : > { %p6086_p1 = pnand %p6085_p12, %p6079_p7 }
  0x82   : > { %6089 = shalt.err (!%p6086_p1)
}
  0x83   : > { %s6090_s4 = scalar_lea.vmem %s6676_s7, 4096  ;;  %s6345_s6 = smov [#allocation9]  }
  0x84   : > { %p6091_p9 = scmp.ne.s32.totalorder %s6676_s7, %s6090_s4  ;;  %s6095_s2 = sshll.u32 %s6345_s6, 4  ;;  %s6096_s2 = int_to_ptr.vmem [resolvable:$false] %s6095_s2 }
  0x85   : > { %s6097_s14 = scalar_lea.vmem %s6096_s2, 8192  ;;  %p6098_p6 = scmp.lt.s32.totalorder %s6676_s7, %s6096_s2 }
  0x86   : > { %p6093_p11 = pnand %p6091_p9, %p9309_p13  ;;  %p6099_p3 = scmp.lt.s32.totalorder %s6097_s14, %s6090_s4 }
  0x88   : > { %p6094_p0 = pneg %p6093_p11  ;;  %p6100_p10 = por %p6099_p3, %p6098_p6 }
  0x8a   : > { %p6101_p2 = pnand %p6100_p10, %p6094_p0 }
  0x8c   : > { %6104 = shalt.err (!%p6101_p2)
}
  0x8d   : > { %s9312_s23 = smov 128   ;;  %s9420_s0 = sld [smem:[#allocation28_spill]] }
  0x8e   : > { %s9421_s15 = sld [smem:[#allocation27_spill]]  ;;  %s9313_s25 = smov 8  }
  0x8f   : > { %5533 = dma.hbm_to_vmem [thread:$0]  (!%p6672_p5), %s6667_s16, 4096, %s6676_s7, %s6533_s5, %s9312_s23, %s9312_s23, %s9313_s25  }
  0x90   : > { %s6708_s4 = sadd.s32 4294967295, %s6337_s19   ;;  %s9311_s6 = sadd.s32 4294967294, %s6337_s19  }
  0x91   : > { %p69_p7 = scmp.ne.s32.totalorder %s6305_s11, %s6301_s10  ;;  %p9310_p4 = scmp.eq.s32.totalorder %s6708_s4, 0 }
  0x92   : > { %p116_p8 = scmp.ne.s32.totalorder %s6293_s8, %s6289_s30  ;;  %p142_p12 = scmp.ne.s32.totalorder %s6281_s28, %s6277_s27 }
  0x93   : > { %p6720_p1 = por %p9310_p4, %p69_p7  ;;  %s185_s16 = sadd.s32 1, %s6273_s26 }
  0x94   : > { %p6727_p9 = por %p116_p8, %p9310_p4  ;;  %p6733_p11 = por %p142_p12, %p9310_p4 }
  0x95   : > { %s9422_s2 = scalar_select %p6720_p1, 1, 0 }
  0x96   : > { %s9423_s7 = scalar_select %p6727_p9, 1, 0 }
  0x97   : > { %s9424_s14 = scalar_select %p6733_p11, 1, 0 }
  0x98   : > { %p9425_p0 = scmp.eq.s32.totalorder %s6614_s24, 0  ;;  %p195_p6 = scmp.ne.s32.totalorder %s6273_s26, %s9420_s0 }
  0x99   : > { %p196_p3 = scmp.eq.s32.totalorder %s6708_s4, 15  ;;  %p201_p10 = scmp.ne.s32.totalorder %s9420_s0, %s9421_s15 }
  0x9a   : > { %s6740_s27 = scalar_select %p9425_p0, %s6273_s26, %s185_s16  }
  0x9b   : > { %p202_p2 = scmp.eq.s32.totalorder %s9311_s6, 15  ;;  %p6749_p7 = por %p196_p3, %p195_p6 }
  0x9c   : > { %p4759_p8 = scmp.ge.s32.totalorder %s6337_s19, 1  ;;  %p269_p13 = scmp.lt.s32.totalorder %s6337_s19, 17 }
  0x9d   : > { %s9426_s30 = scalar_select %p6749_p7, 1, 0 }
  0x9e   : > { %p6754_p12 = por %p202_p2, %p201_p10  ;;  %p6759_p4 = pnand %p4759_p8, %p269_p13 }
  0x9f   : > { %s6348_s16 = smov [#allocation6]   ;;  %s9429_s23 = sld [smem:[#allocation95_spill]] }
  0xa0   : > { %s9427_s10 = scalar_select %p6754_p12, 1, 0 }
  0xa1   : > { %s9428_s24 = scalar_select %p6759_p4, 1, 0 }
  0xa2   : > { %s282_s0 = sshll.u32 %s6348_s16, 4  ;;  %p5520_p0 = pneg %p6759_p4  ;;  %s6772_s0 = int_to_ptr.vmem [resolvable:$true] %s282_s0 }
  0xa3   : > { %s363_s3 = scalar_lea.vmem [#allocation10], %s6659_s18  ;;  %p9430_p13 = scmp.eq.s32.totalorder %s6708_s4, 0 }
  0xa4   : > { %s370_s21 = sshll.u32 %s363_s3, 4  ;;  %p9432_p10 = pneg %p6672_p5  ;;  %s6781_s21 = int_to_ptr.vmem [resolvable:$true] %s370_s21 }
  0xa5   : > { %s6770_s25 = scalar_lea.hbm %s9429_s23, %s4900_s1  ;;  %p6777_p6 = pnand %p5520_p0, %p9430_p13 }
  0xa6   : > { %s6105_s16 = scalar_lea.hbm %s6770_s25, 4096  ;;  %s6110_s15 = scalar_lea.hbm %s9429_s23, 16384 }
  0xa7   : > { %p6106_p3 = scmp.ne.s32.totalorder %s6770_s25, %s6105_s16  ;;  %p6111_p12 = scmp.lt.u32.totalorder %s6770_s25, %s9429_s23 }
  0xa8   : > { %p6112_p0 = scmp.lt.u32.totalorder %s6110_s15, %s6105_s16  ;;  %p6114_p7 = scmp.lt.u32.totalorder %s6105_s16, %s6770_s25 }
  0xa9   : > { %p6108_p2 = pnand %p6106_p3, %p9432_p10 }
  0xaa   : > { %p6113_p13 = por %p6112_p0, %p6111_p12 }
  0xab   : > { %p6109_p8 = pneg %p6108_p2 }
  0xac   : > { %p6115_p11 = por %p6114_p7, %p6113_p13 }
  0xae   : > { %p6116_p9 = pnand %p6115_p11, %p6109_p8 }
  0xb0   : > { %6119 = shalt.err (!%p6116_p9)
}
  0xb1   : > { %s6120_s3 = scalar_lea.vmem %s6781_s21, 4096  ;;  %s6349_s1 = smov [#allocation10]  }
  0xb2   : > { %p6121_p3 = scmp.ne.s32.totalorder %s6781_s21, %s6120_s3  ;;  %s6125_s6 = sshll.u32 %s6349_s1, 4  ;;  %s6126_s6 = int_to_ptr.vmem [resolvable:$false] %s6125_s6 }
  0xb3   : > { %s6127_s17 = scalar_lea.vmem %s6126_s6, 8192  ;;  %p6128_p4 = scmp.lt.s32.totalorder %s6781_s21, %s6126_s6 }
  0xb4   : > { %p6123_p2 = pnand %p6121_p3, %p9432_p10  ;;  %p6129_p12 = scmp.lt.s32.totalorder %s6127_s17, %s6120_s3 }
  0xb6   : > { %p6124_p1 = pneg %p6123_p2  ;;  %p6130_p0 = por %p6129_p12, %p6128_p4 }
  0xb8   : > { %p6131_p7 = pnand %p6130_p0, %p6124_p1 }
  0xba   : > { %6134 = shalt.err (!%p6131_p7)
}
  0xbb   : > { %s9433_s16 = smov 8   ;;  %s9434_s15 = smov 128  }
  0xbc   : > { %5536 = dma.hbm_to_vmem [thread:$0]  (!%p6672_p5), %s6770_s25, 4096, %s6781_s21, %s6533_s5, %s9434_s15, %s9434_s15, %s9433_s16  }
  0xbd   : > { %s9435_s1 = sld [smem:[#allocation92_spill]]  ;;  %p6137_p1 = pneg %p6777_p6 }
  0xc3   : > { %s6135_s13 = scalar_lea.hbm %s9435_s1, 64 }
  0xc4   : > { %p6136_p4 = scmp.ne.s32.totalorder %s9435_s1, %s6135_s13  ;;  %p6142_p8 = scmp.lt.u32.totalorder %s6135_s13, %s9435_s1 }
  0xc6   : > { %p6138_p9 = pnand %p6137_p1, %p6136_p4 }
  0xc8   : > { %p6139_p11 = pneg %p6138_p9 }
  0xca   : > { %p6144_p13 = pnand %p6142_p8, %p6139_p11 }
  0xcc   : > { %6147 = shalt.err (!%p6144_p13)
}
  0xcd   : > { %s6148_s5 = scalar_lea.vmem %s6772_s0, 64  ;;  %p6156_p2 = scmp.lt.s32.totalorder %s6772_s0, %s6772_s0 }
  0xce   : > { %p6149_p5 = scmp.ne.s32.totalorder %s6772_s0, %s6148_s5  ;;  %p6157_p12 = scmp.lt.s32.totalorder %s6148_s5, %s6148_s5 }
  0xd0   : > { %p6151_p3 = pnand %p6149_p5, %p6137_p1  ;;  %p6158_p0 = por %p6157_p12, %p6156_p2 }
  0xd2   : > { %p6152_p10 = pneg %p6151_p3 }
  0xd4   : > { %p6159_p7 = pnand %p6158_p0, %p6152_p10 }
  0xd6   : > { %6162 = shalt.err (!%p6159_p7)
}
  0xd7   : > { %5523 = dma.hbm_to_vmem [thread:$0]  (!%p6777_p6), %s9435_s1, 64, %s6772_s0, [#allocation7]  }
  0xd8   : > { %p9436_p4 = scmp.ne.s32.totalorder %s9428_s24, 0 }
  0xda   : > { %382 = sbr.rel (%p9436_p4) target bundleno = 1336 (0x538), region = 40 }
  0xe1   : > { %s384_s21 = sand.u32 1, %s6708_s4   ;;  %s386_s23 = sand.u32 1, %s6305_s11  }
  0xe2   : > { %s4775_s25 = sshll.u32 %s386_s23, 10  ;;  %s385_s17 = scalar_lea.sflag [#allocation4], %s384_s21 }
  0xe3   : > { %s6837_s16 = scalar_lea.vmem [#allocation3], %s4775_s25  ;;  %p9437_p1 = scmp.ne.s32.totalorder %s9422_s2, 0 }
  0xe5   : > { %6240 = dma.done.wait (%p9437_p1), %s385_s17, 16384  }
  0xe6   : > { %6242 = vsyncadd (%p9437_p1), %s385_s17, 4294950912  ;;  %p9438_p6 = scmp.eq.s32.totalorder %s6708_s4, 0 }
  0xe8   : > { %6244 = dma.done.wait (%p9438_p6), [#allocation7], 64   ;;  %p9439_p9 = pmov %p9438_p6 }
  0xe9   : > { %s399_s12 = sand.u32 1, %s6293_s8   ;;  %p9440_p11 = scmp.ne.s32.totalorder %s9423_s7, 0 }
  0xea   : > { %6246 = vsyncadd (%p9439_p9), [#allocation7], 4294967232  ;;  %s5483_s24 = smul.u32 3072, %s399_s12 }
  0xec   : > { %s6848_s0 = scalar_lea.vmem [#allocation8], %s5483_s24 }
  0xed   : > { %6248 = dma.done.wait (%p9440_p11), %s385_s17, 49152  }
  0xee   : > { %6250 = vsyncadd (%p9440_p11), %s385_s17, 4294918144  ;;  %s408_s2 = sand.u32 1, %s6281_s28   ;;  %p9441_p8 = scmp.ne.s32.totalorder %s9424_s14, 0 }
  0xef   : > { %s4777_s15 = sshll.u32 %s408_s2, 8 }
  0xf0   : > { %s6855_s18 = scalar_lea.vmem [#allocation9], %s4777_s15 }
  0xf1   : > { %6252 = dma.done.wait (%p9441_p8), %s385_s17, 8192  }
  0xf2   : > { %6254 = vsyncadd (%p9441_p8), %s385_s17, 4294959104  ;;  %s9442_s6 = sld [smem:[#allocation28_spill]]  ;;  %s6864_s5 = scalar_lea.vmem [#allocation10], %s4777_s15 }
  0xf3   : > { %s9443_s23 = sld [smem:[#allocation31_spill]] }
  0xf8   : > { %s458_s22 = sand.u32 1, %s9442_s6  }
  0xf9   : > { %s4779_s3 = sshll.u32 %s458_s22, 9  ;;  %p4782_p13 = scmp.ne.s32.totalorder %s9443_s23, 0 }
  0xfa   : > { %s6866_s7 = scalar_lea.vmem [#allocation11], %s4779_s3  ;;  %s6868_s9 = scalar_lea.vmem [#allocation12], %s4779_s3 }
  0xfb   : > { %s6870_s13 = scalar_lea.vmem [#allocation14], %s4779_s3  ;;  %487 = sbr.rel (%p4782_p13) target bundleno = 519 (0x207), region = 64 }
 0x102   : > { %v6874_v0 = vld [vmem:[%s6837_s16 + $0x40] sm:$0xff]  ;;  %v6877_v1 = vld [vmem:[%s6837_s16 + $0x48] sm:$0xff]  ;;  %v6880_v2 = vld [vmem:[%s6837_s16 + $0x50] sm:$0xff] }
 0x103   : > { %v6883_v3 = vld [vmem:[%s6837_s16 + $0x58] sm:$0xff]  ;;  %v624_v4 = vmul.f32 %v6874_v0, %v6874_v0  ;;  %v625_v5 = vmul.f32 %v6877_v1, %v6877_v1  ;;  %v626_v6 = vmul.f32 %v6880_v2, %v6880_v2  ;;  %v6892_v7 = vld [vmem:[%s6837_s16] sm:$0xff]  ;;  %v6895_v8 = vld [vmem:[%s6837_s16 + $0x8] sm:$0xff] }
 0x104   : > { %v627_v9 = vmul.f32 %v6883_v3, %v6883_v3  ;;  %v6900_v10 = vld [vmem:[%s6837_s16 + $0x10] sm:$0xff]  ;;  %v6903_v11 = vld [vmem:[%s6837_s16 + $0x18] sm:$0xff]  ;;  %v616_v12 = vmul.f32 %v6892_v7, %v6892_v7  ;;  %v617_v13 = vmul.f32 %v6895_v8, %v6895_v8  ;;  %v6910_v14 = vld [vmem:[%s6837_s16 + $0x60] sm:$0xff] }
 0x105   : > { %v754_v15 = vadd.f32 %v625_v5, %v624_v4  ;;  %v618_v16 = vmul.f32 %v6900_v10, %v6900_v10  ;;  %v619_v17 = vmul.f32 %v6903_v11, %v6903_v11  ;;  %v6917_v18 = vld [vmem:[%s6837_s16 + $0x68] sm:$0xff]  ;;  %v6920_v19 = vld [vmem:[%s6837_s16 + $0x70] sm:$0xff]  ;;  %v6923_v20 = vld [vmem:[%s6837_s16 + $0x78] sm:$0xff]  ;;  %v628_v21 = vmul.f32 %v6910_v14, %v6910_v14 }
 0x106   : > { %v744_v22 = vadd.f32 %v617_v13, %v616_v12  ;;  %v629_v23 = vmul.f32 %v6917_v18, %v6917_v18  ;;  %v630_v24 = vmul.f32 %v6920_v19, %v6920_v19  ;;  %v631_v25 = vmul.f32 %v6923_v20, %v6923_v20  ;;  %v6934_v26 = vld [vmem:[%s6837_s16 + $0x20] sm:$0xff]  ;;  %v6937_v27 = vld [vmem:[%s6837_s16 + $0x28] sm:$0xff]  ;;  %v6940_v28 = vld [vmem:[%s6837_s16 + $0x30] sm:$0xff] }
 0x107   : > { %v755_v29 = vadd.f32 %v754_v15, %v626_v6  ;;  %v6943_v30 = vld [vmem:[%s6837_s16 + $0x38] sm:$0xff]  ;;  %v620_v31 = vmul.f32 %v6934_v26, %v6934_v26  ;;  %v621_v32 = vmul.f32 %v6937_v27, %v6937_v27  ;;  %v622_v33 = vmul.f32 %v6940_v28, %v6940_v28  ;;  %v6952_v34 = vld [vmem:[%s6837_s16 + $0xa0] sm:$0xff]  ;;  %v6955_v35 = vld [vmem:[%s6837_s16 + $0xa8] sm:$0xff] }
 0x108   : > { %v745_v36 = vadd.f32 %v744_v22, %v618_v16  ;;  %v759_v37 = vadd.f32 %v629_v23, %v628_v21  ;;  %v623_v38 = vmul.f32 %v6943_v30, %v6943_v30  ;;  %v6960_v39 = vld [vmem:[%s6837_s16 + $0xb0] sm:$0xff]  ;;  %v6963_v40 = vld [vmem:[%s6837_s16 + $0xb8] sm:$0xff]  ;;  %v636_v41 = vmul.f32 %v6952_v34, %v6952_v34  ;;  %v6968_v42 = vld [vmem:[%s6837_s16 + $0x80] sm:$0xff] }
 0x109   : > { %v756_v43 = vadd.f32 %v755_v29, %v627_v9  ;;  %v749_v44 = vadd.f32 %v621_v32, %v620_v31  ;;  %v637_v45 = vmul.f32 %v6955_v35, %v6955_v35  ;;  %v638_v46 = vmul.f32 %v6960_v39, %v6960_v39  ;;  %v6975_v47 = vld [vmem:[%s6837_s16 + $0x88] sm:$0xff]  ;;  %v6978_v48 = vld [vmem:[%s6837_s16 + $0x90] sm:$0xff]  ;;  %v6981_v49 = vld [vmem:[%s6837_s16 + $0x98] sm:$0xff] }
 0x10a   : > { %v746_v50 = vadd.f32 %v745_v36, %v619_v17  ;;  %v760_v51 = vadd.f32 %v759_v37, %v630_v24  ;;  %v639_v52 = vmul.f32 %v6963_v40, %v6963_v40  ;;  %v632_v53 = vmul.f32 %v6968_v42, %v6968_v42  ;;  %v6988_v54 = vld [vmem:[%s6837_s16 + $0xe0] sm:$0xff]  ;;  %v6991_v55 = vld [vmem:[%s6837_s16 + $0xe8] sm:$0xff]  ;;  %v6994_v56 = vld [vmem:[%s6837_s16 + $0xf0] sm:$0xff] }
 0x10b   : > { %757 = vadd.xlane.f32.xlu1 %v756_v43  ;;  %v750_v57 = vadd.f32 %v749_v44, %v622_v33  ;;  %v769_v58 = vadd.f32 %v637_v45, %v636_v41  ;;  %v633_v59 = vmul.f32 %v6975_v47, %v6975_v47  ;;  %v634_v60 = vmul.f32 %v6978_v48, %v6978_v48  ;;  %v7001_v61 = vld [vmem:[%s6837_s16 + $0xf8] sm:$0xff]  ;;  %v7004_v62 = vld [vmem:[%s6837_s16 + $0xc0] sm:$0xff]  ;;  %v7007_v63 = vld [vmem:[%s6837_s16 + $0xc8] sm:$0xff] }
 0x10c   : > { %9444 = vst [vmem:[#allocation42_spill] sm:$0xff] %v7004_v62  ;;  %9445 = vst [vmem:[#allocation43_spill] sm:$0xff] %v7007_v63  ;;  %747 = vadd.xlane.f32.xlu0 %v746_v50  ;;  %v761_v4 = vadd.f32 %v760_v51, %v631_v25  ;;  %v635_v5 = vmul.f32 %v6981_v49, %v6981_v49  ;;  %v644_v6 = vmul.f32 %v6988_v54, %v6988_v54  ;;  %v7016_v12 = vld [vmem:[%s6837_s16 + $0xd0] sm:$0xff]  ;;  %v7019_v13 = vld [vmem:[%s6837_s16 + $0xd8] sm:$0xff] }
 0x10d   : > { %v645_v9 = vmul.f32 %v6991_v55, %v6991_v55  ;;  %9446 = vst [vmem:[#allocation44_spill] sm:$0xff] %v7016_v12  ;;  %9447 = vst [vmem:[#allocation45_spill] sm:$0xff] %v7019_v13  ;;  %v751_v15 = vadd.f32 %v750_v57, %v623_v38  ;;  %v770_v16 = vadd.f32 %v769_v58, %v638_v46  ;;  %v7024_v22 = vld [vmem:[%s6837_s16 + $0x120] sm:$0xff]  ;;  %v7027_v23 = vld [vmem:[%s6837_s16 + $0x128] sm:$0xff] }
 0x10e   : > { %v764_v17 = vadd.f32 %v633_v59, %v632_v53  ;;  %v646_v21 = vmul.f32 %v6994_v56, %v6994_v56  ;;  %9448 = vst [vmem:[#allocation46_spill] sm:$0xff] %v7024_v22  ;;  %9449 = vst [vmem:[#allocation47_spill] sm:$0xff] %v7027_v23  ;;  %v647_v24 = vmul.f32 %v7001_v61, %v7001_v61  ;;  %v7036_v32 = vld [vmem:[%s6837_s16 + $0x130] sm:$0xff]  ;;  %v7039_v33 = vld [vmem:[%s6837_s16 + $0x138] sm:$0xff] }
 0x10f   : > { %v779_v25 = vadd.f32 %v645_v9, %v644_v6  ;;  %v640_v29 = vmul.f32 %v7004_v62, %v7004_v62  ;;  %v641_v31 = vmul.f32 %v7007_v63, %v7007_v63  ;;  %9450 = vst [vmem:[#allocation48_spill] sm:$0xff] %v7036_v32  ;;  %9451 = vst [vmem:[#allocation49_spill] sm:$0xff] %v7039_v33  ;;  %v7042_v36 = vld [vmem:[%s6837_s16 + $0x100] sm:$0xff]  ;;  %762 = vadd.xlane.f32.xlu1 %v761_v4  ;;  %v7049_v44 = vld [vmem:[%s6837_s16 + $0x108] sm:$0xff] }
 0x110   : > { %9452 = vst [vmem:[#allocation50_spill] sm:$0xff] %v7042_v36  ;;  %v771_v37 = vadd.f32 %v770_v16, %v639_v52  ;;  %v765_v38 = vadd.f32 %v764_v17, %v634_v60  ;;  %v642_v41 = vmul.f32 %v7016_v12, %v7016_v12  ;;  %v643_v43 = vmul.f32 %v7019_v13, %v7019_v13  ;;  %v7052_v45 = vld [vmem:[%s6837_s16 + $0x110] sm:$0xff]  ;;  %v7059_v53 = vld [vmem:[%s6837_s16 + $0x118] sm:$0xff]  ;;  %v7062_v57 = vld [vmem:[%s6837_s16 + $0x160] sm:$0xff] }
 0x111   : > { %9453 = vst [vmem:[#allocation51_spill] sm:$0xff] %v7049_v44  ;;  %9454 = vst [vmem:[#allocation52_spill] sm:$0xff] %v7052_v45  ;;  %752 = vadd.xlane.f32.xlu0 %v751_v15  ;;  %v780_v46 = vadd.f32 %v779_v25, %v646_v21  ;;  %v774_v50 = vadd.f32 %v641_v31, %v640_v29  ;;  %v652_v51 = vmul.f32 %v7024_v22, %v7024_v22  ;;  %v7065_v58 = vld [vmem:[%s6837_s16 + $0x168] sm:$0xff]  ;;  %v7074_v9 = vld [vmem:[%s6837_s16 + $0x170] sm:$0xff] }
 0x112   : > { %v653_v52 = vmul.f32 %v7027_v23, %v7027_v23  ;;  %9455 = vst [vmem:[#allocation53_spill] sm:$0xff] %v7059_v53  ;;  %9456 = vst [vmem:[#allocation54_spill] sm:$0xff] %v7062_v57  ;;  %v766_v59 = vadd.f32 %v765_v38, %v635_v5  ;;  %v654_v60 = vmul.f32 %v7036_v32, %v7036_v32  ;;  %v7079_v5 = vld [vmem:[%s6837_s16 + $0x140] sm:$0xff]  ;;  %v7082_v25 = vld [vmem:[%s6837_s16 + $0x148] sm:$0xff] }
 0x113   : > { %9457 = vst [vmem:[#allocation55_spill] sm:$0xff] %v7065_v58  ;;  %v655_v4 = vmul.f32 %v7039_v33, %v7039_v33  ;;  %v648_v6 = vmul.f32 %v7042_v36, %v7042_v36  ;;  %9458 = vst [vmem:[#allocation56_spill] sm:$0xff] %v7074_v9  ;;  %v781_v15 = vadd.f32 %v780_v46, %v647_v24  ;;  %772 = vadd.xlane.f32.xlu1 %v771_v37  ;;  %v7089_v24 = vld [vmem:[%s6837_s16 + $0x178] sm:$0xff]  ;;  %v7096_v46 = vld [vmem:[%s6837_s16 + $0x150] sm:$0xff] }
 0x114   : > { %v775_v16 = vadd.f32 %v774_v50, %v642_v41  ;;  %v789_v17 = vadd.f32 %v653_v52, %v652_v51  ;;  %v649_v21 = vmul.f32 %v7049_v44, %v7049_v44  ;;  %9459 = vst [vmem:[#allocation57_spill] sm:$0xff] %v7079_v5  ;;  %9460 = vst [vmem:[#allocation58_spill] sm:$0xff] %v7082_v25  ;;  %v7175_v36 = vld [vmem:[%s6837_s16 + $0x1d8] sm:$0xff]  ;;  %v561_v23 = vld [vmem:[%s6837_s16 + $0x248] sm:$0xff] }
 0x115   : > { %v650_v29 = vmul.f32 %v7052_v45, %v7052_v45  ;;  %v651_v31 = vmul.f32 %v7059_v53, %v7059_v53  ;;  %9461 = vst [vmem:[#allocation59_spill] sm:$0xff] %v7089_v24  ;;  %v660_v38 = vmul.f32 %v7062_v57, %v7062_v57  ;;  %v661_v41 = vmul.f32 %v7065_v58, %v7065_v58  ;;  %v7101_v53 = vld [vmem:[%s6837_s16 + $0x1a0] sm:$0xff]  ;;  %v7104_v45 = vld [vmem:[%s6837_s16 + $0x1a8] sm:$0xff]  ;;  %v7107_v57 = vld [vmem:[%s6837_s16 + $0x158] sm:$0xff] }
 0x116   : > { %9462 = vst [vmem:[#allocation60_spill] sm:$0xff] %v7096_v46  ;;  %767 = vadd.xlane.f32.xlu0 %v766_v59  ;;  %v776_v37 = vadd.f32 %v775_v16, %v643_v43  ;;  %v790_v50 = vadd.f32 %v789_v17, %v654_v60  ;;  %v784_v51 = vadd.f32 %v649_v21, %v648_v6  ;;  %9463 = vst [vmem:[#allocation61_spill] sm:$0xff] %v7101_v53  ;;  %v7114_v59 = vld [vmem:[%s6837_s16 + $0x1b0] sm:$0xff]  ;;  %v536_v60 = vld [vmem:[%s6837_s16 + $0x180] sm:$0xff] }
 0x117   : > { %v662_v52 = vmul.f32 %v7074_v9, %v7074_v9  ;;  %9464 = vst [vmem:[#allocation62_spill] sm:$0xff] %v7104_v45  ;;  %v799_v44 = vadd.f32 %v661_v41, %v660_v38  ;;  %9465 = vst [vmem:[#allocation63_spill] sm:$0xff] %v7107_v57  ;;  %v656_v58 = vmul.f32 %v7079_v5, %v7079_v5  ;;  %v7122_v38 = vld [vmem:[%s6837_s16 + $0x1b8] sm:$0xff]  ;;  %v7125_v41 = vld [vmem:[%s6837_s16 + $0x188] sm:$0xff]  ;;  %782 = vadd.xlane.f32.xlu1 %v781_v15 }
 0x118   : > { %v657_v43 = vmul.f32 %v7082_v25, %v7082_v25  ;;  %9466 = vst [vmem:[#allocation64_spill] sm:$0xff] %v7114_v59  ;;  %v791_v6 = vadd.f32 %v790_v50, %v655_v4  ;;  %v785_v16 = vadd.f32 %v784_v51, %v650_v29  ;;  %v663_v17 = vmul.f32 %v7089_v24, %v7089_v24  ;;  %v7132_v29 = vld [vmem:[%s6837_s16 + $0x190] sm:$0xff]  ;;  %v7135_v50 = vld [vmem:[%s6837_s16 + $0x1e0] sm:$0xff]  ;;  %v7138_v51 = vld [vmem:[%s6837_s16 + $0x1e8] sm:$0xff] }
 0x119   : > { %v658_v21 = vmul.f32 %v7096_v46, %v7096_v46  ;;  %9467 = vst [vmem:[#allocation65_spill] sm:$0xff] %v7122_v38  ;;  %9468 = vst [vmem:[#allocation66_spill] sm:$0xff] %v7125_v41  ;;  %v800_v25 = vadd.f32 %v799_v44, %v662_v52  ;;  %v668_v9 = vmul.f32 %v7101_v53, %v7101_v53  ;;  %v7145_v15 = vld [vmem:[%s6837_s16 + $0x198] sm:$0xff]  ;;  %v568_v13 = vld [vmem:[%s6837_s16 + $0x280] sm:$0xff] }
 0x11a   : > { %v794_v5 = vadd.f32 %v657_v43, %v656_v58  ;;  %v669_v4 = vmul.f32 %v7104_v45, %v7104_v45  ;;  %9469 = vst [vmem:[#allocation67_spill] sm:$0xff] %v7132_v29  ;;  %9470 = vst [vmem:[#allocation68_spill] sm:$0xff] %v7135_v50  ;;  %777 = vadd.xlane.f32.xlu0 %v776_v37  ;;  %v786_v46 = vadd.f32 %v785_v16, %v651_v31  ;;  %v7148_v43 = vld [vmem:[%s6837_s16 + $0x1f0] sm:$0xff]  ;;  %v544_v37 = vld [vmem:[%s6837_s16 + $0x1c0] sm:$0xff] }
 0x11b   : > { %9471 = vst [vmem:[#allocation69_spill] sm:$0xff] %v7138_v51  ;;  %v659_v44 = vmul.f32 %v7107_v57, %v7107_v57  ;;  %v670_v58 = vmul.f32 %v7114_v59, %v7114_v59  ;;  %9472 = vst [vmem:[#allocation70_spill] sm:$0xff] %v7145_v15  ;;  %v664_v52 = vmul.f32 %v536_v60, %v536_v60  ;;  %v545_v16 = vld [vmem:[%s6837_s16 + $0x1c8] sm:$0xff]  ;;  %v7159_v60 = vld [vmem:[%s6837_s16 + $0x1f8] sm:$0xff]  ;;  %792 = vadd.xlane.f32.xlu1 %v791_v6 }
 0x11c   : > { %9473 = vst [vmem:[#allocation71_spill] sm:$0xff] %v7148_v43  ;;  %v795_v45 = vadd.f32 %v794_v5, %v658_v21  ;;  %v671_v53 = vmul.f32 %v7122_v38, %v7122_v38  ;;  %v809_v24 = vadd.f32 %v669_v4, %v668_v9  ;;  %v665_v31 = vmul.f32 %v7125_v41, %v7125_v41  ;;  %v7166_v21 = vld [vmem:[%s6837_s16 + $0x1d0] sm:$0xff]  ;;  %v556_v41 = vld [vmem:[%s6837_s16 + $0x220] sm:$0xff]  ;;  %v557_v38 = vld [vmem:[%s6837_s16 + $0x228] sm:$0xff] }
 0x11d   : > { %v801_v57 = vadd.f32 %v800_v25, %v663_v17  ;;  %v666_v59 = vmul.f32 %v7132_v29, %v7132_v29  ;;  %9474 = vst [vmem:[#allocation72_spill] sm:$0xff] %v7159_v60  ;;  %v676_v5 = vmul.f32 %v7135_v50, %v7135_v50  ;;  %v677_v9 = vmul.f32 %v7138_v51, %v7138_v51  ;;  %v563_v22 = vld [vmem:[%s6837_s16 + $0x258] sm:$0xff] }
 0x11e   : > { %9475 = vst [vmem:[#allocation73_spill] sm:$0xff] %v7166_v21  ;;  %v810_v4 = vadd.f32 %v809_v24, %v670_v58  ;;  %v667_v25 = vmul.f32 %v7145_v15, %v7145_v15  ;;  %v804_v17 = vadd.f32 %v665_v31, %v664_v52  ;;  %v678_v29 = vmul.f32 %v7148_v43, %v7148_v43  ;;  %v558_v58 = vld [vmem:[%s6837_s16 + $0x230] sm:$0xff]  ;;  %v552_v15 = vld [vmem:[%s6837_s16 + $0x200] sm:$0xff]  ;;  %v575_v63 = vld [vmem:[%s6837_s16 + $0x2b8] sm:$0xff] }
 0x11f   : > { %787 = vadd.xlane.f32.xlu0 %v786_v46  ;;  %v796_v50 = vadd.f32 %v795_v45, %v659_v44  ;;  %v819_v51 = vadd.f32 %v677_v9, %v676_v5  ;;  %9476 = vst [vmem:[#allocation74_spill] sm:$0xff] %v7175_v36  ;;  %v672_v6 = vmul.f32 %v544_v37, %v544_v37  ;;  %v553_v46 = vld [vmem:[%s6837_s16 + $0x208] sm:$0xff]  ;;  %v554_v9 = vld [vmem:[%s6837_s16 + $0x210] sm:$0xff]  ;;  %v564_v37 = vld [vmem:[%s6837_s16 + $0x260] sm:$0xff] }
 0x120   : > { %v673_v24 = vmul.f32 %v545_v16, %v545_v16  ;;  %v805_v33 = vadd.f32 %v804_v17, %v666_v59  ;;  %v679_v52 = vmul.f32 %v7159_v60, %v7159_v60  ;;  %v674_v31 = vmul.f32 %v7166_v21, %v7166_v21  ;;  %v565_v16 = vld [vmem:[%s6837_s16 + $0x268] sm:$0xff]  ;;  %802 = vadd.xlane.f32.xlu1 %v801_v57  ;;  %v559_v60 = vld [vmem:[%s6837_s16 + $0x238] sm:$0xff] }
 0x121   : > { %v820_v43 = vadd.f32 %v819_v51, %v678_v29  ;;  %v684_v44 = vmul.f32 %v556_v41, %v556_v41  ;;  %v685_v5 = vmul.f32 %v557_v38, %v557_v38  ;;  %v811_v59 = vadd.f32 %v810_v4, %v671_v53  ;;  %v555_v53 = vld [vmem:[%s6837_s16 + $0x218] sm:$0xff] }
 0x122   : > { %v814_v45 = vadd.f32 %v673_v24, %v672_v6  ;;  %v675_v17 = vmul.f32 %v7175_v36, %v7175_v36  ;;  %v686_v21 = vmul.f32 %v558_v58, %v558_v58  ;;  %v680_v32 = vmul.f32 %v552_v15, %v552_v15  ;;  %v566_v6 = vld [vmem:[%s6837_s16 + $0x270] sm:$0xff]  ;;  %v560_v24 = vld [vmem:[%s6837_s16 + $0x240] sm:$0xff] }
 0x123   : > { %797 = vadd.xlane.f32.xlu0 %v796_v50  ;;  %v806_v29 = vadd.f32 %v805_v33, %v667_v25  ;;  %v829_v38 = vadd.f32 %v685_v5, %v684_v44  ;;  %v681_v51 = vmul.f32 %v553_v46, %v553_v46  ;;  %v682_v57 = vmul.f32 %v554_v9, %v554_v9  ;;  %v562_v58 = vld [vmem:[%s6837_s16 + $0x250] sm:$0xff]  ;;  %v573_v44 = vld [vmem:[%s6837_s16 + $0x2a8] sm:$0xff] }
 0x124   : > { %v815_v41 = vadd.f32 %v814_v45, %v674_v31  ;;  %v692_v4 = vmul.f32 %v564_v37, %v564_v37  ;;  %v693_v36 = vmul.f32 %v565_v16, %v565_v16  ;;  %v821_v15 = vadd.f32 %v820_v43, %v679_v52  ;;  %v567_v31 = vld [vmem:[%s6837_s16 + $0x278] sm:$0xff]  ;;  %v572_v45 = vld [vmem:[%s6837_s16 + $0x2a0] sm:$0xff]  ;;  %812 = vadd.xlane.f32.xlu1 %v811_v59  ;;  %v574_v16 = vld [vmem:[%s6837_s16 + $0x2b0] sm:$0xff] }
 0x125   : > { %v687_v50 = vmul.f32 %v559_v60, %v559_v60  ;;  %v830_v33 = vadd.f32 %v829_v38, %v686_v21  ;;  %v824_v25 = vadd.f32 %v681_v51, %v680_v32  ;;  %v694_v46 = vmul.f32 %v566_v6, %v566_v6  ;;  %v569_v52 = vld [vmem:[%s6837_s16 + $0x288] sm:$0xff]  ;;  %v570_v6 = vld [vmem:[%s6837_s16 + $0x290] sm:$0xff] }
 0x126   : > { %v839_v5 = vadd.f32 %v693_v36, %v692_v4  ;;  %v688_v9 = vmul.f32 %v560_v24, %v560_v24  ;;  %v689_v37 = vmul.f32 %v561_v23, %v561_v23  ;;  %v816_v43 = vadd.f32 %v815_v41, %v675_v17  ;;  %v580_v24 = vld [vmem:[%s6837_s16 + $0x2e0] sm:$0xff]  ;;  %v581_v4 = vld [vmem:[%s6837_s16 + $0x2e8] sm:$0xff]  ;;  %v582_v41 = vld [vmem:[%s6837_s16 + $0x2f0] sm:$0xff] }
 0x127   : > { %807 = vadd.xlane.f32.xlu0 %v806_v29  ;;  %v683_v60 = vmul.f32 %v555_v53, %v555_v53  ;;  %v825_v32 = vadd.f32 %v824_v25, %v682_v57  ;;  %v690_v21 = vmul.f32 %v562_v58, %v562_v58  ;;  %v695_v38 = vmul.f32 %v567_v31, %v567_v31  ;;  %v576_v31 = vld [vmem:[%s6837_s16 + $0x2c0] sm:$0xff] }
 0x128   : > { %v834_v59 = vadd.f32 %v689_v37, %v688_v9  ;;  %v700_v51 = vmul.f32 %v572_v45, %v572_v45  ;;  %v701_v36 = vmul.f32 %v573_v44, %v573_v44  ;;  %v831_v23 = vadd.f32 %v830_v33, %v687_v50  ;;  %822 = vadd.xlane.f32.xlu1 %v821_v15  ;;  %v577_v45 = vld [vmem:[%s6837_s16 + $0x2c8] sm:$0xff]  ;;  %v571_v50 = vld [vmem:[%s6837_s16 + $0x298] sm:$0xff] }
 0x129   : > { %v691_v12 = vmul.f32 %v563_v22, %v563_v22  ;;  %v702_v29 = vmul.f32 %v574_v16, %v574_v16  ;;  %v696_v17 = vmul.f32 %v568_v13, %v568_v13  ;;  %v840_v53 = vadd.f32 %v839_v5, %v694_v46  ;;  %v578_v46 = vld [vmem:[%s6837_s16 + $0x2d0] sm:$0xff]  ;;  %v588_v5 = vld [vmem:[%s6837_s16 + $0x320] sm:$0xff]  ;;  %v589_v16 = vld [vmem:[%s6837_s16 + $0x328] sm:$0xff] }
 0x12a   : > { %v835_v57 = vadd.f32 %v834_v59, %v690_v21  ;;  %v849_v58 = vadd.f32 %v701_v36, %v700_v51  ;;  %v697_v25 = vmul.f32 %v569_v52, %v569_v52  ;;  %v826_v44 = vadd.f32 %v825_v32, %v683_v60  ;;  %v583_v52 = vld [vmem:[%s6837_s16 + $0x2f8] sm:$0xff]  ;;  %v590_v60 = vld [vmem:[%s6837_s16 + $0x330] sm:$0xff]  ;;  %v584_v32 = vld [vmem:[%s6837_s16 + $0x300] sm:$0xff] }
 0x12b   : > { %817 = vadd.xlane.f32.xlu0 %v816_v43  ;;  %v698_v22 = vmul.f32 %v570_v6, %v570_v6  ;;  %v708_v33 = vmul.f32 %v580_v24, %v580_v24  ;;  %v709_v13 = vmul.f32 %v581_v4, %v581_v4  ;;  %v703_v9 = vmul.f32 %v575_v63, %v575_v63  ;;  %v579_v4 = vld [vmem:[%s6837_s16 + $0x2d8] sm:$0xff] }
 0x12c   : > { %v844_v15 = vadd.f32 %v697_v25, %v696_v17  ;;  %v710_v37 = vmul.f32 %v582_v41, %v582_v41  ;;  %v850_v21 = vadd.f32 %v849_v58, %v702_v29  ;;  %v704_v51 = vmul.f32 %v576_v31, %v576_v31  ;;  %832 = vadd.xlane.f32.xlu1 %v831_v23  ;;  %v585_v17 = vld [vmem:[%s6837_s16 + $0x308] sm:$0xff]  ;;  %v586_v31 = vld [vmem:[%s6837_s16 + $0x310] sm:$0xff] }
 0x12d   : > { %v859_v59 = vadd.f32 %v709_v13, %v708_v33  ;;  %v705_v43 = vmul.f32 %v577_v45, %v577_v45  ;;  %v841_v36 = vadd.f32 %v840_v53, %v695_v38  ;;  %v836_v63 = vadd.f32 %v835_v57, %v691_v12  ;;  %v596_v45 = vld [vmem:[%s6837_s16 + $0x360] sm:$0xff]  ;;  %v597_v33 = vld [vmem:[%s6837_s16 + $0x368] sm:$0xff]  ;;  %v591_v53 = vld [vmem:[%s6837_s16 + $0x338] sm:$0xff] }
 0x12e   : > { %v699_v6 = vmul.f32 %v571_v50, %v571_v50  ;;  %v845_v24 = vadd.f32 %v844_v15, %v698_v22  ;;  %v706_v29 = vmul.f32 %v578_v46, %v578_v46  ;;  %v716_v58 = vmul.f32 %v588_v5, %v588_v5  ;;  %v592_v13 = vld [vmem:[%s6837_s16 + $0x340] sm:$0xff]  ;;  %v593_v15 = vld [vmem:[%s6837_s16 + $0x348] sm:$0xff]  ;;  %v587_v5 = vld [vmem:[%s6837_s16 + $0x318] sm:$0xff] }
 0x12f   : > { %827 = vadd.xlane.f32.xlu0 %v826_v44  ;;  %v854_v41 = vadd.f32 %v705_v43, %v704_v51  ;;  %v717_v25 = vmul.f32 %v589_v16, %v589_v16  ;;  %v711_v23 = vmul.f32 %v583_v52, %v583_v52  ;;  %v860_v38 = vadd.f32 %v859_v59, %v710_v37  ;;  %v598_v51 = vld [vmem:[%s6837_s16 + $0x370] sm:$0xff] }
 0x130   : > { %v718_v12 = vmul.f32 %v590_v60, %v590_v60  ;;  %v712_v57 = vmul.f32 %v584_v32, %v584_v32  ;;  %v851_v50 = vadd.f32 %v850_v21, %v703_v9  ;;  %v713_v44 = vmul.f32 %v585_v17, %v585_v17  ;;  %842 = vadd.xlane.f32.xlu1 %v841_v36  ;;  %v594_v60 = vld [vmem:[%s6837_s16 + $0x350] sm:$0xff]  ;;  %v604_v32 = vld [vmem:[%s6837_s16 + $0x3a0] sm:$0xff]  ;;  %v605_v17 = vld [vmem:[%s6837_s16 + $0x3a8] sm:$0xff] }
 0x131   : > { %v869_v22 = vadd.f32 %v717_v25, %v716_v58  ;;  %v707_v46 = vmul.f32 %v579_v4, %v579_v4  ;;  %v714_v16 = vmul.f32 %v586_v31, %v586_v31  ;;  %v724_v43 = vmul.f32 %v596_v45, %v596_v45  ;;  %v600_v31 = vld [vmem:[%s6837_s16 + $0x380] sm:$0xff] }
 0x132   : > { %v725_v52 = vmul.f32 %v597_v33, %v597_v33  ;;  %v846_v37 = vadd.f32 %v845_v24, %v699_v6  ;;  %v855_v59 = vadd.f32 %v854_v41, %v706_v29  ;;  %v719_v9 = vmul.f32 %v591_v53, %v591_v53  ;;  %v601_v29 = vld [vmem:[%s6837_s16 + $0x388] sm:$0xff]  ;;  %v595_v41 = vld [vmem:[%s6837_s16 + $0x358] sm:$0xff] }
 0x133   : > { %837 = vadd.xlane.f32.xlu0 %v836_v63  ;;  %v864_v21 = vadd.f32 %v713_v44, %v712_v57  ;;  %v861_v36 = vadd.f32 %v860_v38, %v711_v23  ;;  %v870_v4 = vadd.f32 %v869_v22, %v718_v12  ;;  %v720_v58 = vmul.f32 %v592_v13, %v592_v13  ;;  %v599_v63 = vld [vmem:[%s6837_s16 + $0x378] sm:$0xff]  ;;  %v606_v23 = vld [vmem:[%s6837_s16 + $0x3b0] sm:$0xff]  ;;  %v612_v44 = vld [vmem:[%s6837_s16 + $0x3e0] sm:$0xff] }
 0x134   : > { %v721_v25 = vmul.f32 %v593_v15, %v593_v15  ;;  %v715_v62 = vmul.f32 %v587_v5, %v587_v5  ;;  %v726_v6 = vmul.f32 %v598_v51, %v598_v51  ;;  %v879_v24 = vadd.f32 %v725_v52, %v724_v43  ;;  %852 = vadd.xlane.f32.xlu1 %v851_v50  ;;  %v613_v13 = vld [vmem:[%s6837_s16 + $0x3e8] sm:$0xff]  ;;  %v608_v50 = vld [vmem:[%s6837_s16 + $0x3c0] sm:$0xff] }
 0x135   : > { %v865_v45 = vadd.f32 %v864_v21, %v714_v16  ;;  %v722_v33 = vmul.f32 %v594_v60, %v594_v60  ;;  %v732_v38 = vmul.f32 %v604_v32, %v604_v32  ;;  %v733_v12 = vmul.f32 %v605_v17, %v605_v17  ;;  %v602_v16 = vld [vmem:[%s6837_s16 + $0x390] sm:$0xff]  ;;  %v609_v43 = vld [vmem:[%s6837_s16 + $0x3c8] sm:$0xff] }
 0x136   : > { %v874_v53 = vadd.f32 %v721_v25, %v720_v58  ;;  %v856_v57 = vadd.f32 %v855_v59, %v707_v46  ;;  %v728_v22 = vmul.f32 %v600_v31, %v600_v31  ;;  %v871_v15 = vadd.f32 %v870_v4, %v719_v9  ;;  %v607_v46 = vld [vmem:[%s6837_s16 + $0x3b8] sm:$0xff]  ;;  %v614_v31 = vld [vmem:[%s6837_s16 + $0x3f0] sm:$0xff] }
 0x137   : > { %847 = vadd.xlane.f32.xlu0 %v846_v37  ;;  %v727_v5 = vmul.f32 %v599_v63, %v599_v63  ;;  %v729_v51 = vmul.f32 %v601_v29, %v601_v29  ;;  %v866_v52 = vadd.f32 %v865_v45, %v715_v62  ;;  %v880_v21 = vadd.f32 %v879_v24, %v726_v6  ;;  %v603_v9 = vld [vmem:[%s6837_s16 + $0x398] sm:$0xff]  ;;  %v610_v62 = vld [vmem:[%s6837_s16 + $0x3d0] sm:$0xff] }
 0x138   : > { %v723_v60 = vmul.f32 %v595_v41, %v595_v41  ;;  %v734_v32 = vmul.f32 %v606_v23, %v606_v23  ;;  %862 = vadd.xlane.f32.xlu1 %v861_v36  ;;  %v875_v37 = vadd.f32 %v874_v53, %v722_v33  ;;  %v889_v59 = vadd.f32 %v733_v12, %v732_v38  ;;  %v615_v38 = vld [vmem:[%s6837_s16 + $0x3f8] sm:$0xff] }
 0x139   : > { %v740_v17 = vmul.f32 %v612_v44, %v612_v44  ;;  %v741_v58 = vmul.f32 %v613_v13, %v613_v13  ;;  %v730_v4 = vmul.f32 %v602_v16, %v602_v16  ;;  %v884_v25 = vadd.f32 %v729_v51, %v728_v22  ;;  %v611_v44 = vld [vmem:[%s6837_s16 + $0x3d8] sm:$0xff] }
 0x13a   : > { %v736_v63 = vmul.f32 %v608_v50, %v608_v50  ;;  %v737_v29 = vmul.f32 %v609_v43, %v609_v43  ;;  %v881_v45 = vadd.f32 %v880_v21, %v727_v5  ;;  %v735_v6 = vmul.f32 %v607_v46, %v607_v46 }
 0x13b   : > { %857 = vadd.xlane.f32.xlu0 %v856_v57  ;;  %v890_v24 = vadd.f32 %v889_v59, %v734_v32  ;;  %v731_v36 = vmul.f32 %v603_v9, %v603_v9  ;;  %v742_v41 = vmul.f32 %v614_v31, %v614_v31  ;;  %v899_v33 = vadd.f32 %v741_v58, %v740_v17 }
 0x13c   : > { %872 = vadd.xlane.f32.xlu1 %v871_v15  ;;  %v876_v53 = vadd.f32 %v875_v37, %v723_v60  ;;  %v885_v23 = vadd.f32 %v884_v25, %v730_v4  ;;  %v738_v12 = vmul.f32 %v610_v62, %v610_v62  ;;  %v894_v57 = vadd.f32 %v737_v29, %v736_v63 }
 0x13d   : > { %v891_v22 = vadd.f32 %v890_v24, %v735_v6  ;;  %v743_v13 = vmul.f32 %v615_v38, %v615_v38  ;;  %v900_v16 = vadd.f32 %v899_v33, %v742_v41  ;;  %v739_v5 = vmul.f32 %v611_v44, %v611_v44 }
 0x13e   : > { %v886_v51 = vadd.f32 %v885_v23, %v731_v36  ;;  %v895_v50 = vadd.f32 %v894_v57, %v738_v12  ;;  %v1131_v21 = vlaneseq  ;;  %v1129_v36 = vld [vmem:[#allocation6] sm:$0xf] }
 0x13f   : > { %867 = vadd.xlane.f32.xlu0 %v866_v52  ;;  %v901_v15 = vadd.f32 %v900_v16, %v743_v13 }
 0x140   : > { %882 = vadd.xlane.f32.xlu1 %v881_v45  ;;  %v896_v43 = vadd.f32 %v895_v50, %v739_v5  ;;  %v1132_v58 = vshrl.u32 %v1131_v21, 7 }
 0x142   : > { %v1133_v62 = vsub.s32 0, %v1132_v58  ;;  %v1137_v45 = vsub.s32 1, %v1132_v58  ;;  %v1141_v41 = vsub.s32 2, %v1132_v58  ;;  %v1145_v33 = vsub.s32 3, %v1132_v58 }
 0x143   : > { %877 = vadd.xlane.f32.xlu0 %v876_v53 }
 0x144   : > { %892 = vadd.xlane.f32.xlu1 %v891_v22  ;;  %v7245_v57 = vrot.slane %v1129_v36, %v1133_v62  ;;  %v7247_v13 = vrot.slane %v1129_v36, %v1137_v45  ;;  %v7249_v16 = vrot.slane %v1129_v36, %v1141_v41 }
 0x147   : > { %887 = vadd.xlane.f32.xlu0 %v886_v51  ;;  %v7251_v51 = vrot.slane %v1129_v36, %v1145_v33 }
 0x148   : > { %902 = vadd.xlane.f32.xlu1 %v901_v15 }
 0x14b   : > { %897 = vadd.xlane.f32.xlu0 %v896_v43 }
 0x198   : > { %v758_v52 = vpop.xlane.xlu1 %757 }
 0x199   : > { %v907_v60 = vmul.f32 0.001953125, %v758_v52  ;;  %v748_v32 = vpop.xlane.xlu0 %747 }
 0x19a   : > { %v905_v37 = vmul.f32 0.001953125, %v748_v32 }
 0x19b   : > { %v939_v46 = vadd.f32 1e-05, %v907_v60 }
 0x19c   : > { %v937_v59 = vadd.f32 1e-05, %v905_v37  ;;  %v763_v17 = vpop.xlane.xlu1 %762 }
 0x19d   : > { %5732 = vrsqrt.f32 %v939_v46  ;;  %v908_v9 = vmul.f32 0.001953125, %v763_v17 }
 0x19e   : > { %v753_v4 = vpop.xlane.xlu0 %752  ;;  %5734 = vrsqrt.f32 %v937_v59 }
 0x19f   : > { %v906_v25 = vmul.f32 0.001953125, %v753_v4  ;;  %v940_v31 = vadd.f32 1e-05, %v908_v9 }
 0x1a0   : > { %v773_v29 = vpop.xlane.xlu1 %772 }
 0x1a1   : > { %v938_v63 = vadd.f32 1e-05, %v906_v25  ;;  %5736 = vrsqrt.f32 %v940_v31  ;;  %v910_v6 = vmul.f32 0.001953125, %v773_v29 }
 0x1a3   : > { %v768_v24 = vpop.xlane.xlu0 %767  ;;  %5738 = vrsqrt.f32 %v938_v63  ;;  %v942_v23 = vadd.f32 1e-05, %v910_v6 }
 0x1a4   : > { %v909_v53 = vmul.f32 0.001953125, %v768_v24  ;;  %v783_v12 = vpop.xlane.xlu1 %782 }
 0x1a5   : > { %5740 = vrsqrt.f32 %v942_v23  ;;  %v912_v44 = vmul.f32 0.001953125, %v783_v12 }
 0x1a6   : > { %v941_v38 = vadd.f32 1e-05, %v909_v53 }
 0x1a7   : > { %v778_v22 = vpop.xlane.xlu0 %777  ;;  %v5733_v5 = vpop.eup %5732  ;;  %v7253_v50 = vadd.f32 1e-05, %v912_v44 }
 0x1a8   : > { %5742 = vrsqrt.f32 %v941_v38  ;;  %v7255_v15 = vmul.f32 0.001953125, %v778_v22  ;;  %v5735_v43 = vpop.eup %5734  ;;  %v1009_v52 = vmul.f32 %v5733_v5, %v6874_v0  ;;  %v1010_v21 = vmul.f32 %v5733_v5, %v6877_v1  ;;  %v7261_v37 = vpop.xlane.xlu1 %792 }
 0x1a9   : > { %v1011_v60 = vmul.f32 %v5733_v5, %v6880_v2  ;;  %v1012_v32 = vmul.f32 %v5733_v5, %v6883_v3  ;;  %v1001_v46 = vmul.f32 %v5735_v43, %v6892_v7  ;;  %v1002_v59 = vmul.f32 %v5735_v43, %v6895_v8 }
 0x1aa   : > { %v1003_v17 = vmul.f32 %v5735_v43, %v6900_v10  ;;  %v1004_v58 = vmul.f32 %v5735_v43, %v6903_v11  ;;  %v1159_v0 = vmul.f32 %v7245_v57, %v1009_v52  ;;  %v1160_v1 = vmul.f32 %v7247_v13, %v1010_v21 }
 0x1ab   : > { %v1161_v2 = vmul.f32 %v7249_v16, %v1011_v60  ;;  %v1162_v3 = vmul.f32 %v7251_v51, %v1012_v32  ;;  %v5737_v4 = vpop.eup %5736  ;;  %v1151_v25 = vmul.f32 %v7245_v57, %v1001_v46  ;;  %v1152_v7 = vmul.f32 %v7247_v13, %v1002_v59 }
 0x1ac   : > { %v7267_v9 = vpop.xlane.xlu0 %787  ;;  %v1153_v8 = vmul.f32 %v7249_v16, %v1003_v17  ;;  %v1154_v10 = vmul.f32 %v7251_v51, %v1004_v58  ;;  %1287 = vst [vmem:[#allocation2 + $0x40] sm:$0xff] %v1159_v0  ;;  %1288 = vst [vmem:[#allocation2 + $0x48] sm:$0xff] %v1160_v1  ;;  %v1013_v31 = vmul.f32 %v5737_v4, %v6910_v14  ;;  %5744 = vrsqrt.f32 %v7253_v50 }
 0x1ad   : > { %v5739_v11 = vpop.eup %5738  ;;  %1289 = vst [vmem:[#allocation2 + $0x50] sm:$0xff] %v1161_v2  ;;  %1290 = vst [vmem:[#allocation2 + $0x58] sm:$0xff] %v1162_v3  ;;  %v1014_v63 = vmul.f32 %v5737_v4, %v6917_v18  ;;  %v1015_v29 = vmul.f32 %v5737_v4, %v6920_v19  ;;  %v1016_v62 = vmul.f32 %v5737_v4, %v6923_v20  ;;  %v803_v45 = vpop.xlane.xlu1 %802  ;;  %v913_v17 = vmul.f32 0.001953125, %v7267_v9 }
 0x1ae   : > { %1279 = vst [vmem:[#allocation2] sm:$0xff] %v1151_v25  ;;  %1280 = vst [vmem:[#allocation2 + $0x8] sm:$0xff] %v1152_v7  ;;  %v1005_v6 = vmul.f32 %v5739_v11, %v6934_v26  ;;  %v1006_v24 = vmul.f32 %v5739_v11, %v6937_v27  ;;  %v1007_v36 = vmul.f32 %v5739_v11, %v6940_v28  ;;  %v916_v0 = vmul.f32 0.001953125, %v803_v45 }
 0x1af   : > { %1281 = vst [vmem:[#allocation2 + $0x10] sm:$0xff] %v1153_v8  ;;  %1282 = vst [vmem:[#allocation2 + $0x18] sm:$0xff] %v1154_v10  ;;  %v1008_v41 = vmul.f32 %v5739_v11, %v6943_v30  ;;  %v1163_v18 = vmul.f32 %v7245_v57, %v1013_v31  ;;  %v1164_v19 = vmul.f32 %v7247_v13, %v1014_v63  ;;  %v5741_v53 = vpop.eup %5740  ;;  %v945_v7 = vadd.f32 1e-05, %v913_v17 }
 0x1b0   : > { %v798_v14 = vpop.xlane.xlu0 %797  ;;  %v1165_v20 = vmul.f32 %v7249_v16, %v1015_v29  ;;  %v1166_v33 = vmul.f32 %v7251_v51, %v1016_v62  ;;  %v1155_v23 = vmul.f32 %v7245_v57, %v1005_v6  ;;  %v1156_v26 = vmul.f32 %v7247_v13, %v1006_v24 }
 0x1b1   : > { %v1157_v27 = vmul.f32 %v7249_v16, %v1007_v36  ;;  %v1158_v28 = vmul.f32 %v7251_v51, %v1008_v41  ;;  %1291 = vst [vmem:[#allocation2 + $0x60] sm:$0xff] %v1163_v18  ;;  %1292 = vst [vmem:[#allocation2 + $0x68] sm:$0xff] %v1164_v19  ;;  %v1021_v30 = vmul.f32 %v5741_v53, %v6952_v34  ;;  %v813_v5 = vpop.xlane.xlu1 %812  ;;  %v915_v1 = vmul.f32 0.001953125, %v798_v14 }
 0x1b2   : > { %v5743_v38 = vpop.eup %5742  ;;  %1293 = vst [vmem:[#allocation2 + $0x70] sm:$0xff] %v1165_v20  ;;  %1294 = vst [vmem:[#allocation2 + $0x78] sm:$0xff] %v1166_v33  ;;  %v1022_v12 = vmul.f32 %v5741_v53, %v6955_v35  ;;  %v1023_v44 = vmul.f32 %v5741_v53, %v6960_v39  ;;  %v1024_v22 = vmul.f32 %v5741_v53, %v6963_v40  ;;  %v918_v2 = vmul.f32 0.001953125, %v813_v5  ;;  %v9478_v5 = vld [vmem:[#allocation43_spill] sm:$0xff] }
 0x1b3   : > { %1283 = vst [vmem:[#allocation2 + $0x20] sm:$0xff] %v1155_v23  ;;  %1284 = vst [vmem:[#allocation2 + $0x28] sm:$0xff] %v1156_v26  ;;  %v1017_v43 = vmul.f32 %v5743_v38, %v6968_v42  ;;  %v1018_v52 = vmul.f32 %v5743_v38, %v6975_v47  ;;  %v1019_v21 = vmul.f32 %v5743_v38, %v6978_v48  ;;  %v943_v48 = vadd.f32 1e-05, %v7255_v15 }
 0x1b4   : > { %1285 = vst [vmem:[#allocation2 + $0x30] sm:$0xff] %v1157_v27  ;;  %1286 = vst [vmem:[#allocation2 + $0x38] sm:$0xff] %v1158_v28  ;;  %v1020_v60 = vmul.f32 %v5743_v38, %v6981_v49  ;;  %v808_v34 = vpop.xlane.xlu0 %807  ;;  %v1171_v35 = vmul.f32 %v7245_v57, %v1021_v30  ;;  %v1172_v39 = vmul.f32 %v7247_v13, %v1022_v12  ;;  %v914_v49 = vmul.f32 0.001953125, %v7261_v37 }
 0x1b5   : > { %v1173_v40 = vmul.f32 %v7249_v16, %v1023_v44  ;;  %v1174_v32 = vmul.f32 %v7251_v51, %v1024_v22  ;;  %v1167_v46 = vmul.f32 %v7245_v57, %v1017_v43  ;;  %v1168_v59 = vmul.f32 %v7247_v13, %v1018_v52  ;;  %v823_v58 = vpop.xlane.xlu1 %822  ;;  %v9477_v44 = vld [vmem:[#allocation42_spill] sm:$0xff]  ;;  %v9479_v52 = vld [vmem:[#allocation44_spill] sm:$0xff] }
 0x1b6   : > { %v1169_v42 = vmul.f32 %v7249_v16, %v1019_v21  ;;  %v1170_v47 = vmul.f32 %v7251_v51, %v1020_v60  ;;  %1299 = vst [vmem:[#allocation2 + $0xa0] sm:$0xff] %v1171_v35  ;;  %1300 = vst [vmem:[#allocation2 + $0xa8] sm:$0xff] %v1172_v39  ;;  %v917_v3 = vmul.f32 0.001953125, %v808_v34  ;;  %5746 = vrsqrt.f32 %v943_v48  ;;  %v5745_v41 = vpop.eup %5744  ;;  %v9480_v60 = vld [vmem:[#allocation45_spill] sm:$0xff]  ;;  %v9481_v39 = vld [vmem:[#allocation46_spill] sm:$0xff] }
 0x1b7   : > { %1301 = vst [vmem:[#allocation2 + $0xb0] sm:$0xff] %v1173_v40  ;;  %1302 = vst [vmem:[#allocation2 + $0xb8] sm:$0xff] %v1174_v32  ;;  %v946_v25 = vadd.f32 1e-05, %v914_v49  ;;  %v920_v50 = vmul.f32 0.001953125, %v823_v58  ;;  %v1029_v19 = vmul.f32 %v5745_v41, %v6988_v54  ;;  %v1030_v20 = vmul.f32 %v5745_v41, %v6991_v55  ;;  %v9482_v32 = vld [vmem:[#allocation47_spill] sm:$0xff] }
 0x1b8   : > { %1295 = vst [vmem:[#allocation2 + $0x80] sm:$0xff] %v1167_v46  ;;  %1296 = vst [vmem:[#allocation2 + $0x88] sm:$0xff] %v1168_v59  ;;  %v818_v4 = vpop.xlane.xlu0 %817  ;;  %v948_v8 = vadd.f32 1e-05, %v916_v0  ;;  %v947_v15 = vadd.f32 1e-05, %v915_v1  ;;  %v1031_v33 = vmul.f32 %v5745_v41, %v6994_v56  ;;  %v1032_v53 = vmul.f32 %v5745_v41, %v7001_v61 }
 0x1b9   : > { %1297 = vst [vmem:[#allocation2 + $0x90] sm:$0xff] %v1169_v42  ;;  %1298 = vst [vmem:[#allocation2 + $0x98] sm:$0xff] %v1170_v47  ;;  %5748 = vrsqrt.f32 %v946_v25  ;;  %v950_v37 = vadd.f32 1e-05, %v918_v2  ;;  %v919_v10 = vmul.f32 0.001953125, %v818_v4  ;;  %v833_v9 = vpop.xlane.xlu1 %832  ;;  %v1179_v30 = vmul.f32 %v7245_v57, %v1029_v19  ;;  %v9483_v59 = vld [vmem:[#allocation48_spill] sm:$0xff] }
 0x1ba   : > { %5750 = vrsqrt.f32 %v945_v7  ;;  %v949_v11 = vadd.f32 1e-05, %v917_v3  ;;  %v952_v63 = vadd.f32 1e-05, %v920_v50  ;;  %v922_v29 = vmul.f32 0.001953125, %v833_v9  ;;  %v9484_v47 = vld [vmem:[#allocation49_spill] sm:$0xff] }
 0x1bb   : > { %5752 = vrsqrt.f32 %v948_v8  ;;  %v951_v62 = vadd.f32 1e-05, %v919_v10  ;;  %v1180_v54 = vmul.f32 %v7247_v13, %v1030_v20  ;;  %v1181_v55 = vmul.f32 %v7249_v16, %v1031_v33  ;;  %1307 = vst [vmem:[#allocation2 + $0xe0] sm:$0xff] %v1179_v30  ;;  %v9486_v9 = vld [vmem:[#allocation51_spill] sm:$0xff] }
 0x1bc   : > { %v828_v31 = vpop.xlane.xlu0 %827  ;;  %5754 = vrsqrt.f32 %v947_v15  ;;  %v7313_v14 = vadd.f32 1e-05, %v922_v29  ;;  %v1182_v56 = vmul.f32 %v7251_v51, %v1032_v53  ;;  %v9488_v29 = vld [vmem:[#allocation53_spill] sm:$0xff]  ;;  %v9492_v20 = vld [vmem:[#allocation59_spill] sm:$0xff] }
 0x1bd   : > { %5756 = vrsqrt.f32 %v950_v37  ;;  %v921_v45 = vmul.f32 0.001953125, %v828_v31  ;;  %v843_v6 = vpop.xlane.xlu1 %842  ;;  %1308 = vst [vmem:[#allocation2 + $0xe8] sm:$0xff] %v1180_v54  ;;  %1309 = vst [vmem:[#allocation2 + $0xf0] sm:$0xff] %v1181_v55  ;;  %v9485_v37 = vld [vmem:[#allocation50_spill] sm:$0xff]  ;;  %v9487_v31 = vld [vmem:[#allocation52_spill] sm:$0xff] }
 0x1be   : > { %5758 = vrsqrt.f32 %v949_v11  ;;  %v924_v24 = vmul.f32 0.001953125, %v843_v6  ;;  %1310 = vst [vmem:[#allocation2 + $0xf8] sm:$0xff] %v1182_v56  ;;  %v9489_v6 = vld [vmem:[#allocation54_spill] sm:$0xff] }
 0x1bf   : > { %5760 = vrsqrt.f32 %v952_v63  ;;  %v7319_v26 = vadd.f32 1e-05, %v921_v45 }
 0x1c0   : > { %v838_v36 = vpop.xlane.xlu0 %837  ;;  %v5747_v23 = vpop.eup %5746  ;;  %5762 = vrsqrt.f32 %v951_v62  ;;  %v7321_v27 = vadd.f32 1e-05, %v924_v24 }
 0x1c1   : > { %v923_v18 = vmul.f32 0.001953125, %v838_v36  ;;  %v7325_v38 = vpop.xlane.xlu1 %852  ;;  %v1025_v22 = vmul.f32 %v5747_v23, %v9477_v44  ;;  %v1026_v43 = vmul.f32 %v5747_v23, %v9478_v5  ;;  %v1027_v21 = vmul.f32 %v5747_v23, %v9479_v52  ;;  %v9490_v36 = vld [vmem:[#allocation55_spill] sm:$0xff]  ;;  %v9493_v52 = vld [vmem:[#allocation57_spill] sm:$0xff] }
 0x1c2   : > { %v1028_v34 = vmul.f32 %v5747_v23, %v9480_v60  ;;  %v9494_v60 = vld [vmem:[#allocation58_spill] sm:$0xff]  ;;  %5764 = vrsqrt.f32 %v7313_v14 }
 0x1c3   : > { %v7323_v28 = vadd.f32 1e-05, %v923_v18  ;;  %v5749_v61 = vpop.eup %5748  ;;  %v1175_v17 = vmul.f32 %v7245_v57, %v1025_v22  ;;  %v1176_v58 = vmul.f32 %v7247_v13, %v1026_v43  ;;  %v1177_v0 = vmul.f32 %v7249_v16, %v1027_v21  ;;  %v9491_v18 = vld [vmem:[#allocation56_spill] sm:$0xff] }
 0x1c4   : > { %v7331_v12 = vpop.xlane.xlu0 %847  ;;  %v5751_v35 = vpop.eup %5750  ;;  %v1037_v40 = vmul.f32 %v5749_v61, %v9481_v39  ;;  %v1038_v46 = vmul.f32 %v5749_v61, %v9482_v32  ;;  %v1039_v42 = vmul.f32 %v5749_v61, %v9483_v59  ;;  %v1040_v48 = vmul.f32 %v5749_v61, %v9484_v47  ;;  %v9497_v59 = vld [vmem:[#allocation61_spill] sm:$0xff]  ;;  %v9498_v47 = vld [vmem:[#allocation62_spill] sm:$0xff] }
 0x1c5   : > { %v5753_v49 = vpop.eup %5752  ;;  %v1178_v1 = vmul.f32 %v7251_v51, %v1028_v34  ;;  %v7345_v2 = vpop.xlane.xlu1 %862  ;;  %1303 = vst [vmem:[#allocation2 + $0xc0] sm:$0xff] %v1175_v17  ;;  %1304 = vst [vmem:[#allocation2 + $0xc8] sm:$0xff] %v1176_v58  ;;  %v1033_v10 = vmul.f32 %v5751_v35, %v9485_v37  ;;  %v1034_v11 = vmul.f32 %v5751_v35, %v9486_v9  ;;  %v9500_v58 = vld [vmem:[#allocation65_spill] sm:$0xff]  ;;  %5766 = vrsqrt.f32 %v7319_v26 }
 0x1c6   : > { %v5755_v3 = vpop.eup %5754  ;;  %v1187_v4 = vmul.f32 %v7245_v57, %v1037_v40  ;;  %v1188_v25 = vmul.f32 %v7247_v13, %v1038_v46  ;;  %v1189_v7 = vmul.f32 %v7249_v16, %v1039_v42  ;;  %v1190_v50 = vmul.f32 %v7251_v51, %v1040_v48  ;;  %1305 = vst [vmem:[#allocation2 + $0xd0] sm:$0xff] %v1177_v0  ;;  %v9496_v40 = vld [vmem:[#allocation63_spill] sm:$0xff] }
 0x1c7   : > { %v5757_v15 = vpop.eup %5756  ;;  %1306 = vst [vmem:[#allocation2 + $0xd8] sm:$0xff] %v1178_v1  ;;  %v1035_v63 = vmul.f32 %v5751_v35, %v9487_v31  ;;  %v1036_v62 = vmul.f32 %v5751_v35, %v9488_v29  ;;  %v1045_v24 = vmul.f32 %v5753_v49, %v9489_v6  ;;  %v1046_v41 = vmul.f32 %v5753_v49, %v9490_v36  ;;  %v9495_v35 = vld [vmem:[#allocation60_spill] sm:$0xff]  ;;  %v9501_v31 = vld [vmem:[#allocation66_spill] sm:$0xff]  ;;  %v9502_v29 = vld [vmem:[#allocation67_spill] sm:$0xff] }
 0x1c8   : > { %v7351_v8 = vpop.xlane.xlu0 %857  ;;  %v5759_v45 = vpop.eup %5758  ;;  %1315 = vst [vmem:[#allocation2 + $0x120] sm:$0xff] %v1187_v4  ;;  %1316 = vst [vmem:[#allocation2 + $0x128] sm:$0xff] %v1188_v25  ;;  %v1047_v19 = vmul.f32 %v5753_v49, %v9491_v18  ;;  %v1048_v33 = vmul.f32 %v5753_v49, %v9492_v20  ;;  %v1183_v23 = vmul.f32 %v7245_v57, %v1033_v10  ;;  %v9499_v49 = vld [vmem:[#allocation64_spill] sm:$0xff]  ;;  %v9503_v6 = vld [vmem:[#allocation70_spill] sm:$0xff]  ;;  %5768 = vrsqrt.f32 %v7321_v27 }
 0x1c9   : > { %1317 = vst [vmem:[#allocation2 + $0x130] sm:$0xff] %v1189_v7  ;;  %1318 = vst [vmem:[#allocation2 + $0x138] sm:$0xff] %v1190_v50  ;;  %v5761_v53 = vpop.eup %5760  ;;  %v1184_v30 = vmul.f32 %v7247_v13, %v1034_v11  ;;  %v1185_v54 = vmul.f32 %v7249_v16, %v1035_v63  ;;  %v1186_v55 = vmul.f32 %v7251_v51, %v1036_v62  ;;  %v7365_v56 = vpop.xlane.xlu1 %872  ;;  %v9504_v36 = vld [vmem:[#allocation68_spill] sm:$0xff]  ;;  %v9505_v18 = vld [vmem:[#allocation69_spill] sm:$0xff]  ;;  %v927_v14 = vmul.f32 0.001953125, %v7351_v8 }
 0x1ca   : > { %v1195_v61 = vmul.f32 %v7245_v57, %v1045_v24  ;;  %v1196_v44 = vmul.f32 %v7247_v13, %v1046_v41  ;;  %v1197_v22 = vmul.f32 %v7249_v16, %v1047_v19  ;;  %v1198_v5 = vmul.f32 %v7251_v51, %v1048_v33  ;;  %v5763_v43 = vpop.eup %5762  ;;  %1311 = vst [vmem:[#allocation2 + $0x100] sm:$0xff] %v1183_v23  ;;  %v9506_v20 = vld [vmem:[#allocation71_spill] sm:$0xff]  ;;  %v9507_v23 = vld [vmem:[#allocation72_spill] sm:$0xff] }
 0x1cb   : > { %1312 = vst [vmem:[#allocation2 + $0x108] sm:$0xff] %v1184_v30  ;;  %1313 = vst [vmem:[#allocation2 + $0x110] sm:$0xff] %v1185_v54  ;;  %v1041_v21 = vmul.f32 %v5755_v3, %v9493_v52  ;;  %v1042_v34 = vmul.f32 %v5755_v3, %v9494_v60  ;;  %v1043_v39 = vmul.f32 %v5755_v3, %v9495_v35  ;;  %5770 = vrsqrt.f32 %v7323_v28 }
 0x1cc   : > { %1314 = vst [vmem:[#allocation2 + $0x118] sm:$0xff] %v1186_v55  ;;  %v1044_v32 = vmul.f32 %v5755_v3, %v9496_v40  ;;  %v7375_v46 = vpop.xlane.xlu0 %867  ;;  %1323 = vst [vmem:[#allocation2 + $0x160] sm:$0xff] %v1195_v61  ;;  %v1053_v42 = vmul.f32 %v5757_v15, %v9497_v59  ;;  %v1054_v48 = vmul.f32 %v5757_v15, %v9498_v47  ;;  %v926_v47 = vmul.f32 0.001953125, %v7325_v38 }
 0x1cd   : > { %1324 = vst [vmem:[#allocation2 + $0x168] sm:$0xff] %v1196_v44  ;;  %1325 = vst [vmem:[#allocation2 + $0x170] sm:$0xff] %v1197_v22  ;;  %v1055_v17 = vmul.f32 %v5757_v15, %v9499_v49  ;;  %v1056_v0 = vmul.f32 %v5757_v15, %v9500_v58  ;;  %v1191_v1 = vmul.f32 %v7245_v57, %v1041_v21  ;;  %v7385_v7 = vpop.xlane.xlu1 %882  ;;  %v5796_v15 = vld [vmem:[%s6837_s16 + $0x180] sm:$0xff]  ;;  %v928_v49 = vmul.f32 0.001953125, %v7345_v2 }
 0x1ce   : > { %1326 = vst [vmem:[#allocation2 + $0x178] sm:$0xff] %v1198_v5  ;;  %v1192_v4 = vmul.f32 %v7247_v13, %v1042_v34  ;;  %v1193_v3 = vmul.f32 %v7249_v16, %v1043_v39  ;;  %v1194_v25 = vmul.f32 %v7251_v51, %v1044_v32  ;;  %v1203_v50 = vmul.f32 %v7245_v57, %v1053_v42  ;;  %v5798_v34 = vld [vmem:[%s6837_s16 + $0x1c8] sm:$0xff]  ;;  %v9508_v39 = vld [vmem:[#allocation73_spill] sm:$0xff] }
 0x1cf   : > { %v1204_v37 = vmul.f32 %v7247_v13, %v1054_v48  ;;  %v1205_v10 = vmul.f32 %v7249_v16, %v1055_v17  ;;  %v1206_v9 = vmul.f32 %v7251_v51, %v1056_v0  ;;  %1319 = vst [vmem:[#allocation2 + $0x140] sm:$0xff] %v1191_v1  ;;  %v1049_v11 = vmul.f32 %v5796_v15, %v5759_v45  ;;  %v9509_v32 = vld [vmem:[#allocation74_spill] sm:$0xff] }
 0x1d0   : > { %1320 = vst [vmem:[#allocation2 + $0x148] sm:$0xff] %v1192_v4  ;;  %1321 = vst [vmem:[#allocation2 + $0x150] sm:$0xff] %v1193_v3  ;;  %v1050_v63 = vmul.f32 %v5759_v45, %v9501_v31  ;;  %v1051_v62 = vmul.f32 %v5759_v45, %v9502_v29  ;;  %v1052_v24 = vmul.f32 %v5759_v45, %v9503_v6  ;;  %v878_v44 = vpop.xlane.xlu0 %877  ;;  %v925_v48 = vmul.f32 0.001953125, %v7331_v12  ;;  %v5799_v31 = vld [vmem:[%s6837_s16 + $0x220] sm:$0xff]  ;;  %v5800_v29 = vld [vmem:[%s6837_s16 + $0x228] sm:$0xff] }
 0x1d1   : > { %1322 = vst [vmem:[#allocation2 + $0x158] sm:$0xff] %v1194_v25  ;;  %1331 = vst [vmem:[#allocation2 + $0x1a0] sm:$0xff] %v1203_v50  ;;  %v1061_v41 = vmul.f32 %v5761_v53, %v9504_v36  ;;  %v1062_v19 = vmul.f32 %v5761_v53, %v9505_v18  ;;  %v1063_v33 = vmul.f32 %v5761_v53, %v9506_v20  ;;  %v893_v42 = vpop.xlane.xlu1 %892  ;;  %v958_v1 = vadd.f32 1e-05, %v926_v47  ;;  %v5801_v6 = vld [vmem:[%s6837_s16 + $0x230] sm:$0xff]  ;;  %v5802_v36 = vld [vmem:[%s6837_s16 + $0x238] sm:$0xff] }
 0x1d2   : > { %1332 = vst [vmem:[#allocation2 + $0x1a8] sm:$0xff] %v1204_v37  ;;  %1333 = vst [vmem:[#allocation2 + $0x1b0] sm:$0xff] %v1205_v10  ;;  %v1064_v30 = vmul.f32 %v5761_v53, %v9507_v23  ;;  %v1199_v54 = vmul.f32 %v7245_v57, %v1049_v11  ;;  %v1200_v55 = vmul.f32 %v7247_v13, %v1050_v63  ;;  %v5797_v53 = vld [vmem:[%s6837_s16 + $0x1c0] sm:$0xff]  ;;  %v957_v4 = vadd.f32 1e-05, %v925_v48  ;;  %v5810_v48 = vld [vmem:[%s6837_s16 + $0x278] sm:$0xff] }
 0x1d3   : > { %1334 = vst [vmem:[#allocation2 + $0x1b8] sm:$0xff] %v1206_v9  ;;  %v1201_v45 = vmul.f32 %v7249_v16, %v1051_v62  ;;  %v1202_v61 = vmul.f32 %v7251_v51, %v1052_v24  ;;  %v1211_v22 = vmul.f32 %v7245_v57, %v1061_v41  ;;  %v1212_v5 = vmul.f32 %v7247_v13, %v1062_v19 }
 0x1d4   : > { %v1213_v52 = vmul.f32 %v7249_v16, %v1063_v33  ;;  %v1214_v21 = vmul.f32 %v7251_v51, %v1064_v30  ;;  %1327 = vst [vmem:[#allocation2 + $0x180] sm:$0xff] %v1199_v54  ;;  %1328 = vst [vmem:[#allocation2 + $0x188] sm:$0xff] %v1200_v55  ;;  %v1057_v60 = vmul.f32 %v5797_v53, %v5763_v43  ;;  %v960_v3 = vadd.f32 1e-05, %v928_v49  ;;  %v888_v2 = vpop.xlane.xlu0 %887 }
 0x1d5   : > { %1329 = vst [vmem:[#allocation2 + $0x190] sm:$0xff] %v1201_v45  ;;  %1330 = vst [vmem:[#allocation2 + $0x198] sm:$0xff] %v1202_v61  ;;  %v1058_v35 = vmul.f32 %v5798_v34, %v5763_v43  ;;  %v1059_v40 = vmul.f32 %v5763_v43, %v9508_v39  ;;  %v1060_v59 = vmul.f32 %v5763_v43, %v9509_v32  ;;  %v930_v38 = vmul.f32 0.001953125, %v7365_v56  ;;  %v903_v37 = vpop.xlane.xlu1 %902  ;;  %v5807_v39 = vld [vmem:[%s6837_s16 + $0x260] sm:$0xff]  ;;  %v5808_v32 = vld [vmem:[%s6837_s16 + $0x268] sm:$0xff] }
 0x1d6   : > { %1339 = vst [vmem:[#allocation2 + $0x1e0] sm:$0xff] %v1211_v22  ;;  %1340 = vst [vmem:[#allocation2 + $0x1e8] sm:$0xff] %v1212_v5  ;;  %v1207_v17 = vmul.f32 %v7245_v57, %v1057_v60  ;;  %v929_v12 = vmul.f32 0.001953125, %v7375_v46  ;;  %v932_v26 = vmul.f32 0.001953125, %v7385_v7  ;;  %5772 = vrsqrt.f32 %v958_v1  ;;  %v5765_v7 = vpop.eup %5764  ;;  %v5804_v5 = vld [vmem:[%s6837_s16 + $0x208] sm:$0xff]  ;;  %v5806_v60 = vld [vmem:[%s6837_s16 + $0x218] sm:$0xff] }
 0x1d7   : > { %1341 = vst [vmem:[#allocation2 + $0x1f0] sm:$0xff] %v1213_v52  ;;  %1342 = vst [vmem:[#allocation2 + $0x1f8] sm:$0xff] %v1214_v21  ;;  %v1208_v58 = vmul.f32 %v7247_v13, %v1058_v35  ;;  %v1209_v0 = vmul.f32 %v7249_v16, %v1059_v40  ;;  %v1210_v43 = vmul.f32 %v7251_v51, %v1060_v59  ;;  %v959_v25 = vadd.f32 1e-05, %v927_v14  ;;  %v5767_v18 = vpop.eup %5766  ;;  %v5805_v21 = vld [vmem:[%s6837_s16 + $0x210] sm:$0xff] }
 0x1d8   : > { %1335 = vst [vmem:[#allocation2 + $0x1c0] sm:$0xff] %v1207_v17  ;;  %v962_v50 = vadd.f32 1e-05, %v930_v38  ;;  %5774 = vrsqrt.f32 %v957_v4  ;;  %v961_v10 = vadd.f32 1e-05, %v929_v12  ;;  %v931_v27 = vmul.f32 0.001953125, %v878_v44  ;;  %v898_v28 = vpop.xlane.xlu0 %897  ;;  %v5769_v23 = vpop.eup %5768 }
 0x1d9   : > { %1336 = vst [vmem:[#allocation2 + $0x1c8] sm:$0xff] %v1208_v58  ;;  %1337 = vst [vmem:[#allocation2 + $0x1d0] sm:$0xff] %v1209_v0  ;;  %v934_v9 = vmul.f32 0.001953125, %v893_v42  ;;  %5776 = vrsqrt.f32 %v960_v3  ;;  %v964_v8 = vadd.f32 1e-05, %v932_v26  ;;  %v933_v56 = vmul.f32 0.001953125, %v888_v2  ;;  %v5771_v61 = vpop.eup %5770 }
 0x1da   : > { %1338 = vst [vmem:[#allocation2 + $0x1d8] sm:$0xff] %v1210_v43  ;;  %5778 = vrsqrt.f32 %v959_v25  ;;  %v936_v46 = vmul.f32 0.001953125, %v903_v37  ;;  %v7426_v15 = vadd.f32 1e-05, %v931_v27  ;;  %v1069_v63 = vmul.f32 %v5799_v31, %v5765_v7  ;;  %v5803_v44 = vld [vmem:[%s6837_s16 + $0x200] sm:$0xff]  ;;  %v5809_v42 = vld [vmem:[%s6837_s16 + $0x270] sm:$0xff] }
 0x1db   : > { %5780 = vrsqrt.f32 %v962_v50  ;;  %v7428_v11 = vadd.f32 1e-05, %v934_v9  ;;  %v1070_v62 = vmul.f32 %v5800_v29, %v5765_v7  ;;  %v1071_v24 = vmul.f32 %v5801_v6, %v5765_v7  ;;  %v5811_v26 = vld [vmem:[%s6837_s16 + $0x240] sm:$0xff]  ;;  %v5812_v50 = vld [vmem:[%s6837_s16 + $0x248] sm:$0xff]  ;;  %v5814_v9 = vld [vmem:[%s6837_s16 + $0x258] sm:$0xff] }
 0x1dc   : > { %5782 = vrsqrt.f32 %v961_v10  ;;  %v1072_v41 = vmul.f32 %v5802_v36, %v5765_v7  ;;  %v7434_v19 = vadd.f32 1e-05, %v933_v56  ;;  %v7436_v20 = vadd.f32 1e-05, %v936_v46  ;;  %v5813_v10 = vld [vmem:[%s6837_s16 + $0x250] sm:$0xff]  ;;  %v5815_v46 = vld [vmem:[%s6837_s16 + $0x2a0] sm:$0xff] }
 0x1dd   : > { %5784 = vrsqrt.f32 %v964_v8  ;;  %v7438_v33 = vmul.f32 0.001953125, %v898_v28  ;;  %v1219_v30 = vmul.f32 %v7245_v57, %v1069_v63  ;;  %v1220_v54 = vmul.f32 %v7247_v13, %v1070_v62  ;;  %v5816_v7 = vld [vmem:[%s6837_s16 + $0x2a8] sm:$0xff]  ;;  %v5817_v63 = vld [vmem:[%s6837_s16 + $0x2b0] sm:$0xff]  ;;  %v5818_v62 = vld [vmem:[%s6837_s16 + $0x2b8] sm:$0xff] }
 0x1de   : > { %v1221_v55 = vmul.f32 %v7249_v16, %v1071_v24  ;;  %v1222_v45 = vmul.f32 %v7251_v51, %v1072_v41  ;;  %v1065_v22 = vmul.f32 %v5803_v44, %v5767_v18  ;;  %v1066_v52 = vmul.f32 %v5804_v5, %v5767_v18  ;;  %v5819_v44 = vld [vmem:[%s6837_s16 + $0x280] sm:$0xff]  ;;  %v5820_v5 = vld [vmem:[%s6837_s16 + $0x288] sm:$0xff] }
 0x1df   : > { %v1067_v53 = vmul.f32 %v5805_v21, %v5767_v18  ;;  %v1068_v34 = vmul.f32 %v5806_v60, %v5767_v18  ;;  %1347 = vst [vmem:[#allocation2 + $0x220] sm:$0xff] %v1219_v30  ;;  %1348 = vst [vmem:[#allocation2 + $0x228] sm:$0xff] %v1220_v54  ;;  %v1077_v40 = vmul.f32 %v5807_v39, %v5769_v23  ;;  %v5821_v21 = vld [vmem:[%s6837_s16 + $0x290] sm:$0xff]  ;;  %v5822_v60 = vld [vmem:[%s6837_s16 + $0x298] sm:$0xff]  ;;  %5786 = vrsqrt.f32 %v7426_v15 }
 0x1e0   : > { %v5773_v35 = vpop.eup %5772  ;;  %1349 = vst [vmem:[#allocation2 + $0x230] sm:$0xff] %v1221_v55  ;;  %1350 = vst [vmem:[#allocation2 + $0x238] sm:$0xff] %v1222_v45  ;;  %v1078_v59 = vmul.f32 %v5808_v32, %v5769_v23  ;;  %v1079_v47 = vmul.f32 %v5809_v42, %v5769_v23  ;;  %v1080_v49 = vmul.f32 %v5810_v48, %v5769_v23  ;;  %5788 = vrsqrt.f32 %v7428_v11  ;;  %v5846_v11 = vld [vmem:[%s6837_s16 + $0x358] sm:$0xff] }
 0x1e1   : > { %v1215_v58 = vmul.f32 %v7245_v57, %v1065_v22  ;;  %v1216_v0 = vmul.f32 %v7247_v13, %v1066_v52  ;;  %v1217_v43 = vmul.f32 %v7249_v16, %v1067_v53  ;;  %v1218_v1 = vmul.f32 %v7251_v51, %v1068_v34 }
 0x1e2   : > { %v5775_v17 = vpop.eup %5774  ;;  %v1227_v3 = vmul.f32 %v7245_v57, %v1077_v40  ;;  %v1228_v14 = vmul.f32 %v7247_v13, %v1078_v59  ;;  %v1229_v38 = vmul.f32 %v7249_v16, %v1079_v47  ;;  %v1230_v12 = vmul.f32 %v7251_v51, %v1080_v49  ;;  %v5824_v40 = vld [vmem:[%s6837_s16 + $0x2e8] sm:$0xff]  ;;  %v5825_v59 = vld [vmem:[%s6837_s16 + $0x2f0] sm:$0xff]  ;;  %v5826_v47 = vld [vmem:[%s6837_s16 + $0x2f8] sm:$0xff] }
 0x1e3   : > { %v7456_v4 = vpop.eup %5776  ;;  %1343 = vst [vmem:[#allocation2 + $0x200] sm:$0xff] %v1215_v58  ;;  %1344 = vst [vmem:[#allocation2 + $0x208] sm:$0xff] %v1216_v0  ;;  %v1073_v25 = vmul.f32 %v5811_v26, %v5771_v61  ;;  %v1074_v37 = vmul.f32 %v5812_v50, %v5771_v61  ;;  %v1075_v27 = vmul.f32 %v5813_v10, %v5771_v61  ;;  %5790 = vrsqrt.f32 %v7434_v19  ;;  %v5847_v19 = vld [vmem:[%s6837_s16 + $0x3a0] sm:$0xff] }
 0x1e4   : > { %v7462_v2 = vpop.eup %5778  ;;  %1345 = vst [vmem:[#allocation2 + $0x210] sm:$0xff] %v1217_v43  ;;  %1346 = vst [vmem:[#allocation2 + $0x218] sm:$0xff] %v1218_v1  ;;  %v1076_v8 = vmul.f32 %v5814_v9, %v5771_v61  ;;  %v1085_v28 = vmul.f32 %v5815_v46, %v5773_v35  ;;  %v1086_v31 = vmul.f32 %v5816_v7, %v5773_v35  ;;  %5792 = vrsqrt.f32 %v7436_v20 }
 0x1e5   : > { %v7468_v56 = vpop.eup %5780  ;;  %1355 = vst [vmem:[#allocation2 + $0x260] sm:$0xff] %v1227_v3  ;;  %1356 = vst [vmem:[#allocation2 + $0x268] sm:$0xff] %v1228_v14  ;;  %v1087_v29 = vmul.f32 %v5817_v63, %v5773_v35  ;;  %v1088_v6 = vmul.f32 %v5818_v62, %v5773_v35  ;;  %v1223_v36 = vmul.f32 %v7245_v57, %v1073_v25  ;;  %v5823_v35 = vld [vmem:[%s6837_s16 + $0x2e0] sm:$0xff]  ;;  %v5829_v25 = vld [vmem:[%s6837_s16 + $0x2d0] sm:$0xff] }
 0x1e6   : > { %1357 = vst [vmem:[#allocation2 + $0x270] sm:$0xff] %v1229_v38  ;;  %1358 = vst [vmem:[#allocation2 + $0x278] sm:$0xff] %v1230_v12  ;;  %v7474_v24 = vpop.eup %5782  ;;  %v1224_v41 = vmul.f32 %v7247_v13, %v1074_v37  ;;  %v1225_v18 = vmul.f32 %v7249_v16, %v1075_v27  ;;  %v1226_v23 = vmul.f32 %v7251_v51, %v1076_v8  ;;  %v5828_v12 = vld [vmem:[%s6837_s16 + $0x2c8] sm:$0xff]  ;;  %v5830_v37 = vld [vmem:[%s6837_s16 + $0x2d8] sm:$0xff] }
 0x1e7   : > { %v1235_v30 = vmul.f32 %v7245_v57, %v1085_v28  ;;  %v1236_v54 = vmul.f32 %v7247_v13, %v1086_v31  ;;  %v1237_v55 = vmul.f32 %v7249_v16, %v1087_v29  ;;  %v1238_v45 = vmul.f32 %v7251_v51, %v1088_v6  ;;  %v7484_v61 = vpop.eup %5784  ;;  %1351 = vst [vmem:[#allocation2 + $0x240] sm:$0xff] %v1223_v36  ;;  %v5831_v27 = vld [vmem:[%s6837_s16 + $0x320] sm:$0xff]  ;;  %v5832_v8 = vld [vmem:[%s6837_s16 + $0x328] sm:$0xff]  ;;  %v5833_v28 = vld [vmem:[%s6837_s16 + $0x330] sm:$0xff] }
 0x1e8   : > { %1352 = vst [vmem:[#allocation2 + $0x248] sm:$0xff] %v1224_v41  ;;  %1353 = vst [vmem:[#allocation2 + $0x250] sm:$0xff] %v1225_v18  ;;  %v1081_v22 = vmul.f32 %v5819_v44, %v5775_v17  ;;  %v1082_v52 = vmul.f32 %v5820_v5, %v5775_v17  ;;  %v1083_v53 = vmul.f32 %v5821_v21, %v5775_v17  ;;  %v5834_v31 = vld [vmem:[%s6837_s16 + $0x338] sm:$0xff] }
 0x1e9   : > { %1354 = vst [vmem:[#allocation2 + $0x258] sm:$0xff] %v1226_v23  ;;  %v1084_v34 = vmul.f32 %v5822_v60, %v5775_v17  ;;  %1363 = vst [vmem:[#allocation2 + $0x2a0] sm:$0xff] %v1235_v30  ;;  %v1093_v39 = vmul.f32 %v5823_v35, %v7456_v4  ;;  %v1094_v32 = vmul.f32 %v5824_v40, %v7456_v4 }
 0x1ea   : > { %1364 = vst [vmem:[#allocation2 + $0x2a8] sm:$0xff] %v1236_v54  ;;  %1365 = vst [vmem:[#allocation2 + $0x2b0] sm:$0xff] %v1237_v55  ;;  %v1095_v42 = vmul.f32 %v5825_v59, %v7456_v4  ;;  %v1096_v48 = vmul.f32 %v5826_v47, %v7456_v4  ;;  %v1231_v49 = vmul.f32 %v7245_v57, %v1081_v22  ;;  %v5827_v4 = vld [vmem:[%s6837_s16 + $0x2c0] sm:$0xff]  ;;  %v5836_v54 = vld [vmem:[%s6837_s16 + $0x308] sm:$0xff] }
 0x1eb   : > { %1366 = vst [vmem:[#allocation2 + $0x2b8] sm:$0xff] %v1238_v45  ;;  %v1232_v17 = vmul.f32 %v7247_v13, %v1082_v52  ;;  %v1233_v58 = vmul.f32 %v7249_v16, %v1083_v53  ;;  %v1234_v0 = vmul.f32 %v7251_v51, %v1084_v34  ;;  %v1243_v43 = vmul.f32 %v7245_v57, %v1093_v39  ;;  %v5837_v45 = vld [vmem:[%s6837_s16 + $0x310] sm:$0xff]  ;;  %v5838_v22 = vld [vmem:[%s6837_s16 + $0x318] sm:$0xff]  ;;  %v5839_v52 = vld [vmem:[%s6837_s16 + $0x360] sm:$0xff] }
 0x1ec   : > { %v1244_v1 = vmul.f32 %v7247_v13, %v1094_v32  ;;  %v1245_v3 = vmul.f32 %v7249_v16, %v1095_v42  ;;  %v1246_v14 = vmul.f32 %v7251_v51, %v1096_v48  ;;  %1359 = vst [vmem:[#allocation2 + $0x280] sm:$0xff] %v1231_v49  ;;  %v1089_v38 = vmul.f32 %v5827_v4, %v7462_v2  ;;  %v5840_v53 = vld [vmem:[%s6837_s16 + $0x368] sm:$0xff]  ;;  %v5841_v34 = vld [vmem:[%s6837_s16 + $0x370] sm:$0xff]  ;;  %v5842_v39 = vld [vmem:[%s6837_s16 + $0x378] sm:$0xff] }
 0x1ed   : > { %1360 = vst [vmem:[#allocation2 + $0x288] sm:$0xff] %v1232_v17  ;;  %1361 = vst [vmem:[#allocation2 + $0x290] sm:$0xff] %v1233_v58  ;;  %v1090_v26 = vmul.f32 %v5828_v12, %v7462_v2  ;;  %v1091_v50 = vmul.f32 %v5829_v25, %v7462_v2  ;;  %v1092_v10 = vmul.f32 %v5830_v37, %v7462_v2  ;;  %v5787_v58 = vpop.eup %5786  ;;  %v5850_v37 = vld [vmem:[%s6837_s16 + $0x3b8] sm:$0xff] }
 0x1ee   : > { %1362 = vst [vmem:[#allocation2 + $0x298] sm:$0xff] %v1234_v0  ;;  %1371 = vst [vmem:[#allocation2 + $0x2e0] sm:$0xff] %v1243_v43  ;;  %v1101_v9 = vmul.f32 %v5831_v27, %v7468_v56  ;;  %v1102_v46 = vmul.f32 %v5832_v8, %v7468_v56  ;;  %v1103_v7 = vmul.f32 %v5833_v28, %v7468_v56  ;;  %v5789_v15 = vpop.eup %5788  ;;  %v5843_v0 = vld [vmem:[%s6837_s16 + $0x340] sm:$0xff] }
 0x1ef   : > { %1372 = vst [vmem:[#allocation2 + $0x2e8] sm:$0xff] %v1244_v1  ;;  %1373 = vst [vmem:[#allocation2 + $0x2f0] sm:$0xff] %v1245_v3  ;;  %v1104_v63 = vmul.f32 %v5834_v31, %v7468_v56  ;;  %v1239_v2 = vmul.f32 %v7245_v57, %v1089_v38  ;;  %v1240_v29 = vmul.f32 %v7247_v13, %v1090_v26  ;;  %v5835_v56 = vld [vmem:[%s6837_s16 + $0x300] sm:$0xff]  ;;  %v5844_v1 = vld [vmem:[%s6837_s16 + $0x348] sm:$0xff]  ;;  %v5791_v12 = vpop.eup %5790 }
 0x1f0   : > { %1374 = vst [vmem:[#allocation2 + $0x2f8] sm:$0xff] %v1246_v14  ;;  %v1241_v62 = vmul.f32 %v7249_v16, %v1091_v50  ;;  %v1242_v6 = vmul.f32 %v7251_v51, %v1092_v10  ;;  %v1251_v36 = vmul.f32 %v7245_v57, %v1101_v9  ;;  %v1252_v41 = vmul.f32 %v7247_v13, %v1102_v46  ;;  %v5845_v14 = vld [vmem:[%s6837_s16 + $0x350] sm:$0xff]  ;;  %v5793_v27 = vpop.eup %5792 }
 0x1f1   : > { %v1253_v18 = vmul.f32 %v7249_v16, %v1103_v7  ;;  %v1254_v23 = vmul.f32 %v7251_v51, %v1104_v63  ;;  %1367 = vst [vmem:[#allocation2 + $0x2c0] sm:$0xff] %v1239_v2  ;;  %1368 = vst [vmem:[#allocation2 + $0x2c8] sm:$0xff] %v1240_v29  ;;  %v1097_v30 = vmul.f32 %v5835_v56, %v7474_v24  ;;  %v5849_v50 = vld [vmem:[%s6837_s16 + $0x3b0] sm:$0xff]  ;;  %v5851_v29 = vld [vmem:[%s6837_s16 + $0x380] sm:$0xff] }
 0x1f2   : > { %1369 = vst [vmem:[#allocation2 + $0x2d0] sm:$0xff] %v1241_v62  ;;  %1370 = vst [vmem:[#allocation2 + $0x2d8] sm:$0xff] %v1242_v6  ;;  %v1098_v55 = vmul.f32 %v5836_v54, %v7474_v24  ;;  %v1099_v44 = vmul.f32 %v5837_v45, %v7474_v24  ;;  %v1100_v5 = vmul.f32 %v5838_v22, %v7474_v24  ;;  %v5852_v6 = vld [vmem:[%s6837_s16 + $0x388] sm:$0xff]  ;;  %v5855_v54 = vld [vmem:[%s6837_s16 + $0x3e0] sm:$0xff] }
 0x1f3   : > { %1379 = vst [vmem:[#allocation2 + $0x320] sm:$0xff] %v1251_v36  ;;  %1380 = vst [vmem:[#allocation2 + $0x328] sm:$0xff] %v1252_v41  ;;  %v1109_v21 = vmul.f32 %v5839_v52, %v7484_v61  ;;  %v1110_v60 = vmul.f32 %v5840_v53, %v7484_v61  ;;  %v1111_v35 = vmul.f32 %v5841_v34, %v7484_v61  ;;  %v5853_v41 = vld [vmem:[%s6837_s16 + $0x390] sm:$0xff]  ;;  %v5856_v45 = vld [vmem:[%s6837_s16 + $0x3e8] sm:$0xff] }
 0x1f4   : > { %1381 = vst [vmem:[#allocation2 + $0x330] sm:$0xff] %v1253_v18  ;;  %1382 = vst [vmem:[#allocation2 + $0x338] sm:$0xff] %v1254_v23  ;;  %v1112_v40 = vmul.f32 %v5842_v39, %v7484_v61  ;;  %v1247_v32 = vmul.f32 %v7245_v57, %v1097_v30  ;;  %v1248_v24 = vmul.f32 %v7247_v13, %v1098_v55  ;;  %v967_v61 = vadd.f32 1e-05, %v7438_v33  ;;  %v5848_v33 = vld [vmem:[%s6837_s16 + $0x3a8] sm:$0xff]  ;;  %v5854_v23 = vld [vmem:[%s6837_s16 + $0x398] sm:$0xff] }
 0x1f5   : > { %v1249_v59 = vmul.f32 %v7249_v16, %v1099_v44  ;;  %v1250_v42 = vmul.f32 %v7251_v51, %v1100_v5  ;;  %v1259_v47 = vmul.f32 %v7245_v57, %v1109_v21  ;;  %v1260_v48 = vmul.f32 %v7247_v13, %v1110_v60  ;;  %v5857_v22 = vld [vmem:[%s6837_s16 + $0x3f0] sm:$0xff]  ;;  %v5858_v52 = vld [vmem:[%s6837_s16 + $0x3f8] sm:$0xff] }
 0x1f6   : > { %v1261_v49 = vmul.f32 %v7249_v16, %v1111_v35  ;;  %v1262_v17 = vmul.f32 %v7251_v51, %v1112_v40  ;;  %1375 = vst [vmem:[#allocation2 + $0x300] sm:$0xff] %v1247_v32  ;;  %1376 = vst [vmem:[#allocation2 + $0x308] sm:$0xff] %v1248_v24  ;;  %5794 = vrsqrt.f32 %v967_v61  ;;  %v1105_v43 = vmul.f32 %v5843_v0, %v5787_v58  ;;  %v5862_v61 = vld [vmem:[%s6837_s16 + $0x3d8] sm:$0xff] }
 0x1f7   : > { %1377 = vst [vmem:[#allocation2 + $0x310] sm:$0xff] %v1249_v59  ;;  %1378 = vst [vmem:[#allocation2 + $0x318] sm:$0xff] %v1250_v42  ;;  %v1106_v3 = vmul.f32 %v5844_v1, %v5787_v58  ;;  %v1107_v4 = vmul.f32 %v5845_v14, %v5787_v58  ;;  %v1108_v38 = vmul.f32 %v5846_v11, %v5787_v58  ;;  %v5859_v59 = vld [vmem:[%s6837_s16 + $0x3c0] sm:$0xff] }
 0x1f8   : > { %1387 = vst [vmem:[#allocation2 + $0x360] sm:$0xff] %v1259_v47  ;;  %1388 = vst [vmem:[#allocation2 + $0x368] sm:$0xff] %v1260_v48  ;;  %v1117_v26 = vmul.f32 %v5847_v19, %v5789_v15  ;;  %v1118_v25 = vmul.f32 %v5848_v33, %v5789_v15  ;;  %v1119_v20 = vmul.f32 %v5849_v50, %v5789_v15  ;;  %v5860_v47 = vld [vmem:[%s6837_s16 + $0x3c8] sm:$0xff] }
 0x1f9   : > { %1389 = vst [vmem:[#allocation2 + $0x370] sm:$0xff] %v1261_v49  ;;  %1390 = vst [vmem:[#allocation2 + $0x378] sm:$0xff] %v1262_v17  ;;  %v1120_v10 = vmul.f32 %v5850_v37, %v5789_v15  ;;  %v1255_v9 = vmul.f32 %v7245_v57, %v1105_v43  ;;  %v1256_v8 = vmul.f32 %v7247_v13, %v1106_v3  ;;  %v5861_v49 = vld [vmem:[%s6837_s16 + $0x3d0] sm:$0xff] }
 0x1fa   : > { %v1257_v46 = vmul.f32 %v7249_v16, %v1107_v4  ;;  %v1258_v28 = vmul.f32 %v7251_v51, %v1108_v38  ;;  %v1267_v7 = vmul.f32 %v7245_v57, %v1117_v26  ;;  %v1268_v31 = vmul.f32 %v7247_v13, %v1118_v25 }
 0x1fb   : > { %v1269_v63 = vmul.f32 %v7249_v16, %v1119_v20  ;;  %v1270_v2 = vmul.f32 %v7251_v51, %v1120_v10  ;;  %1383 = vst [vmem:[#allocation2 + $0x340] sm:$0xff] %v1255_v9  ;;  %1384 = vst [vmem:[#allocation2 + $0x348] sm:$0xff] %v1256_v8  ;;  %v1113_v62 = vmul.f32 %v5851_v29, %v5791_v12 }
 0x1fc   : > { %1385 = vst [vmem:[#allocation2 + $0x350] sm:$0xff] %v1257_v46  ;;  %1386 = vst [vmem:[#allocation2 + $0x358] sm:$0xff] %v1258_v28  ;;  %v1114_v36 = vmul.f32 %v5852_v6, %v5791_v12  ;;  %v1115_v18 = vmul.f32 %v5853_v41, %v5791_v12  ;;  %v1116_v56 = vmul.f32 %v5854_v23, %v5791_v12 }
 0x1fd   : > { %1395 = vst [vmem:[#allocation2 + $0x3a0] sm:$0xff] %v1267_v7  ;;  %1396 = vst [vmem:[#allocation2 + $0x3a8] sm:$0xff] %v1268_v31  ;;  %v1125_v55 = vmul.f32 %v5855_v54, %v5793_v27  ;;  %v1126_v44 = vmul.f32 %v5856_v45, %v5793_v27  ;;  %v1127_v5 = vmul.f32 %v5857_v22, %v5793_v27 }
 0x1fe   : > { %1397 = vst [vmem:[#allocation2 + $0x3b0] sm:$0xff] %v1269_v63  ;;  %1398 = vst [vmem:[#allocation2 + $0x3b8] sm:$0xff] %v1270_v2  ;;  %v1128_v21 = vmul.f32 %v5858_v52, %v5793_v27  ;;  %v1263_v53 = vmul.f32 %v7245_v57, %v1113_v62  ;;  %v1264_v60 = vmul.f32 %v7247_v13, %v1114_v36 }
 0x1ff   : > { %v1265_v34 = vmul.f32 %v7249_v16, %v1115_v18  ;;  %v1266_v35 = vmul.f32 %v7251_v51, %v1116_v56  ;;  %v1275_v39 = vmul.f32 %v7245_v57, %v1125_v55  ;;  %v1276_v40 = vmul.f32 %v7247_v13, %v1126_v44 }
 0x200   : > { %v5795_v30 = vpop.eup %5794  ;;  %v1277_v32 = vmul.f32 %v7249_v16, %v1127_v5  ;;  %v1278_v24 = vmul.f32 %v7251_v51, %v1128_v21  ;;  %1391 = vst [vmem:[#allocation2 + $0x380] sm:$0xff] %v1263_v53  ;;  %1392 = vst [vmem:[#allocation2 + $0x388] sm:$0xff] %v1264_v60 }
 0x201   : > { %1393 = vst [vmem:[#allocation2 + $0x390] sm:$0xff] %v1265_v34  ;;  %1394 = vst [vmem:[#allocation2 + $0x398] sm:$0xff] %v1266_v35  ;;  %v1121_v42 = vmul.f32 %v5859_v59, %v5795_v30  ;;  %v1122_v48 = vmul.f32 %v5860_v47, %v5795_v30  ;;  %v1123_v17 = vmul.f32 %v5861_v49, %v5795_v30 }
 0x202   : > { %v1124_v58 = vmul.f32 %v5862_v61, %v5795_v30  ;;  %1403 = vst [vmem:[#allocation2 + $0x3e0] sm:$0xff] %v1275_v39  ;;  %1404 = vst [vmem:[#allocation2 + $0x3e8] sm:$0xff] %v1276_v40 }
 0x203   : > { %1405 = vst [vmem:[#allocation2 + $0x3f0] sm:$0xff] %v1277_v32  ;;  %1406 = vst [vmem:[#allocation2 + $0x3f8] sm:$0xff] %v1278_v24  ;;  %v1271_v15 = vmul.f32 %v7245_v57, %v1121_v42  ;;  %v1272_v0 = vmul.f32 %v7247_v13, %v1122_v48  ;;  %v1273_v43 = vmul.f32 %v7249_v16, %v1123_v17 }
 0x204   : > { %v1274_v1 = vmul.f32 %v7251_v51, %v1124_v58 }
 0x205   : > { %1399 = vst [vmem:[#allocation2 + $0x3c0] sm:$0xff] %v1271_v15  ;;  %1400 = vst [vmem:[#allocation2 + $0x3c8] sm:$0xff] %v1272_v0 }
 0x206   : > { %1401 = vst [vmem:[#allocation2 + $0x3d0] sm:$0xff] %v1273_v43  ;;  %1402 = vst [vmem:[#allocation2 + $0x3d8] sm:$0xff] %v1274_v1 }
 0x207 PF: > { %v1536_v57 = vld [vmem:[%s6848_s0 + $0x8] sm:$0xff]  ;;  %v1542_v13 = vld [vmem:[%s6848_s0 + $0x38] sm:$0xff]  ;;  %v1535_v14 = vld [vmem:[%s6848_s0] sm:$0xff]  ;;  %s6350_s14 = smov 64   ;;  %s4361_s17 = scalar_lea.sflag [#allocation5], %s458_s22 }
 0x208   : > { %v1728_v16 = vld [vmem:[%s6848_s0 + $0x608] sm:$0xff]  ;;  %v4905_v51 = vpack.c.bf16 %v1542_v13, %v1536_v57  ;;  %v1734_v3 = vld [vmem:[%s6848_s0 + $0x638] sm:$0xff]  ;;  %v1541_v4 = vld [vmem:[%s6848_s0 + $0x30] sm:$0xff]  ;;  %s9155_s16 = scalar_lea.sflag [#allocation13], %s384_s21 }
 0x209   : > { %v4969_v11 = vpack.c.bf16 %v1734_v3, %v1728_v16  ;;  %v4907_v38 = vpack.c.bf16 %v1541_v4, %v1535_v14  ;;  %v1727_v12 = vld [vmem:[%s6848_s0 + $0x600] sm:$0xff]  ;;  %v1733_v19 = vld [vmem:[%s6848_s0 + $0x630] sm:$0xff]  ;;  %v1548_v26 = vld [vmem:[%s6848_s0 + $0x68] sm:$0xff] }
 0x20a   : > { %4906 = vmatprep.subr.bf16.mxu1 %v4905_v51  ;;  %v4971_v33 = vpack.c.bf16 %v1733_v19, %v1727_v12  ;;  %v1554_v25 = vld [vmem:[%s6848_s0 + $0x98] sm:$0xff]  ;;  %v1740_v50 = vld [vmem:[%s6848_s0 + $0x668] sm:$0xff]  ;;  %v1547_v27 = vld [vmem:[%s6848_s0 + $0x60] sm:$0xff] }
 0x20b   : > { %v1746_v20 = vld [vmem:[%s6848_s0 + $0x698] sm:$0xff]  ;;  %4970 = vmatprep.subr.bf16.mxu0 %v4969_v11  ;;  %4908 = vmatpush1.bf16.msra.mxu1 %v4907_v38  ;;  %v4909_v37 = vpack.c.bf16 %v1554_v25, %v1548_v26  ;;  %v1553_v9 = vld [vmem:[%s6848_s0 + $0x90] sm:$0xff]  ;;  %v1739_v8 = vld [vmem:[%s6848_s0 + $0x660] sm:$0xff] }
 0x20c   : > { %v4973_v10 = vpack.c.bf16 %v1746_v20, %v1740_v50  ;;  %4972 = vmatpush1.bf16.msra.mxu0 %v4971_v33  ;;  %v4911_v46 = vpack.c.bf16 %v1553_v9, %v1547_v27  ;;  %v1745_v28 = vld [vmem:[%s6848_s0 + $0x690] sm:$0xff]  ;;  %v1560_v7 = vld [vmem:[%s6848_s0 + $0xc8] sm:$0xff]  ;;  %v1566_v31 = vld [vmem:[%s6848_s0 + $0xf8] sm:$0xff] }
 0x20d   : > { %4910 = vmatprep.subr.bf16.mxu1 %v4909_v37  ;;  %v4975_v63 = vpack.c.bf16 %v1745_v28, %v1739_v8  ;;  %v4913_v2 = vpack.c.bf16 %v1566_v31, %v1560_v7  ;;  %v1752_v29 = vld [vmem:[%s6848_s0 + $0x6c8] sm:$0xff]  ;;  %v1758_v62 = vld [vmem:[%s6848_s0 + $0x6f8] sm:$0xff]  ;;  %v1559_v6 = vld [vmem:[%s6848_s0 + $0xc0] sm:$0xff] }
 0x20e   : > { %4974 = vmatprep.subr.bf16.mxu0 %v4973_v10  ;;  %v4977_v36 = vpack.c.bf16 %v1758_v62, %v1752_v29  ;;  %v1565_v41 = vld [vmem:[%s6848_s0 + $0xf0] sm:$0xff]  ;;  %v1751_v18 = vld [vmem:[%s6848_s0 + $0x6c0] sm:$0xff]  ;;  %v1572_v30 = vld [vmem:[%s6848_s0 + $0x128] sm:$0xff] }
 0x20f   : > { %v1757_v23 = vld [vmem:[%s6848_s0 + $0x6f0] sm:$0xff]  ;;  %4912 = vmatpush1.bf16.msra.mxu1 %v4911_v46  ;;  %v4915_v56 = vpack.c.bf16 %v1565_v41, %v1559_v6  ;;  %v1578_v54 = vld [vmem:[%s6848_s0 + $0x158] sm:$0xff]  ;;  %v1764_v55 = vld [vmem:[%s6848_s0 + $0x728] sm:$0xff] }
 0x210   : > { %4976 = vmatpush1.bf16.msra.mxu0 %v4975_v63  ;;  %4914 = vmatprep.subr.bf16.mxu1 %v4913_v2  ;;  %v4979_v45 = vpack.c.bf16 %v1757_v23, %v1751_v18  ;;  %v4917_v44 = vpack.c.bf16 %v1578_v54, %v1572_v30  ;;  %v1770_v22 = vld [vmem:[%s6848_s0 + $0x758] sm:$0xff]  ;;  %v1571_v5 = vld [vmem:[%s6848_s0 + $0x120] sm:$0xff]  ;;  %v1577_v52 = vld [vmem:[%s6848_s0 + $0x150] sm:$0xff] }
 0x211   : > { %4978 = vmatprep.subr.bf16.mxu0 %v4977_v36  ;;  %v4981_v21 = vpack.c.bf16 %v1770_v22, %v1764_v55  ;;  %v1763_v53 = vld [vmem:[%s6848_s0 + $0x720] sm:$0xff]  ;;  %v1769_v60 = vld [vmem:[%s6848_s0 + $0x750] sm:$0xff]  ;;  %v1584_v34 = vld [vmem:[%s6848_s0 + $0x188] sm:$0xff]  ;;  %v4919_v32 = vpack.c.bf16 %v1577_v52, %v1571_v5 }
 0x212   : > { %v1590_v35 = vld [vmem:[%s6848_s0 + $0x1b8] sm:$0xff]  ;;  %v1776_v39 = vld [vmem:[%s6848_s0 + $0x788] sm:$0xff]  ;;  %v4983_v24 = vpack.c.bf16 %v1769_v60, %v1763_v53  ;;  %v1583_v42 = vld [vmem:[%s6848_s0 + $0x180] sm:$0xff] }
 0x213   : > { %v1782_v40 = vld [vmem:[%s6848_s0 + $0x7b8] sm:$0xff]  ;;  %4916 = vmatpush1.bf16.msra.mxu1 %v4915_v56  ;;  %v4921_v59 = vpack.c.bf16 %v1590_v35, %v1584_v34  ;;  %v1589_v47 = vld [vmem:[%s6848_s0 + $0x1b0] sm:$0xff]  ;;  %v1775_v48 = vld [vmem:[%s6848_s0 + $0x780] sm:$0xff] }
 0x214   : > { %4980 = vmatpush1.bf16.msra.mxu0 %v4979_v45  ;;  %4918 = vmatprep.subr.bf16.mxu1 %v4917_v44  ;;  %v4985_v49 = vpack.c.bf16 %v1782_v40, %v1776_v39  ;;  %v1781_v17 = vld [vmem:[%s6848_s0 + $0x7b0] sm:$0xff]  ;;  %v1596_v61 = vld [vmem:[%s6848_s0 + $0x1e8] sm:$0xff]  ;;  %v1602_v58 = vld [vmem:[%s6848_s0 + $0x218] sm:$0xff]  ;;  %v4923_v43 = vpack.c.bf16 %v1589_v47, %v1583_v42 }
 0x215   : > { %4982 = vmatprep.subr.bf16.mxu0 %v4981_v21  ;;  %v1788_v15 = vld [vmem:[%s6848_s0 + $0x7e8] sm:$0xff]  ;;  %v1794_v0 = vld [vmem:[%s6848_s0 + $0x818] sm:$0xff]  ;;  %v4987_v1 = vpack.c.bf16 %v1781_v17, %v1775_v48  ;;  %v4925_v57 = vpack.c.bf16 %v1602_v58, %v1596_v61  ;;  %v1595_v13 = vld [vmem:[%s6848_s0 + $0x1e0] sm:$0xff] }
 0x216   : > { %v1601_v16 = vld [vmem:[%s6848_s0 + $0x210] sm:$0xff]  ;;  %v1787_v51 = vld [vmem:[%s6848_s0 + $0x7e0] sm:$0xff]  ;;  %v4989_v3 = vpack.c.bf16 %v1794_v0, %v1788_v15  ;;  %v1608_v4 = vld [vmem:[%s6848_s0 + $0x248] sm:$0xff] }
 0x217   : > { %4920 = vmatpush1.bf16.msra.mxu1 %v4919_v32  ;;  %v1793_v14 = vld [vmem:[%s6848_s0 + $0x810] sm:$0xff]  ;;  %v1614_v11 = vld [vmem:[%s6848_s0 + $0x278] sm:$0xff]  ;;  %v1800_v38 = vld [vmem:[%s6848_s0 + $0x848] sm:$0xff]  ;;  %v4927_v19 = vpack.c.bf16 %v1601_v16, %v1595_v13 }
 0x218   : > { %4984 = vmatpush1.bf16.msra.mxu0 %v4983_v24  ;;  %4922 = vmatprep.subr.bf16.mxu1 %v4921_v59  ;;  %v1806_v12 = vld [vmem:[%s6848_s0 + $0x878] sm:$0xff]  ;;  %v4991_v26 = vpack.c.bf16 %v1793_v14, %v1787_v51  ;;  %v4929_v33 = vpack.c.bf16 %v1614_v11, %v1608_v4  ;;  %v1607_v25 = vld [vmem:[%s6848_s0 + $0x240] sm:$0xff]  ;;  %v1613_v50 = vld [vmem:[%s6848_s0 + $0x270] sm:$0xff] }
 0x219   : > { %4986 = vmatprep.subr.bf16.mxu0 %v4985_v49  ;;  %v1799_v20 = vld [vmem:[%s6848_s0 + $0x840] sm:$0xff]  ;;  %v4993_v37 = vpack.c.bf16 %v1806_v12, %v1800_v38  ;;  %v1805_v10 = vld [vmem:[%s6848_s0 + $0x870] sm:$0xff]  ;;  %v1620_v27 = vld [vmem:[%s6848_s0 + $0x2a8] sm:$0xff]  ;;  %v4931_v28 = vpack.c.bf16 %v1613_v50, %v1607_v25 }
 0x21a   : > { %v1626_v9 = vld [vmem:[%s6848_s0 + $0x2d8] sm:$0xff]  ;;  %v1812_v8 = vld [vmem:[%s6848_s0 + $0x8a8] sm:$0xff]  ;;  %v4995_v7 = vpack.c.bf16 %v1805_v10, %v1799_v20  ;;  %v1619_v63 = vld [vmem:[%s6848_s0 + $0x2a0] sm:$0xff] }
 0x21b   : > { %4924 = vmatpush1.bf16.msra.mxu1 %v4923_v43  ;;  %v1818_v46 = vld [vmem:[%s6848_s0 + $0x8d8] sm:$0xff]  ;;  %v4933_v31 = vpack.c.bf16 %v1626_v9, %v1620_v27  ;;  %v1625_v2 = vld [vmem:[%s6848_s0 + $0x2d0] sm:$0xff]  ;;  %v1811_v29 = vld [vmem:[%s6848_s0 + $0x8a0] sm:$0xff] }
 0x21c   : > { %4988 = vmatpush1.bf16.msra.mxu0 %v4987_v1  ;;  %4926 = vmatprep.subr.bf16.mxu1 %v4925_v57  ;;  %v4997_v62 = vpack.c.bf16 %v1818_v46, %v1812_v8  ;;  %v1817_v6 = vld [vmem:[%s6848_s0 + $0x8d0] sm:$0xff]  ;;  %v1632_v36 = vld [vmem:[%s6848_s0 + $0x308] sm:$0xff]  ;;  %v1638_v41 = vld [vmem:[%s6848_s0 + $0x338] sm:$0xff]  ;;  %v4935_v56 = vpack.c.bf16 %v1625_v2, %v1619_v63 }
 0x21d   : > { %4990 = vmatprep.subr.bf16.mxu0 %v4989_v3  ;;  %v1824_v18 = vld [vmem:[%s6848_s0 + $0x908] sm:$0xff]  ;;  %v1830_v23 = vld [vmem:[%s6848_s0 + $0x938] sm:$0xff]  ;;  %v4999_v30 = vpack.c.bf16 %v1817_v6, %v1811_v29  ;;  %v4937_v54 = vpack.c.bf16 %v1638_v41, %v1632_v36  ;;  %v1631_v55 = vld [vmem:[%s6848_s0 + $0x300] sm:$0xff] }
 0x21e   : > { %v1637_v45 = vld [vmem:[%s6848_s0 + $0x330] sm:$0xff]  ;;  %v1823_v44 = vld [vmem:[%s6848_s0 + $0x900] sm:$0xff]  ;;  %v5001_v22 = vpack.c.bf16 %v1830_v23, %v1824_v18  ;;  %v1644_v52 = vld [vmem:[%s6848_s0 + $0x368] sm:$0xff] }
 0x21f   : > { %4928 = vmatpush1.bf16.msra.mxu1 %v4927_v19  ;;  %v1829_v5 = vld [vmem:[%s6848_s0 + $0x930] sm:$0xff]  ;;  %v1650_v21 = vld [vmem:[%s6848_s0 + $0x398] sm:$0xff]  ;;  %v1836_v53 = vld [vmem:[%s6848_s0 + $0x968] sm:$0xff]  ;;  %v4939_v34 = vpack.c.bf16 %v1637_v45, %v1631_v55 }
 0x220   : > { %4992 = vmatpush1.bf16.msra.mxu0 %v4991_v26  ;;  %4930 = vmatprep.subr.bf16.mxu1 %v4929_v33  ;;  %v1842_v60 = vld [vmem:[%s6848_s0 + $0x998] sm:$0xff]  ;;  %v5003_v35 = vpack.c.bf16 %v1829_v5, %v1823_v44  ;;  %v4941_v39 = vpack.c.bf16 %v1650_v21, %v1644_v52  ;;  %v1643_v40 = vld [vmem:[%s6848_s0 + $0x360] sm:$0xff]  ;;  %v1649_v32 = vld [vmem:[%s6848_s0 + $0x390] sm:$0xff] }
 0x221   : > { %4994 = vmatprep.subr.bf16.mxu0 %v4993_v37  ;;  %v1835_v24 = vld [vmem:[%s6848_s0 + $0x960] sm:$0xff]  ;;  %v5005_v59 = vpack.c.bf16 %v1842_v60, %v1836_v53  ;;  %v1841_v42 = vld [vmem:[%s6848_s0 + $0x990] sm:$0xff]  ;;  %v1656_v47 = vld [vmem:[%s6848_s0 + $0x3c8] sm:$0xff]  ;;  %v4943_v61 = vpack.c.bf16 %v1649_v32, %v1643_v40 }
 0x222   : > { %v1662_v48 = vld [vmem:[%s6848_s0 + $0x3f8] sm:$0xff]  ;;  %v1848_v49 = vld [vmem:[%s6848_s0 + $0x9c8] sm:$0xff]  ;;  %v5007_v58 = vpack.c.bf16 %v1841_v42, %v1835_v24  ;;  %v1655_v0 = vld [vmem:[%s6848_s0 + $0x3c0] sm:$0xff] }
 0x223   : > { %4932 = vmatpush1.bf16.msra.mxu1 %v4931_v28  ;;  %v1854_v17 = vld [vmem:[%s6848_s0 + $0x9f8] sm:$0xff]  ;;  %v4945_v15 = vpack.c.bf16 %v1662_v48, %v1656_v47  ;;  %v1661_v43 = vld [vmem:[%s6848_s0 + $0x3f0] sm:$0xff]  ;;  %v1847_v1 = vld [vmem:[%s6848_s0 + $0x9c0] sm:$0xff] }
 0x224   : > { %4996 = vmatpush1.bf16.msra.mxu0 %v4995_v7  ;;  %4934 = vmatprep.subr.bf16.mxu1 %v4933_v31  ;;  %v5009_v57 = vpack.c.bf16 %v1854_v17, %v1848_v49  ;;  %v1853_v13 = vld [vmem:[%s6848_s0 + $0x9f0] sm:$0xff]  ;;  %v1668_v16 = vld [vmem:[%s6848_s0 + $0x428] sm:$0xff]  ;;  %v1674_v51 = vld [vmem:[%s6848_s0 + $0x458] sm:$0xff]  ;;  %v4947_v4 = vpack.c.bf16 %v1661_v43, %v1655_v0 }
 0x225   : > { %4998 = vmatprep.subr.bf16.mxu0 %v4997_v62  ;;  %v1860_v3 = vld [vmem:[%s6848_s0 + $0xa28] sm:$0xff]  ;;  %v1866_v14 = vld [vmem:[%s6848_s0 + $0xa58] sm:$0xff]  ;;  %v1667_v11 = vld [vmem:[%s6848_s0 + $0x420] sm:$0xff]  ;;  %v5011_v38 = vpack.c.bf16 %v1853_v13, %v1847_v1  ;;  %v4949_v12 = vpack.c.bf16 %v1674_v51, %v1668_v16 }
 0x226   : > { %v1673_v19 = vld [vmem:[%s6848_s0 + $0x450] sm:$0xff]  ;;  %v1859_v26 = vld [vmem:[%s6848_s0 + $0xa20] sm:$0xff]  ;;  %v5013_v25 = vpack.c.bf16 %v1866_v14, %v1860_v3  ;;  %v1680_v50 = vld [vmem:[%s6848_s0 + $0x488] sm:$0xff] }
 0x227   : > { %4936 = vmatpush1.bf16.msra.mxu1 %v4935_v56  ;;  %v1865_v33 = vld [vmem:[%s6848_s0 + $0xa50] sm:$0xff]  ;;  %v1686_v20 = vld [vmem:[%s6848_s0 + $0x4b8] sm:$0xff]  ;;  %v1408_v37 = vld [vmem:[#allocation2 + $0x8] sm:$0xff]  ;;  %v4951_v8 = vpack.c.bf16 %v1673_v19, %v1667_v11 }
 0x228   : > { %5000 = vmatpush1.bf16.msra.mxu0 %v4999_v30  ;;  %4938 = vmatprep.subr.bf16.mxu1 %v4937_v54  ;;  %v1872_v10 = vld [vmem:[%s6848_s0 + $0xa88] sm:$0xff]  ;;  %v1878_v27 = vld [vmem:[%s6848_s0 + $0xab8] sm:$0xff]  ;;  %v5015_v46 = vpack.c.bf16 %v1865_v33, %v1859_v26  ;;  %v4953_v28 = vpack.c.bf16 %v1686_v20, %v1680_v50  ;;  %v1679_v7 = vld [vmem:[%s6848_s0 + $0x480] sm:$0xff] }
 0x229   : > { %5002 = vmatprep.subr.bf16.mxu0 %v5001_v22  ;;  %1983 = vmatprep.mubr.f32.mxu1 %v1408_v37  ;;  %v1410_v9 = vld [vmem:[#allocation2 + $0x18] sm:$0xff]  ;;  %v1871_v63 = vld [vmem:[%s6848_s0 + $0xa80] sm:$0xff]  ;;  %v5017_v2 = vpack.c.bf16 %v1878_v27, %v1872_v10  ;;  %v1692_v62 = vld [vmem:[%s6848_s0 + $0x4e8] sm:$0xff] }
 0x22a   : > { %2240 = vmatprep.mubr.f32.mxu0 %v1410_v9  ;;  %v1685_v31 = vld [vmem:[%s6848_s0 + $0x4b0] sm:$0xff]  ;;  %v1698_v6 = vld [vmem:[%s6848_s0 + $0x518] sm:$0xff]  ;;  %v1884_v36 = vld [vmem:[%s6848_s0 + $0xae8] sm:$0xff] }
 0x22b   : > { %4940 = vmatpush1.bf16.msra.mxu1 %v4939_v34  ;;  %v1877_v29 = vld [vmem:[%s6848_s0 + $0xab0] sm:$0xff]  ;;  %v1890_v41 = vld [vmem:[%s6848_s0 + $0xb18] sm:$0xff]  ;;  %v4955_v18 = vpack.c.bf16 %v1685_v31, %v1679_v7  ;;  %v4957_v56 = vpack.c.bf16 %v1698_v6, %v1692_v62  ;;  %v1691_v30 = vld [vmem:[%s6848_s0 + $0x4e0] sm:$0xff] }
 0x22c   : > { %5004 = vmatpush1.bf16.msra.mxu0 %v5003_v35  ;;  %4942 = vmatprep.subr.bf16.mxu1 %v4941_v39  ;;  %v5019_v23 = vpack.c.bf16 %v1877_v29, %v1871_v63  ;;  %v1697_v54 = vld [vmem:[%s6848_s0 + $0x510] sm:$0xff]  ;;  %v1883_v55 = vld [vmem:[%s6848_s0 + $0xae0] sm:$0xff]  ;;  %v5021_v45 = vpack.c.bf16 %v1890_v41, %v1884_v36  ;;  %v1704_v22 = vld [vmem:[%s6848_s0 + $0x548] sm:$0xff] }
 0x22d   : > { %5006 = vmatprep.subr.bf16.mxu0 %v5005_v59  ;;  %v1889_v44 = vld [vmem:[%s6848_s0 + $0xb10] sm:$0xff]  ;;  %v1710_v5 = vld [vmem:[%s6848_s0 + $0x578] sm:$0xff]  ;;  %v1896_v52 = vld [vmem:[%s6848_s0 + $0xb48] sm:$0xff]  ;;  %v4959_v53 = vpack.c.bf16 %v1697_v54, %v1691_v30 }
 0x22e   : > { %v1902_v21 = vld [vmem:[%s6848_s0 + $0xb78] sm:$0xff]  ;;  %v5023_v60 = vpack.c.bf16 %v1889_v44, %v1883_v55  ;;  %v4961_v34 = vpack.c.bf16 %v1710_v5, %v1704_v22  ;;  %v1703_v35 = vld [vmem:[%s6848_s0 + $0x540] sm:$0xff]  ;;  %v1709_v39 = vld [vmem:[%s6848_s0 + $0x570] sm:$0xff] }
 0x22f   : > { %4944 = vmatpush1.bf16.msra.mxu1 %v4943_v61  ;;  %v1895_v40 = vld [vmem:[%s6848_s0 + $0xb40] sm:$0xff]  ;;  %v5025_v32 = vpack.c.bf16 %v1902_v21, %v1896_v52  ;;  %v1901_v24 = vld [vmem:[%s6848_s0 + $0xb70] sm:$0xff]  ;;  %v1716_v59 = vld [vmem:[%s6848_s0 + $0x5a8] sm:$0xff]  ;;  %v4963_v49 = vpack.c.bf16 %v1709_v39, %v1703_v35 }
 0x230   : > { %5008 = vmatpush1.bf16.msra.mxu0 %v5007_v58  ;;  %4946 = vmatprep.subr.bf16.mxu1 %v4945_v15  ;;  %v1722_v42 = vld [vmem:[%s6848_s0 + $0x5d8] sm:$0xff]  ;;  %v1908_v47 = vld [vmem:[%s6848_s0 + $0xba8] sm:$0xff]  ;;  %v5027_v17 = vpack.c.bf16 %v1901_v24, %v1895_v40  ;;  %v1715_v58 = vld [vmem:[%s6848_s0 + $0x5a0] sm:$0xff] }
 0x231   : > { %5010 = vmatprep.subr.bf16.mxu0 %v5009_v57  ;;  %v1914_v48 = vld [vmem:[%s6848_s0 + $0xbd8] sm:$0xff]  ;;  %v4965_v61 = vpack.c.bf16 %v1722_v42, %v1716_v59  ;;  %v1721_v15 = vld [vmem:[%s6848_s0 + $0x5d0] sm:$0xff]  ;;  %v1907_v0 = vld [vmem:[%s6848_s0 + $0xba0] sm:$0xff] }
 0x232   : > { %v5029_v43 = vpack.c.bf16 %v1914_v48, %v1908_v47  ;;  %v1913_v1 = vld [vmem:[%s6848_s0 + $0xbd0] sm:$0xff]  ;;  %v1538_v57 = vld [vmem:[%s6848_s0 + $0x18] sm:$0xff]  ;;  %v1544_v13 = vld [vmem:[%s6848_s0 + $0x48] sm:$0xff]  ;;  %v4967_v16 = vpack.c.bf16 %v1721_v15, %v1715_v58 }
 0x233   : > { %4948 = vmatpush1.bf16.msra.mxu1 %v4947_v4  ;;  %v5031_v51 = vpack.c.bf16 %v1913_v1, %v1907_v0  ;;  %v5033_v3 = vpack.c.bf16 %v1544_v13, %v1538_v57  ;;  %v1537_v14 = vld [vmem:[%s6848_s0 + $0x10] sm:$0xff]  ;;  %v1543_v4 = vld [vmem:[%s6848_s0 + $0x40] sm:$0xff]  ;;  %v1550_v11 = vld [vmem:[%s6848_s0 + $0x78] sm:$0xff] }
 0x234   : > { %5012 = vmatpush1.bf16.msra.mxu0 %v5011_v38  ;;  %4950 = vmatprep.subr.bf16.mxu1 %v4949_v12  ;;  %v1556_v38 = vld [vmem:[%s6848_s0 + $0xa8] sm:$0xff]  ;;  %v1407_v12 = vld [vmem:[#allocation2] sm:$0xff]  ;;  %v5035_v19 = vpack.c.bf16 %v1543_v4, %v1537_v14  ;;  %v1549_v20 = vld [vmem:[%s6848_s0 + $0x70] sm:$0xff] }
 0x235   : > { %5014 = vmatprep.subr.bf16.mxu0 %v5013_v25  ;;  %v1409_v26 = vld [vmem:[#allocation2 + $0x10] sm:$0xff]  ;;  %v1412_v33 = vld [vmem:[#allocation2 + $0x28] sm:$0xff]  ;;  %v1414_v25 = vld [vmem:[#allocation2 + $0x38] sm:$0xff]  ;;  %v5037_v50 = vpack.c.bf16 %v1556_v38, %v1550_v11 }
 0x236   : > { %v1555_v37 = vld [vmem:[%s6848_s0 + $0xa0] sm:$0xff]  ;;  %v1562_v10 = vld [vmem:[%s6848_s0 + $0xd8] sm:$0xff]  ;;  %v1568_v27 = vld [vmem:[%s6848_s0 + $0x108] sm:$0xff] }
 0x237   : > { %4952 = vmatpush1.bf16.msra.mxu1 %v4951_v8  ;;  %v1411_v9 = vld [vmem:[#allocation2 + $0x20] sm:$0xff]  ;;  %v1413_v8 = vld [vmem:[#allocation2 + $0x30] sm:$0xff]  ;;  %v1418_v7 = vld [vmem:[#allocation2 + $0x58] sm:$0xff]  ;;  %v5041_v31 = vpack.c.bf16 %v1568_v27, %v1562_v10 }
 0x238   : > { %5016 = vmatpush1.bf16.msra.mxu0 %v5015_v46  ;;  %4954 = vmatprep.subr.bf16.mxu1 %v4953_v28  ;;  %v1416_v46 = vld [vmem:[#allocation2 + $0x48] sm:$0xff]  ;;  %v5039_v28 = vpack.c.bf16 %v1555_v37, %v1549_v20  ;;  %v1561_v63 = vld [vmem:[%s6848_s0 + $0xd0] sm:$0xff]  ;;  %v1574_v29 = vld [vmem:[%s6848_s0 + $0x138] sm:$0xff] }
 0x239   : > { %5018 = vmatprep.subr.bf16.mxu0 %v5017_v2  ;;  %v1567_v2 = vld [vmem:[%s6848_s0 + $0x100] sm:$0xff]  ;;  %v1580_v62 = vld [vmem:[%s6848_s0 + $0x168] sm:$0xff]  ;;  %v1573_v30 = vld [vmem:[%s6848_s0 + $0x130] sm:$0xff] }
 0x23a   : > { %v1415_v6 = vld [vmem:[#allocation2 + $0x40] sm:$0xff]  ;;  %v1417_v36 = vld [vmem:[#allocation2 + $0x50] sm:$0xff]  ;;  %v1420_v41 = vld [vmem:[#allocation2 + $0x68] sm:$0xff] }
 0x23b   : > { %4956 = vmatpush1.bf16.msra.mxu1 %v4955_v18  ;;  %v5043_v18 = vpack.c.bf16 %v1567_v2, %v1561_v63  ;;  %v1579_v54 = vld [vmem:[%s6848_s0 + $0x160] sm:$0xff]  ;;  %v1592_v44 = vld [vmem:[%s6848_s0 + $0x1c8] sm:$0xff]  ;;  %v1426_v21 = vld [vmem:[#allocation2 + $0x98] sm:$0xff] }
 0x23c   : > { %5020 = vmatpush1.bf16.msra.mxu0 %v5019_v23  ;;  %4958 = vmatprep.subr.bf16.mxu1 %v4957_v56  ;;  %v1422_v23 = vld [vmem:[#allocation2 + $0x78] sm:$0xff]  ;;  %v5045_v56 = vpack.c.bf16 %v1580_v62, %v1574_v29  ;;  %v1419_v55 = vld [vmem:[#allocation2 + $0x60] sm:$0xff]  ;;  %v1421_v22 = vld [vmem:[#allocation2 + $0x70] sm:$0xff] }
 0x23d   : > { %5022 = vmatprep.subr.bf16.mxu0 %v5021_v45  ;;  %v1586_v45 = vld [vmem:[%s6848_s0 + $0x198] sm:$0xff]  ;;  %v1424_v5 = vld [vmem:[#allocation2 + $0x88] sm:$0xff]  ;;  %v1545_v59 = vld [vmem:[%s6848_s0 + $0x50] sm:$0xff] }
 0x23e   : > { %v1540_v52 = vld [vmem:[%s6848_s0 + $0x28] sm:$0xff]  ;;  %v1423_v35 = vld [vmem:[#allocation2 + $0x80] sm:$0xff]  ;;  %v5049_v39 = vpack.c.bf16 %v1592_v44, %v1586_v45  ;;  %v1430_v0 = vld [vmem:[#allocation2 + $0xb8] sm:$0xff] }
 0x23f   : > { %4960 = vmatpush1.bf16.msra.mxu1 %v4959_v53  ;;  %v5047_v53 = vpack.c.bf16 %v1579_v54, %v1573_v30  ;;  %v1591_v40 = vld [vmem:[%s6848_s0 + $0x1c0] sm:$0xff]  ;;  %v1425_v42 = vld [vmem:[#allocation2 + $0x90] sm:$0xff]  ;;  %v1598_v47 = vld [vmem:[%s6848_s0 + $0x1f8] sm:$0xff] }
 0x240   : > { %5024 = vmatpush1.bf16.msra.mxu0 %v5023_v60  ;;  %4962 = vmatprep.subr.bf16.mxu1 %v4961_v34  ;;  %v1585_v60 = vld [vmem:[%s6848_s0 + $0x190] sm:$0xff]  ;;  %v1546_v34 = vld [vmem:[%s6848_s0 + $0x58] sm:$0xff]  ;;  %v1539_v24 = vld [vmem:[%s6848_s0 + $0x20] sm:$0xff] }
 0x241   : > { %5026 = vmatprep.subr.bf16.mxu0 %v5025_v32  ;;  %v5161_v32 = vpack.c.bf16 %v1546_v34, %v1540_v52  ;;  %v1604_v48 = vld [vmem:[%s6848_s0 + $0x228] sm:$0xff]  ;;  %v1551_v58 = vld [vmem:[%s6848_s0 + $0x80] sm:$0xff]  ;;  %v1557_v1 = vld [vmem:[%s6848_s0 + $0xb0] sm:$0xff] }
 0x242   : > { %v1428_v15 = vld [vmem:[#allocation2 + $0xa8] sm:$0xff]  ;;  %v5053_v57 = vpack.c.bf16 %v1604_v48, %v1598_v47  ;;  %v1597_v13 = vld [vmem:[%s6848_s0 + $0x1f0] sm:$0xff]  ;;  %v5167_v4 = vpack.c.bf16 %v1557_v1, %v1551_v58  ;;  %v1570_v38 = vld [vmem:[%s6848_s0 + $0x118] sm:$0xff] }
 0x243   : > { %4964 = vmatpush1.bf16.msra.mxu1 %v4963_v49  ;;  %v5163_v49 = vpack.c.bf16 %v1545_v59, %v1539_v24  ;;  %v1616_v14 = vld [vmem:[%s6848_s0 + $0x288] sm:$0xff]  ;;  %v1569_v20 = vld [vmem:[%s6848_s0 + $0x110] sm:$0xff]  ;;  %v1615_v27 = vld [vmem:[%s6848_s0 + $0x280] sm:$0xff] }
 0x244   : > { %5028 = vmatpush1.bf16.msra.mxu0 %v5027_v17  ;;  %4966 = vmatprep.subr.bf16.mxu1 %v4965_v61  ;;  %v1552_v17 = vld [vmem:[%s6848_s0 + $0x88] sm:$0xff]  ;;  %v1558_v61 = vld [vmem:[%s6848_s0 + $0xb8] sm:$0xff]  ;;  %v1609_v10 = vld [vmem:[%s6848_s0 + $0x250] sm:$0xff] }
 0x245   : > { %5030 = vmatprep.subr.bf16.mxu0 %v5029_v43  ;;  %v5051_v43 = vpack.c.bf16 %v1591_v40, %v1585_v60  ;;  %v1564_v11 = vld [vmem:[%s6848_s0 + $0xe8] sm:$0xff]  ;;  %v1431_v63 = vld [vmem:[#allocation2 + $0xc0] sm:$0xff]  ;;  %v1581_v29 = vld [vmem:[%s6848_s0 + $0x170] sm:$0xff] }
 0x246   : > { %v1575_v2 = vld [vmem:[%s6848_s0 + $0x140] sm:$0xff]  ;;  %v1433_v62 = vld [vmem:[#allocation2 + $0xd0] sm:$0xff]  ;;  %v1634_v30 = vld [vmem:[%s6848_s0 + $0x318] sm:$0xff] }
 0x247   : > { %4968 = vmatpush1.bf16.msra.mxu1 %v4967_v16  ;;  %v1603_v16 = vld [vmem:[%s6848_s0 + $0x220] sm:$0xff]  ;;  %v5175_v45 = vpack.c.bf16 %v1581_v29, %v1575_v2  ;;  %v1588_v44 = vld [vmem:[%s6848_s0 + $0x1a8] sm:$0xff]  ;;  %v1442_v34 = vld [vmem:[#allocation2 + $0x118] sm:$0xff] }
 0x248   : > { %5032 = vmatpush1.bf16.msra.mxu0 %v5031_v51  ;;  %5034 = vmatprep.subr.bf16.mxu1 %v5033_v3  ;;  %v1610_v51 = vld [vmem:[%s6848_s0 + $0x258] sm:$0xff]  ;;  %v5165_v3 = vpack.c.bf16 %v1558_v61, %v1552_v17  ;;  %v1587_v52 = vld [vmem:[%s6848_s0 + $0x1a0] sm:$0xff]  ;;  %v1633_v40 = vld [vmem:[%s6848_s0 + $0x310] sm:$0xff] }
 0x249   : > { %5162 = vmatprep.subr.bf16.mxu0 %v5161_v32  ;;  %v5057_v37 = vpack.c.bf16 %v1616_v14, %v1610_v51  ;;  %v1440_v60 = vld [vmem:[#allocation2 + $0x108] sm:$0xff]  ;;  %v1646_v24 = vld [vmem:[%s6848_s0 + $0x378] sm:$0xff]  ;;  %v1605_v58 = vld [vmem:[%s6848_s0 + $0x230] sm:$0xff] }
 0x24a   : > { %1984 = vmatmul.mubr.f32.vlgmr.msra.gmra.mrb[0].mxu1 %v1407_v12  ;;  %v1427_v12 = vld [vmem:[#allocation2 + $0xa0] sm:$0xff]  ;;  %v1600_v48 = vld [vmem:[%s6848_s0 + $0x208] sm:$0xff]  ;;  %v1629_v29 = vld [vmem:[%s6848_s0 + $0x2f0] sm:$0xff] }
 0x24b   : > { %2241 = vmatmul.mubr.f32.vlgmr.msra.gmra.mrb[0].mxu0 %v1409_v26  ;;  %5036 = vmatpush1.bf16.msra.mxu1 %v5035_v19  ;;  %v1429_v19 = vld [vmem:[#allocation2 + $0xb0] sm:$0xff]  ;;  %v1563_v26 = vld [vmem:[%s6848_s0 + $0xe0] sm:$0xff]  ;;  %v1658_v51 = vld [vmem:[%s6848_s0 + $0x3d8] sm:$0xff] }
 0x24c   : > { %1989 = vmatprep.mubr.f32.mxu1 %v1412_v33  ;;  %2246 = vmatprep.mubr.f32.mxu0 %v1414_v25  ;;  %v1432_v33 = vld [vmem:[#allocation2 + $0xc8] sm:$0xff]  ;;  %v1434_v25 = vld [vmem:[#allocation2 + $0xd8] sm:$0xff]  ;;  %v1439_v17 = vld [vmem:[#allocation2 + $0x100] sm:$0xff] }
 0x24d   : > { %5038 = vmatprep.subr.bf16.mxu1 %v5037_v50  ;;  %5164 = vmatpush1.bf16.msra.mxu0 %v5163_v49  ;;  %v5055_v50 = vpack.c.bf16 %v1603_v16, %v1597_v13  ;;  %v1639_v32 = vld [vmem:[%s6848_s0 + $0x340] sm:$0xff]  ;;  %v1606_v49 = vld [vmem:[%s6848_s0 + $0x238] sm:$0xff]  ;;  %v1645_v13 = vld [vmem:[%s6848_s0 + $0x370] sm:$0xff] }
 0x24e   : > { %1990 = vmatmul.mubr.f32.gmra.mrb[2].mxu1 %v1411_v9  ;;  %v1622_v9 = vld [vmem:[%s6848_s0 + $0x2b8] sm:$0xff]  ;;  %5166 = vmatprep.subr.bf16.mxu0 %v5165_v3  ;;  %v1599_v61 = vld [vmem:[%s6848_s0 + $0x200] sm:$0xff]  ;;  %v5067_v1 = vpack.c.bf16 %v1639_v32, %v1633_v40  ;;  %v5181_v3 = vpack.c.bf16 %v1606_v49, %v1600_v48  ;;  %v1664_v14 = vld [vmem:[%s6848_s0 + $0x408] sm:$0xff] }
 0x24f   : > { %2247 = vmatmul.mubr.f32.gmra.mrb[2].mxu0 %v1413_v8  ;;  %1995 = vmatprep.mubr.f32.mxu1 %v1416_v46  ;;  %v5169_v8 = vpack.c.bf16 %v1570_v38, %v1564_v11  ;;  %v1628_v46 = vld [vmem:[%s6848_s0 + $0x2e8] sm:$0xff]  ;;  %v1651_v16 = vld [vmem:[%s6848_s0 + $0x3a0] sm:$0xff]  ;;  %v1618_v38 = vld [vmem:[%s6848_s0 + $0x298] sm:$0xff] }
 0x250   : > { %2252 = vmatprep.mubr.f32.mxu0 %v1418_v7  ;;  %5040 = vmatpush1.bf16.msra.mxu1 %v5039_v28  ;;  %v5171_v28 = vpack.c.bf16 %v1569_v20, %v1563_v26  ;;  %v1576_v7 = vld [vmem:[%s6848_s0 + $0x148] sm:$0xff]  ;;  %v1617_v26 = vld [vmem:[%s6848_s0 + $0x290] sm:$0xff]  ;;  %v5071_v20 = vpack.c.bf16 %v1651_v16, %v1645_v13  ;;  %v1623_v2 = vld [vmem:[%s6848_s0 + $0x2c0] sm:$0xff] }
 0x251   : > { %5042 = vmatprep.subr.bf16.mxu1 %v5041_v31  ;;  %5168 = vmatpush1.bf16.msra.mxu0 %v5167_v4  ;;  %v1582_v31 = vld [vmem:[%s6848_s0 + $0x178] sm:$0xff]  ;;  %v5183_v4 = vpack.c.bf16 %v1605_v58, %v1599_v61  ;;  %v1612_v11 = vld [vmem:[%s6848_s0 + $0x268] sm:$0xff]  ;;  %v1681_v32 = vld [vmem:[%s6848_s0 + $0x490] sm:$0xff] }
 0x252   : > { %1996 = vmatmul.mubr.f32.gmra.mrb[4].mxu1 %v1415_v6  ;;  %v1436_v6 = vld [vmem:[#allocation2 + $0xe8] sm:$0xff]  ;;  %5170 = vmatprep.subr.bf16.mxu0 %v5169_v8  ;;  %v5173_v54 = vpack.c.bf16 %v1582_v31, %v1576_v7  ;;  %v5185_v8 = vpack.c.bf16 %v1618_v38, %v1612_v11  ;;  %v1630_v31 = vld [vmem:[%s6848_s0 + $0x2f8] sm:$0xff]  ;;  %v1653_v58 = vld [vmem:[%s6848_s0 + $0x3b0] sm:$0xff] }
 0x253   : > { %2253 = vmatmul.mubr.f32.gmra.mrb[4].mxu0 %v1417_v36  ;;  %2001 = vmatprep.mubr.f32.mxu1 %v1420_v41  ;;  %v1438_v36 = vld [vmem:[#allocation2 + $0xf8] sm:$0xff]  ;;  %v5059_v41 = vpack.c.bf16 %v1615_v27, %v1609_v10  ;;  %v1663_v27 = vld [vmem:[%s6848_s0 + $0x400] sm:$0xff]  ;;  %v1624_v7 = vld [vmem:[%s6848_s0 + $0x2c8] sm:$0xff] }
 0x254   : > { %2258 = vmatprep.mubr.f32.mxu0 %v1422_v23  ;;  %5044 = vmatpush1.bf16.msra.mxu1 %v5043_v18  ;;  %v5061_v18 = vpack.c.bf16 %v1628_v46, %v1622_v9  ;;  %v1621_v23 = vld [vmem:[%s6848_s0 + $0x2b0] sm:$0xff]  ;;  %v1670_v9 = vld [vmem:[%s6848_s0 + $0x438] sm:$0xff]  ;;  %v1676_v46 = vld [vmem:[%s6848_s0 + $0x468] sm:$0xff] }
 0x255   : > { %5046 = vmatprep.subr.bf16.mxu1 %v5045_v56  ;;  %v1627_v56 = vld [vmem:[%s6848_s0 + $0x2e0] sm:$0xff]  ;;  %5172 = vmatpush1.bf16.msra.mxu0 %v5171_v28  ;;  %v1657_v10 = vld [vmem:[%s6848_s0 + $0x3d0] sm:$0xff]  ;;  %v1694_v48 = vld [vmem:[%s6848_s0 + $0x4f8] sm:$0xff] }
 0x256   : > { %2002 = vmatmul.mubr.f32.gmra.mrb[6].mxu1 %v1419_v55  ;;  %v1640_v55 = vld [vmem:[%s6848_s0 + $0x348] sm:$0xff]  ;;  %5174 = vmatprep.subr.bf16.mxu0 %v5173_v54  ;;  %v1682_v54 = vld [vmem:[%s6848_s0 + $0x498] sm:$0xff]  ;;  %v1647_v61 = vld [vmem:[%s6848_s0 + $0x380] sm:$0xff] }
 0x257   : > { %2259 = vmatmul.mubr.f32.gmra.mrb[6].mxu0 %v1421_v22  ;;  %2007 = vmatprep.mubr.f32.mxu1 %v1424_v5  ;;  %v1594_v22 = vld [vmem:[%s6848_s0 + $0x1d8] sm:$0xff]  ;;  %v1700_v49 = vld [vmem:[%s6848_s0 + $0x528] sm:$0xff]  ;;  %v1659_v38 = vld [vmem:[%s6848_s0 + $0x3e0] sm:$0xff] }
 0x258   : > { %2264 = vmatprep.mubr.f32.mxu0 %v1426_v21  ;;  %5048 = vmatpush1.bf16.msra.mxu1 %v5047_v53  ;;  %v1435_v5 = vld [vmem:[#allocation2 + $0xe0] sm:$0xff]  ;;  %v1593_v21 = vld [vmem:[%s6848_s0 + $0x1d0] sm:$0xff]  ;;  %v5177_v59 = vpack.c.bf16 %v1594_v22, %v1588_v44  ;;  %v1636_v44 = vld [vmem:[%s6848_s0 + $0x328] sm:$0xff]  ;;  %v5085_v13 = vpack.c.bf16 %v1700_v49, %v1694_v48 }
 0x259   : > { %5050 = vmatprep.subr.bf16.mxu1 %v5049_v39  ;;  %v1437_v53 = vld [vmem:[#allocation2 + $0xf0] sm:$0xff]  ;;  %v5065_v39 = vpack.c.bf16 %v1640_v55, %v1634_v30  ;;  %5176 = vmatpush1.bf16.msra.mxu0 %v5175_v45  ;;  %v5179_v47 = vpack.c.bf16 %v1593_v21, %v1587_v52  ;;  %v5189_v30 = vpack.c.bf16 %v1630_v31, %v1624_v7  ;;  %v1642_v22 = vld [vmem:[%s6848_s0 + $0x358] sm:$0xff]  ;;  %v1635_v52 = vld [vmem:[%s6848_s0 + $0x320] sm:$0xff] }
 0x25a   : > { %2008 = vmatmul.mubr.f32.gmra.mrb[8].mxu1 %v1423_v35  ;;  %v5063_v35 = vpack.c.bf16 %v1627_v56, %v1621_v23  ;;  %5178 = vmatprep.subr.bf16.mxu0 %v5177_v59  ;;  %v1669_v23 = vld [vmem:[%s6848_s0 + $0x430] sm:$0xff]  ;;  %v1675_v56 = vld [vmem:[%s6848_s0 + $0x460] sm:$0xff]  ;;  %v5191_v55 = vpack.c.bf16 %v1629_v29, %v1623_v2  ;;  %v1688_v45 = vld [vmem:[%s6848_s0 + $0x4c8] sm:$0xff]  ;;  %v5193_v40 = vpack.c.bf16 %v1642_v22, %v1636_v44 }
 0x25b   : > { %2265 = vmatmul.mubr.f32.gmra.mrb[8].mxu0 %v1425_v42  ;;  %2013 = vmatprep.mubr.f32.mxu1 %v1428_v15  ;;  %v1652_v42 = vld [vmem:[%s6848_s0 + $0x3a8] sm:$0xff]  ;;  %v1641_v21 = vld [vmem:[%s6848_s0 + $0x350] sm:$0xff]  ;;  %v7840_v11 = vld [vmem:[#allocation2 + $0x1a0] sm:$0xff] }
 0x25c   : > { %2270 = vmatprep.mubr.f32.mxu0 %v1430_v0  ;;  %5052 = vmatpush1.bf16.msra.mxu1 %v5051_v43  ;;  %v1441_v15 = vld [vmem:[#allocation2 + $0x110] sm:$0xff]  ;;  %v1444_v0 = vld [vmem:[#allocation2 + $0x128] sm:$0xff]  ;;  %v1446_v43 = vld [vmem:[#allocation2 + $0x138] sm:$0xff] }
 0x25d   : > { %5054 = vmatprep.subr.bf16.mxu1 %v5053_v57  ;;  %v5069_v57 = vpack.c.bf16 %v1652_v42, %v1646_v24  ;;  %5180 = vmatpush1.bf16.msra.mxu0 %v5179_v47  ;;  %v1687_v24 = vld [vmem:[%s6848_s0 + $0x4c0] sm:$0xff]  ;;  %v1648_v59 = vld [vmem:[%s6848_s0 + $0x388] sm:$0xff]  ;;  %v5195_v42 = vpack.c.bf16 %v1641_v21, %v1635_v52  ;;  %v1654_v47 = vld [vmem:[%s6848_s0 + $0x3b8] sm:$0xff] }
 0x25e   : > { %2014 = vmatmul.mubr.f32.gmra.mrb[10].mxu1 %v1427_v12  ;;  %v1443_v12 = vld [vmem:[#allocation2 + $0x120] sm:$0xff]  ;;  %5182 = vmatprep.subr.bf16.mxu0 %v5181_v3  ;;  %v1660_v16 = vld [vmem:[%s6848_s0 + $0x3e8] sm:$0xff]  ;;  %v5199_v3 = vpack.c.bf16 %v1653_v58, %v1647_v61  ;;  %v1470_v29 = vld [vmem:[#allocation2 + $0x1f8] sm:$0xff] }
 0x25f   : > { %2271 = vmatmul.mubr.f32.gmra.mrb[10].mxu0 %v1429_v19  ;;  %2019 = vmatprep.mubr.f32.mxu1 %v1432_v33  ;;  %v1611_v19 = vld [vmem:[%s6848_s0 + $0x260] sm:$0xff]  ;;  %v1445_v33 = vld [vmem:[#allocation2 + $0x130] sm:$0xff]  ;;  %v1474_v22 = vld [vmem:[#allocation2 + $0x218] sm:$0xff] }
 0x260   : > { %2276 = vmatprep.mubr.f32.mxu0 %v1434_v25  ;;  %5056 = vmatpush1.bf16.msra.mxu1 %v5055_v50  ;;  %v1448_v25 = vld [vmem:[#allocation2 + $0x148] sm:$0xff]  ;;  %v1450_v50 = vld [vmem:[#allocation2 + $0x158] sm:$0xff]  ;;  %v5187_v28 = vpack.c.bf16 %v1617_v26, %v1611_v19  ;;  %v1461_v19 = vld [vmem:[#allocation2 + $0x1b0] sm:$0xff] }
 0x261   : > { %5058 = vmatprep.subr.bf16.mxu1 %v5057_v37  ;;  %v5073_v37 = vpack.c.bf16 %v1664_v14, %v1658_v51  ;;  %5184 = vmatpush1.bf16.msra.mxu0 %v5183_v4  ;;  %v1666_v51 = vld [vmem:[%s6848_s0 + $0x418] sm:$0xff]  ;;  %v1693_v14 = vld [vmem:[%s6848_s0 + $0x4f0] sm:$0xff]  ;;  %v1699_v4 = vld [vmem:[%s6848_s0 + $0x520] sm:$0xff] }
 0x262   : > { %2020 = vmatmul.mubr.f32.gmra.mrb[12].mxu1 %v1431_v63  ;;  %v7803_v63 = vld [vmem:[#allocation2 + $0x140] sm:$0xff]  ;;  %5186 = vmatprep.subr.bf16.mxu0 %v5185_v8  ;;  %v7844_v26 = vld [vmem:[#allocation2 + $0x1c8] sm:$0xff]  ;;  %v1465_v7 = vld [vmem:[#allocation2 + $0x1d0] sm:$0xff] }
 0x263   : > { %2277 = vmatmul.mubr.f32.gmra.mrb[12].mxu0 %v1433_v62  ;;  %2025 = vmatprep.mubr.f32.mxu1 %v1436_v6  ;;  %v1449_v62 = vld [vmem:[#allocation2 + $0x150] sm:$0xff]  ;;  %v1452_v6 = vld [vmem:[#allocation2 + $0x168] sm:$0xff]  ;;  %v7852_v8 = vld [vmem:[#allocation2 + $0x1c0] sm:$0xff] }
 0x264   : > { %2282 = vmatprep.mubr.f32.mxu0 %v1438_v36  ;;  %5060 = vmatpush1.bf16.msra.mxu1 %v5059_v41  ;;  %v1454_v36 = vld [vmem:[#allocation2 + $0x178] sm:$0xff]  ;;  %v5075_v41 = vpack.c.bf16 %v1663_v27, %v1657_v10  ;;  %v7856_v31 = vld [vmem:[#allocation2 + $0x1e8] sm:$0xff] }
 0x265   : > { %5062 = vmatprep.subr.bf16.mxu1 %v5061_v18  ;;  %v5077_v18 = vpack.c.bf16 %v1676_v46, %v1670_v9  ;;  %5188 = vmatpush1.bf16.msra.mxu0 %v5187_v28  ;;  %v1706_v27 = vld [vmem:[%s6848_s0 + $0x558] sm:$0xff]  ;;  %v1712_v9 = vld [vmem:[%s6848_s0 + $0x588] sm:$0xff]  ;;  %v1671_v46 = vld [vmem:[%s6848_s0 + $0x440] sm:$0xff] }
 0x266   : > { %2026 = vmatmul.mubr.f32.gmra.mrb[14].mxu1 %v1435_v5  ;;  %v7814_v5 = vld [vmem:[#allocation2 + $0x160] sm:$0xff]  ;;  %5190 = vmatprep.subr.bf16.mxu0 %v5189_v30  ;;  %v1677_v28 = vld [vmem:[%s6848_s0 + $0x470] sm:$0xff]  ;;  %v1696_v21 = vld [vmem:[%s6848_s0 + $0x508] sm:$0xff] }
 0x267   : > { %2283 = vmatmul.mubr.f32.gmra.mrb[14].mxu0 %v1437_v53  ;;  %2031 = vmatprep.mubr.f32.mxu1 %v1440_v60  ;;  %v1453_v53 = vld [vmem:[#allocation2 + $0x170] sm:$0xff]  ;;  %v7818_v60 = vld [vmem:[#allocation2 + $0x188] sm:$0xff]  ;;  %v1478_v48 = vld [vmem:[#allocation2 + $0x238] sm:$0xff] }
 0x268   : > { %2288 = vmatprep.mubr.f32.mxu0 %v1442_v34  ;;  %5064 = vmatpush1.bf16.msra.mxu1 %v5063_v35  ;;  %v1458_v34 = vld [vmem:[#allocation2 + $0x198] sm:$0xff]  ;;  %v5079_v35 = vpack.c.bf16 %v1675_v56, %v1669_v23  ;;  %v1711_v23 = vld [vmem:[%s6848_s0 + $0x580] sm:$0xff]  ;;  %v1708_v61 = vld [vmem:[%s6848_s0 + $0x568] sm:$0xff] }
 0x269   : > { %5066 = vmatprep.subr.bf16.mxu1 %v5065_v39  ;;  %v5081_v39 = vpack.c.bf16 %v1688_v45, %v1682_v54  ;;  %5192 = vmatpush1.bf16.msra.mxu0 %v5191_v55  ;;  %v7864_v56 = vld [vmem:[#allocation2 + $0x1e0] sm:$0xff]  ;;  %v1689_v54 = vld [vmem:[%s6848_s0 + $0x4d0] sm:$0xff]  ;;  %v7868_v45 = vld [vmem:[#allocation2 + $0x208] sm:$0xff] }
 0x26a   : > { %2032 = vmatmul.mubr.f32.gmra.mrb[16].mxu1 %v1439_v17  ;;  %v7828_v17 = vld [vmem:[#allocation2 + $0x180] sm:$0xff]  ;;  %5194 = vmatprep.subr.bf16.mxu0 %v5193_v40  ;;  %v1469_v55 = vld [vmem:[#allocation2 + $0x1f0] sm:$0xff] }
 0x26b   : > { %2289 = vmatmul.mubr.f32.gmra.mrb[16].mxu0 %v1441_v15  ;;  %2037 = vmatprep.mubr.f32.mxu1 %v1444_v0  ;;  %v1457_v15 = vld [vmem:[#allocation2 + $0x190] sm:$0xff]  ;;  %v7832_v0 = vld [vmem:[#allocation2 + $0x1a8] sm:$0xff]  ;;  %v7876_v40 = vld [vmem:[#allocation2 + $0x200] sm:$0xff] }
 0x26c   : > { %2294 = vmatprep.mubr.f32.mxu0 %v1446_v43  ;;  %5068 = vmatpush1.bf16.msra.mxu1 %v5067_v1  ;;  %v5083_v43 = vpack.c.bf16 %v1687_v24, %v1681_v32  ;;  %v1462_v1 = vld [vmem:[#allocation2 + $0x1b8] sm:$0xff]  ;;  %v1683_v30 = vld [vmem:[%s6848_s0 + $0x4a0] sm:$0xff] }
 0x26d   : > { %5070 = vmatprep.subr.bf16.mxu1 %v5069_v57  ;;  %v5197_v57 = vpack.c.bf16 %v1654_v47, %v1648_v59  ;;  %5196 = vmatpush1.bf16.msra.mxu0 %v5195_v42  ;;  %v1695_v32 = vld [vmem:[%s6848_s0 + $0x500] sm:$0xff]  ;;  %v1701_v24 = vld [vmem:[%s6848_s0 + $0x530] sm:$0xff]  ;;  %v1714_v58 = vld [vmem:[%s6848_s0 + $0x598] sm:$0xff] }
 0x26e   : > { %2038 = vmatmul.mubr.f32.gmra.mrb[18].mxu1 %v1443_v12  ;;  %v1665_v12 = vld [vmem:[%s6848_s0 + $0x410] sm:$0xff]  ;;  %v7880_v42 = vld [vmem:[#allocation2 + $0x228] sm:$0xff] }
 0x26f   : > { %2295 = vmatmul.mubr.f32.gmra.mrb[18].mxu0 %v1445_v33  ;;  %2043 = vmatprep.mubr.f32.mxu1 %v1448_v25  ;;  %v5201_v33 = vpack.c.bf16 %v1666_v51, %v1660_v16  ;;  %v1466_v25 = vld [vmem:[#allocation2 + $0x1d8] sm:$0xff]  ;;  %v5203_v10 = vpack.c.bf16 %v1665_v12, %v1659_v38  ;;  %v1473_v59 = vld [vmem:[#allocation2 + $0x210] sm:$0xff] }
 0x270   : > { %2300 = vmatprep.mubr.f32.mxu0 %v1450_v50  ;;  %5072 = vmatpush1.bf16.msra.mxu1 %v5071_v20  ;;  %v5087_v50 = vpack.c.bf16 %v1699_v4, %v1693_v14  ;;  %v1672_v20 = vld [vmem:[%s6848_s0 + $0x448] sm:$0xff]  ;;  %v1713_v16 = vld [vmem:[%s6848_s0 + $0x590] sm:$0xff]  ;;  %v5217_v14 = vpack.c.bf16 %v1714_v58, %v1708_v61 }
 0x271   : > { %5074 = vmatprep.subr.bf16.mxu1 %v5073_v37  ;;  %5198 = vmatprep.subr.bf16.mxu0 %v5197_v57  ;;  %v1678_v37 = vld [vmem:[%s6848_s0 + $0x478] sm:$0xff]  ;;  %v1477_v51 = vld [vmem:[#allocation2 + $0x230] sm:$0xff]  ;;  %v7942_v58 = vld [vmem:[#allocation2 + $0x328] sm:$0xff] }
 0x272   : > { %2044 = vmatmul.mubr.f32.gmra.mrb[20].mxu1 %v7803_v63  ;;  %5200 = vmatpush1.bf16.msra.mxu0 %v5199_v3  ;;  %v5205_v2 = vpack.c.bf16 %v1678_v37, %v1672_v20  ;;  %v7888_v57 = vld [vmem:[#allocation2 + $0x220] sm:$0xff]  ;;  %v7892_v3 = vld [vmem:[#allocation2 + $0x248] sm:$0xff]  ;;  %v1482_v4 = vld [vmem:[#allocation2 + $0x258] sm:$0xff] }
 0x273   : > { %2301 = vmatmul.mubr.f32.gmra.mrb[20].mxu0 %v1449_v62  ;;  %2049 = vmatprep.mubr.f32.mxu1 %v1452_v6  ;;  %v5089_v62 = vpack.c.bf16 %v1712_v9, %v1706_v27  ;;  %v1684_v6 = vld [vmem:[%s6848_s0 + $0x4a8] sm:$0xff]  ;;  %v7900_v20 = vld [vmem:[#allocation2 + $0x240] sm:$0xff] }
 0x274   : > { %2306 = vmatprep.mubr.f32.mxu0 %v1454_v36  ;;  %5076 = vmatpush1.bf16.msra.mxu1 %v5075_v41  ;;  %v1690_v36 = vld [vmem:[%s6848_s0 + $0x4d8] sm:$0xff]  ;;  %v5207_v41 = vpack.c.bf16 %v1677_v28, %v1671_v46  ;;  %v1720_v12 = vld [vmem:[%s6848_s0 + $0x5c8] sm:$0xff]  ;;  %v1719_v37 = vld [vmem:[%s6848_s0 + $0x5c0] sm:$0xff] }
 0x275   : > { %5078 = vmatprep.subr.bf16.mxu1 %v5077_v18  ;;  %5202 = vmatprep.subr.bf16.mxu0 %v5201_v33  ;;  %v1705_v18 = vld [vmem:[%s6848_s0 + $0x550] sm:$0xff]  ;;  %v5209_v44 = vpack.c.bf16 %v1690_v36, %v1684_v6  ;;  %v7904_v9 = vld [vmem:[#allocation2 + $0x268] sm:$0xff]  ;;  %v7910_v6 = vld [vmem:[#allocation2 + $0x260] sm:$0xff] }
 0x276   : > { %2050 = vmatmul.mubr.f32.gmra.mrb[22].mxu1 %v7814_v5  ;;  %5204 = vmatpush1.bf16.msra.mxu0 %v5203_v10  ;;  %v5091_v52 = vpack.c.bf16 %v1711_v23, %v1705_v18  ;;  %v1725_v10 = vld [vmem:[%s6848_s0 + $0x5f0] sm:$0xff] }
 0x277   : > { %2307 = vmatmul.mubr.f32.gmra.mrb[22].mxu0 %v1453_v53  ;;  %2055 = vmatprep.mubr.f32.mxu1 %v7818_v60  ;;  %v1702_v53 = vld [vmem:[%s6848_s0 + $0x538] sm:$0xff]  ;;  %v1481_v27 = vld [vmem:[#allocation2 + $0x250] sm:$0xff] }
 0x278   : > { %2312 = vmatprep.mubr.f32.mxu0 %v1458_v34  ;;  %5080 = vmatpush1.bf16.msra.mxu1 %v5079_v35  ;;  %v5211_v34 = vpack.c.bf16 %v1689_v54, %v1683_v30  ;;  %v1718_v35 = vld [vmem:[%s6848_s0 + $0x5b8] sm:$0xff]  ;;  %v5213_v47 = vpack.c.bf16 %v1702_v53, %v1696_v21  ;;  %v1485_v36 = vld [vmem:[#allocation2 + $0x270] sm:$0xff]  ;;  %v7924_v21 = vld [vmem:[#allocation2 + $0x2c8] sm:$0xff] }
 0x279   : > { %5082 = vmatprep.subr.bf16.mxu1 %v5081_v39  ;;  %5206 = vmatprep.subr.bf16.mxu0 %v5205_v2  ;;  %v1724_v39 = vld [vmem:[%s6848_s0 + $0x5e8] sm:$0xff]  ;;  %v1486_v28 = vld [vmem:[#allocation2 + $0x278] sm:$0xff]  ;;  %v5223_v2 = vpack.c.bf16 %v1725_v10, %v1719_v37  ;;  %v7916_v30 = vld [vmem:[#allocation2 + $0x280] sm:$0xff] }
 0x27a   : > { %2056 = vmatmul.mubr.f32.gmra.mrb[24].mxu1 %v7828_v17  ;;  %5208 = vmatpush1.bf16.msra.mxu0 %v5207_v41  ;;  %v5093_v49 = vpack.c.bf16 %v1724_v39, %v1718_v35  ;;  %v7912_v41 = vld [vmem:[#allocation2 + $0x288] sm:$0xff]  ;;  %v1490_v23 = vld [vmem:[#allocation2 + $0x298] sm:$0xff]  ;;  %v1489_v54 = vld [vmem:[#allocation2 + $0x290] sm:$0xff] }
 0x27b   : > { %2313 = vmatmul.mubr.f32.gmra.mrb[24].mxu0 %v1457_v15  ;;  %2061 = vmatprep.mubr.f32.mxu1 %v7832_v0  ;;  %v5215_v15 = vpack.c.bf16 %v1701_v24, %v1695_v32  ;;  %v1498_v53 = vld [vmem:[#allocation2 + $0x2d8] sm:$0xff]  ;;  %v1497_v35 = vld [vmem:[#allocation2 + $0x2d0] sm:$0xff]  ;;  %v7930_v39 = vld [vmem:[#allocation2 + $0x2e8] sm:$0xff] }
 0x27c   : > { %2318 = vmatprep.mubr.f32.mxu0 %v1462_v1  ;;  %5084 = vmatpush1.bf16.msra.mxu1 %v5083_v43  ;;  %v1717_v43 = vld [vmem:[%s6848_s0 + $0x5b0] sm:$0xff]  ;;  %v1723_v1 = vld [vmem:[%s6848_s0 + $0x5e0] sm:$0xff] }
 0x27d   : > { %5086 = vmatprep.subr.bf16.mxu1 %v5085_v13  ;;  %5210 = vmatprep.subr.bf16.mxu0 %v5209_v44  ;;  %v1707_v13 = vld [vmem:[%s6848_s0 + $0x560] sm:$0xff]  ;;  %v5095_v38 = vpack.c.bf16 %v1723_v1, %v1717_v43  ;;  %v1494_v44 = vld [vmem:[#allocation2 + $0x2b8] sm:$0xff]  ;;  %v1505_v61 = vld [vmem:[#allocation2 + $0x310] sm:$0xff] }
 0x27e   : > { %2062 = vmatmul.mubr.f32.gmra.mrb[26].mxu1 %v7840_v11  ;;  %5212 = vmatpush1.bf16.msra.mxu0 %v5211_v34  ;;  %v5219_v33 = vpack.c.bf16 %v1713_v16, %v1707_v13  ;;  %v7928_v34 = vld [vmem:[#allocation2 + $0x2c0] sm:$0xff]  ;;  %v1502_v32 = vld [vmem:[#allocation2 + $0x2f8] sm:$0xff]  ;;  %v1509_v1 = vld [vmem:[#allocation2 + $0x330] sm:$0xff] }
 0x27f   : > { %2319 = vmatmul.mubr.f32.gmra.mrb[26].mxu0 %v1461_v19  ;;  %2067 = vmatprep.mubr.f32.mxu1 %v7844_v26  ;;  %v1726_v19 = vld [vmem:[%s6848_s0 + $0x5f8] sm:$0xff]  ;;  %v7948_v13 = vld [vmem:[#allocation2 + $0x348] sm:$0xff]  ;;  %v1521_v37 = vld [vmem:[#allocation2 + $0x390] sm:$0xff] }
 0x280   : > { %2324 = vmatprep.mubr.f32.mxu0 %v1466_v25  ;;  %5088 = vmatpush1.bf16.msra.mxu1 %v5087_v50  ;;  %v1730_v25 = vld [vmem:[%s6848_s0 + $0x618] sm:$0xff]  ;;  %v1736_v50 = vld [vmem:[%s6848_s0 + $0x648] sm:$0xff]  ;;  %v5221_v46 = vpack.c.bf16 %v1726_v19, %v1720_v12 }
 0x281   : > { %5090 = vmatprep.subr.bf16.mxu1 %v5089_v62  ;;  %5214 = vmatprep.subr.bf16.mxu0 %v5213_v47  ;;  %v1738_v62 = vld [vmem:[%s6848_s0 + $0x658] sm:$0xff]  ;;  %v7936_v47 = vld [vmem:[#allocation2 + $0x308] sm:$0xff]  ;;  %v1517_v19 = vld [vmem:[#allocation2 + $0x370] sm:$0xff] }
 0x282   : > { %2068 = vmatmul.mubr.f32.gmra.mrb[28].mxu1 %v7852_v8  ;;  %5216 = vmatpush1.bf16.msra.mxu0 %v5215_v15  ;;  %v7934_v24 = vld [vmem:[#allocation2 + $0x2e0] sm:$0xff]  ;;  %v1510_v15 = vld [vmem:[#allocation2 + $0x338] sm:$0xff]  ;;  %v7966_v10 = vld [vmem:[#allocation2 + $0x3a8] sm:$0xff] }
 0x283   : > { %2325 = vmatmul.mubr.f32.gmra.mrb[28].mxu0 %v1465_v7  ;;  %2073 = vmatprep.mubr.f32.mxu1 %v7856_v31  ;;  %v5097_v7 = vpack.c.bf16 %v1736_v50, %v1730_v25  ;;  %v7946_v43 = vld [vmem:[#allocation2 + $0x320] sm:$0xff]  ;;  %v1514_v16 = vld [vmem:[#allocation2 + $0x358] sm:$0xff] }
 0x284   : > { %2330 = vmatprep.mubr.f32.mxu0 %v1470_v29  ;;  %5092 = vmatpush1.bf16.msra.mxu1 %v5091_v52  ;;  %v1732_v29 = vld [vmem:[%s6848_s0 + $0x628] sm:$0xff]  ;;  %v7958_v12 = vld [vmem:[#allocation2 + $0x360] sm:$0xff]  ;;  %v1522_v25 = vld [vmem:[#allocation2 + $0x398] sm:$0xff] }
 0x285   : > { %5094 = vmatprep.subr.bf16.mxu1 %v5093_v49  ;;  %5218 = vmatprep.subr.bf16.mxu0 %v5217_v14  ;;  %v5225_v18 = vpack.c.bf16 %v1738_v62, %v1732_v29  ;;  %v1493_v52 = vld [vmem:[#allocation2 + $0x2b0] sm:$0xff]  ;;  %v7940_v49 = vld [vmem:[#allocation2 + $0x300] sm:$0xff] }
 0x286   : > { %2074 = vmatmul.mubr.f32.gmra.mrb[30].mxu1 %v7864_v56  ;;  %5220 = vmatpush1.bf16.msra.mxu0 %v5219_v33  ;;  %v1513_v14 = vld [vmem:[#allocation2 + $0x350] sm:$0xff]  ;;  %v7960_v33 = vld [vmem:[#allocation2 + $0x388] sm:$0xff]  ;;  %v7964_v50 = vld [vmem:[#allocation2 + $0x380] sm:$0xff] }
 0x287   : > { %2331 = vmatmul.mubr.f32.gmra.mrb[30].mxu0 %v1469_v55  ;;  %2079 = vmatprep.mubr.f32.mxu1 %v7868_v45  ;;  %v7918_v55 = vld [vmem:[#allocation2 + $0x2a8] sm:$0xff]  ;;  %v7976_v29 = vld [vmem:[#allocation2 + $0x3c0] sm:$0xff]  ;;  %v1529_v62 = vld [vmem:[#allocation2 + $0x3d0] sm:$0xff] }
 0x288   : > { %2336 = vmatprep.mubr.f32.mxu0 %v1474_v22  ;;  %5096 = vmatpush1.bf16.msra.mxu1 %v5095_v38  ;;  %v7922_v22 = vld [vmem:[#allocation2 + $0x2a0] sm:$0xff]  ;;  %v1518_v38 = vld [vmem:[#allocation2 + $0x378] sm:$0xff] }
 0x289   : > { %5222 = vmatprep.subr.bf16.mxu0 %v5221_v46  ;;  %5098 = vmatprep.subr.bf16.mxu1 %v5097_v7  ;;  %v7970_v46 = vld [vmem:[#allocation2 + $0x3a0] sm:$0xff]  ;;  %v7972_v7 = vld [vmem:[#allocation2 + $0x3c8] sm:$0xff] }
 0x28a   : > { %2080 = vmatmul.mubr.f32.gmra.mrb[32].mxu1 %v7876_v40  ;;  %5224 = vmatpush1.bf16.msra.mxu0 %v5223_v2  ;;  %v1530_v2 = vld [vmem:[#allocation2 + $0x3d8] sm:$0xff] }
 0x28b   : > { %2337 = vmatmul.mubr.f32.gmra.mrb[32].mxu0 %v1473_v59  ;;  %2085 = vmatprep.mubr.f32.mxu1 %v7880_v42  ;;  %v1501_v59 = vld [vmem:[#allocation2 + $0x2f0] sm:$0xff] }
 0x28c   : > { %2342 = vmatprep.mubr.f32.mxu0 %v1478_v48  ;;  %5226 = vmatprep.subr.bf16.mxu0 %v5225_v18  ;;  %v1506_v48 = vld [vmem:[#allocation2 + $0x318] sm:$0xff] }
 0x28d   : > { %v1534_v18 = vld [vmem:[#allocation2 + $0x3f8] sm:$0xff] }
 0x28e   : > { %2086 = vmatmul.mubr.f32.gmra.mrb[34].mxu1 %v7888_v57 }
 0x28f   : > { %2343 = vmatmul.mubr.f32.gmra.mrb[34].mxu0 %v1477_v51  ;;  %2091 = vmatprep.mubr.f32.mxu1 %v7892_v3  ;;  %v7952_v51 = vld [vmem:[#allocation2 + $0x340] sm:$0xff] }
 0x290   : > { %2348 = vmatprep.mubr.f32.mxu0 %v1482_v4  ;;  %v7954_v4 = vld [vmem:[#allocation2 + $0x368] sm:$0xff] }
 0x292   : > { %2092 = vmatmul.mubr.f32.gmra.mrb[36].mxu1 %v7900_v20 }
 0x293   : > { %2349 = vmatmul.mubr.f32.gmra.mrb[36].mxu0 %v1481_v27  ;;  %2097 = vmatprep.mubr.f32.mxu1 %v7904_v9  ;;  %v1526_v27 = vld [vmem:[#allocation2 + $0x3b8] sm:$0xff] }
 0x294   : > { %2354 = vmatprep.mubr.f32.mxu0 %v1486_v28  ;;  %v1525_v28 = vld [vmem:[#allocation2 + $0x3b0] sm:$0xff] }
 0x296   : > { %2098 = vmatmul.mubr.f32.gmra.mrb[38].mxu1 %v7910_v6 }
 0x297   : > { %2355 = vmatmul.mubr.f32.gmra.mrb[38].mxu0 %v1485_v36  ;;  %2103 = vmatprep.mubr.f32.mxu1 %v7912_v41  ;;  %v7978_v36 = vld [vmem:[#allocation2 + $0x3e8] sm:$0xff] }
 0x298   : > { %2360 = vmatprep.mubr.f32.mxu0 %v1490_v23  ;;  %v7982_v23 = vld [vmem:[#allocation2 + $0x3e0] sm:$0xff] }
 0x29a   : > { %2104 = vmatmul.mubr.f32.gmra.mrb[40].mxu1 %v7916_v30 }
 0x29b   : > { %2361 = vmatmul.mubr.f32.gmra.mrb[40].mxu0 %v1489_v54  ;;  %2109 = vmatprep.mubr.f32.mxu1 %v7918_v55  ;;  %v1533_v54 = vld [vmem:[#allocation2 + $0x3f0] sm:$0xff] }
 0x29c   : > { %2366 = vmatprep.mubr.f32.mxu0 %v1494_v44  ;;  %v1729_v44 = vld [vmem:[%s6848_s0 + $0x610] sm:$0xff] }
 0x29e   : > { %2110 = vmatmul.mubr.f32.gmra.mrb[42].mxu1 %v7922_v22 }
 0x29f   : > { %2367 = vmatmul.mubr.f32.gmra.mrb[42].mxu0 %v1493_v52  ;;  %2115 = vmatprep.mubr.f32.mxu1 %v7924_v21  ;;  %v1735_v52 = vld [vmem:[%s6848_s0 + $0x640] sm:$0xff] }
 0x2a0   : > { %2372 = vmatprep.mubr.f32.mxu0 %v1498_v53  ;;  %v1742_v53 = vld [vmem:[%s6848_s0 + $0x678] sm:$0xff] }
 0x2a2   : > { %2116 = vmatmul.mubr.f32.gmra.mrb[44].mxu1 %v7928_v34 }
 0x2a3   : > { %2373 = vmatmul.mubr.f32.gmra.mrb[44].mxu0 %v1497_v35  ;;  %2121 = vmatprep.mubr.f32.mxu1 %v7930_v39  ;;  %v1748_v35 = vld [vmem:[%s6848_s0 + $0x6a8] sm:$0xff] }
 0x2a4   : > { %2378 = vmatprep.mubr.f32.mxu0 %v1502_v32  ;;  %v1731_v32 = vld [vmem:[%s6848_s0 + $0x620] sm:$0xff] }
 0x2a6   : > { %2122 = vmatmul.mubr.f32.gmra.mrb[46].mxu1 %v7934_v24 }
 0x2a7   : > { %2379 = vmatmul.mubr.f32.gmra.mrb[46].mxu0 %v1501_v59  ;;  %2127 = vmatprep.mubr.f32.mxu1 %v7936_v47  ;;  %v1737_v59 = vld [vmem:[%s6848_s0 + $0x650] sm:$0xff] }
 0x2a8   : > { %2384 = vmatprep.mubr.f32.mxu0 %v1506_v48  ;;  %v5863_v48 = vld [vmem:[#allocation2 + $0x8] sm:$0xff] }
 0x2aa   : > { %2128 = vmatmul.mubr.f32.gmra.mrb[48].mxu1 %v7940_v49 }
 0x2ab   : > { %2385 = vmatmul.mubr.f32.gmra.mrb[48].mxu0 %v1505_v61  ;;  %2133 = vmatprep.mubr.f32.mxu1 %v7942_v58  ;;  %v5099_v61 = vpack.c.bf16 %v1735_v52, %v1729_v44  ;;  %v5865_v44 = vld [vmem:[#allocation2 + $0x28] sm:$0xff] }
 0x2ac   : > { %2390 = vmatprep.mubr.f32.mxu0 %v1510_v15  ;;  %v1744_v15 = vld [vmem:[%s6848_s0 + $0x688] sm:$0xff] }
 0x2ae   : > { %2134 = vmatmul.mubr.f32.gmra.mrb[50].mxu1 %v7946_v43 }
 0x2af   : > { %2391 = vmatmul.mubr.f32.gmra.mrb[50].mxu0 %v1509_v1  ;;  %2139 = vmatprep.mubr.f32.mxu1 %v7948_v13  ;;  %v1750_v1 = vld [vmem:[%s6848_s0 + $0x6b8] sm:$0xff] }
 0x2b0   : > { %2396 = vmatprep.mubr.f32.mxu0 %v1514_v16  ;;  %v5101_v16 = vpack.c.bf16 %v1748_v35, %v1742_v53  ;;  %v1753_v35 = vld [vmem:[%s6848_s0 + $0x6d0] sm:$0xff] }
 0x2b2   : > { %2140 = vmatmul.mubr.f32.gmra.mrb[52].mxu1 %v7952_v51 }
 0x2b3   : > { %2397 = vmatmul.mubr.f32.gmra.mrb[52].mxu0 %v1513_v14  ;;  %2145 = vmatprep.mubr.f32.mxu1 %v7954_v4  ;;  %v1741_v14 = vld [vmem:[%s6848_s0 + $0x670] sm:$0xff] }
 0x2b4   : > { %2402 = vmatprep.mubr.f32.mxu0 %v1518_v38  ;;  %v1747_v38 = vld [vmem:[%s6848_s0 + $0x6a0] sm:$0xff] }
 0x2b5   : > { %v5103_v52 = vpack.c.bf16 %v1747_v38, %v1741_v14  ;;  %v1768_v14 = vld [vmem:[%s6848_s0 + $0x748] sm:$0xff]  ;;  %v1774_v38 = vld [vmem:[%s6848_s0 + $0x778] sm:$0xff] }
 0x2b6   : > { %2146 = vmatmul.mubr.f32.gmra.mrb[54].mxu1 %v7958_v12 }
 0x2b7   : > { %2403 = vmatmul.mubr.f32.gmra.mrb[54].mxu0 %v1517_v19  ;;  %2151 = vmatprep.mubr.f32.mxu1 %v7960_v33  ;;  %v1754_v19 = vld [vmem:[%s6848_s0 + $0x6d8] sm:$0xff] }
 0x2b8   : > { %2408 = vmatprep.mubr.f32.mxu0 %v1522_v25  ;;  %v5227_v25 = vpack.c.bf16 %v1737_v59, %v1731_v32  ;;  %v1759_v32 = vld [vmem:[%s6848_s0 + $0x700] sm:$0xff]  ;;  %v1766_v59 = vld [vmem:[%s6848_s0 + $0x738] sm:$0xff] }
 0x2ba   : > { %2152 = vmatmul.mubr.f32.gmra.mrb[56].mxu1 %v7964_v50 }
 0x2bb   : > { %2409 = vmatmul.mubr.f32.gmra.mrb[56].mxu0 %v1521_v37  ;;  %2157 = vmatprep.mubr.f32.mxu1 %v7966_v10  ;;  %v5864_v37 = vld [vmem:[#allocation2] sm:$0xff] }
 0x2bc   : > { %2414 = vmatprep.mubr.f32.mxu0 %v1526_v27  ;;  %v1760_v27 = vld [vmem:[%s6848_s0 + $0x708] sm:$0xff] }
 0x2bd   : > { %v5105_v53 = vpack.c.bf16 %v1760_v27, %v1754_v19  ;;  %v5107_v19 = vpack.c.bf16 %v1759_v32, %v1753_v35  ;;  %v1765_v27 = vld [vmem:[%s6848_s0 + $0x730] sm:$0xff]  ;;  %v1780_v35 = vld [vmem:[%s6848_s0 + $0x7a8] sm:$0xff]  ;;  %v1786_v32 = vld [vmem:[%s6848_s0 + $0x7d8] sm:$0xff] }
 0x2be   : > { %2158 = vmatmul.mubr.f32.gmra.mrb[58].mxu1 %v7970_v46 }
 0x2bf   : > { %2415 = vmatmul.mubr.f32.gmra.mrb[58].mxu0 %v1525_v28  ;;  %2163 = vmatprep.mubr.f32.mxu1 %v7972_v7  ;;  %v5229_v28 = vpack.c.bf16 %v1750_v1, %v1744_v15  ;;  %v5866_v15 = vld [vmem:[#allocation2 + $0x20] sm:$0xff] }
 0x2c0   : > { %2420 = vmatprep.mubr.f32.mxu0 %v1530_v2  ;;  %v1743_v2 = vld [vmem:[%s6848_s0 + $0x680] sm:$0xff] }
 0x2c2   : > { %2164 = vmatmul.mubr.f32.gmra.mrb[60].mxu1 %v7976_v29 }
 0x2c3   : > { %2421 = vmatmul.mubr.f32.gmra.mrb[60].mxu0 %v1529_v62  ;;  %2169 = vmatprep.mubr.f32.mxu1 %v7978_v36  ;;  %v1749_v62 = vld [vmem:[%s6848_s0 + $0x6b0] sm:$0xff] }
 0x2c4   : > { %2426 = vmatprep.mubr.f32.mxu0 %v1534_v18  ;;  %v1756_v18 = vld [vmem:[%s6848_s0 + $0x6e8] sm:$0xff] }
 0x2c6   : > { %2170 = vmatmul.mubr.f32.gmra.mrb[62].mxu1 %v7982_v23 }
 0x2c7   : > { %2427 = vmatmul.mubr.f32.gmra.mrb[62].mxu0 %v1533_v54  ;;  %2497 = vmatprep.mubr.f32.mxu1 %v5863_v48  ;;  %v1762_v54 = vld [vmem:[%s6848_s0 + $0x718] sm:$0xff] }
 0x2c8   : > { %3011 = vmatprep.mubr.f32.mxu0 %v5863_v48  ;;  %v5231_v48 = vpack.c.bf16 %v1749_v62, %v1743_v2  ;;  %v5233_v1 = vpack.c.bf16 %v1762_v54, %v1756_v18  ;;  %v1778_v2 = vld [vmem:[%s6848_s0 + $0x798] sm:$0xff]  ;;  %v1784_v54 = vld [vmem:[%s6848_s0 + $0x7c8] sm:$0xff] }
 0x2c9   : > { %v5868_v18 = vld [vmem:[#allocation2 + $0x40] sm:$0xff] }
 0x2ca   : > { %2498 = vmatmul.mubr.f32.vlgmr.msra.gmra.mrb[64].mxu1 %v5864_v37 }
 0x2cb   : > { %3012 = vmatmul.mubr.f32.vlgmr.msra.gmra.mrb[64].mxu0 %v5864_v37  ;;  %5100 = vmatpush1.bf16.msra.mxu1 %v5099_v61  ;;  %v1772_v61 = vld [vmem:[%s6848_s0 + $0x768] sm:$0xff]  ;;  %v1755_v37 = vld [vmem:[%s6848_s0 + $0x6e0] sm:$0xff] }
 0x2cc   : > { %2503 = vmatprep.mubr.f32.mxu1 %v5865_v44  ;;  %3017 = vmatprep.mubr.f32.mxu0 %v5865_v44  ;;  %v1761_v44 = vld [vmem:[%s6848_s0 + $0x710] sm:$0xff] }
 0x2cd   : > { %5102 = vmatprep.subr.bf16.mxu1 %v5101_v16  ;;  %5228 = vmatpush1.bf16.msra.mxu0 %v5227_v25  ;;  %v5867_v16 = vld [vmem:[#allocation2 + $0x48] sm:$0xff]  ;;  %v5109_v25 = vpack.c.bf16 %v1772_v61, %v1766_v59  ;;  %v5235_v62 = vpack.c.bf16 %v1761_v44, %v1755_v37  ;;  %v1777_v61 = vld [vmem:[%s6848_s0 + $0x790] sm:$0xff]  ;;  %v1790_v37 = vld [vmem:[%s6848_s0 + $0x7f8] sm:$0xff] }
 0x2ce   : > { %2504 = vmatmul.mubr.f32.gmra.mrb[66].mxu1 %v5866_v15  ;;  %5230 = vmatprep.subr.bf16.mxu0 %v5229_v28  ;;  %v1771_v28 = vld [vmem:[%s6848_s0 + $0x760] sm:$0xff] }
 0x2cf   : > { %3018 = vmatmul.mubr.f32.gmra.mrb[66].mxu0 %v5866_v15  ;;  %2509 = vmatprep.mubr.f32.mxu1 %v5867_v16  ;;  %v5237_v15 = vpack.c.bf16 %v1774_v38, %v1768_v14  ;;  %v5111_v59 = vpack.c.bf16 %v1771_v28, %v1765_v27  ;;  %v5870_v14 = vld [vmem:[#allocation2 + $0x60] sm:$0xff]  ;;  %v1796_v38 = vld [vmem:[%s6848_s0 + $0x828] sm:$0xff] }
 0x2d0   : > { %3023 = vmatprep.mubr.f32.mxu0 %v5867_v16  ;;  %5104 = vmatpush1.bf16.msra.mxu1 %v5103_v52  ;;  %v1767_v16 = vld [vmem:[%s6848_s0 + $0x740] sm:$0xff]  ;;  %v1773_v52 = vld [vmem:[%s6848_s0 + $0x770] sm:$0xff]  ;;  %v1792_v27 = vld [vmem:[%s6848_s0 + $0x808] sm:$0xff] }
 0x2d1   : > { %5106 = vmatprep.subr.bf16.mxu1 %v5105_v53  ;;  %5232 = vmatpush1.bf16.msra.mxu0 %v5231_v48  ;;  %v5869_v53 = vld [vmem:[#allocation2 + $0x68] sm:$0xff]  ;;  %v5113_v48 = vpack.c.bf16 %v1784_v54, %v1778_v2  ;;  %v5239_v44 = vpack.c.bf16 %v1773_v52, %v1767_v16  ;;  %v1798_v28 = vld [vmem:[%s6848_s0 + $0x838] sm:$0xff]  ;;  %v1789_v54 = vld [vmem:[%s6848_s0 + $0x7f0] sm:$0xff] }
 0x2d2   : > { %2510 = vmatmul.mubr.f32.gmra.mrb[68].mxu1 %v5868_v18  ;;  %5234 = vmatprep.subr.bf16.mxu0 %v5233_v1  ;;  %v1783_v1 = vld [vmem:[%s6848_s0 + $0x7c0] sm:$0xff]  ;;  %v1802_v16 = vld [vmem:[%s6848_s0 + $0x858] sm:$0xff] }
 0x2d3   : > { %3024 = vmatmul.mubr.f32.gmra.mrb[68].mxu0 %v5868_v18  ;;  %2515 = vmatprep.mubr.f32.mxu1 %v5869_v53  ;;  %v5241_v18 = vpack.c.bf16 %v1786_v32, %v1780_v35  ;;  %v5115_v2 = vpack.c.bf16 %v1783_v1, %v1777_v61  ;;  %v5872_v35 = vld [vmem:[#allocation2 + $0x80] sm:$0xff]  ;;  %v1808_v32 = vld [vmem:[%s6848_s0 + $0x888] sm:$0xff] }
 0x2d4   : > { %3029 = vmatprep.mubr.f32.mxu0 %v5869_v53  ;;  %5108 = vmatpush1.bf16.msra.mxu1 %v5107_v19  ;;  %v1779_v53 = vld [vmem:[%s6848_s0 + $0x7a0] sm:$0xff]  ;;  %v1785_v19 = vld [vmem:[%s6848_s0 + $0x7d0] sm:$0xff]  ;;  %v1804_v61 = vld [vmem:[%s6848_s0 + $0x868] sm:$0xff] }
 0x2d5   : > { %5110 = vmatprep.subr.bf16.mxu1 %v5109_v25  ;;  %5236 = vmatpush1.bf16.msra.mxu0 %v5235_v62  ;;  %v5871_v25 = vld [vmem:[#allocation2 + $0x88] sm:$0xff]  ;;  %v5117_v62 = vpack.c.bf16 %v1796_v38, %v1790_v37  ;;  %v5243_v52 = vpack.c.bf16 %v1785_v19, %v1779_v53  ;;  %v1810_v1 = vld [vmem:[%s6848_s0 + $0x898] sm:$0xff]  ;;  %v1801_v38 = vld [vmem:[%s6848_s0 + $0x850] sm:$0xff] }
 0x2d6   : > { %2516 = vmatmul.mubr.f32.gmra.mrb[70].mxu1 %v5870_v14  ;;  %5238 = vmatprep.subr.bf16.mxu0 %v5237_v15  ;;  %v1795_v15 = vld [vmem:[%s6848_s0 + $0x820] sm:$0xff]  ;;  %v1814_v53 = vld [vmem:[%s6848_s0 + $0x8b8] sm:$0xff] }
 0x2d7   : > { %3030 = vmatmul.mubr.f32.gmra.mrb[70].mxu0 %v5870_v14  ;;  %2521 = vmatprep.mubr.f32.mxu1 %v5871_v25  ;;  %v5245_v14 = vpack.c.bf16 %v1798_v28, %v1792_v27  ;;  %v5119_v37 = vpack.c.bf16 %v1795_v15, %v1789_v54  ;;  %v5874_v27 = vld [vmem:[#allocation2 + $0xa0] sm:$0xff]  ;;  %v1820_v28 = vld [vmem:[%s6848_s0 + $0x8e8] sm:$0xff] }
 0x2d8   : > { %3035 = vmatprep.mubr.f32.mxu0 %v5871_v25  ;;  %5112 = vmatpush1.bf16.msra.mxu1 %v5111_v59  ;;  %v1791_v25 = vld [vmem:[%s6848_s0 + $0x800] sm:$0xff]  ;;  %v1797_v59 = vld [vmem:[%s6848_s0 + $0x830] sm:$0xff]  ;;  %v1816_v54 = vld [vmem:[%s6848_s0 + $0x8c8] sm:$0xff] }
 0x2d9   : > { %5114 = vmatprep.subr.bf16.mxu1 %v5113_v48  ;;  %5240 = vmatpush1.bf16.msra.mxu0 %v5239_v44  ;;  %v5873_v48 = vld [vmem:[#allocation2 + $0xa8] sm:$0xff]  ;;  %v5121_v44 = vpack.c.bf16 %v1808_v32, %v1802_v16  ;;  %v5247_v19 = vpack.c.bf16 %v1797_v59, %v1791_v25  ;;  %v1822_v15 = vld [vmem:[%s6848_s0 + $0x8f8] sm:$0xff]  ;;  %v1813_v32 = vld [vmem:[%s6848_s0 + $0x8b0] sm:$0xff] }
 0x2da   : > { %2522 = vmatmul.mubr.f32.gmra.mrb[72].mxu1 %v5872_v35  ;;  %5242 = vmatprep.subr.bf16.mxu0 %v5241_v18  ;;  %v1807_v18 = vld [vmem:[%s6848_s0 + $0x880] sm:$0xff]  ;;  %v1826_v25 = vld [vmem:[%s6848_s0 + $0x918] sm:$0xff] }
 0x2db   : > { %3036 = vmatmul.mubr.f32.gmra.mrb[72].mxu0 %v5872_v35  ;;  %2527 = vmatprep.mubr.f32.mxu1 %v5873_v48  ;;  %v5249_v35 = vpack.c.bf16 %v1810_v1, %v1804_v61  ;;  %v5123_v16 = vpack.c.bf16 %v1807_v18, %v1801_v38  ;;  %v5876_v61 = vld [vmem:[#allocation2 + $0xc0] sm:$0xff]  ;;  %v1832_v1 = vld [vmem:[%s6848_s0 + $0x948] sm:$0xff] }
 0x2dc   : > { %3041 = vmatprep.mubr.f32.mxu0 %v5873_v48  ;;  %5116 = vmatpush1.bf16.msra.mxu1 %v5115_v2  ;;  %v1803_v48 = vld [vmem:[%s6848_s0 + $0x860] sm:$0xff]  ;;  %v1809_v2 = vld [vmem:[%s6848_s0 + $0x890] sm:$0xff]  ;;  %v1828_v38 = vld [vmem:[%s6848_s0 + $0x928] sm:$0xff] }
 0x2dd   : > { %5118 = vmatprep.subr.bf16.mxu1 %v5117_v62  ;;  %5244 = vmatpush1.bf16.msra.mxu0 %v5243_v52  ;;  %v5875_v62 = vld [vmem:[#allocation2 + $0xc8] sm:$0xff]  ;;  %v5125_v52 = vpack.c.bf16 %v1820_v28, %v1814_v53  ;;  %v5251_v59 = vpack.c.bf16 %v1809_v2, %v1803_v48  ;;  %v1834_v18 = vld [vmem:[%s6848_s0 + $0x958] sm:$0xff]  ;;  %v1825_v28 = vld [vmem:[%s6848_s0 + $0x910] sm:$0xff] }
 0x2de   : > { %2528 = vmatmul.mubr.f32.gmra.mrb[74].mxu1 %v5874_v27  ;;  %5246 = vmatprep.subr.bf16.mxu0 %v5245_v14  ;;  %v1819_v14 = vld [vmem:[%s6848_s0 + $0x8e0] sm:$0xff]  ;;  %v1838_v48 = vld [vmem:[%s6848_s0 + $0x978] sm:$0xff] }
 0x2df   : > { %3042 = vmatmul.mubr.f32.gmra.mrb[74].mxu0 %v5874_v27  ;;  %2533 = vmatprep.mubr.f32.mxu1 %v5875_v62  ;;  %v5253_v27 = vpack.c.bf16 %v1822_v15, %v1816_v54  ;;  %v5127_v53 = vpack.c.bf16 %v1819_v14, %v1813_v32  ;;  %v5878_v54 = vld [vmem:[#allocation2 + $0xe0] sm:$0xff]  ;;  %v1844_v15 = vld [vmem:[%s6848_s0 + $0x9a8] sm:$0xff] }
 0x2e0   : > { %3047 = vmatprep.mubr.f32.mxu0 %v5875_v62  ;;  %5120 = vmatpush1.bf16.msra.mxu1 %v5119_v37  ;;  %v1815_v62 = vld [vmem:[%s6848_s0 + $0x8c0] sm:$0xff]  ;;  %v1821_v37 = vld [vmem:[%s6848_s0 + $0x8f0] sm:$0xff]  ;;  %v1840_v32 = vld [vmem:[%s6848_s0 + $0x988] sm:$0xff] }
 0x2e1   : > { %5122 = vmatprep.subr.bf16.mxu1 %v5121_v44  ;;  %5248 = vmatpush1.bf16.msra.mxu0 %v5247_v19  ;;  %v5877_v44 = vld [vmem:[#allocation2 + $0xe8] sm:$0xff]  ;;  %v5129_v19 = vpack.c.bf16 %v1832_v1, %v1826_v25  ;;  %v5255_v2 = vpack.c.bf16 %v1821_v37, %v1815_v62  ;;  %v1846_v14 = vld [vmem:[%s6848_s0 + $0x9b8] sm:$0xff]  ;;  %v1837_v1 = vld [vmem:[%s6848_s0 + $0x970] sm:$0xff] }
 0x2e2   : > { %2534 = vmatmul.mubr.f32.gmra.mrb[76].mxu1 %v5876_v61  ;;  %5250 = vmatprep.subr.bf16.mxu0 %v5249_v35  ;;  %v1831_v35 = vld [vmem:[%s6848_s0 + $0x940] sm:$0xff]  ;;  %v1850_v62 = vld [vmem:[%s6848_s0 + $0x9d8] sm:$0xff] }
 0x2e3   : > { %3048 = vmatmul.mubr.f32.gmra.mrb[76].mxu0 %v5876_v61  ;;  %2539 = vmatprep.mubr.f32.mxu1 %v5877_v44  ;;  %v5257_v61 = vpack.c.bf16 %v1834_v18, %v1828_v38  ;;  %v5131_v25 = vpack.c.bf16 %v1831_v35, %v1825_v28  ;;  %v5880_v38 = vld [vmem:[#allocation2 + $0x100] sm:$0xff]  ;;  %v1856_v18 = vld [vmem:[%s6848_s0 + $0xa08] sm:$0xff] }
 0x2e4   : > { %3053 = vmatprep.mubr.f32.mxu0 %v5877_v44  ;;  %5124 = vmatpush1.bf16.msra.mxu1 %v5123_v16  ;;  %v1827_v44 = vld [vmem:[%s6848_s0 + $0x920] sm:$0xff]  ;;  %v1833_v16 = vld [vmem:[%s6848_s0 + $0x950] sm:$0xff]  ;;  %v1852_v28 = vld [vmem:[%s6848_s0 + $0x9e8] sm:$0xff] }
 0x2e5   : > { %5126 = vmatprep.subr.bf16.mxu1 %v5125_v52  ;;  %5252 = vmatpush1.bf16.msra.mxu0 %v5251_v59  ;;  %v5879_v52 = vld [vmem:[#allocation2 + $0x108] sm:$0xff]  ;;  %v5133_v59 = vpack.c.bf16 %v1844_v15, %v1838_v48  ;;  %v5259_v37 = vpack.c.bf16 %v1833_v16, %v1827_v44  ;;  %v1858_v35 = vld [vmem:[%s6848_s0 + $0xa18] sm:$0xff]  ;;  %v1849_v15 = vld [vmem:[%s6848_s0 + $0x9d0] sm:$0xff] }
 0x2e6   : > { %2540 = vmatmul.mubr.f32.gmra.mrb[78].mxu1 %v5878_v54  ;;  %5254 = vmatprep.subr.bf16.mxu0 %v5253_v27  ;;  %v1843_v27 = vld [vmem:[%s6848_s0 + $0x9a0] sm:$0xff]  ;;  %v1862_v44 = vld [vmem:[%s6848_s0 + $0xa38] sm:$0xff] }
 0x2e7   : > { %3054 = vmatmul.mubr.f32.gmra.mrb[78].mxu0 %v5878_v54  ;;  %2545 = vmatprep.mubr.f32.mxu1 %v5879_v52  ;;  %v5261_v54 = vpack.c.bf16 %v1846_v14, %v1840_v32  ;;  %v5135_v48 = vpack.c.bf16 %v1843_v27, %v1837_v1  ;;  %v5882_v32 = vld [vmem:[#allocation2 + $0x120] sm:$0xff]  ;;  %v1868_v14 = vld [vmem:[%s6848_s0 + $0xa68] sm:$0xff] }
 0x2e8   : > { %3059 = vmatprep.mubr.f32.mxu0 %v5879_v52  ;;  %5128 = vmatpush1.bf16.msra.mxu1 %v5127_v53  ;;  %v1839_v52 = vld [vmem:[%s6848_s0 + $0x980] sm:$0xff]  ;;  %v1845_v53 = vld [vmem:[%s6848_s0 + $0x9b0] sm:$0xff]  ;;  %v1864_v1 = vld [vmem:[%s6848_s0 + $0xa48] sm:$0xff] }
 0x2e9   : > { %5130 = vmatprep.subr.bf16.mxu1 %v5129_v19  ;;  %5256 = vmatpush1.bf16.msra.mxu0 %v5255_v2  ;;  %v5881_v19 = vld [vmem:[#allocation2 + $0x128] sm:$0xff]  ;;  %v5137_v2 = vpack.c.bf16 %v1856_v18, %v1850_v62  ;;  %v5263_v16 = vpack.c.bf16 %v1845_v53, %v1839_v52  ;;  %v1870_v27 = vld [vmem:[%s6848_s0 + $0xa78] sm:$0xff]  ;;  %v1861_v18 = vld [vmem:[%s6848_s0 + $0xa30] sm:$0xff] }
 0x2ea   : > { %2546 = vmatmul.mubr.f32.gmra.mrb[80].mxu1 %v5880_v38  ;;  %5258 = vmatprep.subr.bf16.mxu0 %v5257_v61  ;;  %v1855_v61 = vld [vmem:[%s6848_s0 + $0xa00] sm:$0xff]  ;;  %v1874_v52 = vld [vmem:[%s6848_s0 + $0xa98] sm:$0xff] }
 0x2eb   : > { %3060 = vmatmul.mubr.f32.gmra.mrb[80].mxu0 %v5880_v38  ;;  %2551 = vmatprep.mubr.f32.mxu1 %v5881_v19  ;;  %v5265_v38 = vpack.c.bf16 %v1858_v35, %v1852_v28  ;;  %v5139_v62 = vpack.c.bf16 %v1855_v61, %v1849_v15  ;;  %v1880_v28 = vld [vmem:[%s6848_s0 + $0xac8] sm:$0xff]  ;;  %v5269_v35 = vpack.c.bf16 %v1870_v27, %v1864_v1  ;;  %v5884_v15 = vld [vmem:[#allocation2 + $0x140] sm:$0xff] }
 0x2ec   : > { %3065 = vmatprep.mubr.f32.mxu0 %v5881_v19  ;;  %5132 = vmatpush1.bf16.msra.mxu1 %v5131_v25  ;;  %v1851_v19 = vld [vmem:[%s6848_s0 + $0x9e0] sm:$0xff]  ;;  %v1857_v25 = vld [vmem:[%s6848_s0 + $0xa10] sm:$0xff]  ;;  %v1876_v61 = vld [vmem:[%s6848_s0 + $0xaa8] sm:$0xff] }
 0x2ed   : > { %5134 = vmatprep.subr.bf16.mxu1 %v5133_v59  ;;  %5260 = vmatpush1.bf16.msra.mxu0 %v5259_v37  ;;  %v5883_v59 = vld [vmem:[#allocation2 + $0x148] sm:$0xff]  ;;  %v5141_v37 = vpack.c.bf16 %v1868_v14, %v1862_v44  ;;  %v5267_v53 = vpack.c.bf16 %v1857_v25, %v1851_v19  ;;  %v1882_v44 = vld [vmem:[%s6848_s0 + $0xad8] sm:$0xff]  ;;  %v1873_v14 = vld [vmem:[%s6848_s0 + $0xa90] sm:$0xff] }
 0x2ee   : > { %2552 = vmatmul.mubr.f32.gmra.mrb[82].mxu1 %v5882_v32  ;;  %5262 = vmatprep.subr.bf16.mxu0 %v5261_v54  ;;  %v1867_v54 = vld [vmem:[%s6848_s0 + $0xa60] sm:$0xff]  ;;  %v1886_v19 = vld [vmem:[%s6848_s0 + $0xaf8] sm:$0xff]  ;;  %v5273_v1 = vpack.c.bf16 %v1882_v44, %v1876_v61  ;;  %v1900_v61 = vld [vmem:[%s6848_s0 + $0xb68] sm:$0xff] }
 0x2ef   : > { %3066 = vmatmul.mubr.f32.gmra.mrb[82].mxu0 %v5882_v32  ;;  %2557 = vmatprep.mubr.f32.mxu1 %v5883_v59  ;;  %v1863_v32 = vld [vmem:[%s6848_s0 + $0xa40] sm:$0xff]  ;;  %v1906_v44 = vld [vmem:[%s6848_s0 + $0xb98] sm:$0xff] }
 0x2f0   : > { %3071 = vmatprep.mubr.f32.mxu0 %v5883_v59  ;;  %5136 = vmatpush1.bf16.msra.mxu1 %v5135_v48  ;;  %v1869_v48 = vld [vmem:[%s6848_s0 + $0xa70] sm:$0xff]  ;;  %v1892_v59 = vld [vmem:[%s6848_s0 + $0xb28] sm:$0xff]  ;;  %v1875_v27 = vld [vmem:[%s6848_s0 + $0xaa0] sm:$0xff] }
 0x2f1   : > { %5138 = vmatprep.subr.bf16.mxu1 %v5137_v2  ;;  %5264 = vmatpush1.bf16.msra.mxu0 %v5263_v16  ;;  %v5885_v2 = vld [vmem:[#allocation2 + $0x168] sm:$0xff]  ;;  %v5145_v16 = vpack.c.bf16 %v1880_v28, %v1874_v52  ;;  %v5271_v25 = vpack.c.bf16 %v1869_v48, %v1863_v32  ;;  %v5149_v52 = vpack.c.bf16 %v1892_v59, %v1886_v19  ;;  %v1898_v48 = vld [vmem:[%s6848_s0 + $0xb58] sm:$0xff] }
 0x2f2   : > { %2558 = vmatmul.mubr.f32.gmra.mrb[84].mxu1 %v7803_v63  ;;  %5266 = vmatprep.subr.bf16.mxu0 %v5265_v38  ;;  %v5143_v63 = vpack.c.bf16 %v1867_v54, %v1861_v18  ;;  %v1879_v38 = vld [vmem:[%s6848_s0 + $0xac0] sm:$0xff]  ;;  %v1894_v54 = vld [vmem:[%s6848_s0 + $0xb38] sm:$0xff]  ;;  %v1916_v59 = vld [vmem:[%s6848_s0 + $0xbe8] sm:$0xff] }
 0x2f3   : > { %3072 = vmatmul.mubr.f32.gmra.mrb[84].mxu0 %v5884_v15  ;;  %2563 = vmatprep.mubr.f32.mxu1 %v5885_v2  ;;  %v5886_v18 = vld [vmem:[#allocation2 + $0x160] sm:$0xff]  ;;  %v1904_v15 = vld [vmem:[%s6848_s0 + $0xb88] sm:$0xff] }
 0x2f4   : > { %3077 = vmatprep.mubr.f32.mxu0 %v5885_v2  ;;  %5140 = vmatpush1.bf16.msra.mxu1 %v5139_v62  ;;  %v1881_v62 = vld [vmem:[%s6848_s0 + $0xad0] sm:$0xff]  ;;  %v1891_v28 = vld [vmem:[%s6848_s0 + $0xb20] sm:$0xff] }
 0x2f5   : > { %5142 = vmatprep.subr.bf16.mxu1 %v5141_v37  ;;  %5268 = vmatpush1.bf16.msra.mxu0 %v5267_v53  ;;  %v1888_v37 = vld [vmem:[%s6848_s0 + $0xb08] sm:$0xff]  ;;  %v1885_v53 = vld [vmem:[%s6848_s0 + $0xaf0] sm:$0xff]  ;;  %v1887_v32 = vld [vmem:[%s6848_s0 + $0xb00] sm:$0xff] }
 0x2f6   : > { %2564 = vmatmul.mubr.f32.gmra.mrb[86].mxu1 %v7814_v5  ;;  %5270 = vmatprep.subr.bf16.mxu0 %v5269_v35  ;;  %v5147_v5 = vpack.c.bf16 %v1879_v38, %v1873_v14  ;;  %v5275_v35 = vpack.c.bf16 %v1881_v62, %v1875_v27  ;;  %v1893_v2 = vld [vmem:[%s6848_s0 + $0xb30] sm:$0xff]  ;;  %v1903_v38 = vld [vmem:[%s6848_s0 + $0xb80] sm:$0xff]  ;;  %v1912_v27 = vld [vmem:[%s6848_s0 + $0xbc8] sm:$0xff] }
 0x2f7   : > { %3078 = vmatmul.mubr.f32.gmra.mrb[86].mxu0 %v5886_v18  ;;  %2569 = vmatprep.mubr.f32.mxu1 %v7818_v60  ;;  %v1897_v14 = vld [vmem:[%s6848_s0 + $0xb50] sm:$0xff]  ;;  %v5279_v19 = vpack.c.bf16 %v1893_v2, %v1887_v32  ;;  %v1918_v62 = vld [vmem:[%s6848_s0 + $0xbf8] sm:$0xff] }
 0x2f8   : > { %3083 = vmatprep.mubr.f32.mxu0 %v7818_v60  ;;  %5144 = vmatpush1.bf16.msra.mxu1 %v5143_v63  ;;  %v5277_v60 = vpack.c.bf16 %v1894_v54, %v1888_v37  ;;  %v5151_v63 = vpack.c.bf16 %v1891_v28, %v1885_v53  ;;  %v5155_v18 = vpack.c.bf16 %v1903_v38, %v1897_v14  ;;  %v1909_v54 = vld [vmem:[%s6848_s0 + $0xbb0] sm:$0xff]  ;;  %v1911_v53 = vld [vmem:[%s6848_s0 + $0xbc0] sm:$0xff] }
 0x2f9   : > { %5146 = vmatprep.subr.bf16.mxu1 %v5145_v16  ;;  %5272 = vmatpush1.bf16.msra.mxu0 %v5271_v25  ;;  %v5153_v16 = vpack.c.bf16 %v1904_v15, %v1898_v48  ;;  %v1910_v25 = vld [vmem:[%s6848_s0 + $0xbb8] sm:$0xff]  ;;  %v1917_v28 = vld [vmem:[%s6848_s0 + $0xbf0] sm:$0xff] }
 0x2fa   : > { %2570 = vmatmul.mubr.f32.gmra.mrb[88].mxu1 %v7828_v17  ;;  %5274 = vmatprep.subr.bf16.mxu0 %v5273_v1  ;;  %v5281_v1 = vpack.c.bf16 %v1906_v44, %v1900_v61  ;;  %v5157_v37 = vpack.c.bf16 %v1916_v59, %v1910_v25 }
 0x2fb   : > { %3084 = vmatmul.mubr.f32.gmra.mrb[88].mxu0 %v7828_v17  ;;  %2575 = vmatprep.mubr.f32.mxu1 %v7832_v0  ;;  %v1899_v17 = vld [vmem:[%s6848_s0 + $0xb60] sm:$0xff] }
 0x2fc   : > { %3089 = vmatprep.mubr.f32.mxu0 %v7832_v0  ;;  %5148 = vmatpush1.bf16.msra.mxu1 %v5147_v5  ;;  %v1905_v0 = vld [vmem:[%s6848_s0 + $0xb90] sm:$0xff]  ;;  %v1915_v5 = vld [vmem:[%s6848_s0 + $0xbe0] sm:$0xff] }
 0x2fd   : > { %5150 = vmatprep.subr.bf16.mxu1 %v5149_v52  ;;  %5276 = vmatpush1.bf16.msra.mxu0 %v5275_v35  ;;  %v5283_v52 = vpack.c.bf16 %v1905_v0, %v1899_v17  ;;  %v5287_v35 = vpack.c.bf16 %v1917_v28, %v1911_v53 }
 0x2fe   : > { %2576 = vmatmul.mubr.f32.gmra.mrb[90].mxu1 %v7840_v11  ;;  %5278 = vmatprep.subr.bf16.mxu0 %v5277_v60 }
 0x2ff   : > { %3090 = vmatmul.mubr.f32.gmra.mrb[90].mxu0 %v7840_v11  ;;  %2581 = vmatprep.mubr.f32.mxu1 %v7844_v26  ;;  %v5285_v11 = vpack.c.bf16 %v1918_v62, %v1912_v27 }
 0x300   : > { %3095 = vmatprep.mubr.f32.mxu0 %v7844_v26  ;;  %5152 = vmatpush1.bf16.msra.mxu1 %v5151_v63  ;;  %v5159_v26 = vpack.c.bf16 %v1915_v5, %v1909_v54 }
 0x301   : > { %5154 = vmatprep.subr.bf16.mxu1 %v5153_v16  ;;  %5280 = vmatpush1.bf16.msra.mxu0 %v5279_v19 }
 0x302   : > { %2582 = vmatmul.mubr.f32.gmra.mrb[92].mxu1 %v7852_v8  ;;  %5282 = vmatprep.subr.bf16.mxu0 %v5281_v1 }
 0x303   : > { %3096 = vmatmul.mubr.f32.gmra.mrb[92].mxu0 %v7852_v8  ;;  %2587 = vmatprep.mubr.f32.mxu1 %v7856_v31 }
 0x304   : > { %3101 = vmatprep.mubr.f32.mxu0 %v7856_v31  ;;  %5156 = vmatpush1.bf16.msra.mxu1 %v5155_v18 }
 0x305   : > { %5158 = vmatprep.subr.bf16.mxu1 %v5157_v37  ;;  %5284 = vmatpush1.bf16.msra.mxu0 %v5283_v52 }
 0x306   : > { %2588 = vmatmul.mubr.f32.gmra.mrb[94].mxu1 %v7864_v56  ;;  %5286 = vmatprep.subr.bf16.mxu0 %v5285_v11 }
 0x307   : > { %3102 = vmatmul.mubr.f32.gmra.mrb[94].mxu0 %v7864_v56  ;;  %2593 = vmatprep.mubr.f32.mxu1 %v7868_v45 }
 0x308   : > { %3107 = vmatprep.mubr.f32.mxu0 %v7868_v45  ;;  %5160 = vmatpush1.bf16.msra.mxu1 %v5159_v26 }
 0x309   : > { %5288 = vmatpush1.bf16.msra.mxu0 %v5287_v35 }
 0x30a   : > { %2594 = vmatmul.mubr.f32.gmra.mrb[96].mxu1 %v7876_v40 }
 0x30b   : > { %3108 = vmatmul.mubr.f32.gmra.mrb[96].mxu0 %v7876_v40  ;;  %2599 = vmatprep.mubr.f32.mxu1 %v7880_v42 }
 0x30c   : > { %3113 = vmatprep.mubr.f32.mxu0 %v7880_v42 }
 0x30e   : > { %2600 = vmatmul.mubr.f32.gmra.mrb[98].mxu1 %v7888_v57 }
 0x30f   : > { %3114 = vmatmul.mubr.f32.gmra.mrb[98].mxu0 %v7888_v57  ;;  %2605 = vmatprep.mubr.f32.mxu1 %v7892_v3 }
 0x310   : > { %3119 = vmatprep.mubr.f32.mxu0 %v7892_v3 }
 0x312   : > { %2606 = vmatmul.mubr.f32.gmra.mrb[100].mxu1 %v7900_v20 }
 0x313   : > { %3120 = vmatmul.mubr.f32.gmra.mrb[100].mxu0 %v7900_v20  ;;  %2611 = vmatprep.mubr.f32.mxu1 %v7904_v9 }
 0x314   : > { %3125 = vmatprep.mubr.f32.mxu0 %v7904_v9 }
 0x316   : > { %2612 = vmatmul.mubr.f32.gmra.mrb[102].mxu1 %v7910_v6 }
 0x317   : > { %3126 = vmatmul.mubr.f32.gmra.mrb[102].mxu0 %v7910_v6  ;;  %2617 = vmatprep.mubr.f32.mxu1 %v7912_v41 }
 0x318   : > { %3131 = vmatprep.mubr.f32.mxu0 %v7912_v41 }
 0x31a   : > { %2618 = vmatmul.mubr.f32.gmra.mrb[104].mxu1 %v7916_v30 }
 0x31b   : > { %3132 = vmatmul.mubr.f32.gmra.mrb[104].mxu0 %v7916_v30  ;;  %2623 = vmatprep.mubr.f32.mxu1 %v7918_v55 }
 0x31c   : > { %3137 = vmatprep.mubr.f32.mxu0 %v7918_v55 }
 0x31d   : > { %v1985_v8 = vpop.f32.mrb[0].mxu1 }
 0x31e   : > { %v2242_v31 = vpop.f32.mrb[0].mxu0  ;;  %v1987_v56 = vpop.f32.mrb[1].mxu1  ;;  %2624 = vmatmul.mubr.f32.gmra.mrb[106].mxu1 %v7922_v22 }
 0x31f   : > { %v8150_v45 = vadd.f32 %v2242_v31, %v1985_v8  ;;  %v2244_v40 = vpop.f32.mrb[1].mxu0  ;;  %3138 = vmatmul.mubr.f32.gmra.mrb[106].mxu0 %v7922_v22  ;;  %2629 = vmatprep.mubr.f32.mxu1 %v7924_v21 }
 0x320   : > { %v8154_v42 = vadd.f32 %v2244_v40, %v1987_v56  ;;  %3143 = vmatprep.mubr.f32.mxu0 %v7924_v21  ;;  %v5887_v40 = vld [vmem:[#allocation2 + $0x18] sm:$0xff] }
 0x321   : > { %3525 = vrot.lane.b32.xlu0 %v8150_v45, %s6350_s14  ;;  %v1991_v57 = vpop.f32.mrb[2].mxu1 }
 0x322   : > { %v2248_v3 = vpop.f32.mrb[2].mxu0  ;;  %v1993_v20 = vpop.f32.mrb[3].mxu1  ;;  %2630 = vmatmul.mubr.f32.gmra.mrb[108].mxu1 %v7928_v34 }
 0x323   : > { %v8160_v9 = vadd.f32 %v2248_v3, %v1991_v57  ;;  %v2250_v6 = vpop.f32.mrb[3].mxu0  ;;  %3144 = vmatmul.mubr.f32.gmra.mrb[108].mxu0 %v7928_v34  ;;  %2635 = vmatprep.mubr.f32.mxu1 %v7930_v39 }
 0x324   : > { %v8164_v41 = vadd.f32 %v2250_v6, %v1993_v20  ;;  %3149 = vmatprep.mubr.f32.mxu0 %v7930_v39  ;;  %v5888_v6 = vld [vmem:[#allocation2 + $0x10] sm:$0xff] }
 0x325   : > { %3941 = vrot.lane.b32.xlu0 %v8154_v42, %s6350_s14  ;;  %v1997_v30 = vpop.f32.mrb[4].mxu1 }
 0x326   : > { %v2254_v55 = vpop.f32.mrb[4].mxu0  ;;  %3943 = vrot.lane.b32.xlu1 %v8164_v41, %s6350_s14  ;;  %v1999_v22 = vpop.f32.mrb[5].mxu1  ;;  %2636 = vmatmul.mubr.f32.gmra.mrb[110].mxu1 %v7934_v24 }
 0x327   : > { %v8172_v21 = vadd.f32 %v2254_v55, %v1997_v30  ;;  %v2256_v34 = vpop.f32.mrb[5].mxu0  ;;  %3150 = vmatmul.mubr.f32.gmra.mrb[110].mxu0 %v7934_v24  ;;  %2641 = vmatprep.mubr.f32.mxu1 %v7936_v47 }
 0x328   : > { %v8176_v32 = vadd.f32 %v2256_v34, %v1999_v22  ;;  %3155 = vmatprep.mubr.f32.mxu0 %v7936_v47 }
 0x329   : > { %3527 = vrot.lane.b32.xlu0 %v8160_v9, %s6350_s14  ;;  %v2003_v39 = vpop.f32.mrb[6].mxu1 }
 0x32a   : > { %v2260_v48 = vpop.f32.mrb[6].mxu0  ;;  %3529 = vrot.lane.b32.xlu1 %v8172_v21, %s6350_s14  ;;  %v2005_v15 = vpop.f32.mrb[7].mxu1  ;;  %2642 = vmatmul.mubr.f32.gmra.mrb[112].mxu1 %v7940_v49 }
 0x32b   : > { %v8184_v60 = vadd.f32 %v2260_v48, %v2003_v39  ;;  %v2262_v24 = vpop.f32.mrb[7].mxu0  ;;  %3156 = vmatmul.mubr.f32.gmra.mrb[112].mxu0 %v7940_v49  ;;  %2647 = vmatprep.mubr.f32.mxu1 %v7942_v58 }
 0x32c   : > { %v8188_v2 = vadd.f32 %v2262_v24, %v2005_v15  ;;  %3161 = vmatprep.mubr.f32.mxu0 %v7942_v58  ;;  %v5890_v15 = vld [vmem:[#allocation2 + $0x30] sm:$0xff] }
 0x32d   : > { %3945 = vrot.lane.b32.xlu0 %v8176_v32, %s6350_s14  ;;  %v2009_v47 = vpop.f32.mrb[8].mxu1 }
 0x32e   : > { %v2266_v61 = vpop.f32.mrb[8].mxu0  ;;  %3531 = vrot.lane.b32.xlu1 %v8184_v60, %s6350_s14  ;;  %v2011_v44 = vpop.f32.mrb[9].mxu1  ;;  %2648 = vmatmul.mubr.f32.gmra.mrb[114].mxu1 %v7946_v43 }
 0x32f   : > { %v8196_v63 = vadd.f32 %v2266_v61, %v2009_v47  ;;  %v2268_v49 = vpop.f32.mrb[9].mxu0  ;;  %3162 = vmatmul.mubr.f32.gmra.mrb[114].mxu0 %v7946_v43  ;;  %2653 = vmatprep.mubr.f32.mxu1 %v7948_v13  ;;  %v5891_v61 = vld [vmem:[#allocation2 + $0x58] sm:$0xff] }
 0x330   : > { %v8200_v16 = vadd.f32 %v2268_v49, %v2011_v44  ;;  %3167 = vmatprep.mubr.f32.mxu0 %v7948_v13 }
 0x331   : > { %3533 = vrot.lane.b32.xlu0 %v8196_v63, %s6350_s14  ;;  %v2015_v58 = vpop.f32.mrb[10].mxu1 }
 0x332   : > { %v2272_v14 = vpop.f32.mrb[10].mxu0  ;;  %3947 = vrot.lane.b32.xlu1 %v8188_v2, %s6350_s14  ;;  %v2017_v38 = vpop.f32.mrb[11].mxu1  ;;  %2654 = vmatmul.mubr.f32.gmra.mrb[116].mxu1 %v7952_v51 }
 0x333   : > { %v8208_v19 = vadd.f32 %v2272_v14, %v2015_v58  ;;  %v2274_v43 = vpop.f32.mrb[11].mxu0  ;;  %3168 = vmatmul.mubr.f32.gmra.mrb[116].mxu0 %v7952_v51  ;;  %2659 = vmatprep.mubr.f32.mxu1 %v7954_v4 }
 0x334   : > { %v8212_v17 = vadd.f32 %v2274_v43, %v2017_v38  ;;  %3173 = vmatprep.mubr.f32.mxu0 %v7954_v4  ;;  %v5892_v38 = vld [vmem:[#allocation2 + $0x50] sm:$0xff] }
 0x335   : > { %3949 = vrot.lane.b32.xlu0 %v8200_v16, %s6350_s14  ;;  %v2021_v13 = vpop.f32.mrb[12].mxu1 }
 0x336   : > { %v2278_v25 = vpop.f32.mrb[12].mxu0  ;;  %3535 = vrot.lane.b32.xlu1 %v8208_v19, %s6350_s14  ;;  %v2023_v59 = vpop.f32.mrb[13].mxu1  ;;  %2660 = vmatmul.mubr.f32.gmra.mrb[118].mxu1 %v7958_v12 }
 0x337   : > { %v8220_v1 = vadd.f32 %v2278_v25, %v2021_v13  ;;  %v2280_v51 = vpop.f32.mrb[13].mxu0  ;;  %3174 = vmatmul.mubr.f32.gmra.mrb[118].mxu0 %v7958_v12  ;;  %2665 = vmatprep.mubr.f32.mxu1 %v7960_v33  ;;  %v5893_v25 = vld [vmem:[#allocation2 + $0x78] sm:$0xff] }
 0x338   : > { %v8224_v0 = vadd.f32 %v2280_v51, %v2023_v59  ;;  %3179 = vmatprep.mubr.f32.mxu0 %v7960_v33 }
 0x339   : > { %3537 = vrot.lane.b32.xlu0 %v8220_v1, %s6350_s14  ;;  %v2027_v4 = vpop.f32.mrb[14].mxu1 }
 0x33a   : > { %v2284_v27 = vpop.f32.mrb[14].mxu0  ;;  %3951 = vrot.lane.b32.xlu1 %v8212_v17, %s6350_s14  ;;  %v2029_v62 = vpop.f32.mrb[15].mxu1  ;;  %2666 = vmatmul.mubr.f32.gmra.mrb[120].mxu1 %v7964_v50 }
 0x33b   : > { %v8232_v18 = vadd.f32 %v2284_v27, %v2027_v4  ;;  %v2286_v12 = vpop.f32.mrb[15].mxu0  ;;  %3180 = vmatmul.mubr.f32.gmra.mrb[120].mxu0 %v7964_v50  ;;  %2671 = vmatprep.mubr.f32.mxu1 %v7966_v10 }
 0x33c   : > { %v8236_v37 = vadd.f32 %v2286_v12, %v2029_v62  ;;  %3185 = vmatprep.mubr.f32.mxu0 %v7966_v10  ;;  %v5894_v62 = vld [vmem:[#allocation2 + $0x70] sm:$0xff] }
 0x33d   : > { %3953 = vrot.lane.b32.xlu0 %v8224_v0, %s6350_s14  ;;  %v2033_v33 = vpop.f32.mrb[16].mxu1 }
 0x33e   : > { %v2290_v54 = vpop.f32.mrb[16].mxu0  ;;  %3539 = vrot.lane.b32.xlu1 %v8232_v18, %s6350_s14  ;;  %v2035_v5 = vpop.f32.mrb[17].mxu1  ;;  %2672 = vmatmul.mubr.f32.gmra.mrb[122].mxu1 %v7970_v46 }
 0x33f   : > { %v8244_v52 = vadd.f32 %v2290_v54, %v2033_v33  ;;  %v2292_v50 = vpop.f32.mrb[17].mxu0  ;;  %3186 = vmatmul.mubr.f32.gmra.mrb[122].mxu0 %v7970_v46  ;;  %2677 = vmatprep.mubr.f32.mxu1 %v7972_v7  ;;  %v5895_v54 = vld [vmem:[#allocation2 + $0x98] sm:$0xff] }
 0x340   : > { %v8248_v11 = vadd.f32 %v2292_v50, %v2035_v5  ;;  %3191 = vmatprep.mubr.f32.mxu0 %v7972_v7 }
 0x341   : > { %3541 = vrot.lane.b32.xlu0 %v8244_v52, %s6350_s14  ;;  %v2039_v10 = vpop.f32.mrb[18].mxu1 }
 0x342   : > { %v2296_v53 = vpop.f32.mrb[18].mxu0  ;;  %3955 = vrot.lane.b32.xlu1 %v8236_v37, %s6350_s14  ;;  %v2041_v28 = vpop.f32.mrb[19].mxu1  ;;  %2678 = vmatmul.mubr.f32.gmra.mrb[124].mxu1 %v7976_v29 }
 0x343   : > { %v8256_v26 = vadd.f32 %v2296_v53, %v2039_v10  ;;  %v2298_v46 = vpop.f32.mrb[19].mxu0  ;;  %3192 = vmatmul.mubr.f32.gmra.mrb[124].mxu0 %v7976_v29  ;;  %2683 = vmatprep.mubr.f32.mxu1 %v7978_v36 }
 0x344   : > { %v8260_v35 = vadd.f32 %v2298_v46, %v2041_v28  ;;  %3197 = vmatprep.mubr.f32.mxu0 %v7978_v36  ;;  %v5896_v28 = vld [vmem:[#allocation2 + $0x90] sm:$0xff] }
 0x345   : > { %3957 = vrot.lane.b32.xlu0 %v8248_v11, %s6350_s14  ;;  %v2045_v7 = vpop.f32.mrb[20].mxu1 }
 0x346   : > { %v2302_v8 = vpop.f32.mrb[20].mxu0  ;;  %3543 = vrot.lane.b32.xlu1 %v8256_v26, %s6350_s14  ;;  %v2047_v31 = vpop.f32.mrb[21].mxu1  ;;  %2684 = vmatmul.mubr.f32.gmra.mrb[126].mxu1 %v7982_v23 }
 0x347   : > { %v8268_v56 = vadd.f32 %v2302_v8, %v2045_v7  ;;  %v2304_v29 = vpop.f32.mrb[21].mxu0  ;;  %3198 = vmatmul.mubr.f32.gmra.mrb[126].mxu0 %v7982_v23  ;;  %2754 = vmatprep.mubr.f32.mxu1 %v5887_v40  ;;  %v5889_v23 = vld [vmem:[#allocation2 + $0x38] sm:$0xff] }
 0x348   : > { %v8271_v57 = vadd.f32 %v2304_v29, %v2047_v31  ;;  %3268 = vmatprep.mubr.f32.mxu0 %v5887_v40  ;;  %v5897_v8 = vld [vmem:[#allocation2 + $0xb8] sm:$0xff] }
 0x349   : > { %3545 = vrot.lane.b32.xlu0 %v8268_v56, %s6350_s14  ;;  %v2051_v36 = vpop.f32.mrb[22].mxu1 }
 0x34a   : > { %v2308_v3 = vpop.f32.mrb[22].mxu0  ;;  %3959 = vrot.lane.b32.xlu1 %v8260_v35, %s6350_s14  ;;  %v2053_v20 = vpop.f32.mrb[23].mxu1  ;;  %2755 = vmatmul.mubr.f32.vlgmr.msra.gmra.mrb[64].mxu1 %v5888_v6 }
 0x34b   : > { %v8277_v30 = vadd.f32 %v2308_v3, %v2051_v36  ;;  %v2310_v55 = vpop.f32.mrb[23].mxu0  ;;  %3269 = vmatmul.mubr.f32.vlgmr.msra.gmra.mrb[64].mxu0 %v5888_v6  ;;  %2760 = vmatprep.mubr.f32.mxu1 %v5889_v23  ;;  %v5898_v3 = vld [vmem:[#allocation2 + $0xb0] sm:$0xff] }
 0x34c   : > { %v8279_v22 = vadd.f32 %v2310_v55, %v2053_v20  ;;  %3274 = vmatprep.mubr.f32.mxu0 %v5889_v23  ;;  %v5899_v55 = vld [vmem:[#allocation2 + $0xd8] sm:$0xff] }
 0x34d   : > { %3961 = vrot.lane.b32.xlu0 %v8271_v57, %s6350_s14  ;;  %v2057_v34 = vpop.f32.mrb[24].mxu1 }
 0x34e   : > { %v2314_v39 = vpop.f32.mrb[24].mxu0  ;;  %3547 = vrot.lane.b32.xlu1 %v8277_v30, %s6350_s14  ;;  %v2059_v48 = vpop.f32.mrb[25].mxu1  ;;  %2761 = vmatmul.mubr.f32.gmra.mrb[66].mxu1 %v5890_v15 }
 0x34f   : > { %v8285_v24 = vadd.f32 %v2314_v39, %v2057_v34  ;;  %v2316_v47 = vpop.f32.mrb[25].mxu0  ;;  %3275 = vmatmul.mubr.f32.gmra.mrb[66].mxu0 %v5890_v15  ;;  %2766 = vmatprep.mubr.f32.mxu1 %v5891_v61  ;;  %v5900_v15 = vld [vmem:[#allocation2 + $0xd0] sm:$0xff] }
 0x350   : > { %v8287_v44 = vadd.f32 %v2316_v47, %v2059_v48  ;;  %3280 = vmatprep.mubr.f32.mxu0 %v5891_v61 }
 0x351   : > { %3549 = vrot.lane.b32.xlu0 %v8285_v24, %s6350_s14  ;;  %v2063_v49 = vpop.f32.mrb[26].mxu1 }
 0x352   : > { %v2320_v58 = vpop.f32.mrb[26].mxu0  ;;  %3963 = vrot.lane.b32.xlu1 %v8279_v22, %s6350_s14  ;;  %v2065_v14 = vpop.f32.mrb[27].mxu1  ;;  %2767 = vmatmul.mubr.f32.gmra.mrb[68].mxu1 %v5892_v38 }
 0x353   : > { %v8293_v43 = vadd.f32 %v2320_v58, %v2063_v49  ;;  %v2322_v13 = vpop.f32.mrb[27].mxu0  ;;  %3281 = vmatmul.mubr.f32.gmra.mrb[68].mxu0 %v5892_v38  ;;  %2772 = vmatprep.mubr.f32.mxu1 %v5893_v25  ;;  %v5901_v49 = vld [vmem:[#allocation2 + $0xf8] sm:$0xff] }
 0x354   : > { %v8295_v59 = vadd.f32 %v2322_v13, %v2065_v14  ;;  %3286 = vmatprep.mubr.f32.mxu0 %v5893_v25  ;;  %v5902_v25 = vld [vmem:[#allocation2 + $0xf0] sm:$0xff] }
 0x355   : > { %3965 = vrot.lane.b32.xlu0 %v8287_v44, %s6350_s14  ;;  %v2069_v51 = vpop.f32.mrb[28].mxu1 }
 0x356   : > { %v2326_v4 = vpop.f32.mrb[28].mxu0  ;;  %3551 = vrot.lane.b32.xlu1 %v8293_v43, %s6350_s14  ;;  %v2071_v27 = vpop.f32.mrb[29].mxu1  ;;  %2773 = vmatmul.mubr.f32.gmra.mrb[70].mxu1 %v5894_v62 }
 0x357   : > { %v8301_v12 = vadd.f32 %v2326_v4, %v2069_v51  ;;  %v2328_v33 = vpop.f32.mrb[29].mxu0  ;;  %3287 = vmatmul.mubr.f32.gmra.mrb[70].mxu0 %v5894_v62  ;;  %2778 = vmatprep.mubr.f32.mxu1 %v5895_v54 }
 0x358   : > { %v8303_v5 = vadd.f32 %v2328_v33, %v2071_v27  ;;  %3292 = vmatprep.mubr.f32.mxu0 %v5895_v54  ;;  %v5903_v27 = vld [vmem:[#allocation2 + $0x118] sm:$0xff] }
 0x359   : > { %3553 = vrot.lane.b32.xlu0 %v8301_v12, %s6350_s14  ;;  %v2075_v50 = vpop.f32.mrb[30].mxu1 }
 0x35a   : > { %v2332_v10 = vpop.f32.mrb[30].mxu0  ;;  %3967 = vrot.lane.b32.xlu1 %v8295_v59, %s6350_s14  ;;  %v2077_v53 = vpop.f32.mrb[31].mxu1  ;;  %2779 = vmatmul.mubr.f32.gmra.mrb[72].mxu1 %v5896_v28 }
 0x35b   : > { %v8309_v46 = vadd.f32 %v2332_v10, %v2075_v50  ;;  %v2334_v7 = vpop.f32.mrb[31].mxu0  ;;  %3293 = vmatmul.mubr.f32.gmra.mrb[72].mxu0 %v5896_v28  ;;  %2784 = vmatprep.mubr.f32.mxu1 %v5897_v8  ;;  %v5904_v10 = vld [vmem:[#allocation2 + $0x110] sm:$0xff] }
 0x35c   : > { %v8311_v31 = vadd.f32 %v2334_v7, %v2077_v53  ;;  %3298 = vmatprep.mubr.f32.mxu0 %v5897_v8  ;;  %v5905_v7 = vld [vmem:[#allocation2 + $0x138] sm:$0xff] }
 0x35d   : > { %3969 = vrot.lane.b32.xlu0 %v8303_v5, %s6350_s14  ;;  %v2081_v29 = vpop.f32.mrb[32].mxu1 }
 0x35e   : > { %v2338_v40 = vpop.f32.mrb[32].mxu0  ;;  %3555 = vrot.lane.b32.xlu1 %v8309_v46, %s6350_s14  ;;  %v2083_v36 = vpop.f32.mrb[33].mxu1  ;;  %2785 = vmatmul.mubr.f32.gmra.mrb[74].mxu1 %v5898_v3 }
 0x35f   : > { %v8317_v20 = vadd.f32 %v2338_v40, %v2081_v29  ;;  %v2340_v6 = vpop.f32.mrb[33].mxu0  ;;  %3299 = vmatmul.mubr.f32.gmra.mrb[74].mxu0 %v5898_v3  ;;  %2790 = vmatprep.mubr.f32.mxu1 %v5899_v55  ;;  %v5906_v3 = vld [vmem:[#allocation2 + $0x130] sm:$0xff] }
 0x360   : > { %v8319_v23 = vadd.f32 %v2340_v6, %v2083_v36  ;;  %3304 = vmatprep.mubr.f32.mxu0 %v5899_v55 }
 0x361   : > { %3557 = vrot.lane.b32.xlu0 %v8317_v20, %s6350_s14  ;;  %v2087_v34 = vpop.f32.mrb[34].mxu1 }
 0x362   : > { %v2344_v39 = vpop.f32.mrb[34].mxu0  ;;  %3971 = vrot.lane.b32.xlu1 %v8311_v31, %s6350_s14  ;;  %v2089_v48 = vpop.f32.mrb[35].mxu1  ;;  %2791 = vmatmul.mubr.f32.gmra.mrb[76].mxu1 %v5900_v15 }
 0x363   : > { %v8325_v47 = vadd.f32 %v2344_v39, %v2087_v34  ;;  %v2346_v61 = vpop.f32.mrb[35].mxu0  ;;  %3305 = vmatmul.mubr.f32.gmra.mrb[76].mxu0 %v5900_v15  ;;  %2796 = vmatprep.mubr.f32.mxu1 %v5901_v49  ;;  %v5907_v34 = vld [vmem:[#allocation2 + $0x158] sm:$0xff] }
 0x364   : > { %v8327_v58 = vadd.f32 %v2346_v61, %v2089_v48  ;;  %3310 = vmatprep.mubr.f32.mxu0 %v5901_v49  ;;  %v5908_v49 = vld [vmem:[#allocation2 + $0x150] sm:$0xff] }
 0x365   : > { %3973 = vrot.lane.b32.xlu0 %v8319_v23, %s6350_s14  ;;  %v2093_v14 = vpop.f32.mrb[36].mxu1 }
 0x366   : > { %v2350_v38 = vpop.f32.mrb[36].mxu0  ;;  %3559 = vrot.lane.b32.xlu1 %v8325_v47, %s6350_s14  ;;  %v2095_v13 = vpop.f32.mrb[37].mxu1  ;;  %2797 = vmatmul.mubr.f32.gmra.mrb[78].mxu1 %v5902_v25 }
 0x367   : > { %v8333_v51 = vadd.f32 %v2350_v38, %v2093_v14  ;;  %v2352_v4 = vpop.f32.mrb[37].mxu0  ;;  %3311 = vmatmul.mubr.f32.gmra.mrb[78].mxu0 %v5902_v25  ;;  %2802 = vmatprep.mubr.f32.mxu1 %v5903_v27 }
 0x368   : > { %v8335_v62 = vadd.f32 %v2352_v4, %v2095_v13  ;;  %3316 = vmatprep.mubr.f32.mxu0 %v5903_v27  ;;  %v5909_v13 = vld [vmem:[#allocation2 + $0x178] sm:$0xff] }
 0x369   : > { %3561 = vrot.lane.b32.xlu0 %v8333_v51, %s6350_s14  ;;  %v2099_v33 = vpop.f32.mrb[38].mxu1 }
 0x36a   : > { %v2356_v54 = vpop.f32.mrb[38].mxu0  ;;  %3975 = vrot.lane.b32.xlu1 %v8327_v58, %s6350_s14  ;;  %v2101_v50 = vpop.f32.mrb[39].mxu1  ;;  %2803 = vmatmul.mubr.f32.gmra.mrb[80].mxu1 %v5904_v10 }
 0x36b   : > { %v8341_v53 = vadd.f32 %v2356_v54, %v2099_v33  ;;  %v2358_v28 = vpop.f32.mrb[39].mxu0  ;;  %3317 = vmatmul.mubr.f32.gmra.mrb[80].mxu0 %v5904_v10  ;;  %2808 = vmatprep.mubr.f32.mxu1 %v5905_v7  ;;  %v5910_v54 = vld [vmem:[#allocation2 + $0x170] sm:$0xff] }
 0x36c   : > { %v8343_v8 = vadd.f32 %v2358_v28, %v2101_v50  ;;  %3322 = vmatprep.mubr.f32.mxu0 %v5905_v7  ;;  %v5911_v28 = vld [vmem:[#allocation2 + $0x198] sm:$0xff] }
 0x36d   : > { %3977 = vrot.lane.b32.xlu0 %v8335_v62, %s6350_s14  ;;  %v2105_v29 = vpop.f32.mrb[40].mxu1 }
 0x36e   : > { %v2362_v40 = vpop.f32.mrb[40].mxu0  ;;  %3563 = vrot.lane.b32.xlu1 %v8341_v53, %s6350_s14  ;;  %v2107_v36 = vpop.f32.mrb[41].mxu1  ;;  %2809 = vmatmul.mubr.f32.gmra.mrb[82].mxu1 %v5906_v3 }
 0x36f   : > { %v8349_v6 = vadd.f32 %v2362_v40, %v2105_v29  ;;  %v2364_v55 = vpop.f32.mrb[41].mxu0  ;;  %3323 = vmatmul.mubr.f32.gmra.mrb[82].mxu0 %v5906_v3  ;;  %2814 = vmatprep.mubr.f32.mxu1 %v5907_v34  ;;  %v5912_v3 = vld [vmem:[#allocation2 + $0x190] sm:$0xff] }
 0x370   : > { %v8351_v39 = vadd.f32 %v2364_v55, %v2107_v36  ;;  %3328 = vmatprep.mubr.f32.mxu0 %v5907_v34 }
 0x371   : > { %3565 = vrot.lane.b32.xlu0 %v8349_v6, %s6350_s14  ;;  %v2111_v48 = vpop.f32.mrb[42].mxu1 }
 0x372   : > { %v2368_v15 = vpop.f32.mrb[42].mxu0  ;;  %3979 = vrot.lane.b32.xlu1 %v8343_v8, %s6350_s14  ;;  %v2113_v61 = vpop.f32.mrb[43].mxu1  ;;  %2815 = vmatmul.mubr.f32.gmra.mrb[84].mxu1 %v5908_v49 }
 0x373   : > { %v8357_v14 = vadd.f32 %v2368_v15, %v2111_v48  ;;  %v2370_v38 = vpop.f32.mrb[43].mxu0  ;;  %3329 = vmatmul.mubr.f32.gmra.mrb[84].mxu0 %v5908_v49  ;;  %2820 = vmatprep.mubr.f32.mxu1 %v5909_v13  ;;  %v5913_v48 = vld [vmem:[#allocation2 + $0x1b8] sm:$0xff] }
 0x374   : > { %v8359_v25 = vadd.f32 %v2370_v38, %v2113_v61  ;;  %3334 = vmatprep.mubr.f32.mxu0 %v5909_v13  ;;  %v5914_v13 = vld [vmem:[#allocation2 + $0x1b0] sm:$0xff] }
 0x375   : > { %3981 = vrot.lane.b32.xlu0 %v8351_v39, %s6350_s14  ;;  %v2117_v4 = vpop.f32.mrb[44].mxu1 }
 0x376   : > { %9510 = vst [vmem:[#allocation75_spill] sm:$0xff] %v8359_v25  ;;  %v2374_v27 = vpop.f32.mrb[44].mxu0  ;;  %3567 = vrot.lane.b32.xlu1 %v8357_v14, %s6350_s14  ;;  %v2119_v33 = vpop.f32.mrb[45].mxu1  ;;  %2821 = vmatmul.mubr.f32.gmra.mrb[86].mxu1 %v5910_v54 }
 0x377   : > { %v8365_v50 = vadd.f32 %v2374_v27, %v2117_v4  ;;  %v2376_v10 = vpop.f32.mrb[45].mxu0  ;;  %3335 = vmatmul.mubr.f32.gmra.mrb[86].mxu0 %v5910_v54  ;;  %2826 = vmatprep.mubr.f32.mxu1 %v5911_v28 }
 0x378   : > { %v8367_v7 = vadd.f32 %v2376_v10, %v2119_v33  ;;  %3340 = vmatprep.mubr.f32.mxu0 %v5911_v28  ;;  %v5915_v33 = vld [vmem:[#allocation2 + $0x1d8] sm:$0xff] }
 0x379   : > { %3569 = vrot.lane.b32.xlu0 %v8365_v50, %s6350_s14  ;;  %v2123_v29 = vpop.f32.mrb[46].mxu1 }
 0x37a   : > { %9511 = vst [vmem:[#allocation76_spill] sm:$0xff] %v8367_v7  ;;  %v2380_v40 = vpop.f32.mrb[46].mxu0  ;;  %3983 = vrot.lane.b32.xlu1 %v8359_v25, %s6350_s14  ;;  %v2125_v36 = vpop.f32.mrb[47].mxu1  ;;  %2827 = vmatmul.mubr.f32.gmra.mrb[88].mxu1 %v5912_v3 }
 0x37b   : > { %v8373_v55 = vadd.f32 %v2380_v40, %v2123_v29  ;;  %v2382_v34 = vpop.f32.mrb[47].mxu0  ;;  %3341 = vmatmul.mubr.f32.gmra.mrb[88].mxu0 %v5912_v3  ;;  %2832 = vmatprep.mubr.f32.mxu1 %v5913_v48  ;;  %v5916_v40 = vld [vmem:[#allocation2 + $0x1d0] sm:$0xff] }
 0x37c   : > { %v8375_v15 = vadd.f32 %v2382_v34, %v2125_v36  ;;  %3346 = vmatprep.mubr.f32.mxu0 %v5913_v48  ;;  %v5917_v34 = vld [vmem:[#allocation2 + $0x1f8] sm:$0xff] }
 0x37d   : > { %9512 = vst [vmem:[#allocation77_spill] sm:$0xff] %v8373_v55  ;;  %3985 = vrot.lane.b32.xlu0 %v8367_v7, %s6350_s14  ;;  %v2129_v61 = vpop.f32.mrb[48].mxu1 }
 0x37e   : > { %9513 = vst [vmem:[#allocation78_spill] sm:$0xff] %v8375_v15  ;;  %v2386_v49 = vpop.f32.mrb[48].mxu0  ;;  %3571 = vrot.lane.b32.xlu1 %v8373_v55, %s6350_s14  ;;  %v2131_v38 = vpop.f32.mrb[49].mxu1  ;;  %2833 = vmatmul.mubr.f32.gmra.mrb[90].mxu1 %v5914_v13  ;;  %v3494_v55 = vld [vmem:[%s6864_s5 + $0x8] sm:$0xff] }
 0x37f   : > { %v8381_v4 = vadd.f32 %v2386_v49, %v2129_v61  ;;  %v2388_v27 = vpop.f32.mrb[49].mxu0  ;;  %3347 = vmatmul.mubr.f32.gmra.mrb[90].mxu0 %v5914_v13  ;;  %2838 = vmatprep.mubr.f32.mxu1 %v5915_v33  ;;  %v5918_v13 = vld [vmem:[#allocation2 + $0x1f0] sm:$0xff] }
 0x380   : > { %v8383_v54 = vadd.f32 %v2388_v27, %v2131_v38  ;;  %3352 = vmatprep.mubr.f32.mxu0 %v5915_v33 }
 0x381   : > { %9514 = vst [vmem:[#allocation79_spill] sm:$0xff] %v8381_v4  ;;  %3573 = vrot.lane.b32.xlu0 %v8381_v4, %s6350_s14  ;;  %v2135_v10 = vpop.f32.mrb[50].mxu1 }
 0x382   : > { %9515 = vst [vmem:[#allocation80_spill] sm:$0xff] %v8383_v54  ;;  %v2392_v28 = vpop.f32.mrb[50].mxu0  ;;  %3987 = vrot.lane.b32.xlu1 %v8375_v15, %s6350_s14  ;;  %v2137_v29 = vpop.f32.mrb[51].mxu1  ;;  %2839 = vmatmul.mubr.f32.gmra.mrb[92].mxu1 %v5916_v40  ;;  %v3462_v15 = vld [vmem:[%s6855_s18 + $0x8] sm:$0xff] }
 0x383   : > { %v8389_v36 = vadd.f32 %v2392_v28, %v2135_v10  ;;  %v2394_v3 = vpop.f32.mrb[51].mxu0  ;;  %3353 = vmatmul.mubr.f32.gmra.mrb[92].mxu0 %v5916_v40  ;;  %2844 = vmatprep.mubr.f32.mxu1 %v5917_v34  ;;  %v5919_v10 = vld [vmem:[#allocation2 + $0x218] sm:$0xff] }
 0x384   : > { %v8391_v48 = vadd.f32 %v2394_v3, %v2137_v29  ;;  %3358 = vmatprep.mubr.f32.mxu0 %v5917_v34  ;;  %v5920_v34 = vld [vmem:[#allocation2 + $0x210] sm:$0xff] }
 0x385   : > { %9516 = vst [vmem:[#allocation81_spill] sm:$0xff] %v8389_v36  ;;  %3989 = vrot.lane.b32.xlu0 %v8383_v54, %s6350_s14  ;;  %v2141_v61 = vpop.f32.mrb[52].mxu1 }
 0x386   : > { %9517 = vst [vmem:[#allocation82_spill] sm:$0xff] %v8391_v48  ;;  %v2398_v49 = vpop.f32.mrb[52].mxu0  ;;  %3575 = vrot.lane.b32.xlu1 %v8389_v36, %s6350_s14  ;;  %v2143_v38 = vpop.f32.mrb[53].mxu1  ;;  %2845 = vmatmul.mubr.f32.gmra.mrb[94].mxu1 %v5918_v13 }
 0x387   : > { %v8397_v27 = vadd.f32 %v2398_v49, %v2141_v61  ;;  %v2400_v33 = vpop.f32.mrb[53].mxu0  ;;  %3359 = vmatmul.mubr.f32.gmra.mrb[94].mxu0 %v5918_v13  ;;  %2850 = vmatprep.mubr.f32.mxu1 %v5919_v10  ;;  %v5921_v13 = vld [vmem:[#allocation2 + $0x238] sm:$0xff] }
 0x388   : > { %v8399_v28 = vadd.f32 %v2400_v33, %v2143_v38  ;;  %3364 = vmatprep.mubr.f32.mxu0 %v5919_v10 }
 0x389   : > { %9518 = vst [vmem:[#allocation83_spill] sm:$0xff] %v8397_v27  ;;  %3577 = vrot.lane.b32.xlu0 %v8397_v27, %s6350_s14  ;;  %v2147_v29 = vpop.f32.mrb[54].mxu1  ;;  %v3493_v27 = vld [vmem:[%s6864_s5] sm:$0xff] }
 0x38a   : > { %9519 = vst [vmem:[#allocation84_spill] sm:$0xff] %v8399_v28  ;;  %v2404_v40 = vpop.f32.mrb[54].mxu0  ;;  %3991 = vrot.lane.b32.xlu1 %v8391_v48, %s6350_s14  ;;  %v2149_v3 = vpop.f32.mrb[55].mxu1  ;;  %2851 = vmatmul.mubr.f32.gmra.mrb[96].mxu1 %v5920_v34 }
 0x38b   : > { %v8405_v61 = vadd.f32 %v2404_v40, %v2147_v29  ;;  %v2406_v49 = vpop.f32.mrb[55].mxu0  ;;  %3365 = vmatmul.mubr.f32.gmra.mrb[96].mxu0 %v5920_v34  ;;  %2856 = vmatprep.mubr.f32.mxu1 %v5921_v13  ;;  %v5922_v29 = vld [vmem:[#allocation2 + $0x230] sm:$0xff] }
 0x38c   : > { %v8407_v38 = vadd.f32 %v2406_v49, %v2149_v3  ;;  %3370 = vmatprep.mubr.f32.mxu0 %v5921_v13  ;;  %v5923_v3 = vld [vmem:[#allocation2 + $0x258] sm:$0xff]  ;;  %v3461_v13 = vld [vmem:[%s6855_s18] sm:$0xff] }
 0x38d   : > { %9520 = vst [vmem:[#allocation85_spill] sm:$0xff] %v8405_v61  ;;  %3993 = vrot.lane.b32.xlu0 %v8399_v28, %s6350_s14  ;;  %v2153_v33 = vpop.f32.mrb[56].mxu1 }
 0x38e   : > { %9521 = vst [vmem:[#allocation86_spill] sm:$0xff] %v8407_v38  ;;  %v2410_v10 = vpop.f32.mrb[56].mxu0  ;;  %3579 = vrot.lane.b32.xlu1 %v8405_v61, %s6350_s14  ;;  %v2155_v48 = vpop.f32.mrb[57].mxu1  ;;  %2857 = vmatmul.mubr.f32.gmra.mrb[98].mxu1 %v5922_v29 }
 0x38f   : > { %v8413_v40 = vadd.f32 %v2410_v10, %v2153_v33  ;;  %v2412_v34 = vpop.f32.mrb[57].mxu0  ;;  %3371 = vmatmul.mubr.f32.gmra.mrb[98].mxu0 %v5922_v29  ;;  %2862 = vmatprep.mubr.f32.mxu1 %v5923_v3  ;;  %v5924_v33 = vld [vmem:[#allocation2 + $0x250] sm:$0xff] }
 0x390   : > { %v8415_v49 = vadd.f32 %v2412_v34, %v2155_v48  ;;  %3376 = vmatprep.mubr.f32.mxu0 %v5923_v3  ;;  %v5925_v34 = vld [vmem:[#allocation2 + $0x278] sm:$0xff]  ;;  %v3589_v3 = vmul.f32 %v3461_v13, %v8150_v45 }
 0x391   : > { %9522 = vst [vmem:[#allocation87_spill] sm:$0xff] %v8413_v40  ;;  %3581 = vrot.lane.b32.xlu0 %v8413_v40, %s6350_s14  ;;  %v2159_v28 = vpop.f32.mrb[58].mxu1 }
 0x392   : > { %9523 = vst [vmem:[#allocation88_spill] sm:$0xff] %v8415_v49  ;;  %v2416_v36 = vpop.f32.mrb[58].mxu0  ;;  %3995 = vrot.lane.b32.xlu1 %v8407_v38, %s6350_s14  ;;  %2863 = vmatmul.mubr.f32.gmra.mrb[100].mxu1 %v5924_v33  ;;  %v2161_v10 = vpop.f32.mrb[59].mxu1 }
 0x393   : > { %v8423_v29 = vadd.f32 %v2416_v36, %v2159_v28  ;;  %v2418_v61 = vpop.f32.mrb[59].mxu0  ;;  %3377 = vmatmul.mubr.f32.gmra.mrb[100].mxu0 %v5924_v33  ;;  %v3526_v48 = vpop.permute.xlu0 %3525  ;;  %2868 = vmatprep.mubr.f32.mxu1 %v5925_v34  ;;  %v5926_v33 = vld [vmem:[#allocation2 + $0x270] sm:$0xff] }
 0x394   : > { %v3621_v40 = vmul.f32 %v3526_v48, %v3493_v27  ;;  %v8426_v54 = vadd.f32 %v2418_v61, %v2161_v10  ;;  %3382 = vmatprep.mubr.f32.mxu0 %v5925_v34  ;;  %v5927_v48 = vld [vmem:[#allocation2 + $0x298] sm:$0xff]  ;;  %v4005_v34 = vmul.f32 %v3461_v13, %v8154_v42  ;;  %v5928_v42 = vld [vmem:[#allocation2 + $0x290] sm:$0xff] }
 0x395   : > { %9524 = vst [vmem:[#allocation89_spill] sm:$0xff] %v8423_v29  ;;  %3997 = vrot.lane.b32.xlu0 %v8415_v49, %s6350_s14  ;;  %v2165_v38 = vpop.f32.mrb[60].mxu1  ;;  %v4006_v49 = vmul.f32 %v3462_v15, %v8164_v41 }
 0x396   : > { %9525 = vst [vmem:[#allocation90_spill] sm:$0xff] %v8426_v54  ;;  %v3653_v36 = vadd.f32 %v3621_v40, %v3589_v3  ;;  %v2422_v28 = vpop.f32.mrb[60].mxu0  ;;  %3583 = vrot.lane.b32.xlu1 %v8423_v29, %s6350_s14  ;;  %2869 = vmatmul.mubr.f32.gmra.mrb[102].mxu1 %v5926_v33  ;;  %v2167_v4 = vpop.f32.mrb[61].mxu1 }
 0x397   : > { %v8434_v45 = vadd.f32 %v2422_v28, %v2165_v38  ;;  %v2424_v61 = vpop.f32.mrb[61].mxu0  ;;  %3383 = vmatmul.mubr.f32.gmra.mrb[102].mxu0 %v5926_v33  ;;  %v3942_v10 = vpop.permute.xlu0 %3941  ;;  %2874 = vmatprep.mubr.f32.mxu1 %v5927_v48  ;;  %v3463_v28 = vld [vmem:[%s6855_s18 + $0x10] sm:$0xff] }
 0x398   : > { %3685 = vst [vmem:[%s6866_s7] sm:$0xff] %v3653_v36  ;;  %v4037_v40 = vmul.f32 %v3942_v10, %v3493_v27  ;;  %v8438_v3 = vadd.f32 %v2424_v61, %v2167_v4  ;;  %v3944_v29 = vpop.permute.xlu1 %3943  ;;  %3388 = vmatprep.mubr.f32.mxu0 %v5927_v48  ;;  %v3495_v27 = vld [vmem:[%s6864_s5 + $0x10] sm:$0xff]  ;;  %v3590_v10 = vmul.f32 %v3462_v15, %v8160_v9 }
 0x399   : > { %v4038_v7 = vmul.f32 %v3944_v29, %v3494_v55  ;;  %3585 = vrot.lane.b32.xlu0 %v8434_v45, %s6350_s14  ;;  %v2171_v38 = vpop.f32.mrb[62].mxu1  ;;  %v5929_v61 = vld [vmem:[#allocation2 + $0x2b8] sm:$0xff]  ;;  %v5930_v9 = vld [vmem:[#allocation2 + $0x2b0] sm:$0xff] }
 0x39a   : > { %v4069_v33 = vadd.f32 %v4037_v40, %v4005_v34  ;;  %v2428_v25 = vpop.f32.mrb[62].mxu0  ;;  %3999 = vrot.lane.b32.xlu1 %v8426_v54, %s6350_s14  ;;  %2875 = vmatmul.mubr.f32.gmra.mrb[104].mxu1 %v5928_v42  ;;  %v2173_v4 = vpop.f32.mrb[63].mxu1  ;;  %v3591_v54 = vmul.f32 %v3463_v28, %v8172_v21 }
 0x39b   : > { %v4070_v13 = vadd.f32 %v4038_v7, %v4006_v49  ;;  %v8447_v36 = vadd.f32 %v2428_v25, %v2171_v38  ;;  %v2430_v41 = vpop.f32.mrb[63].mxu0  ;;  %3389 = vmatmul.mubr.f32.gmra.mrb[104].mxu0 %v5928_v42  ;;  %v3528_v29 = vpop.permute.xlu0 %3527  ;;  %2880 = vmatprep.mubr.f32.mxu1 %v5929_v61  ;;  %v3464_v7 = vld [vmem:[%s6855_s18 + $0x18] sm:$0xff] }
 0x39c   : > { %4783 = vst [vmem:[%s6866_s7 + $0x100] sm:$0xff] %v4069_v33  ;;  %v3622_v48 = vmul.f32 %v3528_v29, %v3494_v55  ;;  %v8451_v34 = vadd.f32 %v2430_v41, %v2173_v4  ;;  %v3530_v40 = vpop.permute.xlu1 %3529  ;;  %3394 = vmatprep.mubr.f32.mxu0 %v5929_v61  ;;  %v3496_v55 = vld [vmem:[%s6864_s5 + $0x18] sm:$0xff]  ;;  %v4007_v33 = vmul.f32 %v3463_v28, %v8176_v32  ;;  %v3465_v41 = vld [vmem:[%s6855_s18 + $0x20] sm:$0xff] }
 0x39d   : > { %4784 = vst [vmem:[%s6866_s7 + $0x108] sm:$0xff] %v4070_v13  ;;  %v3623_v25 = vmul.f32 %v3530_v40, %v3495_v27  ;;  %4001 = vrot.lane.b32.xlu0 %v8438_v3, %s6350_s14  ;;  %v5931_v38 = vld [vmem:[#allocation2 + $0x2d8] sm:$0xff]  ;;  %v3592_v13 = vmul.f32 %v3464_v7, %v8184_v60  ;;  %v3497_v61 = vld [vmem:[%s6864_s5 + $0x20] sm:$0xff]  ;;  %v3593_v60 = vmul.f32 %v3465_v41, %v8196_v63 }
 0x39e   : > { %v3654_v49 = vadd.f32 %v3622_v48, %v3590_v10  ;;  %3587 = vrot.lane.b32.xlu1 %v8447_v36, %s6350_s14  ;;  %2881 = vmatmul.mubr.f32.gmra.mrb[106].mxu1 %v5930_v9 }
 0x39f   : > { %v3655_v15 = vadd.f32 %v3623_v25, %v3591_v54  ;;  %3395 = vmatmul.mubr.f32.gmra.mrb[106].mxu0 %v5930_v9  ;;  %v3946_v21 = vpop.permute.xlu0 %3945  ;;  %2886 = vmatprep.mubr.f32.mxu1 %v5931_v38  ;;  %v5932_v54 = vld [vmem:[#allocation2 + $0x2d0] sm:$0xff]  ;;  %v4008_v25 = vmul.f32 %v3464_v7, %v8188_v2 }
 0x3a0   : > { %3686 = vst [vmem:[%s6866_s7 + $0x8] sm:$0xff] %v3654_v49  ;;  %v4039_v42 = vmul.f32 %v3946_v21, %v3495_v27  ;;  %v3532_v4 = vpop.permute.xlu1 %3531  ;;  %3400 = vmatprep.mubr.f32.mxu0 %v5931_v38  ;;  %v5933_v27 = vld [vmem:[#allocation2 + $0x2f8] sm:$0xff]  ;;  %v3466_v9 = vld [vmem:[%s6855_s18 + $0x28] sm:$0xff] }
 0x3a1   : > { %3687 = vst [vmem:[%s6866_s7 + $0x10] sm:$0xff] %v3655_v15  ;;  %v3624_v29 = vmul.f32 %v3532_v4, %v3496_v55  ;;  %v5934_v21 = vld [vmem:[#allocation2 + $0x2f0] sm:$0xff]  ;;  %v4009_v4 = vmul.f32 %v3465_v41, %v8200_v16  ;;  %v3594_v7 = vmul.f32 %v3466_v9, %v8208_v19  ;;  %v5937_v41 = vld [vmem:[#allocation2 + $0x338] sm:$0xff] }
 0x3a2   : > { %v4071_v10 = vadd.f32 %v4039_v42, %v4007_v33  ;;  %4003 = vrot.lane.b32.xlu1 %v8451_v34, %s6350_s14  ;;  %2887 = vmatmul.mubr.f32.gmra.mrb[108].mxu1 %v5932_v54  ;;  %v3498_v38 = vld [vmem:[%s6864_s5 + $0x28] sm:$0xff]  ;;  %v5935_v42 = vld [vmem:[#allocation2 + $0x318] sm:$0xff] }
 0x3a3   : > { %v3656_v32 = vadd.f32 %v3624_v29, %v3592_v13  ;;  %3401 = vmatmul.mubr.f32.gmra.mrb[108].mxu0 %v5932_v54  ;;  %v3534_v28 = vpop.permute.xlu0 %3533  ;;  %2892 = vmatprep.mubr.f32.mxu1 %v5933_v27 }
 0x3a4   : > { %4785 = vst [vmem:[%s6866_s7 + $0x110] sm:$0xff] %v4071_v10  ;;  %v3625_v48 = vmul.f32 %v3534_v28, %v3497_v61  ;;  %v3948_v40 = vpop.permute.xlu1 %3947  ;;  %3406 = vmatprep.mubr.f32.mxu0 %v5933_v27  ;;  %v3499_v10 = vld [vmem:[%s6864_s5 + $0x30] sm:$0xff] }
 0x3a5   : > { %3688 = vst [vmem:[%s6866_s7 + $0x18] sm:$0xff] %v3656_v32  ;;  %v4040_v49 = vmul.f32 %v3948_v40, %v3496_v55  ;;  %v3467_v55 = vld [vmem:[%s6855_s18 + $0x30] sm:$0xff]  ;;  %v3468_v40 = vld [vmem:[%s6855_s18 + $0x38] sm:$0xff] }
 0x3a6   : > { %v3657_v15 = vadd.f32 %v3625_v48, %v3593_v60  ;;  %2893 = vmatmul.mubr.f32.gmra.mrb[110].mxu1 %v5934_v21  ;;  %v5936_v32 = vld [vmem:[#allocation2 + $0x310] sm:$0xff]  ;;  %v4010_v60 = vmul.f32 %v3466_v9, %v8212_v17  ;;  %v3596_v9 = vmul.f32 %v3468_v40, %v8232_v18 }
 0x3a7   : > { %v4072_v33 = vadd.f32 %v4040_v49, %v4008_v25  ;;  %3407 = vmatmul.mubr.f32.gmra.mrb[110].mxu0 %v5934_v21  ;;  %v3950_v63 = vpop.permute.xlu0 %3949  ;;  %2898 = vmatprep.mubr.f32.mxu1 %v5935_v42  ;;  %v5938_v49 = vld [vmem:[#allocation2 + $0x330] sm:$0xff] }
 0x3a8   : > { %3689 = vst [vmem:[%s6866_s7 + $0x20] sm:$0xff] %v3657_v15  ;;  %v4041_v13 = vmul.f32 %v3950_v63, %v3497_v61  ;;  %v3536_v2 = vpop.permute.xlu1 %3535  ;;  %3412 = vmatprep.mubr.f32.mxu0 %v5935_v42  ;;  %v3595_v61 = vmul.f32 %v3467_v55, %v8220_v1  ;;  %v3500_v15 = vld [vmem:[%s6864_s5 + $0x38] sm:$0xff]  ;;  %v4011_v63 = vmul.f32 %v3467_v55, %v8224_v0 }
 0x3a9   : > { %4786 = vst [vmem:[%s6866_s7 + $0x118] sm:$0xff] %v4072_v33  ;;  %v3626_v29 = vmul.f32 %v3536_v2, %v3498_v38  ;;  %v5939_v33 = vld [vmem:[#allocation2 + $0x358] sm:$0xff] }
 0x3aa   : > { %v4073_v54 = vadd.f32 %v4041_v13, %v4009_v4  ;;  %2899 = vmatmul.mubr.f32.gmra.mrb[112].mxu1 %v5936_v32  ;;  %v3501_v13 = vld [vmem:[%s6864_s5 + $0x40] sm:$0xff]  ;;  %v5941_v55 = vld [vmem:[#allocation2 + $0x378] sm:$0xff] }
 0x3ab   : > { %v3658_v28 = vadd.f32 %v3626_v29, %v3594_v7  ;;  %3413 = vmatmul.mubr.f32.gmra.mrb[112].mxu0 %v5936_v32  ;;  %v3538_v16 = vpop.permute.xlu0 %3537  ;;  %2904 = vmatprep.mubr.f32.mxu1 %v5937_v41  ;;  %v5940_v7 = vld [vmem:[#allocation2 + $0x350] sm:$0xff]  ;;  %v4012_v32 = vmul.f32 %v3468_v40, %v8236_v37 }
 0x3ac   : > { %4787 = vst [vmem:[%s6866_s7 + $0x120] sm:$0xff] %v4073_v54  ;;  %v3627_v27 = vmul.f32 %v3538_v16, %v3499_v10  ;;  %v3952_v19 = vpop.permute.xlu1 %3951  ;;  %3418 = vmatprep.mubr.f32.mxu0 %v5937_v41  ;;  %v3470_v16 = vld [vmem:[%s6855_s18 + $0x48] sm:$0xff] }
 0x3ad   : > { %3690 = vst [vmem:[%s6866_s7 + $0x28] sm:$0xff] %v3658_v28  ;;  %v4042_v48 = vmul.f32 %v3952_v19, %v3498_v38  ;;  %v3469_v38 = vld [vmem:[%s6855_s18 + $0x40] sm:$0xff]  ;;  %v3598_v40 = vmul.f32 %v3470_v16, %v8256_v26 }
 0x3ae   : > { %v3659_v25 = vadd.f32 %v3627_v27, %v3595_v61  ;;  %2905 = vmatmul.mubr.f32.gmra.mrb[114].mxu1 %v5938_v49  ;;  %v5942_v61 = vld [vmem:[#allocation2 + $0x370] sm:$0xff] }
 0x3af   : > { %v4074_v21 = vadd.f32 %v4042_v48, %v4010_v60  ;;  %3419 = vmatmul.mubr.f32.gmra.mrb[114].mxu0 %v5938_v49  ;;  %v3954_v1 = vpop.permute.xlu0 %3953  ;;  %2910 = vmatprep.mubr.f32.mxu1 %v5939_v33  ;;  %v3502_v27 = vld [vmem:[%s6864_s5 + $0x48] sm:$0xff]  ;;  %v5943_v60 = vld [vmem:[#allocation2 + $0x398] sm:$0xff]  ;;  %v4013_v48 = vmul.f32 %v3469_v38, %v8248_v11 }
 0x3b0   : > { %3691 = vst [vmem:[%s6866_s7 + $0x30] sm:$0xff] %v3659_v25  ;;  %v4043_v42 = vmul.f32 %v3954_v1, %v3499_v10  ;;  %v3540_v17 = vpop.permute.xlu1 %3539  ;;  %3424 = vmatprep.mubr.f32.mxu0 %v5939_v33  ;;  %v3597_v10 = vmul.f32 %v3469_v38, %v8244_v52  ;;  %v3471_v49 = vld [vmem:[%s6855_s18 + $0x50] sm:$0xff]  ;;  %v4014_v38 = vmul.f32 %v3470_v16, %v8260_v35  ;;  %v3505_v16 = vld [vmem:[%s6864_s5 + $0x60] sm:$0xff] }
 0x3b1   : > { %4788 = vst [vmem:[%s6866_s7 + $0x128] sm:$0xff] %v4074_v21  ;;  %v3628_v4 = vmul.f32 %v3540_v17, %v3500_v15  ;;  %v3503_v21 = vld [vmem:[%s6864_s5 + $0x50] sm:$0xff]  ;;  %v3599_v17 = vmul.f32 %v3471_v49, %v8268_v56 }
 0x3b2   : > { %v4075_v2 = vadd.f32 %v4043_v42, %v4011_v63  ;;  %2911 = vmatmul.mubr.f32.gmra.mrb[116].mxu1 %v5940_v7  ;;  %v5944_v33 = vld [vmem:[#allocation2 + $0x390] sm:$0xff]  ;;  %v5945_v42 = vld [vmem:[#allocation2 + $0x3b8] sm:$0xff] }
 0x3b3   : > { %v3660_v29 = vadd.f32 %v3628_v4, %v3596_v9  ;;  %3425 = vmatmul.mubr.f32.gmra.mrb[116].mxu0 %v5940_v7  ;;  %v3542_v0 = vpop.permute.xlu0 %3541  ;;  %2916 = vmatprep.mubr.f32.mxu1 %v5941_v55  ;;  %v5946_v7 = vld [vmem:[#allocation2 + $0x3b0] sm:$0xff] }
 0x3b4   : > { %4789 = vst [vmem:[%s6866_s7 + $0x130] sm:$0xff] %v4075_v2  ;;  %v3629_v54 = vmul.f32 %v3542_v0, %v3501_v13  ;;  %v3956_v18 = vpop.permute.xlu1 %3955  ;;  %3430 = vmatprep.mubr.f32.mxu0 %v5941_v55  ;;  %v5947_v55 = vld [vmem:[#allocation2 + $0x3d8] sm:$0xff] }
 0x3b5   : > { %3692 = vst [vmem:[%s6866_s7 + $0x38] sm:$0xff] %v3660_v29  ;;  %v4044_v28 = vmul.f32 %v3956_v18, %v3500_v15  ;;  %v3504_v29 = vld [vmem:[%s6864_s5 + $0x58] sm:$0xff] }
 0x3b6   : > { %v3661_v41 = vadd.f32 %v3629_v54, %v3597_v10  ;;  %2917 = vmatmul.mubr.f32.gmra.mrb[118].mxu1 %v5942_v61  ;;  %v4015_v10 = vmul.f32 %v3471_v49, %v8271_v57  ;;  %v5950_v49 = vld [vmem:[#allocation2 + $0x3f0] sm:$0xff] }
 0x3b7   : > { %v4076_v19 = vadd.f32 %v4044_v28, %v4012_v32  ;;  %3431 = vmatmul.mubr.f32.gmra.mrb[118].mxu0 %v5942_v61  ;;  %v3958_v52 = vpop.permute.xlu0 %3957  ;;  %2922 = vmatprep.mubr.f32.mxu1 %v5943_v60  ;;  %v3473_v32 = vld [vmem:[%s6855_s18 + $0x60] sm:$0xff]  ;;  %v5948_v61 = vld [vmem:[#allocation2 + $0x3d0] sm:$0xff] }
 0x3b8   : > { %3693 = vst [vmem:[%s6866_s7 + $0x40] sm:$0xff] %v3661_v41  ;;  %v4045_v25 = vmul.f32 %v3958_v52, %v3501_v13  ;;  %v3544_v37 = vpop.permute.xlu1 %3543  ;;  %3436 = vmatprep.mubr.f32.mxu0 %v5943_v60  ;;  %v3472_v13 = vld [vmem:[%s6855_s18 + $0x58] sm:$0xff]  ;;  %v3601_v52 = vmul.f32 %v3473_v32, %v8285_v24 }
 0x3b9   : > { %4790 = vst [vmem:[%s6866_s7 + $0x138] sm:$0xff] %v4076_v19  ;;  %v3630_v15 = vmul.f32 %v3544_v37, %v3502_v27  ;;  %v3600_v18 = vmul.f32 %v3472_v13, %v8277_v30  ;;  %v5949_v19 = vld [vmem:[#allocation2 + $0x3f8] sm:$0xff]  ;;  %v3474_v37 = vld [vmem:[%s6855_s18 + $0x68] sm:$0xff] }
 0x3ba   : > { %v4077_v1 = vadd.f32 %v4045_v25, %v4013_v48  ;;  %2923 = vmatmul.mubr.f32.gmra.mrb[120].mxu1 %v5944_v33  ;;  %v4016_v48 = vmul.f32 %v3472_v13, %v8279_v22 }
 0x3bb   : > { %v3662_v63 = vadd.f32 %v3630_v15, %v3598_v40  ;;  %3437 = vmatmul.mubr.f32.gmra.mrb[120].mxu0 %v5944_v33  ;;  %v3546_v11 = vpop.permute.xlu0 %3545  ;;  %2928 = vmatprep.mubr.f32.mxu1 %v5945_v42  ;;  %v3506_v15 = vld [vmem:[%s6864_s5 + $0x68] sm:$0xff] }
 0x3bc   : > { %4791 = vst [vmem:[%s6866_s7 + $0x140] sm:$0xff] %v4077_v1  ;;  %v3631_v9 = vmul.f32 %v3546_v11, %v3503_v21  ;;  %v3960_v26 = vpop.permute.xlu1 %3959  ;;  %3442 = vmatprep.mubr.f32.mxu0 %v5945_v42  ;;  %v4017_v1 = vmul.f32 %v3473_v32, %v8287_v44  ;;  %v3475_v11 = vld [vmem:[%s6855_s18 + $0x70] sm:$0xff]  ;;  %v3509_v32 = vld [vmem:[%s6864_s5 + $0x80] sm:$0xff] }
 0x3bd   : > { %3694 = vst [vmem:[%s6866_s7 + $0x48] sm:$0xff] %v3662_v63  ;;  %v4046_v4 = vmul.f32 %v3960_v26, %v3502_v27  ;;  %v3602_v63 = vmul.f32 %v3474_v37, %v8293_v43 }
 0x3be   : > { %v3663_v2 = vadd.f32 %v3631_v9, %v3599_v17  ;;  %2929 = vmatmul.mubr.f32.gmra.mrb[122].mxu1 %v5946_v7  ;;  %v3507_v17 = vld [vmem:[%s6864_s5 + $0x70] sm:$0xff] }
 0x3bf   : > { %v4078_v0 = vadd.f32 %v4046_v4, %v4014_v38  ;;  %3443 = vmatmul.mubr.f32.gmra.mrb[122].mxu0 %v5946_v7  ;;  %v3962_v56 = vpop.permute.xlu0 %3961  ;;  %2934 = vmatprep.mubr.f32.mxu1 %v5947_v55  ;;  %v3603_v4 = vmul.f32 %v3475_v11, %v8301_v12  ;;  %v3476_v7 = vld [vmem:[%s6855_s18 + $0x78] sm:$0xff] }
 0x3c0   : > { %3695 = vst [vmem:[%s6866_s7 + $0x50] sm:$0xff] %v3663_v2  ;;  %v4047_v54 = vmul.f32 %v3962_v56, %v3503_v21  ;;  %v3548_v35 = vpop.permute.xlu1 %3547  ;;  %3448 = vmatprep.mubr.f32.mxu0 %v5947_v55  ;;  %v4018_v2 = vmul.f32 %v3474_v37, %v8295_v59 }
 0x3c1   : > { %4792 = vst [vmem:[%s6866_s7 + $0x148] sm:$0xff] %v4078_v0  ;;  %v3632_v28 = vmul.f32 %v3548_v35, %v3504_v29  ;;  %v3508_v0 = vld [vmem:[%s6864_s5 + $0x78] sm:$0xff]  ;;  %v3604_v35 = vmul.f32 %v3476_v7, %v8309_v46 }
 0x3c2   : > { %v4079_v41 = vadd.f32 %v4047_v54, %v4015_v10  ;;  %2935 = vmatmul.mubr.f32.gmra.mrb[124].mxu1 %v5948_v61  ;;  %v4019_v10 = vmul.f32 %v3475_v11, %v8303_v5  ;;  %v3480_v11 = vld [vmem:[%s6855_s18 + $0x98] sm:$0xff] }
 0x3c3   : > { %v3664_v27 = vadd.f32 %v3632_v28, %v3600_v18  ;;  %3449 = vmatmul.mubr.f32.gmra.mrb[124].mxu0 %v5948_v61  ;;  %v3550_v57 = vpop.permute.xlu0 %3549  ;;  %2940 = vmatprep.mubr.f32.mxu1 %v5949_v19  ;;  %v3477_v18 = vld [vmem:[%s6855_s18 + $0x80] sm:$0xff] }
 0x3c4   : > { %4793 = vst [vmem:[%s6866_s7 + $0x150] sm:$0xff] %v4079_v41  ;;  %v3633_v30 = vmul.f32 %v3550_v57, %v3505_v16  ;;  %v3964_v60 = vpop.permute.xlu1 %3963  ;;  %3454 = vmatprep.mubr.f32.mxu0 %v5949_v19  ;;  %v3605_v61 = vmul.f32 %v3477_v18, %v8317_v20  ;;  %v4020_v57 = vmul.f32 %v3476_v7, %v8311_v31  ;;  %v3478_v19 = vld [vmem:[%s6855_s18 + $0x88] sm:$0xff] }
 0x3c5   : > { %3696 = vst [vmem:[%s6866_s7 + $0x58] sm:$0xff] %v3664_v27  ;;  %v4048_v25 = vmul.f32 %v3964_v60, %v3504_v29 }
 0x3c6   : > { %v3665_v40 = vadd.f32 %v3633_v30, %v3601_v52  ;;  %2941 = vmatmul.mubr.f32.gmra.mrb[126].mxu1 %v5950_v49  ;;  %v3510_v30 = vld [vmem:[%s6864_s5 + $0x88] sm:$0xff] }
 0x3c7   : > { %v4080_v21 = vadd.f32 %v4048_v25, %v4016_v48  ;;  %3455 = vmatmul.mubr.f32.gmra.mrb[126].mxu0 %v5950_v49  ;;  %v3966_v24 = vpop.permute.xlu0 %3965  ;;  %v4021_v25 = vmul.f32 %v3477_v18, %v8319_v23  ;;  %v3479_v49 = vld [vmem:[%s6855_s18 + $0x90] sm:$0xff] }
 0x3c8   : > { %3697 = vst [vmem:[%s6866_s7 + $0x60] sm:$0xff] %v3665_v40  ;;  %v4049_v33 = vmul.f32 %v3966_v24, %v3505_v16  ;;  %v3552_v22 = vpop.permute.xlu1 %3551  ;;  %v3606_v40 = vmul.f32 %v3478_v19, %v8325_v47 }
 0x3c9   : > { %4794 = vst [vmem:[%s6866_s7 + $0x158] sm:$0xff] %v4080_v21  ;;  %v3634_v42 = vmul.f32 %v3552_v22, %v3506_v15 }
 0x3ca   : > { %v4081_v9 = vadd.f32 %v4049_v33, %v4017_v1  ;;  %v3607_v33 = vmul.f32 %v3479_v49, %v8333_v51 }
 0x3cb   : > { %v3666_v26 = vadd.f32 %v3634_v42, %v3602_v63  ;;  %v3554_v38 = vpop.permute.xlu0 %3553  ;;  %v4022_v63 = vmul.f32 %v3478_v19, %v8327_v58  ;;  %v9526_v19 = vld [vmem:[#allocation75_spill] sm:$0xff] }
 0x3cc   : > { %4795 = vst [vmem:[%s6866_s7 + $0x160] sm:$0xff] %v4081_v9  ;;  %v3635_v44 = vmul.f32 %v3554_v38, %v3507_v17  ;;  %v3968_v13 = vpop.permute.xlu1 %3967  ;;  %v4023_v38 = vmul.f32 %v3479_v49, %v8335_v62 }
 0x3cd   : > { %3698 = vst [vmem:[%s6866_s7 + $0x68] sm:$0xff] %v3666_v26  ;;  %v4050_v43 = vmul.f32 %v3968_v13, %v3506_v15  ;;  %v3511_v15 = vld [vmem:[%s6864_s5 + $0x90] sm:$0xff]  ;;  %v3481_v13 = vld [vmem:[%s6855_s18 + $0xa0] sm:$0xff] }
 0x3ce   : > { %v3667_v29 = vadd.f32 %v3635_v44, %v3603_v4  ;;  %v3608_v44 = vmul.f32 %v3480_v11, %v8341_v53 }
 0x3cf   : > { %v4082_v56 = vadd.f32 %v4050_v43, %v4018_v2  ;;  %v3970_v55 = vpop.permute.xlu0 %3969  ;;  %v3513_v2 = vld [vmem:[%s6864_s5 + $0xa0] sm:$0xff] }
 0x3d0   : > { %3699 = vst [vmem:[%s6866_s7 + $0x70] sm:$0xff] %v3667_v29  ;;  %v4051_v12 = vmul.f32 %v3970_v55, %v3507_v17  ;;  %v3556_v54 = vpop.permute.xlu1 %3555  ;;  %v3512_v17 = vld [vmem:[%s6864_s5 + $0x98] sm:$0xff]  ;;  %v4024_v55 = vmul.f32 %v3480_v11, %v8343_v8 }
 0x3d1   : > { %4796 = vst [vmem:[%s6866_s7 + $0x168] sm:$0xff] %v4082_v56  ;;  %v3636_v59 = vmul.f32 %v3556_v54, %v3508_v0  ;;  %v3514_v54 = vld [vmem:[%s6864_s5 + $0xa8] sm:$0xff] }
 0x3d2   : > { %v4083_v28 = vadd.f32 %v4051_v12, %v4019_v10  ;;  %v3482_v10 = vld [vmem:[%s6855_s18 + $0xa8] sm:$0xff] }
 0x3d3   : > { %v3668_v16 = vadd.f32 %v3636_v59, %v3604_v35  ;;  %v3558_v41 = vpop.permute.xlu0 %3557  ;;  %v4025_v59 = vmul.f32 %v3481_v13, %v8351_v39 }
 0x3d4   : > { %4797 = vst [vmem:[%s6866_s7 + $0x170] sm:$0xff] %v4083_v28  ;;  %v3637_v5 = vmul.f32 %v3558_v41, %v3509_v32  ;;  %v3972_v27 = vpop.permute.xlu1 %3971  ;;  %v3610_v28 = vmul.f32 %v3482_v10, %v8357_v14  ;;  %v3515_v41 = vld [vmem:[%s6864_s5 + $0xb0] sm:$0xff] }
 0x3d5   : > { %3700 = vst [vmem:[%s6866_s7 + $0x78] sm:$0xff] %v3668_v16  ;;  %v4052_v46 = vmul.f32 %v3972_v27, %v3508_v0  ;;  %v3609_v0 = vmul.f32 %v3481_v13, %v8349_v6  ;;  %v3483_v16 = vld [vmem:[%s6855_s18 + $0xb0] sm:$0xff] }
 0x3d6   : > { %v3669_v52 = vadd.f32 %v3637_v5, %v3605_v61 }
 0x3d7   : > { %v4084_v60 = vadd.f32 %v4052_v46, %v4020_v57  ;;  %v3974_v48 = vpop.permute.xlu0 %3973  ;;  %v3611_v57 = vmul.f32 %v3483_v16, %v8365_v50 }
 0x3d8   : > { %3701 = vst [vmem:[%s6866_s7 + $0x80] sm:$0xff] %v3669_v52  ;;  %v4053_v20 = vmul.f32 %v3974_v48, %v3509_v32  ;;  %v3560_v37 = vpop.permute.xlu1 %3559  ;;  %v4026_v52 = vmul.f32 %v3482_v10, %v9526_v19  ;;  %v3516_v48 = vld [vmem:[%s6864_s5 + $0xb8] sm:$0xff]  ;;  %v9536_v19 = vld [vmem:[#allocation85_spill] sm:$0xff] }
 0x3d9   : > { %4798 = vst [vmem:[%s6866_s7 + $0x178] sm:$0xff] %v4084_v60  ;;  %v3638_v31 = vmul.f32 %v3560_v37, %v3510_v30  ;;  %v9527_v37 = vld [vmem:[#allocation76_spill] sm:$0xff] }
 0x3da   : > { %v4085_v21 = vadd.f32 %v4053_v20, %v4021_v25 }
 0x3db   : > { %v3670_v24 = vadd.f32 %v3638_v31, %v3606_v40  ;;  %v3562_v1 = vpop.permute.xlu0 %3561  ;;  %v4027_v40 = vmul.f32 %v3483_v16, %v9527_v37  ;;  %v9528_v31 = vld [vmem:[#allocation77_spill] sm:$0xff]  ;;  %v3488_v16 = vld [vmem:[%s6855_s18 + $0xd8] sm:$0xff]  ;;  %v9537_v37 = vld [vmem:[#allocation87_spill] sm:$0xff] }
 0x3dc   : > { %4799 = vst [vmem:[%s6866_s7 + $0x180] sm:$0xff] %v4085_v21  ;;  %v3639_v23 = vmul.f32 %v3562_v1, %v3511_v15  ;;  %v3976_v22 = vpop.permute.xlu1 %3975  ;;  %v3485_v21 = vld [vmem:[%s6855_s18 + $0xc0] sm:$0xff] }
 0x3dd   : > { %3702 = vst [vmem:[%s6866_s7 + $0x88] sm:$0xff] %v3670_v24  ;;  %v4054_v47 = vmul.f32 %v3976_v22, %v3510_v30  ;;  %v3484_v30 = vld [vmem:[%s6855_s18 + $0xb8] sm:$0xff]  ;;  %v3517_v1 = vld [vmem:[%s6864_s5 + $0xc0] sm:$0xff] }
 0x3de   : > { %v3671_v42 = vadd.f32 %v3639_v23, %v3607_v33 }
 0x3df   : > { %v4086_v9 = vadd.f32 %v4054_v47, %v4022_v63  ;;  %v3978_v26 = vpop.permute.xlu0 %3977  ;;  %v9529_v63 = vld [vmem:[#allocation79_spill] sm:$0xff] }
 0x3e0   : > { %3703 = vst [vmem:[%s6866_s7 + $0x90] sm:$0xff] %v3671_v42  ;;  %v4055_v51 = vmul.f32 %v3978_v26, %v3511_v15  ;;  %v3564_v4 = vpop.permute.xlu1 %3563  ;;  %v3612_v15 = vmul.f32 %v3484_v30, %v9528_v31  ;;  %v3613_v47 = vmul.f32 %v3485_v21, %v9529_v63  ;;  %v9538_v31 = vld [vmem:[#allocation86_spill] sm:$0xff]  ;;  %v9539_v63 = vld [vmem:[#allocation88_spill] sm:$0xff] }
 0x3e1   : > { %4800 = vst [vmem:[%s6866_s7 + $0x188] sm:$0xff] %v4086_v9  ;;  %v3640_v58 = vmul.f32 %v3564_v4, %v3512_v17  ;;  %v3518_v4 = vld [vmem:[%s6864_s5 + $0xc8] sm:$0xff] }
 0x3e2   : > { %v4087_v43 = vadd.f32 %v4055_v51, %v4023_v38  ;;  %v3486_v38 = vld [vmem:[%s6855_s18 + $0xc8] sm:$0xff] }
 0x3e3   : > { %v3672_v7 = vadd.f32 %v3640_v58, %v3608_v44  ;;  %v3566_v29 = vpop.permute.xlu0 %3565  ;;  %v9531_v58 = vld [vmem:[#allocation80_spill] sm:$0xff] }
 0x3e4   : > { %4801 = vst [vmem:[%s6866_s7 + $0x190] sm:$0xff] %v4087_v43  ;;  %v3641_v62 = vmul.f32 %v3566_v29, %v3513_v2  ;;  %v3980_v56 = vpop.permute.xlu1 %3979  ;;  %v9532_v29 = vld [vmem:[#allocation81_spill] sm:$0xff] }
 0x3e5   : > { %3704 = vst [vmem:[%s6866_s7 + $0x98] sm:$0xff] %v3672_v7  ;;  %v4056_v53 = vmul.f32 %v3980_v56, %v3512_v17  ;;  %v9530_v17 = vld [vmem:[#allocation78_spill] sm:$0xff] }
 0x3e6   : > { %v3673_v12 = vadd.f32 %v3641_v62, %v3609_v0  ;;  %v4028_v9 = vmul.f32 %v3484_v30, %v9530_v17  ;;  %v3614_v0 = vmul.f32 %v3486_v38, %v9532_v29  ;;  %v3487_v62 = vld [vmem:[%s6855_s18 + $0xd0] sm:$0xff] }
 0x3e7   : > { %v4088_v35 = vadd.f32 %v4056_v53, %v4024_v55  ;;  %v3982_v18 = vpop.permute.xlu0 %3981  ;;  %v3519_v55 = vld [vmem:[%s6864_s5 + $0xd0] sm:$0xff] }
 0x3e8   : > { %3705 = vst [vmem:[%s6866_s7 + $0xa0] sm:$0xff] %v3673_v12  ;;  %v4057_v6 = vmul.f32 %v3982_v18, %v3513_v2  ;;  %v3568_v32 = vpop.permute.xlu1 %3567  ;;  %v4029_v2 = vmul.f32 %v3485_v21, %v9531_v58  ;;  %v9540_v17 = vld [vmem:[#allocation89_spill] sm:$0xff] }
 0x3e9   : > { %4802 = vst [vmem:[%s6866_s7 + $0x198] sm:$0xff] %v4088_v35  ;;  %v3642_v8 = vmul.f32 %v3568_v32, %v3514_v54 }
 0x3ea   : > { %v4089_v61 = vadd.f32 %v4057_v6, %v4025_v59  ;;  %v9534_v6 = vld [vmem:[#allocation82_spill] sm:$0xff] }
 0x3eb   : > { %v3674_v5 = vadd.f32 %v3642_v8, %v3610_v28  ;;  %v3570_v27 = vpop.permute.xlu0 %3569  ;;  %v4030_v32 = vmul.f32 %v3486_v38, %v9534_v6 }
 0x3ec   : > { %4803 = vst [vmem:[%s6866_s7 + $0x1a0] sm:$0xff] %v4089_v61  ;;  %v3643_v39 = vmul.f32 %v3570_v27, %v3515_v41  ;;  %v3984_v46 = vpop.permute.xlu1 %3983  ;;  %v9535_v27 = vld [vmem:[#allocation84_spill] sm:$0xff] }
 0x3ed   : > { %3706 = vst [vmem:[%s6866_s7 + $0xa8] sm:$0xff] %v3674_v5  ;;  %v4058_v14 = vmul.f32 %v3984_v46, %v3514_v54  ;;  %v9533_v54 = vld [vmem:[#allocation83_spill] sm:$0xff] }
 0x3ee   : > { %v3675_v60 = vadd.f32 %v3643_v39, %v3611_v57  ;;  %v3615_v35 = vmul.f32 %v3487_v62, %v9533_v54  ;;  %v4031_v57 = vmul.f32 %v3487_v62, %v9535_v27  ;;  %v3492_v62 = vld [vmem:[%s6855_s18 + $0xf8] sm:$0xff] }
 0x3ef   : > { %v4090_v25 = vadd.f32 %v4058_v14, %v4026_v52  ;;  %v3986_v20 = vpop.permute.xlu0 %3985  ;;  %v3616_v52 = vmul.f32 %v3488_v16, %v9536_v19  ;;  %v3489_v14 = vld [vmem:[%s6855_s18 + $0xe0] sm:$0xff] }
 0x3f0   : > { %3707 = vst [vmem:[%s6866_s7 + $0xb0] sm:$0xff] %v3675_v60  ;;  %v4059_v50 = vmul.f32 %v3986_v20, %v3515_v41  ;;  %v3572_v49 = vpop.permute.xlu1 %3571  ;;  %v3520_v41 = vld [vmem:[%s6864_s5 + $0xd8] sm:$0xff]  ;;  %v3521_v60 = vld [vmem:[%s6864_s5 + $0xe0] sm:$0xff] }
 0x3f1   : > { %4804 = vst [vmem:[%s6866_s7 + $0x1a8] sm:$0xff] %v4090_v25  ;;  %v3644_v24 = vmul.f32 %v3572_v49, %v3516_v48 }
 0x3f2   : > { %v4091_v33 = vadd.f32 %v4059_v50, %v4027_v40  ;;  %v3617_v40 = vmul.f32 %v3489_v14, %v9537_v37 }
 0x3f3   : > { %v3676_v23 = vadd.f32 %v3644_v24, %v3612_v15  ;;  %v3574_v22 = vpop.permute.xlu0 %3573  ;;  %v4032_v15 = vmul.f32 %v3488_v16, %v9538_v31  ;;  %v3490_v24 = vld [vmem:[%s6855_s18 + $0xe8] sm:$0xff] }
 0x3f4   : > { %4805 = vst [vmem:[%s6866_s7 + $0x1b0] sm:$0xff] %v4091_v33  ;;  %v3645_v11 = vmul.f32 %v3574_v22, %v3517_v1  ;;  %v3988_v42 = vpop.permute.xlu1 %3987  ;;  %v3522_v33 = vld [vmem:[%s6864_s5 + $0xe8] sm:$0xff] }
 0x3f5   : > { %3708 = vst [vmem:[%s6866_s7 + $0xb8] sm:$0xff] %v3676_v23  ;;  %v4060_v26 = vmul.f32 %v3988_v42, %v3516_v48 }
 0x3f6   : > { %v3677_v51 = vadd.f32 %v3645_v11, %v3613_v47  ;;  %v4033_v47 = vmul.f32 %v3489_v14, %v9539_v63 }
 0x3f7   : > { %v4092_v44 = vadd.f32 %v4060_v26, %v4028_v9  ;;  %v3990_v13 = vpop.permute.xlu0 %3989  ;;  %v3618_v9 = vmul.f32 %v3490_v24, %v9540_v17  ;;  %v3491_v26 = vld [vmem:[%s6855_s18 + $0xf0] sm:$0xff] }
 0x3f8   : > { %3709 = vst [vmem:[%s6866_s7 + $0xc0] sm:$0xff] %v3677_v51  ;;  %v4061_v43 = vmul.f32 %v3990_v13, %v3517_v1  ;;  %v3576_v7 = vpop.permute.xlu1 %3575  ;;  %v3523_v51 = vld [vmem:[%s6864_s5 + $0xf0] sm:$0xff]  ;;  %v3619_v58 = vmul.f32 %v3491_v26, %v8434_v45 }
 0x3f9   : > { %4806 = vst [vmem:[%s6866_s7 + $0x1b8] sm:$0xff] %v4092_v44  ;;  %v3646_v56 = vmul.f32 %v3576_v7, %v3518_v4  ;;  %v9541_v7 = vld [vmem:[#allocation90_spill] sm:$0xff] }
 0x3fa   : > { %v4093_v53 = vadd.f32 %v4061_v43, %v4029_v2  ;;  %v4034_v29 = vmul.f32 %v3490_v24, %v9541_v7 }
 0x3fb   : > { %v3678_v10 = vadd.f32 %v3646_v56, %v3614_v0  ;;  %v3578_v12 = vpop.permute.xlu0 %3577 }
 0x3fc   : > { %4807 = vst [vmem:[%s6866_s7 + $0x1c0] sm:$0xff] %v4093_v53  ;;  %v3647_v18 = vmul.f32 %v3578_v12, %v3519_v55  ;;  %v3992_v59 = vpop.permute.xlu1 %3991  ;;  %v4035_v12 = vmul.f32 %v3491_v26, %v8438_v3 }
 0x3fd   : > { %3710 = vst [vmem:[%s6866_s7 + $0xc8] sm:$0xff] %v3678_v10  ;;  %v4062_v28 = vmul.f32 %v3992_v59, %v3518_v4 }
 0x3fe   : > { %v3679_v8 = vadd.f32 %v3647_v18, %v3615_v35  ;;  %v3620_v35 = vmul.f32 %v3492_v62, %v8447_v36 }
 0x3ff   : > { %v4094_v61 = vadd.f32 %v4062_v28, %v4030_v32  ;;  %v3994_v5 = vpop.permute.xlu0 %3993  ;;  %v4036_v28 = vmul.f32 %v3492_v62, %v8451_v34 }
 0x400   : > { %3711 = vst [vmem:[%s6866_s7 + $0xd0] sm:$0xff] %v3679_v8  ;;  %v4063_v39 = vmul.f32 %v3994_v5, %v3519_v55  ;;  %v3580_v46 = vpop.permute.xlu1 %3579  ;;  %v3524_v55 = vld [vmem:[%s6864_s5 + $0xf8] sm:$0xff] }
 0x401   : > { %4808 = vst [vmem:[%s6866_s7 + $0x1c8] sm:$0xff] %v4094_v61  ;;  %v3648_v30 = vmul.f32 %v3580_v46, %v3520_v41 }
 0x402   : > { %v4095_v48 = vadd.f32 %v4063_v39, %v4031_v57 }
 0x403   : > { %v3680_v25 = vadd.f32 %v3648_v30, %v3616_v52  ;;  %v3582_v20 = vpop.permute.xlu0 %3581 }
 0x404   : > { %4809 = vst [vmem:[%s6866_s7 + $0x1d0] sm:$0xff] %v4095_v48  ;;  %v3649_v50 = vmul.f32 %v3582_v20, %v3521_v60  ;;  %v3996_v49 = vpop.permute.xlu1 %3995 }
 0x405   : > { %3712 = vst [vmem:[%s6866_s7 + $0xd8] sm:$0xff] %v3680_v25  ;;  %v4064_v21 = vmul.f32 %v3996_v49, %v3520_v41 }
 0x406   : > { %v3681_v1 = vadd.f32 %v3649_v50, %v3617_v40 }
 0x407   : > { %v4096_v23 = vadd.f32 %v4064_v21, %v4032_v15  ;;  %v3998_v22 = vpop.permute.xlu0 %3997 }
 0x408   : > { %3713 = vst [vmem:[%s6866_s7 + $0xe0] sm:$0xff] %v3681_v1  ;;  %v4065_v11 = vmul.f32 %v3998_v22, %v3521_v60  ;;  %v3584_v42 = vpop.permute.xlu1 %3583 }
 0x409   : > { %4810 = vst [vmem:[%s6866_s7 + $0x1d8] sm:$0xff] %v4096_v23  ;;  %v3650_v38 = vmul.f32 %v3584_v42, %v3522_v33 }
 0x40a   : > { %v4097_v4 = vadd.f32 %v4065_v11, %v4033_v47 }
 0x40b   : > { %v3682_v44 = vadd.f32 %v3650_v38, %v3618_v9  ;;  %v3586_v13 = vpop.permute.xlu0 %3585 }
 0x40c   : > { %4811 = vst [vmem:[%s6866_s7 + $0x1e0] sm:$0xff] %v4097_v4  ;;  %v3651_v2 = vmul.f32 %v3586_v13, %v3523_v51  ;;  %v4000_v43 = vpop.permute.xlu1 %3999 }
 0x40d   : > { %3714 = vst [vmem:[%s6866_s7 + $0xe8] sm:$0xff] %v3682_v44  ;;  %v4066_v0 = vmul.f32 %v4000_v43, %v3522_v33 }
 0x40e   : > { %v3683_v56 = vadd.f32 %v3651_v2, %v3619_v58 }
 0x40f   : > { %v4098_v53 = vadd.f32 %v4066_v0, %v4034_v29  ;;  %v4002_v10 = vpop.permute.xlu0 %4001 }
 0x410   : > { %3715 = vst [vmem:[%s6866_s7 + $0xf0] sm:$0xff] %v3683_v56  ;;  %v4067_v45 = vmul.f32 %v4002_v10, %v3523_v51  ;;  %v3588_v54 = vpop.permute.xlu1 %3587 }
 0x411   : > { %4812 = vst [vmem:[%s6866_s7 + $0x1e8] sm:$0xff] %v4098_v53  ;;  %v3652_v18 = vmul.f32 %v3588_v54, %v3524_v55 }
 0x412   : > { %v4099_v59 = vadd.f32 %v4067_v45, %v4035_v12 }
 0x413   : > { %v3684_v6 = vadd.f32 %v3652_v18, %v3620_v35 }
 0x414   : > { %4813 = vst [vmem:[%s6866_s7 + $0x1f0] sm:$0xff] %v4099_v59  ;;  %v4004_v32 = vpop.permute.xlu1 %4003 }
 0x415   : > { %3716 = vst [vmem:[%s6866_s7 + $0xf8] sm:$0xff] %v3684_v6  ;;  %v4068_v16 = vmul.f32 %v4004_v32, %v3524_v55 }
 0x417   : > { %v4100_v8 = vadd.f32 %v4068_v16, %v4036_v28 }
 0x419   : > { %4814 = vst [vmem:[%s6866_s7 + $0x1f8] sm:$0xff] %v4100_v8 }
 0x41d   : > { %v8639_v3 = vpop.f32.mrb[64].mxu1 }
 0x41e   : > { %v3270_v41 = vpop.f32.mrb[64].mxu0  ;;  %3717 = vrot.lane.b32.xlu0 %v8639_v3, %s6350_s14  ;;  %v8643_v36 = vpop.f32.mrb[65].mxu1 }
 0x41f   : > { %3909 = vst [vmem:[%s6870_s13] sm:$0xff] %v3270_v41  ;;  %v3272_v61 = vpop.f32.mrb[65].mxu0 }
 0x420   : > { %4847 = vst [vmem:[%s6870_s13 + $0x100] sm:$0xff] %v3272_v61 }
 0x421   : > { %v8647_v34 = vpop.f32.mrb[66].mxu1 }
 0x422   : > { %v3276_v5 = vpop.f32.mrb[66].mxu0  ;;  %4134 = vrot.lane.b32.xlu0 %v8643_v36, %s6350_s14  ;;  %v8651_v27 = vpop.f32.mrb[67].mxu1  ;;  %3719 = vrot.lane.b32.xlu1 %v8647_v34, %s6350_s14 }
 0x423   : > { %3910 = vst [vmem:[%s6870_s13 + $0x8] sm:$0xff] %v3276_v5  ;;  %v3278_v57 = vpop.f32.mrb[67].mxu0 }
 0x424   : > { %4848 = vst [vmem:[%s6870_s13 + $0x108] sm:$0xff] %v3278_v57 }
 0x425   : > { %v8657_v39 = vpop.f32.mrb[68].mxu1 }
 0x426   : > { %v3282_v46 = vpop.f32.mrb[68].mxu0  ;;  %3721 = vrot.lane.b32.xlu0 %v8657_v39, %s6350_s14  ;;  %v8661_v19 = vpop.f32.mrb[69].mxu1  ;;  %4136 = vrot.lane.b32.xlu1 %v8651_v27, %s6350_s14 }
 0x427   : > { %3911 = vst [vmem:[%s6870_s13 + $0x10] sm:$0xff] %v3282_v46  ;;  %v3284_v52 = vpop.f32.mrb[69].mxu0 }
 0x428   : > { %4849 = vst [vmem:[%s6870_s13 + $0x110] sm:$0xff] %v3284_v52 }
 0x429   : > { %v8667_v14 = vpop.f32.mrb[70].mxu1 }
 0x42a   : > { %v3288_v30 = vpop.f32.mrb[70].mxu0  ;;  %4138 = vrot.lane.b32.xlu0 %v8661_v19, %s6350_s14  ;;  %v8671_v60 = vpop.f32.mrb[71].mxu1  ;;  %3723 = vrot.lane.b32.xlu1 %v8667_v14, %s6350_s14 }
 0x42b   : > { %3912 = vst [vmem:[%s6870_s13 + $0x18] sm:$0xff] %v3288_v30  ;;  %v3290_v48 = vpop.f32.mrb[71].mxu0 }
 0x42c   : > { %4850 = vst [vmem:[%s6870_s13 + $0x118] sm:$0xff] %v3290_v48 }
 0x42d   : > { %v8677_v25 = vpop.f32.mrb[72].mxu1 }
 0x42e   : > { %v3294_v20 = vpop.f32.mrb[72].mxu0  ;;  %3725 = vrot.lane.b32.xlu0 %v8677_v25, %s6350_s14  ;;  %v8681_v37 = vpop.f32.mrb[73].mxu1  ;;  %4140 = vrot.lane.b32.xlu1 %v8671_v60, %s6350_s14 }
 0x42f   : > { %3913 = vst [vmem:[%s6870_s13 + $0x20] sm:$0xff] %v3294_v20  ;;  %v3296_v40 = vpop.f32.mrb[73].mxu0 }
 0x430   : > { %4851 = vst [vmem:[%s6870_s13 + $0x120] sm:$0xff] %v3296_v40 }
 0x431   : > { %v8687_v50 = vpop.f32.mrb[74].mxu1 }
 0x432   : > { %v3300_v49 = vpop.f32.mrb[74].mxu0  ;;  %4142 = vrot.lane.b32.xlu0 %v8681_v37, %s6350_s14  ;;  %v8691_v31 = vpop.f32.mrb[75].mxu1  ;;  %3727 = vrot.lane.b32.xlu1 %v8687_v50, %s6350_s14 }
 0x433   : > { %3914 = vst [vmem:[%s6870_s13 + $0x28] sm:$0xff] %v3300_v49  ;;  %v3302_v15 = vpop.f32.mrb[75].mxu0 }
 0x434   : > { %4852 = vst [vmem:[%s6870_s13 + $0x128] sm:$0xff] %v3302_v15 }
 0x435   : > { %v8697_v21 = vpop.f32.mrb[76].mxu1 }
 0x436   : > { %v3306_v24 = vpop.f32.mrb[76].mxu0  ;;  %3729 = vrot.lane.b32.xlu0 %v8697_v21, %s6350_s14  ;;  %v8701_v1 = vpop.f32.mrb[77].mxu1  ;;  %4144 = vrot.lane.b32.xlu1 %v8691_v31, %s6350_s14 }
 0x437   : > { %3915 = vst [vmem:[%s6870_s13 + $0x30] sm:$0xff] %v3306_v24  ;;  %v3308_v33 = vpop.f32.mrb[77].mxu0 }
 0x438   : > { %4853 = vst [vmem:[%s6870_s13 + $0x130] sm:$0xff] %v3308_v33 }
 0x439   : > { %v8707_v23 = vpop.f32.mrb[78].mxu1 }
 0x43a   : > { %v3312_v22 = vpop.f32.mrb[78].mxu0  ;;  %4146 = vrot.lane.b32.xlu0 %v8701_v1, %s6350_s14  ;;  %v8711_v63 = vpop.f32.mrb[79].mxu1  ;;  %3731 = vrot.lane.b32.xlu1 %v8707_v23, %s6350_s14 }
 0x43b   : > { %3916 = vst [vmem:[%s6870_s13 + $0x38] sm:$0xff] %v3312_v22  ;;  %v3314_v47 = vpop.f32.mrb[79].mxu0 }
 0x43c   : > { %4854 = vst [vmem:[%s6870_s13 + $0x138] sm:$0xff] %v3314_v47 }
 0x43d   : > { %v8717_v11 = vpop.f32.mrb[80].mxu1 }
 0x43e   : > { %v3318_v42 = vpop.f32.mrb[80].mxu0  ;;  %3733 = vrot.lane.b32.xlu0 %v8717_v11, %s6350_s14  ;;  %v8721_v17 = vpop.f32.mrb[81].mxu1  ;;  %4148 = vrot.lane.b32.xlu1 %v8711_v63, %s6350_s14 }
 0x43f   : > { %3917 = vst [vmem:[%s6870_s13 + $0x40] sm:$0xff] %v3318_v42  ;;  %v3320_v9 = vpop.f32.mrb[81].mxu0 }
 0x440   : > { %4855 = vst [vmem:[%s6870_s13 + $0x140] sm:$0xff] %v3320_v9 }
 0x441   : > { %v8727_v26 = vpop.f32.mrb[82].mxu1 }
 0x442   : > { %v3324_v38 = vpop.f32.mrb[82].mxu0  ;;  %4150 = vrot.lane.b32.xlu0 %v8721_v17, %s6350_s14  ;;  %v8731_v51 = vpop.f32.mrb[83].mxu1  ;;  %3735 = vrot.lane.b32.xlu1 %v8727_v26, %s6350_s14 }
 0x443   : > { %3918 = vst [vmem:[%s6870_s13 + $0x48] sm:$0xff] %v3324_v38  ;;  %v3326_v4 = vpop.f32.mrb[83].mxu0 }
 0x444   : > { %4856 = vst [vmem:[%s6870_s13 + $0x148] sm:$0xff] %v3326_v4 }
 0x445   : > { %v8737_v44 = vpop.f32.mrb[84].mxu1 }
 0x446   : > { %v3330_v13 = vpop.f32.mrb[84].mxu0  ;;  %3737 = vrot.lane.b32.xlu0 %v8737_v44, %s6350_s14  ;;  %v8741_v58 = vpop.f32.mrb[85].mxu1  ;;  %4152 = vrot.lane.b32.xlu1 %v8731_v51, %s6350_s14 }
 0x447   : > { %3919 = vst [vmem:[%s6870_s13 + $0x50] sm:$0xff] %v3330_v13  ;;  %v3332_v2 = vpop.f32.mrb[85].mxu0 }
 0x448   : > { %4857 = vst [vmem:[%s6870_s13 + $0x150] sm:$0xff] %v3332_v2 }
 0x449   : > { %v8747_v43 = vpop.f32.mrb[86].mxu1 }
 0x44a   : > { %v3336_v7 = vpop.f32.mrb[86].mxu0  ;;  %4154 = vrot.lane.b32.xlu0 %v8741_v58, %s6350_s14  ;;  %v8751_v29 = vpop.f32.mrb[87].mxu1  ;;  %3739 = vrot.lane.b32.xlu1 %v8747_v43, %s6350_s14 }
 0x44b   : > { %3920 = vst [vmem:[%s6870_s13 + $0x58] sm:$0xff] %v3336_v7  ;;  %v3338_v0 = vpop.f32.mrb[87].mxu0 }
 0x44c   : > { %4858 = vst [vmem:[%s6870_s13 + $0x158] sm:$0xff] %v3338_v0 }
 0x44d   : > { %v8757_v62 = vpop.f32.mrb[88].mxu1 }
 0x44e   : > { %v3342_v56 = vpop.f32.mrb[88].mxu0  ;;  %3741 = vrot.lane.b32.xlu0 %v8757_v62, %s6350_s14  ;;  %v8761_v55 = vpop.f32.mrb[89].mxu1  ;;  %4156 = vrot.lane.b32.xlu1 %v8751_v29, %s6350_s14 }
 0x44f   : > { %3921 = vst [vmem:[%s6870_s13 + $0x60] sm:$0xff] %v3342_v56  ;;  %v3344_v53 = vpop.f32.mrb[89].mxu0 }
 0x450   : > { %4859 = vst [vmem:[%s6870_s13 + $0x160] sm:$0xff] %v3344_v53 }
 0x451   : > { %v8767_v10 = vpop.f32.mrb[90].mxu1 }
 0x452   : > { %v3348_v12 = vpop.f32.mrb[90].mxu0  ;;  %4158 = vrot.lane.b32.xlu0 %v8761_v55, %s6350_s14  ;;  %v8771_v45 = vpop.f32.mrb[91].mxu1  ;;  %3743 = vrot.lane.b32.xlu1 %v8767_v10, %s6350_s14 }
 0x453   : > { %3922 = vst [vmem:[%s6870_s13 + $0x68] sm:$0xff] %v3348_v12  ;;  %v3350_v54 = vpop.f32.mrb[91].mxu0 }
 0x454   : > { %4860 = vst [vmem:[%s6870_s13 + $0x168] sm:$0xff] %v3350_v54 }
 0x455   : > { %v8777_v35 = vpop.f32.mrb[92].mxu1 }
 0x456   : > { %v3354_v18 = vpop.f32.mrb[92].mxu0  ;;  %3745 = vrot.lane.b32.xlu0 %v8777_v35, %s6350_s14  ;;  %v8781_v59 = vpop.f32.mrb[93].mxu1  ;;  %4160 = vrot.lane.b32.xlu1 %v8771_v45, %s6350_s14 }
 0x457   : > { %3923 = vst [vmem:[%s6870_s13 + $0x70] sm:$0xff] %v3354_v18  ;;  %v3356_v6 = vpop.f32.mrb[93].mxu0 }
 0x458   : > { %4861 = vst [vmem:[%s6870_s13 + $0x170] sm:$0xff] %v3356_v6 }
 0x459   : > { %v8787_v32 = vpop.f32.mrb[94].mxu1 }
 0x45a   : > { %v3360_v28 = vpop.f32.mrb[94].mxu0  ;;  %4162 = vrot.lane.b32.xlu0 %v8781_v59, %s6350_s14  ;;  %v8791_v16 = vpop.f32.mrb[95].mxu1  ;;  %3747 = vrot.lane.b32.xlu1 %v8787_v32, %s6350_s14 }
 0x45b   : > { %3924 = vst [vmem:[%s6870_s13 + $0x78] sm:$0xff] %v3360_v28  ;;  %v3362_v8 = vpop.f32.mrb[95].mxu0 }
 0x45c   : > { %4862 = vst [vmem:[%s6870_s13 + $0x178] sm:$0xff] %v3362_v8 }
 0x45d   : > { %v8797_v41 = vpop.f32.mrb[96].mxu1 }
 0x45e   : > { %v3366_v61 = vpop.f32.mrb[96].mxu0  ;;  %3749 = vrot.lane.b32.xlu0 %v8797_v41, %s6350_s14  ;;  %v8801_v5 = vpop.f32.mrb[97].mxu1  ;;  %4164 = vrot.lane.b32.xlu1 %v8791_v16, %s6350_s14 }
 0x45f   : > { %3925 = vst [vmem:[%s6870_s13 + $0x80] sm:$0xff] %v3366_v61  ;;  %v3368_v57 = vpop.f32.mrb[97].mxu0 }
 0x460   : > { %4863 = vst [vmem:[%s6870_s13 + $0x180] sm:$0xff] %v3368_v57 }
 0x461   : > { %v8807_v46 = vpop.f32.mrb[98].mxu1 }
 0x462   : > { %v3372_v52 = vpop.f32.mrb[98].mxu0  ;;  %4166 = vrot.lane.b32.xlu0 %v8801_v5, %s6350_s14  ;;  %v8811_v30 = vpop.f32.mrb[99].mxu1  ;;  %3751 = vrot.lane.b32.xlu1 %v8807_v46, %s6350_s14 }
 0x463   : > { %3926 = vst [vmem:[%s6870_s13 + $0x88] sm:$0xff] %v3372_v52  ;;  %v3374_v48 = vpop.f32.mrb[99].mxu0 }
 0x464   : > { %4864 = vst [vmem:[%s6870_s13 + $0x188] sm:$0xff] %v3374_v48 }
 0x465   : > { %v8817_v20 = vpop.f32.mrb[100].mxu1 }
 0x466   : > { %v3378_v40 = vpop.f32.mrb[100].mxu0  ;;  %3753 = vrot.lane.b32.xlu0 %v8817_v20, %s6350_s14  ;;  %v8821_v49 = vpop.f32.mrb[101].mxu1  ;;  %4168 = vrot.lane.b32.xlu1 %v8811_v30, %s6350_s14 }
 0x467   : > { %3927 = vst [vmem:[%s6870_s13 + $0x90] sm:$0xff] %v3378_v40  ;;  %v3380_v15 = vpop.f32.mrb[101].mxu0 }
 0x468   : > { %4865 = vst [vmem:[%s6870_s13 + $0x190] sm:$0xff] %v3380_v15 }
 0x469   : > { %v8827_v24 = vpop.f32.mrb[102].mxu1 }
 0x46a   : > { %v3384_v33 = vpop.f32.mrb[102].mxu0  ;;  %4170 = vrot.lane.b32.xlu0 %v8821_v49, %s6350_s14  ;;  %v8831_v22 = vpop.f32.mrb[103].mxu1  ;;  %3755 = vrot.lane.b32.xlu1 %v8827_v24, %s6350_s14 }
 0x46b   : > { %3928 = vst [vmem:[%s6870_s13 + $0x98] sm:$0xff] %v3384_v33  ;;  %v3386_v47 = vpop.f32.mrb[103].mxu0 }
 0x46c   : > { %4866 = vst [vmem:[%s6870_s13 + $0x198] sm:$0xff] %v3386_v47 }
 0x46d   : > { %v8837_v42 = vpop.f32.mrb[104].mxu1 }
 0x46e   : > { %v3390_v9 = vpop.f32.mrb[104].mxu0  ;;  %3757 = vrot.lane.b32.xlu0 %v8837_v42, %s6350_s14  ;;  %v8841_v38 = vpop.f32.mrb[105].mxu1  ;;  %4172 = vrot.lane.b32.xlu1 %v8831_v22, %s6350_s14 }
 0x46f   : > { %3929 = vst [vmem:[%s6870_s13 + $0xa0] sm:$0xff] %v3390_v9  ;;  %v3392_v4 = vpop.f32.mrb[105].mxu0 }
 0x470   : > { %4867 = vst [vmem:[%s6870_s13 + $0x1a0] sm:$0xff] %v3392_v4 }
 0x471   : > { %v8847_v13 = vpop.f32.mrb[106].mxu1 }
 0x472   : > { %v3396_v2 = vpop.f32.mrb[106].mxu0  ;;  %4174 = vrot.lane.b32.xlu0 %v8841_v38, %s6350_s14  ;;  %v8851_v7 = vpop.f32.mrb[107].mxu1  ;;  %3759 = vrot.lane.b32.xlu1 %v8847_v13, %s6350_s14 }
 0x473   : > { %3930 = vst [vmem:[%s6870_s13 + $0xa8] sm:$0xff] %v3396_v2  ;;  %v3398_v0 = vpop.f32.mrb[107].mxu0 }
 0x474   : > { %4868 = vst [vmem:[%s6870_s13 + $0x1a8] sm:$0xff] %v3398_v0 }
 0x475   : > { %v8857_v56 = vpop.f32.mrb[108].mxu1 }
 0x476   : > { %v3402_v53 = vpop.f32.mrb[108].mxu0  ;;  %3761 = vrot.lane.b32.xlu0 %v8857_v56, %s6350_s14  ;;  %v8861_v12 = vpop.f32.mrb[109].mxu1  ;;  %4176 = vrot.lane.b32.xlu1 %v8851_v7, %s6350_s14 }
 0x477   : > { %3931 = vst [vmem:[%s6870_s13 + $0xb0] sm:$0xff] %v3402_v53  ;;  %v3404_v54 = vpop.f32.mrb[109].mxu0 }
 0x478   : > { %4869 = vst [vmem:[%s6870_s13 + $0x1b0] sm:$0xff] %v3404_v54 }
 0x479   : > { %v8867_v18 = vpop.f32.mrb[110].mxu1 }
 0x47a   : > { %v3408_v6 = vpop.f32.mrb[110].mxu0  ;;  %4178 = vrot.lane.b32.xlu0 %v8861_v12, %s6350_s14  ;;  %v8871_v28 = vpop.f32.mrb[111].mxu1  ;;  %3763 = vrot.lane.b32.xlu1 %v8867_v18, %s6350_s14 }
 0x47b   : > { %3932 = vst [vmem:[%s6870_s13 + $0xb8] sm:$0xff] %v3408_v6  ;;  %v3410_v8 = vpop.f32.mrb[111].mxu0 }
 0x47c   : > { %4870 = vst [vmem:[%s6870_s13 + $0x1b8] sm:$0xff] %v3410_v8 }
 0x47d   : > { %v8877_v61 = vpop.f32.mrb[112].mxu1 }
 0x47e   : > { %9542 = vst [vmem:[#allocation75_spill] sm:$0xff] %v8877_v61  ;;  %v3414_v57 = vpop.f32.mrb[112].mxu0  ;;  %3765 = vrot.lane.b32.xlu0 %v8877_v61, %s6350_s14  ;;  %v8881_v52 = vpop.f32.mrb[113].mxu1  ;;  %4180 = vrot.lane.b32.xlu1 %v8871_v28, %s6350_s14 }
 0x47f   : > { %9543 = vst [vmem:[#allocation76_spill] sm:$0xff] %v8881_v52  ;;  %3933 = vst [vmem:[%s6870_s13 + $0xc0] sm:$0xff] %v3414_v57  ;;  %v3416_v48 = vpop.f32.mrb[113].mxu0 }
 0x480   : > { %4871 = vst [vmem:[%s6870_s13 + $0x1c0] sm:$0xff] %v3416_v48 }
 0x481   : > { %v8887_v40 = vpop.f32.mrb[114].mxu1 }
 0x482   : > { %9544 = vst [vmem:[#allocation77_spill] sm:$0xff] %v8887_v40  ;;  %v3420_v15 = vpop.f32.mrb[114].mxu0  ;;  %4182 = vrot.lane.b32.xlu0 %v8881_v52, %s6350_s14  ;;  %v8891_v33 = vpop.f32.mrb[115].mxu1  ;;  %3767 = vrot.lane.b32.xlu1 %v8887_v40, %s6350_s14  ;;  %v5954_v52 = vld [vmem:[%s6864_s5 + $0x8] sm:$0xff] }
 0x483   : > { %9545 = vst [vmem:[#allocation79_spill] sm:$0xff] %v8891_v33  ;;  %3934 = vst [vmem:[%s6870_s13 + $0xc8] sm:$0xff] %v3420_v15  ;;  %v3422_v47 = vpop.f32.mrb[115].mxu0 }
 0x484   : > { %4872 = vst [vmem:[%s6870_s13 + $0x1c8] sm:$0xff] %v3422_v47 }
 0x485   : > { %v8897_v9 = vpop.f32.mrb[116].mxu1 }
 0x486   : > { %9546 = vst [vmem:[#allocation78_spill] sm:$0xff] %v8897_v9  ;;  %v3426_v4 = vpop.f32.mrb[116].mxu0  ;;  %3769 = vrot.lane.b32.xlu0 %v8897_v9, %s6350_s14  ;;  %v8901_v2 = vpop.f32.mrb[117].mxu1  ;;  %4184 = vrot.lane.b32.xlu1 %v8891_v33, %s6350_s14  ;;  %v5953_v33 = vld [vmem:[%s6855_s18 + $0x8] sm:$0xff] }
 0x487   : > { %9547 = vst [vmem:[#allocation80_spill] sm:$0xff] %v8901_v2  ;;  %3935 = vst [vmem:[%s6870_s13 + $0xd0] sm:$0xff] %v3426_v4  ;;  %v3428_v0 = vpop.f32.mrb[117].mxu0  ;;  %v3782_v40 = vmul.f32 %v5953_v33, %v8647_v34 }
 0x488   : > { %4873 = vst [vmem:[%s6870_s13 + $0x1d0] sm:$0xff] %v3428_v0  ;;  %v5951_v0 = vld [vmem:[%s6855_s18] sm:$0xff] }
 0x489   : > { %v8907_v53 = vpop.f32.mrb[118].mxu1 }
 0x48a   : > { %9548 = vst [vmem:[#allocation81_spill] sm:$0xff] %v8907_v53  ;;  %v3432_v54 = vpop.f32.mrb[118].mxu0  ;;  %4186 = vrot.lane.b32.xlu0 %v8901_v2, %s6350_s14  ;;  %v8911_v6 = vpop.f32.mrb[119].mxu1  ;;  %3771 = vrot.lane.b32.xlu1 %v8907_v53, %s6350_s14 }
 0x48b   : > { %9549 = vst [vmem:[#allocation83_spill] sm:$0xff] %v8911_v6  ;;  %3936 = vst [vmem:[%s6870_s13 + $0xd8] sm:$0xff] %v3432_v54  ;;  %v3434_v8 = vpop.f32.mrb[119].mxu0  ;;  %v3781_v54 = vmul.f32 %v5951_v0, %v8639_v3 }
 0x48c   : > { %4874 = vst [vmem:[%s6870_s13 + $0x1d8] sm:$0xff] %v3434_v8  ;;  %v5952_v8 = vld [vmem:[%s6864_s5] sm:$0xff] }
 0x48d   : > { %v8917_v57 = vpop.f32.mrb[120].mxu1 }
 0x48e   : > { %9550 = vst [vmem:[#allocation82_spill] sm:$0xff] %v8917_v57  ;;  %v3438_v48 = vpop.f32.mrb[120].mxu0  ;;  %3773 = vrot.lane.b32.xlu0 %v8917_v57, %s6350_s14  ;;  %v8921_v15 = vpop.f32.mrb[121].mxu1  ;;  %4188 = vrot.lane.b32.xlu1 %v8911_v6, %s6350_s14 }
 0x48f   : > { %9551 = vst [vmem:[#allocation84_spill] sm:$0xff] %v8921_v15  ;;  %3937 = vst [vmem:[%s6870_s13 + $0xe0] sm:$0xff] %v3438_v48  ;;  %v3440_v47 = vpop.f32.mrb[121].mxu0 }
 0x490   : > { %4875 = vst [vmem:[%s6870_s13 + $0x1e0] sm:$0xff] %v3440_v47  ;;  %v3718_v4 = vpop.permute.xlu0 %3717 }
 0x491   : > { %v3813_v53 = vmul.f32 %v5952_v8, %v3718_v4  ;;  %v8930_v2 = vpop.f32.mrb[122].mxu1  ;;  %v4198_v4 = vmul.f32 %v5951_v0, %v8643_v36 }
 0x492   : > { %9552 = vst [vmem:[#allocation85_spill] sm:$0xff] %v8930_v2  ;;  %v3444_v57 = vpop.f32.mrb[122].mxu0  ;;  %4190 = vrot.lane.b32.xlu0 %v8921_v15, %s6350_s14  ;;  %v8934_v6 = vpop.f32.mrb[123].mxu1  ;;  %3775 = vrot.lane.b32.xlu1 %v8930_v2, %s6350_s14 }
 0x493   : > { %9553 = vst [vmem:[#allocation87_spill] sm:$0xff] %v8934_v6  ;;  %v3845_v48 = vadd.f32 %v3813_v53, %v3781_v54  ;;  %3938 = vst [vmem:[%s6870_s13 + $0xe8] sm:$0xff] %v3444_v57  ;;  %v3446_v47 = vpop.f32.mrb[123].mxu0 }
 0x494   : > { %4876 = vst [vmem:[%s6870_s13 + $0x1e8] sm:$0xff] %v3446_v47  ;;  %v4135_v3 = vpop.permute.xlu0 %4134  ;;  %v3720_v9 = vpop.permute.xlu1 %3719 }
 0x495   : > { %3877 = vst [vmem:[%s6868_s9] sm:$0xff] %v3845_v48  ;;  %v4230_v15 = vmul.f32 %v5952_v8, %v4135_v3  ;;  %v3814_v61 = vmul.f32 %v5954_v52, %v3720_v9  ;;  %v8945_v2 = vpop.f32.mrb[124].mxu1  ;;  %v4199_v8 = vmul.f32 %v5953_v33, %v8651_v27  ;;  %v5955_v48 = vld [vmem:[%s6855_s18 + $0x10] sm:$0xff] }
 0x496   : > { %9554 = vst [vmem:[#allocation86_spill] sm:$0xff] %v8945_v2  ;;  %v3450_v53 = vpop.f32.mrb[124].mxu0  ;;  %3777 = vrot.lane.b32.xlu0 %v8945_v2, %s6350_s14  ;;  %v8949_v57 = vpop.f32.mrb[125].mxu1  ;;  %4192 = vrot.lane.b32.xlu1 %v8934_v6, %s6350_s14  ;;  %v3783_v47 = vmul.f32 %v5955_v48, %v8657_v39  ;;  %v5956_v3 = vld [vmem:[%s6864_s5 + $0x10] sm:$0xff] }
 0x497   : > { %v4262_v36 = vadd.f32 %v4230_v15, %v4198_v4  ;;  %v3846_v34 = vadd.f32 %v3814_v61, %v3782_v40  ;;  %3939 = vst [vmem:[%s6870_s13 + $0xf0] sm:$0xff] %v3450_v53  ;;  %v3452_v0 = vpop.f32.mrb[125].mxu0  ;;  %v4200_v53 = vmul.f32 %v5955_v48, %v8661_v19  ;;  %v5959_v48 = vld [vmem:[%s6855_s18 + $0x20] sm:$0xff] }
 0x498   : > { %4877 = vst [vmem:[%s6870_s13 + $0x1f0] sm:$0xff] %v3452_v0  ;;  %v3722_v9 = vpop.permute.xlu0 %3721  ;;  %v4137_v54 = vpop.permute.xlu1 %4136 }
 0x499   : > { %4815 = vst [vmem:[%s6868_s9 + $0x100] sm:$0xff] %v4262_v36  ;;  %3878 = vst [vmem:[%s6868_s9 + $0x8] sm:$0xff] %v3846_v34  ;;  %v3815_v2 = vmul.f32 %v5956_v3, %v3722_v9  ;;  %v4231_v6 = vmul.f32 %v5954_v52, %v4137_v54  ;;  %v8961_v61 = vpop.f32.mrb[126].mxu1  ;;  %v5957_v36 = vld [vmem:[%s6855_s18 + $0x18] sm:$0xff] }
 0x49a   : > { %v3456_v40 = vpop.f32.mrb[126].mxu0  ;;  %4194 = vrot.lane.b32.xlu0 %v8949_v57, %s6350_s14  ;;  %v8965_v27 = vpop.f32.mrb[127].mxu1  ;;  %3779 = vrot.lane.b32.xlu1 %v8961_v61, %s6350_s14  ;;  %v3784_v34 = vmul.f32 %v5957_v36, %v8667_v14  ;;  %v5958_v9 = vld [vmem:[%s6864_s5 + $0x18] sm:$0xff]  ;;  %v4201_v19 = vmul.f32 %v5957_v36, %v8671_v60  ;;  %v3785_v14 = vmul.f32 %v5959_v48, %v8677_v25  ;;  %v5961_v60 = vld [vmem:[%s6855_s18 + $0x28] sm:$0xff] }
 0x49b   : > { %v3847_v39 = vadd.f32 %v3815_v2, %v3783_v47  ;;  %v4263_v33 = vadd.f32 %v4231_v6, %v4199_v8  ;;  %3940 = vst [vmem:[%s6870_s13 + $0xf8] sm:$0xff] %v3456_v40  ;;  %v3458_v15 = vpop.f32.mrb[127].mxu0  ;;  %v3786_v36 = vmul.f32 %v5961_v60, %v8687_v50  ;;  %v5964_v50 = vld [vmem:[%s6864_s5 + $0x30] sm:$0xff] }
 0x49c   : > { %4878 = vst [vmem:[%s6870_s13 + $0x1f8] sm:$0xff] %v3458_v15  ;;  %v4139_v52 = vpop.permute.xlu0 %4138  ;;  %v3724_v4 = vpop.permute.xlu1 %3723 }
 0x49d   : > { %3879 = vst [vmem:[%s6868_s9 + $0x10] sm:$0xff] %v3847_v39  ;;  %4816 = vst [vmem:[%s6868_s9 + $0x108] sm:$0xff] %v4263_v33  ;;  %v4232_v0 = vmul.f32 %v5956_v3, %v4139_v52  ;;  %v3816_v2 = vmul.f32 %v5958_v9, %v3724_v4  ;;  %v5960_v3 = vld [vmem:[%s6864_s5 + $0x20] sm:$0xff] }
 0x49e   : > { %4196 = vrot.lane.b32.xlu1 %v8965_v27, %s6350_s14 }
 0x49f   : > { %v4264_v6 = vadd.f32 %v4232_v0, %v4200_v53  ;;  %v3848_v54 = vadd.f32 %v3816_v2, %v3784_v34  ;;  %v4202_v53 = vmul.f32 %v5959_v48, %v8681_v37  ;;  %v5962_v34 = vld [vmem:[%s6864_s5 + $0x28] sm:$0xff]  ;;  %v5963_v37 = vld [vmem:[%s6855_s18 + $0x30] sm:$0xff] }
 0x4a0   : > { %v3726_v8 = vpop.permute.xlu0 %3725  ;;  %v4141_v47 = vpop.permute.xlu1 %4140 }
 0x4a1   : > { %4817 = vst [vmem:[%s6868_s9 + $0x110] sm:$0xff] %v4264_v6  ;;  %3880 = vst [vmem:[%s6868_s9 + $0x18] sm:$0xff] %v3848_v54  ;;  %v3817_v40 = vmul.f32 %v5960_v3, %v3726_v8  ;;  %v4233_v39 = vmul.f32 %v5958_v9, %v4141_v47  ;;  %v4203_v8 = vmul.f32 %v5961_v60, %v8691_v31  ;;  %v5965_v31 = vld [vmem:[%s6855_s18 + $0x38] sm:$0xff] }
 0x4a2   : > { %v3787_v47 = vmul.f32 %v5963_v37, %v8697_v21 }
 0x4a3   : > { %v3849_v33 = vadd.f32 %v3817_v40, %v3785_v14  ;;  %v4265_v15 = vadd.f32 %v4233_v39, %v4201_v19 }
 0x4a4   : > { %v4143_v52 = vpop.permute.xlu0 %4142  ;;  %v3728_v4 = vpop.permute.xlu1 %3727 }
 0x4a5   : > { %3881 = vst [vmem:[%s6868_s9 + $0x20] sm:$0xff] %v3849_v33  ;;  %4818 = vst [vmem:[%s6868_s9 + $0x118] sm:$0xff] %v4265_v15  ;;  %v4234_v25 = vmul.f32 %v5960_v3, %v4143_v52  ;;  %v3818_v0 = vmul.f32 %v5962_v34, %v3728_v4  ;;  %v4204_v33 = vmul.f32 %v5963_v37, %v8701_v1  ;;  %v5966_v52 = vld [vmem:[%s6864_s5 + $0x38] sm:$0xff]  ;;  %v5967_v1 = vld [vmem:[%s6855_s18 + $0x40] sm:$0xff] }
 0x4a6   : > { %v3788_v15 = vmul.f32 %v5965_v31, %v8707_v23  ;;  %v5968_v23 = vld [vmem:[%s6864_s5 + $0x40] sm:$0xff] }
 0x4a7   : > { %v4266_v2 = vadd.f32 %v4234_v25, %v4202_v53  ;;  %v3850_v9 = vadd.f32 %v3818_v0, %v3786_v36  ;;  %v3789_v0 = vmul.f32 %v5967_v1, %v8717_v11 }
 0x4a8   : > { %v3730_v6 = vpop.permute.xlu0 %3729  ;;  %v4145_v54 = vpop.permute.xlu1 %4144 }
 0x4a9   : > { %4819 = vst [vmem:[%s6868_s9 + $0x120] sm:$0xff] %v4266_v2  ;;  %3882 = vst [vmem:[%s6868_s9 + $0x28] sm:$0xff] %v3850_v9  ;;  %v3819_v19 = vmul.f32 %v5964_v50, %v3730_v6  ;;  %v4235_v48 = vmul.f32 %v5962_v34, %v4145_v54  ;;  %v4205_v34 = vmul.f32 %v5965_v31, %v8711_v63  ;;  %v5969_v63 = vld [vmem:[%s6855_s18 + $0x48] sm:$0xff] }
 0x4ab   : > { %v3851_v14 = vadd.f32 %v3819_v19, %v3787_v47  ;;  %v4267_v3 = vadd.f32 %v4235_v48, %v4203_v8  ;;  %v4206_v47 = vmul.f32 %v5967_v1, %v8721_v17  ;;  %v5970_v19 = vld [vmem:[%s6864_s5 + $0x48] sm:$0xff]  ;;  %v5971_v17 = vld [vmem:[%s6855_s18 + $0x50] sm:$0xff] }
 0x4ac   : > { %v4147_v40 = vpop.permute.xlu0 %4146  ;;  %v3732_v39 = vpop.permute.xlu1 %3731  ;;  %v3791_v31 = vmul.f32 %v5971_v17, %v8737_v44 }
 0x4ad   : > { %3883 = vst [vmem:[%s6868_s9 + $0x30] sm:$0xff] %v3851_v14  ;;  %4820 = vst [vmem:[%s6868_s9 + $0x128] sm:$0xff] %v4267_v3  ;;  %v4236_v21 = vmul.f32 %v5964_v50, %v4147_v40  ;;  %v3820_v4 = vmul.f32 %v5966_v52, %v3732_v39  ;;  %v3790_v50 = vmul.f32 %v5969_v63, %v8727_v26  ;;  %v5972_v26 = vld [vmem:[%s6864_s5 + $0x50] sm:$0xff] }
 0x4af   : > { %v4268_v53 = vadd.f32 %v4236_v21, %v4204_v33  ;;  %v3852_v60 = vadd.f32 %v3820_v4, %v3788_v15  ;;  %v4207_v33 = vmul.f32 %v5969_v63, %v8731_v51  ;;  %v5973_v51 = vld [vmem:[%s6855_s18 + $0x58] sm:$0xff] }
 0x4b0   : > { %v3734_v36 = vpop.permute.xlu0 %3733  ;;  %v4149_v25 = vpop.permute.xlu1 %4148 }
 0x4b1   : > { %4821 = vst [vmem:[%s6868_s9 + $0x130] sm:$0xff] %v4268_v53  ;;  %3884 = vst [vmem:[%s6868_s9 + $0x38] sm:$0xff] %v3852_v60  ;;  %v3821_v2 = vmul.f32 %v5968_v23, %v3734_v36  ;;  %v4237_v9 = vmul.f32 %v5966_v52, %v4149_v25  ;;  %v4208_v36 = vmul.f32 %v5971_v17, %v8741_v58  ;;  %v5975_v58 = vld [vmem:[%s6855_s18 + $0x60] sm:$0xff] }
 0x4b2   : > { %v3792_v25 = vmul.f32 %v5973_v51, %v8747_v43  ;;  %v5976_v43 = vld [vmem:[%s6864_s5 + $0x60] sm:$0xff] }
 0x4b3   : > { %v3853_v6 = vadd.f32 %v3821_v2, %v3789_v0  ;;  %v4269_v54 = vadd.f32 %v4237_v9, %v4205_v34  ;;  %v5974_v34 = vld [vmem:[%s6864_s5 + $0x58] sm:$0xff] }
 0x4b4   : > { %v4151_v8 = vpop.permute.xlu0 %4150  ;;  %v3736_v37 = vpop.permute.xlu1 %3735 }
 0x4b5   : > { %3885 = vst [vmem:[%s6868_s9 + $0x40] sm:$0xff] %v3853_v6  ;;  %4822 = vst [vmem:[%s6868_s9 + $0x138] sm:$0xff] %v4269_v54  ;;  %v4238_v11 = vmul.f32 %v5968_v23, %v4151_v8  ;;  %v3822_v48 = vmul.f32 %v5970_v19, %v3736_v37  ;;  %v4209_v6 = vmul.f32 %v5973_v51, %v8751_v29  ;;  %v5977_v29 = vld [vmem:[%s6855_s18 + $0x68] sm:$0xff] }
 0x4b6   : > { %v3793_v54 = vmul.f32 %v5975_v58, %v8757_v62 }
 0x4b7   : > { %v4270_v14 = vadd.f32 %v4238_v11, %v4206_v47  ;;  %v3854_v3 = vadd.f32 %v3822_v48, %v3790_v50  ;;  %v3794_v48 = vmul.f32 %v5977_v29, %v8767_v10  ;;  %v5980_v10 = vld [vmem:[%s6864_s5 + $0x70] sm:$0xff] }
 0x4b8   : > { %v3738_v40 = vpop.permute.xlu0 %3737  ;;  %v4153_v39 = vpop.permute.xlu1 %4152 }
 0x4b9   : > { %4823 = vst [vmem:[%s6868_s9 + $0x140] sm:$0xff] %v4270_v14  ;;  %3886 = vst [vmem:[%s6868_s9 + $0x48] sm:$0xff] %v3854_v3  ;;  %v3823_v15 = vmul.f32 %v5972_v26, %v3738_v40  ;;  %v4239_v21 = vmul.f32 %v5970_v19, %v4153_v39  ;;  %v4210_v19 = vmul.f32 %v5975_v58, %v8761_v55  ;;  %v5978_v14 = vld [vmem:[%s6864_s5 + $0x68] sm:$0xff]  ;;  %v5979_v55 = vld [vmem:[%s6855_s18 + $0x70] sm:$0xff] }
 0x4bb   : > { %v3855_v52 = vadd.f32 %v3823_v15, %v3791_v31  ;;  %v4271_v4 = vadd.f32 %v4239_v21, %v4207_v33  ;;  %v4211_v31 = vmul.f32 %v5977_v29, %v8771_v45  ;;  %v5981_v45 = vld [vmem:[%s6855_s18 + $0x78] sm:$0xff] }
 0x4bc   : > { %v4155_v53 = vpop.permute.xlu0 %4154  ;;  %v3740_v60 = vpop.permute.xlu1 %3739  ;;  %v3796_v51 = vmul.f32 %v5981_v45, %v8787_v32  ;;  %v5984_v32 = vld [vmem:[%s6864_s5 + $0x80] sm:$0xff] }
 0x4bd   : > { %3887 = vst [vmem:[%s6868_s9 + $0x50] sm:$0xff] %v3855_v52  ;;  %4824 = vst [vmem:[%s6868_s9 + $0x148] sm:$0xff] %v4271_v4  ;;  %v4240_v44 = vmul.f32 %v5972_v26, %v4155_v53  ;;  %v3824_v1 = vmul.f32 %v5974_v34, %v3740_v60  ;;  %v3795_v26 = vmul.f32 %v5979_v55, %v8777_v35 }
 0x4bf   : > { %v4272_v0 = vadd.f32 %v4240_v44, %v4208_v36  ;;  %v3856_v23 = vadd.f32 %v3824_v1, %v3792_v25  ;;  %v4212_v36 = vmul.f32 %v5979_v55, %v8781_v59  ;;  %v5982_v25 = vld [vmem:[%s6864_s5 + $0x78] sm:$0xff]  ;;  %v5983_v59 = vld [vmem:[%s6855_s18 + $0x80] sm:$0xff] }
 0x4c0   : > { %v3742_v2 = vpop.permute.xlu0 %3741  ;;  %v4157_v9 = vpop.permute.xlu1 %4156 }
 0x4c1   : > { %4825 = vst [vmem:[%s6868_s9 + $0x150] sm:$0xff] %v4272_v0  ;;  %3888 = vst [vmem:[%s6868_s9 + $0x58] sm:$0xff] %v3856_v23  ;;  %v3825_v8 = vmul.f32 %v5976_v43, %v3742_v2  ;;  %v4241_v37 = vmul.f32 %v5974_v34, %v4157_v9  ;;  %v4213_v2 = vmul.f32 %v5981_v45, %v8791_v16  ;;  %v5985_v16 = vld [vmem:[%s6855_s18 + $0x88] sm:$0xff] }
 0x4c2   : > { %v3797_v9 = vmul.f32 %v5983_v59, %v8797_v41 }
 0x4c3   : > { %v3857_v47 = vadd.f32 %v3825_v8, %v3793_v54  ;;  %v4273_v63 = vadd.f32 %v4241_v37, %v4209_v6 }
 0x4c4   : > { %v4159_v50 = vpop.permute.xlu0 %4158  ;;  %v3744_v11 = vpop.permute.xlu1 %3743 }
 0x4c5   : > { %3889 = vst [vmem:[%s6868_s9 + $0x60] sm:$0xff] %v3857_v47  ;;  %4826 = vst [vmem:[%s6868_s9 + $0x158] sm:$0xff] %v4273_v63  ;;  %v4242_v62 = vmul.f32 %v5976_v43, %v4159_v50  ;;  %v3826_v3 = vmul.f32 %v5978_v14, %v3744_v11  ;;  %v4214_v47 = vmul.f32 %v5983_v59, %v8801_v5  ;;  %v5986_v50 = vld [vmem:[%s6864_s5 + $0x88] sm:$0xff]  ;;  %v5987_v5 = vld [vmem:[%s6855_s18 + $0x90] sm:$0xff] }
 0x4c6   : > { %v3798_v63 = vmul.f32 %v5985_v16, %v8807_v46  ;;  %v5988_v46 = vld [vmem:[%s6864_s5 + $0x90] sm:$0xff] }
 0x4c7   : > { %v4274_v40 = vadd.f32 %v4242_v62, %v4210_v19  ;;  %v3858_v39 = vadd.f32 %v3826_v3, %v3794_v48  ;;  %v3799_v3 = vmul.f32 %v5987_v5, %v8817_v20 }
 0x4c8   : > { %v3746_v33 = vpop.permute.xlu0 %3745  ;;  %v4161_v17 = vpop.permute.xlu1 %4160 }
 0x4c9   : > { %4827 = vst [vmem:[%s6868_s9 + $0x160] sm:$0xff] %v4274_v40  ;;  %3890 = vst [vmem:[%s6868_s9 + $0x68] sm:$0xff] %v3858_v39  ;;  %v3827_v15 = vmul.f32 %v5980_v10, %v3746_v33  ;;  %v4243_v21 = vmul.f32 %v5978_v14, %v4161_v17  ;;  %v4215_v14 = vmul.f32 %v5985_v16, %v8811_v30  ;;  %v5989_v30 = vld [vmem:[%s6855_s18 + $0x98] sm:$0xff] }
 0x4cb   : > { %v3859_v52 = vadd.f32 %v3827_v15, %v3795_v26  ;;  %v4275_v4 = vadd.f32 %v4243_v21, %v4211_v31  ;;  %v4216_v26 = vmul.f32 %v5987_v5, %v8821_v49  ;;  %v5990_v15 = vld [vmem:[%s6864_s5 + $0x98] sm:$0xff]  ;;  %v5991_v49 = vld [vmem:[%s6855_s18 + $0xa0] sm:$0xff] }
 0x4cc   : > { %v4163_v53 = vpop.permute.xlu0 %4162  ;;  %v3748_v60 = vpop.permute.xlu1 %3747  ;;  %v3801_v45 = vmul.f32 %v5991_v49, %v8837_v42 }
 0x4cd   : > { %3891 = vst [vmem:[%s6868_s9 + $0x70] sm:$0xff] %v3859_v52  ;;  %4828 = vst [vmem:[%s6868_s9 + $0x168] sm:$0xff] %v4275_v4  ;;  %v4244_v35 = vmul.f32 %v5980_v10, %v4163_v53  ;;  %v3828_v44 = vmul.f32 %v5982_v25, %v3748_v60  ;;  %v3800_v10 = vmul.f32 %v5989_v30, %v8827_v24  ;;  %v5992_v24 = vld [vmem:[%s6864_s5 + $0xa0] sm:$0xff] }
 0x4cf   : > { %v4276_v34 = vadd.f32 %v4244_v35, %v4212_v36  ;;  %v3860_v1 = vadd.f32 %v3828_v44, %v3796_v51  ;;  %v4217_v36 = vmul.f32 %v5989_v30, %v8831_v22  ;;  %v5993_v22 = vld [vmem:[%s6855_s18 + $0xa8] sm:$0xff] }
 0x4d0   : > { %v3750_v0 = vpop.permute.xlu0 %3749  ;;  %v4165_v23 = vpop.permute.xlu1 %4164  ;;  %v9556_v30 = vld [vmem:[#allocation76_spill] sm:$0xff] }
 0x4d1   : > { %4829 = vst [vmem:[%s6868_s9 + $0x170] sm:$0xff] %v4276_v34  ;;  %3892 = vst [vmem:[%s6868_s9 + $0x78] sm:$0xff] %v3860_v1  ;;  %v3829_v6 = vmul.f32 %v5984_v32, %v3750_v0  ;;  %v4245_v58 = vmul.f32 %v5982_v25, %v4165_v23  ;;  %v4218_v0 = vmul.f32 %v5991_v49, %v8841_v38  ;;  %v5995_v38 = vld [vmem:[%s6855_s18 + $0xb0] sm:$0xff] }
 0x4d2   : > { %v3802_v23 = vmul.f32 %v5993_v22, %v8847_v13  ;;  %v5996_v13 = vld [vmem:[%s6864_s5 + $0xb0] sm:$0xff] }
 0x4d3   : > { %v3861_v54 = vadd.f32 %v3829_v6, %v3797_v9  ;;  %v4277_v43 = vadd.f32 %v4245_v58, %v4213_v2  ;;  %v5994_v2 = vld [vmem:[%s6864_s5 + $0xa8] sm:$0xff] }
 0x4d4   : > { %v4167_v8 = vpop.permute.xlu0 %4166  ;;  %v3752_v37 = vpop.permute.xlu1 %3751 }
 0x4d5   : > { %3893 = vst [vmem:[%s6868_s9 + $0x80] sm:$0xff] %v3861_v54  ;;  %4830 = vst [vmem:[%s6868_s9 + $0x178] sm:$0xff] %v4277_v43  ;;  %v4246_v41 = vmul.f32 %v5984_v32, %v4167_v8  ;;  %v3830_v11 = vmul.f32 %v5986_v50, %v3752_v37  ;;  %v4219_v54 = vmul.f32 %v5993_v22, %v8851_v7  ;;  %v5997_v7 = vld [vmem:[%s6855_s18 + $0xb8] sm:$0xff] }
 0x4d6   : > { %v3803_v43 = vmul.f32 %v5995_v38, %v8857_v56 }
 0x4d7   : > { %v4278_v19 = vadd.f32 %v4246_v41, %v4214_v47  ;;  %v3862_v29 = vadd.f32 %v3830_v11, %v3798_v63  ;;  %v3804_v11 = vmul.f32 %v5997_v7, %v8867_v18  ;;  %v6000_v18 = vld [vmem:[%s6864_s5 + $0xc0] sm:$0xff] }
 0x4d8   : > { %v3754_v48 = vpop.permute.xlu0 %3753  ;;  %v4169_v62 = vpop.permute.xlu1 %4168 }
 0x4d9   : > { %4831 = vst [vmem:[%s6868_s9 + $0x180] sm:$0xff] %v4278_v19  ;;  %3894 = vst [vmem:[%s6868_s9 + $0x88] sm:$0xff] %v3862_v29  ;;  %v3831_v40 = vmul.f32 %v5988_v46, %v3754_v48  ;;  %v4247_v39 = vmul.f32 %v5986_v50, %v4169_v62  ;;  %v4220_v50 = vmul.f32 %v5995_v38, %v8861_v12  ;;  %v5998_v19 = vld [vmem:[%s6864_s5 + $0xb8] sm:$0xff]  ;;  %v5999_v12 = vld [vmem:[%s6855_s18 + $0xc0] sm:$0xff] }
 0x4db   : > { %v3863_v33 = vadd.f32 %v3831_v40, %v3799_v3  ;;  %v4279_v17 = vadd.f32 %v4247_v39, %v4215_v14  ;;  %v4221_v3 = vmul.f32 %v5997_v7, %v8871_v28  ;;  %v6001_v28 = vld [vmem:[%s6855_s18 + $0xc8] sm:$0xff]  ;;  %v6008_v7 = vld [vmem:[%s6864_s5 + $0xe0] sm:$0xff] }
 0x4dc   : > { %v4171_v31 = vpop.permute.xlu0 %4170  ;;  %v3756_v55 = vpop.permute.xlu1 %3755 }
 0x4dd   : > { %3895 = vst [vmem:[%s6868_s9 + $0x90] sm:$0xff] %v3863_v33  ;;  %4832 = vst [vmem:[%s6868_s9 + $0x188] sm:$0xff] %v4279_v17  ;;  %v4248_v20 = vmul.f32 %v5988_v46, %v4171_v31  ;;  %v3832_v21 = vmul.f32 %v5990_v15, %v3756_v55  ;;  %v9555_v46 = vld [vmem:[#allocation75_spill] sm:$0xff] }
 0x4de   : > { %v3805_v40 = vmul.f32 %v5999_v12, %v9555_v46 }
 0x4df   : > { %v4280_v52 = vadd.f32 %v4248_v20, %v4216_v26  ;;  %v3864_v4 = vadd.f32 %v3832_v21, %v3800_v10  ;;  %v4222_v10 = vmul.f32 %v5999_v12, %v9556_v30  ;;  %v9557_v20 = vld [vmem:[#allocation77_spill] sm:$0xff] }
 0x4e0   : > { %v3758_v53 = vpop.permute.xlu0 %3757  ;;  %v4173_v60 = vpop.permute.xlu1 %4172  ;;  %v9565_v12 = vld [vmem:[#allocation85_spill] sm:$0xff] }
 0x4e1   : > { %4833 = vst [vmem:[%s6868_s9 + $0x190] sm:$0xff] %v4280_v52  ;;  %3896 = vst [vmem:[%s6868_s9 + $0x98] sm:$0xff] %v3864_v4  ;;  %v3833_v51 = vmul.f32 %v5992_v24, %v3758_v53  ;;  %v4249_v35 = vmul.f32 %v5990_v15, %v4173_v60  ;;  %v3806_v15 = vmul.f32 %v6001_v28, %v9557_v20  ;;  %v6002_v52 = vld [vmem:[%s6864_s5 + $0xc8] sm:$0xff] }
 0x4e3   : > { %v3865_v25 = vadd.f32 %v3833_v51, %v3801_v45  ;;  %v4281_v44 = vadd.f32 %v4249_v35, %v4217_v36  ;;  %v9558_v45 = vld [vmem:[#allocation79_spill] sm:$0xff]  ;;  %v6003_v51 = vld [vmem:[%s6855_s18 + $0xd0] sm:$0xff]  ;;  %v9559_v35 = vld [vmem:[#allocation78_spill] sm:$0xff] }
 0x4e4   : > { %v4175_v34 = vpop.permute.xlu0 %4174  ;;  %v3760_v1 = vpop.permute.xlu1 %3759 }
 0x4e5   : > { %3897 = vst [vmem:[%s6868_s9 + $0xa0] sm:$0xff] %v3865_v25  ;;  %4834 = vst [vmem:[%s6868_s9 + $0x198] sm:$0xff] %v4281_v44  ;;  %v4250_v42 = vmul.f32 %v5992_v24, %v4175_v34  ;;  %v3834_v59 = vmul.f32 %v5994_v2, %v3760_v1  ;;  %v4223_v24 = vmul.f32 %v6001_v28, %v9558_v45  ;;  %v6004_v44 = vld [vmem:[%s6864_s5 + $0xd0] sm:$0xff]  ;;  %v9567_v28 = vld [vmem:[#allocation86_spill] sm:$0xff] }
 0x4e6   : > { %v3807_v25 = vmul.f32 %v6003_v51, %v9559_v35  ;;  %v6013_v45 = vld [vmem:[%s6855_s18 + $0xf8] sm:$0xff] }
 0x4e7   : > { %v4282_v9 = vadd.f32 %v4250_v42, %v4218_v0  ;;  %v3866_v32 = vadd.f32 %v3834_v59, %v3802_v23  ;;  %v6014_v35 = vld [vmem:[%s6864_s5 + $0xf8] sm:$0xff] }
 0x4e8   : > { %v3762_v6 = vpop.permute.xlu0 %3761  ;;  %v4177_v58 = vpop.permute.xlu1 %4176 }
 0x4e9   : > { %4835 = vst [vmem:[%s6868_s9 + $0x1a0] sm:$0xff] %v4282_v9  ;;  %3898 = vst [vmem:[%s6868_s9 + $0xa8] sm:$0xff] %v3866_v32  ;;  %v3835_v8 = vmul.f32 %v5996_v13, %v3762_v6  ;;  %v4251_v37 = vmul.f32 %v5994_v2, %v4177_v58  ;;  %v9560_v2 = vld [vmem:[#allocation80_spill] sm:$0xff]  ;;  %v6005_v9 = vld [vmem:[%s6855_s18 + $0xd8] sm:$0xff] }
 0x4ea   : > { %v4224_v59 = vmul.f32 %v6003_v51, %v9560_v2  ;;  %v9561_v32 = vld [vmem:[#allocation81_spill] sm:$0xff] }
 0x4eb   : > { %v3867_v47 = vadd.f32 %v3835_v8, %v3803_v43  ;;  %v4283_v16 = vadd.f32 %v4251_v37, %v4219_v54  ;;  %v3808_v6 = vmul.f32 %v6005_v9, %v9561_v32  ;;  %v6006_v54 = vld [vmem:[%s6864_s5 + $0xd8] sm:$0xff] }
 0x4ec   : > { %v4179_v63 = vpop.permute.xlu0 %4178  ;;  %v3764_v41 = vpop.permute.xlu1 %3763 }
 0x4ed   : > { %3899 = vst [vmem:[%s6868_s9 + $0xb0] sm:$0xff] %v3867_v47  ;;  %4836 = vst [vmem:[%s6868_s9 + $0x1a8] sm:$0xff] %v4283_v16  ;;  %v4252_v56 = vmul.f32 %v5996_v13, %v4179_v63  ;;  %v3836_v29 = vmul.f32 %v5998_v19, %v3764_v41  ;;  %v9562_v47 = vld [vmem:[#allocation83_spill] sm:$0xff]  ;;  %v9563_v41 = vld [vmem:[#allocation82_spill] sm:$0xff] }
 0x4ee   : > { %v4225_v16 = vmul.f32 %v6005_v9, %v9562_v47  ;;  %v6007_v63 = vld [vmem:[%s6855_s18 + $0xe0] sm:$0xff] }
 0x4ef   : > { %v4284_v48 = vadd.f32 %v4252_v56, %v4220_v50  ;;  %v3868_v62 = vadd.f32 %v3836_v29, %v3804_v11  ;;  %v3809_v50 = vmul.f32 %v6007_v63, %v9563_v41 }
 0x4f0   : > { %v3766_v14 = vpop.permute.xlu0 %3765  ;;  %v4181_v5 = vpop.permute.xlu1 %4180 }
 0x4f1   : > { %4837 = vst [vmem:[%s6868_s9 + $0x1b0] sm:$0xff] %v4284_v48  ;;  %3900 = vst [vmem:[%s6868_s9 + $0xb8] sm:$0xff] %v3868_v62  ;;  %v3837_v39 = vmul.f32 %v6000_v18, %v3766_v14  ;;  %v4253_v33 = vmul.f32 %v5998_v19, %v4181_v5  ;;  %v9564_v14 = vld [vmem:[#allocation84_spill] sm:$0xff] }
 0x4f2   : > { %v4226_v5 = vmul.f32 %v6007_v63, %v9564_v14 }
 0x4f3   : > { %v3869_v17 = vadd.f32 %v3837_v39, %v3805_v40  ;;  %v4285_v31 = vadd.f32 %v4253_v33, %v4221_v3  ;;  %v6009_v3 = vld [vmem:[%s6855_s18 + $0xe8] sm:$0xff] }
 0x4f4   : > { %v4183_v55 = vpop.permute.xlu0 %4182  ;;  %v3768_v26 = vpop.permute.xlu1 %3767  ;;  %v3810_v46 = vmul.f32 %v6009_v3, %v9565_v12 }
 0x4f5   : > { %3901 = vst [vmem:[%s6868_s9 + $0xc0] sm:$0xff] %v3869_v17  ;;  %4838 = vst [vmem:[%s6868_s9 + $0x1b8] sm:$0xff] %v4285_v31  ;;  %v4254_v21 = vmul.f32 %v6000_v18, %v4183_v55  ;;  %v3838_v4 = vmul.f32 %v6002_v52, %v3768_v26  ;;  %v6010_v18 = vld [vmem:[%s6864_s5 + $0xe8] sm:$0xff]  ;;  %v9566_v26 = vld [vmem:[#allocation87_spill] sm:$0xff] }
 0x4f6   : > { %v4227_v30 = vmul.f32 %v6009_v3, %v9566_v26 }
 0x4f7   : > { %v4286_v53 = vadd.f32 %v4254_v21, %v4222_v10  ;;  %v3870_v60 = vadd.f32 %v3838_v4, %v3806_v15  ;;  %v6011_v10 = vld [vmem:[%s6855_s18 + $0xf0] sm:$0xff] }
 0x4f8   : > { %v3770_v36 = vpop.permute.xlu0 %3769  ;;  %v4185_v49 = vpop.permute.xlu1 %4184  ;;  %v3811_v20 = vmul.f32 %v6011_v10, %v9567_v28  ;;  %v6012_v15 = vld [vmem:[%s6864_s5 + $0xf0] sm:$0xff] }
 0x4f9   : > { %4839 = vst [vmem:[%s6868_s9 + $0x1c0] sm:$0xff] %v4286_v53  ;;  %3902 = vst [vmem:[%s6868_s9 + $0xc8] sm:$0xff] %v3870_v60  ;;  %v3839_v34 = vmul.f32 %v6004_v44, %v3770_v36  ;;  %v4255_v1 = vmul.f32 %v6002_v52, %v4185_v49  ;;  %v4228_v49 = vmul.f32 %v6011_v10, %v8949_v57 }
 0x4fb   : > { %v3871_v0 = vadd.f32 %v3839_v34, %v3807_v25  ;;  %v4287_v22 = vadd.f32 %v4255_v1, %v4223_v24  ;;  %v3812_v24 = vmul.f32 %v6013_v45, %v8961_v61 }
 0x4fc   : > { %v4187_v23 = vpop.permute.xlu0 %4186  ;;  %v3772_v42 = vpop.permute.xlu1 %3771 }
 0x4fd   : > { %3903 = vst [vmem:[%s6868_s9 + $0xd0] sm:$0xff] %v3871_v0  ;;  %4840 = vst [vmem:[%s6868_s9 + $0x1c8] sm:$0xff] %v4287_v22  ;;  %v4256_v58 = vmul.f32 %v6004_v44, %v4187_v23  ;;  %v3840_v38 = vmul.f32 %v6006_v54, %v3772_v42  ;;  %v4229_v0 = vmul.f32 %v6013_v45, %v8965_v27 }
 0x4ff   : > { %v4288_v43 = vadd.f32 %v4256_v58, %v4224_v59  ;;  %v3872_v13 = vadd.f32 %v3840_v38, %v3808_v6 }
 0x500   : > { %v3774_v8 = vpop.permute.xlu0 %3773  ;;  %v4189_v37 = vpop.permute.xlu1 %4188 }
 0x501   : > { %4841 = vst [vmem:[%s6868_s9 + $0x1d0] sm:$0xff] %v4288_v43  ;;  %3904 = vst [vmem:[%s6868_s9 + $0xd8] sm:$0xff] %v3872_v13  ;;  %v3841_v11 = vmul.f32 %v6008_v7, %v3774_v8  ;;  %v4257_v56 = vmul.f32 %v6006_v54, %v4189_v37 }
 0x503   : > { %v3873_v19 = vadd.f32 %v3841_v11, %v3809_v50  ;;  %v4289_v29 = vadd.f32 %v4257_v56, %v4225_v16 }
 0x504   : > { %v4191_v48 = vpop.permute.xlu0 %4190  ;;  %v3776_v62 = vpop.permute.xlu1 %3775 }
 0x505   : > { %3905 = vst [vmem:[%s6868_s9 + $0xe0] sm:$0xff] %v3873_v19  ;;  %4842 = vst [vmem:[%s6868_s9 + $0x1d8] sm:$0xff] %v4289_v29  ;;  %v4258_v40 = vmul.f32 %v6008_v7, %v4191_v48  ;;  %v3842_v39 = vmul.f32 %v6010_v18, %v3776_v62 }
 0x507   : > { %v4290_v33 = vadd.f32 %v4258_v40, %v4226_v5  ;;  %v3874_v17 = vadd.f32 %v3842_v39, %v3810_v46 }
 0x508   : > { %v3778_v31 = vpop.permute.xlu0 %3777  ;;  %v4193_v55 = vpop.permute.xlu1 %4192 }
 0x509   : > { %4843 = vst [vmem:[%s6868_s9 + $0x1e0] sm:$0xff] %v4290_v33  ;;  %3906 = vst [vmem:[%s6868_s9 + $0xe8] sm:$0xff] %v3874_v17  ;;  %v3843_v21 = vmul.f32 %v6012_v15, %v3778_v31  ;;  %v4259_v52 = vmul.f32 %v6010_v18, %v4193_v55 }
 0x50b   : > { %v3875_v4 = vadd.f32 %v3843_v21, %v3811_v20  ;;  %v4291_v53 = vadd.f32 %v4259_v52, %v4227_v30 }
 0x50c   : > { %v4195_v60 = vpop.permute.xlu0 %4194  ;;  %v3780_v36 = vpop.permute.xlu1 %3779 }
 0x50d   : > { %3907 = vst [vmem:[%s6868_s9 + $0xf0] sm:$0xff] %v3875_v4  ;;  %4844 = vst [vmem:[%s6868_s9 + $0x1e8] sm:$0xff] %v4291_v53  ;;  %v4260_v51 = vmul.f32 %v6012_v15, %v4195_v60  ;;  %v3844_v25 = vmul.f32 %v6014_v35, %v3780_v36 }
 0x50f   : > { %v4292_v44 = vadd.f32 %v4260_v51, %v4228_v49  ;;  %v3876_v34 = vadd.f32 %v3844_v25, %v3812_v24 }
 0x510   : > { %v4197_v1 = vpop.permute.xlu1 %4196 }
 0x511   : > { %4845 = vst [vmem:[%s6868_s9 + $0x1f0] sm:$0xff] %v4292_v44  ;;  %3908 = vst [vmem:[%s6868_s9 + $0xf8] sm:$0xff] %v3876_v34  ;;  %v4261_v22 = vmul.f32 %v6014_v35, %v4197_v1 }
 0x513   : > { %v4293_v57 = vadd.f32 %v4261_v22, %v4229_v0 }
 0x515   : > { %4846 = vst [vmem:[%s6868_s9 + $0x1f8] sm:$0xff] %v4293_v57 }
 0x516   : > { %s9569_s12 = sld [smem:[#allocation32_spill]]  ;;  %s9570_s24 = sld [smem:[#allocation31_spill]] }
 0x517   : > { %s9571_s0 = sld [smem:[#allocation33_spill]]  ;;  %s4405_s5 = sshll.u32 %s6866_s7, 4  ;;  %s4406_s5 = int_to_ptr.vmem [resolvable:$true] %s4405_s5 }
 0x518   : > { %s9572_s23 = sld [smem:[#allocation96_spill]]  ;;  %s6351_s25 = smov 4096  }
 0x519   : > { %p9573_p5 = scmp.ne.s32.totalorder %s9426_s30, 0  ;;  %s6355_s7 = smov 8  }
 0x51b   : > { %5496 = sst [smem:[#allocation16]] (%p9573_p5), %s6351_s25 }
 0x51c   : > { %s4883_s2 = sshll.u32 %s9569_s12, 5  ;;  %s4902_s15 = sshll.u32 %s9570_s24, 8 }
 0x51d   : > { %s4384_s18 = sadd.s32 %s4902_s15, %s4883_s2  ;;  %s4885_s6 = sshll.u32 %s9571_s0, 9 }
 0x51e   : > { %s4386_s3 = sadd.s32 %s4885_s6, %s4384_s18  ;;  %s6352_s12 = smov 16384  }
 0x51f   : > { %s9161_s22 = sshll.u32 %s4386_s3, 7  ;;  %5497 = sst [smem:[#allocation16 + $0x1]] (%p9573_p5), %s6352_s12 }
 0x520   : > { %s4388_s14 = scalar_lea.hbm %s9572_s23, %s9161_s22  ;;  %s6353_s24 = smov 32  }
 0x521   : > { %5498 = sst [smem:[#allocation16 + $0x2]] (%p9573_p5), %s6353_s24  ;;  %s6354_s0 = smov 128  }
 0x522   : > { %5499 = sst [smem:[#allocation16 + $0x3]] (%p9573_p5), %s6354_s0  ;;  %s6356_s2 = smov [#allocation15]  }
 0x523   : > { %5500 = sst [smem:[#allocation16 + $0x4]] (%p9573_p5), %s6354_s0  ;;  %s6357_s15 = smov 0  }
 0x524   : > { %5501 = sst [smem:[#allocation16 + $0x5]] (%p9573_p5), %s6355_s7 }
 0x525   : > { %5502 = dma.general (%p9573_p5), %s4406_s5, 8192, %s4388_s14, %s4361_s17, %s6356_s2, [#allocation16], %s6357_s15, 0  }
 0x526   : > { %s9574_s3 = sld [smem:[#allocation97_spill]]  ;;  %s4455_s21 = sshll.u32 %s6868_s9, 4  ;;  %s4456_s21 = int_to_ptr.vmem [resolvable:$true] %s4455_s21 }
 0x527   : > { %s6358_s23 = smov 4096   ;;  %s6359_s17 = smov 16384  }
 0x528   : > { %5503 = sst [smem:[#allocation18]] (%p9573_p5), %s6358_s23  ;;  %s6360_s5 = smov 32  }
 0x529   : > { %5504 = sst [smem:[#allocation18 + $0x1]] (%p9573_p5), %s6359_s17  ;;  %s6361_s14 = smov 128  }
 0x52a   : > { %5505 = sst [smem:[#allocation18 + $0x2]] (%p9573_p5), %s6360_s5  ;;  %s6362_s25 = smov 8  }
 0x52b   : > { %5506 = sst [smem:[#allocation18 + $0x3]] (%p9573_p5), %s6361_s14  ;;  %s6363_s12 = smov [#allocation17]  }
 0x52c   : > { %s4438_s4 = scalar_lea.hbm %s9574_s3, %s9161_s22  ;;  %5507 = sst [smem:[#allocation18 + $0x4]] (%p9573_p5), %s6361_s14 }
 0x52d   : > { %5508 = sst [smem:[#allocation18 + $0x5]] (%p9573_p5), %s6362_s25  ;;  %s6364_s9 = smov 0  }
 0x52e   : > { %5509 = dma.general (%p9573_p5), %s4456_s21, 8192, %s4438_s4, %s9155_s16, %s6363_s12, [#allocation18], %s6364_s9, 0  }
 0x52f   : > { %s9575_s7 = sld [smem:[#allocation98_spill]]  ;;  %s4505_s15 = sshll.u32 %s6870_s13, 4  ;;  %s4506_s15 = int_to_ptr.vmem [resolvable:$true] %s4505_s15 }
 0x530   : > { %s6365_s18 = smov 4096   ;;  %s6366_s6 = smov 16384  }
 0x531   : > { %5510 = sst [smem:[#allocation20]] (%p9573_p5), %s6365_s18  ;;  %s6367_s3 = smov 32  }
 0x532   : > { %5511 = sst [smem:[#allocation20 + $0x1]] (%p9573_p5), %s6366_s6  ;;  %s6368_s4 = smov 128  }
 0x533   : > { %5512 = sst [smem:[#allocation20 + $0x2]] (%p9573_p5), %s6367_s3  ;;  %s6369_s21 = smov 8  }
 0x534   : > { %5513 = sst [smem:[#allocation20 + $0x3]] (%p9573_p5), %s6368_s4  ;;  %s6371_s13 = smov 0  }
 0x535   : > { %s4488_s2 = scalar_lea.hbm %s9575_s7, %s9161_s22  ;;  %5514 = sst [smem:[#allocation20 + $0x4]] (%p9573_p5), %s6368_s4 }
 0x536   : > { %5515 = sst [smem:[#allocation20 + $0x5]] (%p9573_p5), %s6369_s21  ;;  %s6370_s22 = smov [#allocation19]  }
 0x537   : > { %5516 = dma.general (%p9573_p5), %s4506_s15, 8192, %s4488_s2, %s9155_s16, %s6370_s22, [#allocation20], %s6371_s13, 0  }
 0x538 PF: > { %s9576_s23 = sld [smem:[#allocation27_spill]]  ;;  %p5550_p3 = scmp.ge.s32.totalorder %s6337_s19, 2 }
 0x539   : > { %p9577_p10 = scmp.ne.s32.totalorder %s9427_s10, 0 }
 0x53b   : > { %p5538_p2 = pnand %p5550_p3, %p9577_p10 }
 0x53e   : > { %s4533_s17 = sand.u32 1, %s9576_s23  }
 0x53f   : > { %s4534_s5 = scalar_lea.sflag [#allocation5], %s4533_s17 }
 0x540   : > { %6256 = dma.done.wait (!%p5538_p2), %s4534_s5, 8192  }
 0x541   : > { %6258 = vsyncadd (!%p5538_p2), %s4534_s5, 4294959104  ;;  %s9578_s14 = sadd.s32 4294967294, %s6337_s19  }
 0x542   : > { %s4542_s25 = sand.u32 1, %s9578_s14  }
 0x543   : > { %s4543_s12 = scalar_lea.sflag [#allocation13], %s4542_s25 }
 0x544   : > { %6260 = dma.done.wait (!%p5538_p2), %s4543_s12, 16384  }
 0x545   : > { %6262 = vsyncadd (!%p5538_p2), %s4543_s12, 4294950912  ;;  %s28_s19 = sadd.s32 1, %s6337_s19   ;;  %s9580_s24 = sld [smem:[#allocation28_spill]] }
 0x546   : > { %p9228_p12 = scmp.ge.s32.totalorder %s28_s19, 18   ;;  %s9581_s10 = sld [smem:[#allocation29_spill]] }
 0x547   : > { %s9582_s9 = sld [smem:[#allocation39_spill]]  ;;  %s9583_s16 = sld [smem:[#allocation30_spill]] }
 0x548   : > { %s9584_s12 = sld [smem:[#allocation41_spill]]  ;;  %s9585_s13 = sld [smem:[#allocation34_spill]] }
 0x549   : > { %s9586_s14 = sld [smem:[#allocation35_spill]]  ;;  %s9587_s15 = sld [smem:[#allocation36_spill]] }
 0x54a   : > { %s9588_s0 = sld [smem:[#allocation37_spill]]  ;;  %s9589_s17 = sld [smem:[#allocation38_spill]] }
 0x54b   : > { %s9590_s25 = smov %s6273_s26  ;;  %s9591_s18 = sld [smem:[#allocation40_spill]] }
 0x54c   : > { %s9592_s26 = smov %s6740_s27  ;;  %s9593_s27 = smov %s6281_s28 }
 0x54d   : > { %s9595_s28 = smov %s6285_s29  ;;  %s9596_s29 = smov %s6654_s20 }
 0x54e   : > { %s9597_s30 = smov %s6293_s8  ;;  %s9598_s8 = smov %s9581_s10 }
 0x54f   : > { %s9599_s10 = smov %s6305_s11  ;;  %s9600_s11 = smov %s9583_s16 }
 0x550   : > { %s9601_s16 = smov %s9588_s0  ;;  %27 = sbr.rel (!%p9228_p12) target bundleno = 25 (0x19), region = 176 }
 0x557   :  { %4557 = vsyncpa [#allocation4], 1 }
 0x558   :  { %4559 = vsyncpa [#allocation4 + $0x1], 1 }
 0x559   :  { %4560 = vsyncpa [#allocation7], 1 }
 0x55a   :  { %4561 = vsyncpa [#allocation5], 1 }
 0x55b   :  { %4563 = vsyncpa [#allocation5 + $0x1], 1 }
 0x55c   :  { %4564 = vsyncpa [#allocation13], 1 }
 0x55d   :  { %4566 = vsyncpa [#allocation13 + $0x1], 1 }

</bundles_post_ra>
